<compile_context>
chip_gen: v7x
topology: tpu7x:2x2x1
jax: 0.10.0
libtpu: 0.0.40
codegen_flags: <defaults>
</compile_context>

<pallas_src>
import functools

import jax
import jax.numpy as jnp
import numpy as np
from jax import lax
from jax.experimental import pallas as pl
from jax.experimental.pallas import tpu as pltpu

NUM_CLASSES = 10


def _round_up(x, m):
    return ((x + m - 1) // m) * m


def _batch_block(batch):
    """Per-grid-step batch block: keep grid length >= 2 (v7x megacore) while
    amortizing per-step overhead at larger batch sizes."""
    for cand in (8, 4, 2, 1):
        if cand <= batch and (batch + cand - 1) // cand >= 2:
            return cand
    return 1


# ---------------- fused Conv2d(5x5, pad=2) + bias + MaxPool2d(2) kernel ----------------
def conv_pool_kernel(x_ref, w_ref, b_ref, o_ref, patch_ref, *,
                     n_valid, n_pad, wh, cinp, bb):
    """One batch block of fused conv + bias + 2x2 max-pool.

    x_ref:     (bb, 4, cinp, lin)  bf16  phase-split, zero-padded input planes
    w_ref:     (Cout, 25*cinp)     bf16  tap-major weight matrix (VMEM resident)
    b_ref:     (Cout, 1)           f32   bias (VMEM resident)
    o_ref:     (bb, Cout, n_pad)   bf16  pooled output, padded-row layout
    patch_ref: (25*cinp, 4*n_pad)  bf16  VMEM scratch: im2col patches, 4 quadrants
    """
    w = w_ref[...]
    bias = b_ref[...]

    # Deterministically zero the never-written tail columns of the patch scratch
    # (they only feed output columns that are discarded outside the kernel).
    if n_valid < n_pad:
        kdim = patch_ref.shape[0]
        for qd in range(4):
            patch_ref[:, qd * n_pad + n_valid:(qd + 1) * n_pad] = jnp.zeros(
                (kdim, n_pad - n_valid), patch_ref.dtype)

    def one_sample(b):
        xb = x_ref[b]                                   # (4, cinp, lin) in VMEM/vregs
        # In-VMEM im2col: for each pool quadrant (dh, dw) and each of the 25 taps
        # (kh, kw) the required input window is a *static* contiguous slice of one
        # phase plane, shifted by sh*wh + sw.
        for qd in range(4):
            dh, dw = qd // 2, qd % 2
            for t in range(25):
                kh, kw = t // 5, t % 5
                p = ((dh + kh) % 2) * 2 + ((dw + kw) % 2)
                shift = ((dh + kh) // 2) * wh + ((dw + kw) // 2)
                patch_ref[t * cinp:(t + 1) * cinp,
                          qd * n_pad:qd * n_pad + n_valid] = (
                              xb[p, :, shift:shift + n_valid])
        # One big-K MXU matmul for all 4 quadrants, then the fused 2x2 max-pool is
        # a max over the 4 lane-aligned column groups; bias added once at the end.
        r = jnp.dot(w, patch_ref[...], preferred_element_type=jnp.float32)
        s = jnp.maximum(
            jnp.maximum(r[:, 0 * n_pad:1 * n_pad], r[:, 1 * n_pad:2 * n_pad]),
            jnp.maximum(r[:, 2 * n_pad:3 * n_pad], r[:, 3 * n_pad:4 * n_pad]))
        o_ref[b] = (s + bias).astype(o_ref.dtype)

    if bb == 1:
        one_sample(0)          # fully static indexing for the common small-batch path
    else:
        def body(b, carry):
            one_sample(b)
            return carry
        lax.fori_loop(0, bb, body, 0)


def _prep_conv_input(x, cinp, lin):
    """(B, Cin, H, W) -> (B, 4, cinp, lin) bf16 phase-split padded planes.

    Phase p = 2*ph + pw holds x_padded[:, :, ph::2, pw::2] flattened over (Hh, Wh);
    channels are zero-padded to `cinp`, the flat axis is zero-padded to `lin`.
    Raw-activation-sized traffic only (no 25x im2col replication)."""
    B, Cin, H, W = x.shape
    Hh, Wh = (H + 4) // 2, (W + 4) // 2
    xp = jnp.pad(x, ((0, 0), (0, cinp - Cin), (2, 2), (2, 2)))
    xq = xp.reshape(B, cinp, Hh, 2, Wh, 2).transpose(0, 3, 5, 1, 2, 4)
    xq = xq.reshape(B, 4, cinp, Hh * Wh)
    xq = jnp.pad(xq, ((0, 0), (0, 0), (0, 0), (0, lin - Hh * Wh)))
    return xq.astype(jnp.bfloat16)


def conv5x5_pool2(x, wk, bias, *, cinp):
    """x: (B, Cin, H, W).  wk: (Cout, 25*cinp) bf16, K ordered (kh, kw, ci) with ci
    zero-padded to cinp.  bias: (Cout, 1) f32.  Returns (B, Cout, H//2, W//2) bf16."""
    B, Cin, H, W = x.shape
    Cout, K = wk.shape
    assert K == 25 * cinp and H % 2 == 0 and W % 2 == 0
    Ho, Wo = H // 2, W // 2
    Hh, Wh = (H + 4) // 2, (W + 4) // 2
    n_valid = Ho * Wh                      # valid output rows, padded-width layout
    n_pad = _round_up(n_valid, 128)        # lane-dense kernel output width
    lin = Hh * Wh + 8                      # +2 needed for the max tap shift; margin 8

    bb = _batch_block(B)
    Bp = _round_up(B, bb)
    if Bp != B:
        x = jnp.pad(x, ((0, Bp - B), (0, 0), (0, 0), (0, 0)))
    xq = _prep_conv_input(x, cinp, lin)    # (Bp, 4, cinp, lin) bf16

    kernel = functools.partial(conv_pool_kernel, n_valid=n_valid, n_pad=n_pad,
                               wh=Wh, cinp=cinp, bb=bb)
    out = pl.pallas_call(
        kernel,
        out_shape=jax.ShapeDtypeStruct((Bp, Cout, n_pad), jnp.bfloat16),
        grid_spec=pltpu.PrefetchScalarGridSpec(
            num_scalar_prefetch=0,
            grid=(Bp // bb,),
            in_specs=[
                pl.BlockSpec((bb, 4, cinp, lin), lambda i: (i, 0, 0, 0)),
                pl.BlockSpec((Cout, K), lambda i: (0, 0)),      # weights, resident
                pl.BlockSpec((Cout, 1), lambda i: (0, 0)),      # bias, resident
            ],
            out_specs=pl.BlockSpec((bb, Cout, n_pad), lambda i: (i, 0, 0)),
            scratch_shapes=[pltpu.VMEM((K, 4 * n_pad), jnp.bfloat16)],
        ),
        compiler_params=pltpu.CompilerParams(
            dimension_semantics=("parallel",),
            vmem_limit_bytes=32 * 1024 * 1024,
        ),
    )(xq, wk, bias)

    # Extract the valid pooled activation (padded-width rows -> compact (Ho, Wo)).
    y = out[:B, :, :n_valid].reshape(B, Cout, Ho, Wh)[:, :, :, :Wo]
    return y


# ------------------- fused Linear(1024,64) . Linear(64,10) kernel -------------------
def fc_kernel(x_ref, w_ref, b_ref, o_ref):
    o_ref[...] = (jnp.dot(x_ref[...], w_ref[...],
                          preferred_element_type=jnp.float32) + b_ref[...])


def fc_fused(feats, w_pad, b_pad):
    B, D = feats.shape
    Dout = w_pad.shape[1]
    bT = B if B <= 128 else 128
    Bp = _round_up(B, bT)
    if Bp != B:
        feats = jnp.pad(feats, ((0, Bp - B), (0, 0)))
    out = pl.pallas_call(
        fc_kernel,
        out_shape=jax.ShapeDtypeStruct((Bp, Dout), jnp.float32),
        grid_spec=pltpu.PrefetchScalarGridSpec(
            num_scalar_prefetch=0,
            grid=(Bp // bT,),
            in_specs=[pl.BlockSpec((bT, D), lambda i: (i, 0)),
                      pl.BlockSpec((D, Dout), lambda i: (0, 0)),   # weight resident
                      pl.BlockSpec((1, Dout), lambda i: (0, 0))],  # bias resident
            out_specs=pl.BlockSpec((bT, Dout), lambda i: (i, 0)),
        ),
        compiler_params=pltpu.CompilerParams(
            dimension_semantics=("parallel",),
            vmem_limit_bytes=32 * 1024 * 1024,
        ),
    )(feats, w_pad, b_pad)
    return out[:B]


# -------------------------------------- model --------------------------------------
CIN_PAD = {3: 16, 32: 32}   # pad Cin so patch row blocks stay bf16-sublane aligned


def init_params(key):
    def uni(k, shape, fan_in):
        bound = 1.0 / np.sqrt(fan_in)
        return jax.random.uniform(k, shape, jnp.float32, -bound, bound)
    ks = jax.random.split(key, 10)
    return dict(
        w1=uni(ks[0], (32, 3, 5, 5), 3 * 25),   b1=uni(ks[1], (32,), 3 * 25),
        w2=uni(ks[2], (32, 32, 5, 5), 32 * 25), b2=uni(ks[3], (32,), 32 * 25),
        w3=uni(ks[4], (64, 32, 5, 5), 32 * 25), b3=uni(ks[5], (64,), 32 * 25),
        fc1_w=uni(ks[6], (64, 1024), 1024),     fc1_b=uni(ks[7], (64,), 1024),
        fc2_w=uni(ks[8], (10, 64), 64),         fc2_b=uni(ks[9], (10,), 64),
    )


def prepare_params(p):
    """One-time repack: conv weights -> bf16 (Cout, 25*cinp) with K order (kh,kw,ci)
    (ci zero-padded); fc1+fc2 folded into one (1024, 10) affine map (exact), padded
    to 128 output lanes and cast to bf16."""
    def conv_w(w):
        Cout, Cin = w.shape[0], w.shape[1]
        cinp = CIN_PAD[Cin]
        wpad = jnp.pad(w, ((0, 0), (0, cinp - Cin), (0, 0), (0, 0)))
        return wpad.transpose(0, 2, 3, 1).reshape(Cout, 25 * cinp).astype(jnp.bfloat16)
    wf = p['fc1_w'].T @ p['fc2_w'].T                     # (1024, 10), folded in f32
    bf = p['fc1_b'] @ p['fc2_w'].T + p['fc2_b']          # (10,)
    pad = (-wf.shape[1]) % 128
    return dict(
        w1=conv_w(p['w1']), b1=p['b1'].reshape(-1, 1),
        w2=conv_w(p['w2']), b2=p['b2'].reshape(-1, 1),
        w3=conv_w(p['w3']), b3=p['b3'].reshape(-1, 1),
        fc_w=jnp.pad(wf, ((0, 0), (0, pad))).astype(jnp.bfloat16),  # (1024, 128)
        fc_b=jnp.pad(bf, (0, pad)).reshape(1, -1),                  # (1, 128) f32
    )


def forward(prep, x_nchw):
    x = conv5x5_pool2(x_nchw, prep['w1'], prep['b1'], cinp=CIN_PAD[3])   # (B,32,16,16)
    x = conv5x5_pool2(x, prep['w2'], prep['b2'], cinp=CIN_PAD[32])       # (B,32, 8, 8)
    x = conv5x5_pool2(x, prep['w3'], prep['b3'], cinp=CIN_PAD[32])       # (B,64, 4, 4)
    B = x.shape[0]
    feats = x.reshape(B, -1).astype(jnp.bfloat16)        # PyTorch flatten order (c,h,w)
    logits = fc_fused(feats, prep['fc_w'], prep['fc_b'])
    return logits[:, :NUM_CLASSES]


def forward_ref(params, x):
    dn = ('NCHW', 'OIHW', 'NCHW')
    def conv(x, w, b):
        y = jax.lax.conv_general_dilated(x, w, (1, 1), ((2, 2), (2, 2)),
                                         dimension_numbers=dn)
        return y + b.reshape(1, -1, 1, 1)
    def pool(x):
        return jax.lax.reduce_window(x, -jnp.inf, jax.lax.max,
                                     (1, 1, 2, 2), (1, 1, 2, 2), 'VALID')
    x = pool(conv(x, params['w1'], params['b1']))
    x = pool(conv(x, params['w2'], params['b2']))
    x = pool(conv(x, params['w3'], params['b3']))
    x = x.reshape(x.shape[0], -1)
    x = x @ params['fc1_w'].T + params['fc1_b']
    return x @ params['fc2_w'].T + params['fc2_b']


if __name__ == "__main__":
    key = jax.random.PRNGKey(0)
    pkey, xkey = jax.random.split(key)
    params = init_params(pkey)
    # Linear(1024, 64) implies a 32x32 spatial input (64 * 4 * 4 = 1024).
    x = jax.random.normal(xkey, (2, 3, 32, 32), jnp.float32)

    prep = prepare_params(params)
    out = jax.block_until_ready(jax.jit(forward)(prep, x))
    assert out.shape == (2, NUM_CLASSES) and out.dtype == jnp.float32

    ref = forward_ref(params, x)
    # bf16 operands with f32 accumulation -> slightly looser tolerance than pure f32.
    np.testing.assert_allclose(np.asarray(out), np.asarray(ref), rtol=5e-2, atol=2e-2)
    print("KERNEL_OK")
</pallas_src>

<mosaic_0001>
module attributes {stable_mosaic.version = 11 : i64} {
  func.func @conv_pool_kernel(%arg0: i32, %arg1: memref<1x4x16x332xbf16, #tpu.memory_space<vmem>>, %arg2: memref<32x400xbf16, #tpu.memory_space<vmem>>, %arg3: memref<32x1xf32, #tpu.memory_space<vmem>>, %arg4: memref<1x32x384xbf16, #tpu.memory_space<vmem>>, %arg5: memref<400x1536xbf16, #tpu.memory_space<vmem>>) attributes {dimension_semantics = [#tpu.dimension_semantics<parallel>], iteration_bounds = array<i64: 2>, scalar_prefetch = 0 : i64, scratch_operands = 1 : i64, tpu.core_type = #tpu.core_type<tc>, window_params = [{transform_indices = @transform_0, window_bounds = array<i64: 1, 4, 16, 332>}, {pipeline_mode = #tpu.pipeline_mode<synchronous>, transform_indices = @transform_1, window_bounds = array<i64: 32, 400>}, {pipeline_mode = #tpu.pipeline_mode<synchronous>, transform_indices = @transform_2, window_bounds = array<i64: 32, 1>}, {transform_indices = @transform_3, window_bounds = array<i64: 1, 32, 384>}]} {
    %c0 = arith.constant 0 : index
    %c0_0 = arith.constant 0 : index
    %0 = vector.load %arg2[%c0, %c0_0] : memref<32x400xbf16, #tpu.memory_space<vmem>>, vector<32x400xbf16>
    %c0_1 = arith.constant 0 : index
    %c0_2 = arith.constant 0 : index
    %1 = vector.load %arg3[%c0_1, %c0_2] : memref<32x1xf32, #tpu.memory_space<vmem>>, vector<32x1xf32>
    %cst = arith.constant 0.000000e+00 : bf16
    %2 = vector.broadcast %cst : bf16 to vector<400x96xbf16>
    %c0_3 = arith.constant 0 : index
    %c288 = arith.constant 288 : index
    %3 = vector.load %arg5[%c0_3, %c288] : memref<400x1536xbf16, #tpu.memory_space<vmem>>, vector<400x96xbf16>
    tpu.vector_store %arg5[%c0_3, %c288], %2 {strides = array<i32>} : memref<400x1536xbf16, #tpu.memory_space<vmem>>, vector<400x96xbf16>,
    %cst_4 = arith.constant 0.000000e+00 : bf16
    %4 = vector.broadcast %cst_4 : bf16 to vector<400x96xbf16>
    %c0_5 = arith.constant 0 : index
    %c672 = arith.constant 672 : index
    %5 = vector.load %arg5[%c0_5, %c672] : memref<400x1536xbf16, #tpu.memory_space<vmem>>, vector<400x96xbf16>
    tpu.vector_store %arg5[%c0_5, %c672], %4 {strides = array<i32>} : memref<400x1536xbf16, #tpu.memory_space<vmem>>, vector<400x96xbf16>,
    %cst_6 = arith.constant 0.000000e+00 : bf16
    %6 = vector.broadcast %cst_6 : bf16 to vector<400x96xbf16>
    %c0_7 = arith.constant 0 : index
    %c1056 = arith.constant 1056 : index
    %7 = vector.load %arg5[%c0_7, %c1056] : memref<400x1536xbf16, #tpu.memory_space<vmem>>, vector<400x96xbf16>
    tpu.vector_store %arg5[%c0_7, %c1056], %6 {strides = array<i32>} : memref<400x1536xbf16, #tpu.memory_space<vmem>>, vector<400x96xbf16>,
    %cst_8 = arith.constant 0.000000e+00 : bf16
    %8 = vector.broadcast %cst_8 : bf16 to vector<400x96xbf16>
    %c0_9 = arith.constant 0 : index
    %c1440 = arith.constant 1440 : index
    %9 = vector.load %arg5[%c0_9, %c1440] : memref<400x1536xbf16, #tpu.memory_space<vmem>>, vector<400x96xbf16>
    tpu.vector_store %arg5[%c0_9, %c1440], %8 {strides = array<i32>} : memref<400x1536xbf16, #tpu.memory_space<vmem>>, vector<400x96xbf16>,
    %c0_10 = arith.constant 0 : index
    %c0_11 = arith.constant 0 : index
    %c0_12 = arith.constant 0 : index
    %c0_13 = arith.constant 0 : index
    %10 = vector.load %arg1[%c0_10, %c0_11, %c0_12, %c0_13] : memref<1x4x16x332xbf16, #tpu.memory_space<vmem>>, vector<1x4x16x332xbf16>
    %11 = vector.shape_cast %10 : vector<1x4x16x332xbf16> to vector<4x16x332xbf16>
    %12 = vector.extract_strided_slice %11 {offsets = [0, 0, 0], sizes = [1, 16, 288], strides = [1, 1, 1]} : vector<4x16x332xbf16> to vector<1x16x288xbf16>
    %13 = vector.shape_cast %12 : vector<1x16x288xbf16> to vector<16x288xbf16>
    %c0_14 = arith.constant 0 : index
    %c0_15 = arith.constant 0 : index
    %14 = vector.load %arg5[%c0_14, %c0_15] : memref<400x1536xbf16, #tpu.memory_space<vmem>>, vector<16x288xbf16>
    tpu.vector_store %arg5[%c0_14, %c0_15], %13 {strides = array<i32>} : memref<400x1536xbf16, #tpu.memory_space<vmem>>, vector<16x288xbf16>,
    %15 = vector.extract_strided_slice %11 {offsets = [1, 0, 0], sizes = [1, 16, 288], strides = [1, 1, 1]} : vector<4x16x332xbf16> to vector<1x16x288xbf16>
    %16 = vector.shape_cast %15 : vector<1x16x288xbf16> to vector<16x288xbf16>
    %c16 = arith.constant 16 : index
    %c0_16 = arith.constant 0 : index
    %17 = vector.load %arg5[%c16, %c0_16] : memref<400x1536xbf16, #tpu.memory_space<vmem>>, vector<16x288xbf16>
    tpu.vector_store %arg5[%c16, %c0_16], %16 {strides = array<i32>} : memref<400x1536xbf16, #tpu.memory_space<vmem>>, vector<16x288xbf16>,
    %18 = vector.extract_strided_slice %11 {offsets = [0, 0, 1], sizes = [1, 16, 288], strides = [1, 1, 1]} : vector<4x16x332xbf16> to vector<1x16x288xbf16>
    %19 = vector.shape_cast %18 : vector<1x16x288xbf16> to vector<16x288xbf16>
    %c32 = arith.constant 32 : index
    %c0_17 = arith.constant 0 : index
    %20 = vector.load %arg5[%c32, %c0_17] : memref<400x1536xbf16, #tpu.memory_space<vmem>>, vector<16x288xbf16>
    tpu.vector_store %arg5[%c32, %c0_17], %19 {strides = array<i32>} : memref<400x1536xbf16, #tpu.memory_space<vmem>>, vector<16x288xbf16>,
    %21 = vector.extract_strided_slice %11 {offsets = [1, 0, 1], sizes = [1, 16, 288], strides = [1, 1, 1]} : vector<4x16x332xbf16> to vector<1x16x288xbf16>
    %22 = vector.shape_cast %21 : vector<1x16x288xbf16> to vector<16x288xbf16>
    %c48 = arith.constant 48 : index
    %c0_18 = arith.constant 0 : index
    %23 = vector.load %arg5[%c48, %c0_18] : memref<400x1536xbf16, #tpu.memory_space<vmem>>, vector<16x288xbf16>
    tpu.vector_store %arg5[%c48, %c0_18], %22 {strides = array<i32>} : memref<400x1536xbf16, #tpu.memory_space<vmem>>, vector<16x288xbf16>,
    %24 = vector.extract_strided_slice %11 {offsets = [0, 0, 2], sizes = [1, 16, 288], strides = [1, 1, 1]} : vector<4x16x332xbf16> to vector<1x16x288xbf16>
    %25 = vector.shape_cast %24 : vector<1x16x288xbf16> to vector<16x288xbf16>
    %c64 = arith.constant 64 : index
    %c0_19 = arith.constant 0 : index
    %26 = vector.load %arg5[%c64, %c0_19] : memref<400x1536xbf16, #tpu.memory_space<vmem>>, vector<16x288xbf16>
    tpu.vector_store %arg5[%c64, %c0_19], %25 {strides = array<i32>} : memref<400x1536xbf16, #tpu.memory_space<vmem>>, vector<16x288xbf16>,
    %27 = vector.extract_strided_slice %11 {offsets = [2, 0, 0], sizes = [1, 16, 288], strides = [1, 1, 1]} : vector<4x16x332xbf16> to vector<1x16x288xbf16>
    %28 = vector.shape_cast %27 : vector<1x16x288xbf16> to vector<16x288xbf16>
    %c80 = arith.constant 80 : index
    %c0_20 = arith.constant 0 : index
    %29 = vector.load %arg5[%c80, %c0_20] : memref<400x1536xbf16, #tpu.memory_space<vmem>>, vector<16x288xbf16>
    tpu.vector_store %arg5[%c80, %c0_20], %28 {strides = array<i32>} : memref<400x1536xbf16, #tpu.memory_space<vmem>>, vector<16x288xbf16>,
    %30 = vector.extract_strided_slice %11 {offsets = [3, 0, 0], sizes = [1, 16, 288], strides = [1, 1, 1]} : vector<4x16x332xbf16> to vector<1x16x288xbf16>
    %31 = vector.shape_cast %30 : vector<1x16x288xbf16> to vector<16x288xbf16>
    %c96 = arith.constant 96 : index
    %c0_21 = arith.constant 0 : index
    %32 = vector.load %arg5[%c96, %c0_21] : memref<400x1536xbf16, #tpu.memory_space<vmem>>, vector<16x288xbf16>
    tpu.vector_store %arg5[%c96, %c0_21], %31 {strides = array<i32>} : memref<400x1536xbf16, #tpu.memory_space<vmem>>, vector<16x288xbf16>,
    %33 = vector.extract_strided_slice %11 {offsets = [2, 0, 1], sizes = [1, 16, 288], strides = [1, 1, 1]} : vector<4x16x332xbf16> to vector<1x16x288xbf16>
    %34 = vector.shape_cast %33 : vector<1x16x288xbf16> to vector<16x288xbf16>
    %c112 = arith.constant 112 : index
    %c0_22 = arith.constant 0 : index
    %35 = vector.load %arg5[%c112, %c0_22] : memref<400x1536xbf16, #tpu.memory_space<vmem>>, vector<16x288xbf16>
    tpu.vector_store %arg5[%c112, %c0_22], %34 {strides = array<i32>} : memref<400x1536xbf16, #tpu.memory_space<vmem>>, vector<16x288xbf16>,
    %36 = vector.extract_strided_slice %11 {offsets = [3, 0, 1], sizes = [1, 16, 288], strides = [1, 1, 1]} : vector<4x16x332xbf16> to vector<1x16x288xbf16>
    %37 = vector.shape_cast %36 : vector<1x16x288xbf16> to vector<16x288xbf16>
    %c128 = arith.constant 128 : index
    %c0_23 = arith.constant 0 : index
    %38 = vector.load %arg5[%c128, %c0_23] : memref<400x1536xbf16, #tpu.memory_space<vmem>>, vector<16x288xbf16>
    tpu.vector_store %arg5[%c128, %c0_23], %37 {strides = array<i32>} : memref<400x1536xbf16, #tpu.memory_space<vmem>>, vector<16x288xbf16>,
    %39 = vector.extract_strided_slice %11 {offsets = [2, 0, 2], sizes = [1, 16, 288], strides = [1, 1, 1]} : vector<4x16x332xbf16> to vector<1x16x288xbf16>
    %40 = vector.shape_cast %39 : vector<1x16x288xbf16> to vector<16x288xbf16>
    %c144 = arith.constant 144 : index
    %c0_24 = arith.constant 0 : index
    %41 = vector.load %arg5[%c144, %c0_24] : memref<400x1536xbf16, #tpu.memory_space<vmem>>, vector<16x288xbf16>
    tpu.vector_store %arg5[%c144, %c0_24], %40 {strides = array<i32>} : memref<400x1536xbf16, #tpu.memory_space<vmem>>, vector<16x288xbf16>,
    %42 = vector.extract_strided_slice %11 {offsets = [0, 0, 18], sizes = [1, 16, 288], strides = [1, 1, 1]} : vector<4x16x332xbf16> to vector<1x16x288xbf16>
    %43 = vector.shape_cast %42 : vector<1x16x288xbf16> to vector<16x288xbf16>
    %c160 = arith.constant 160 : index
    %c0_25 = arith.constant 0 : index
    %44 = vector.load %arg5[%c160, %c0_25] : memref<400x1536xbf16, #tpu.memory_space<vmem>>, vector<16x288xbf16>
    tpu.vector_store %arg5[%c160, %c0_25], %43 {strides = array<i32>} : memref<400x1536xbf16, #tpu.memory_space<vmem>>, vector<16x288xbf16>,
    %45 = vector.extract_strided_slice %11 {offsets = [1, 0, 18], sizes = [1, 16, 288], strides = [1, 1, 1]} : vector<4x16x332xbf16> to vector<1x16x288xbf16>
    %46 = vector.shape_cast %45 : vector<1x16x288xbf16> to vector<16x288xbf16>
    %c176 = arith.constant 176 : index
    %c0_26 = arith.constant 0 : index
    %47 = vector.load %arg5[%c176, %c0_26] : memref<400x1536xbf16, #tpu.memory_space<vmem>>, vector<16x288xbf16>
    tpu.vector_store %arg5[%c176, %c0_26], %46 {strides = array<i32>} : memref<400x1536xbf16, #tpu.memory_space<vmem>>, vector<16x288xbf16>,
    %48 = vector.extract_strided_slice %11 {offsets = [0, 0, 19], sizes = [1, 16, 288], strides = [1, 1, 1]} : vector<4x16x332xbf16> to vector<1x16x288xbf16>
    %49 = vector.shape_cast %48 : vector<1x16x288xbf16> to vector<16x288xbf16>
    %c192 = arith.constant 192 : index
    %c0_27 = arith.constant 0 : index
    %50 = vector.load %arg5[%c192, %c0_27] : memref<400x1536xbf16, #tpu.memory_space<vmem>>, vector<16x288xbf16>
    tpu.vector_store %arg5[%c192, %c0_27], %49 {strides = array<i32>} : memref<400x1536xbf16, #tpu.memory_space<vmem>>, vector<16x288xbf16>,
    %51 = vector.extract_strided_slice %11 {offsets = [1, 0, 19], sizes = [1, 16, 288], strides = [1, 1, 1]} : vector<4x16x332xbf16> to vector<1x16x288xbf16>
    %52 = vector.shape_cast %51 : vector<1x16x288xbf16> to vector<16x288xbf16>
    %c208 = arith.constant 208 : index
    %c0_28 = arith.constant 0 : index
    %53 = vector.load %arg5[%c208, %c0_28] : memref<400x1536xbf16, #tpu.memory_space<vmem>>, vector<16x288xbf16>
    tpu.vector_store %arg5[%c208, %c0_28], %52 {strides = array<i32>} : memref<400x1536xbf16, #tpu.memory_space<vmem>>, vector<16x288xbf16>,
    %54 = vector.extract_strided_slice %11 {offsets = [0, 0, 20], sizes = [1, 16, 288], strides = [1, 1, 1]} : vector<4x16x332xbf16> to vector<1x16x288xbf16>
    %55 = vector.shape_cast %54 : vector<1x16x288xbf16> to vector<16x288xbf16>
    %c224 = arith.constant 224 : index
    %c0_29 = arith.constant 0 : index
    %56 = vector.load %arg5[%c224, %c0_29] : memref<400x1536xbf16, #tpu.memory_space<vmem>>, vector<16x288xbf16>
    tpu.vector_store %arg5[%c224, %c0_29], %55 {strides = array<i32>} : memref<400x1536xbf16, #tpu.memory_space<vmem>>, vector<16x288xbf16>,
    %57 = vector.extract_strided_slice %11 {offsets = [2, 0, 18], sizes = [1, 16, 288], strides = [1, 1, 1]} : vector<4x16x332xbf16> to vector<1x16x288xbf16>
    %58 = vector.shape_cast %57 : vector<1x16x288xbf16> to vector<16x288xbf16>
    %c240 = arith.constant 240 : index
    %c0_30 = arith.constant 0 : index
    %59 = vector.load %arg5[%c240, %c0_30] : memref<400x1536xbf16, #tpu.memory_space<vmem>>, vector<16x288xbf16>
    tpu.vector_store %arg5[%c240, %c0_30], %58 {strides = array<i32>} : memref<400x1536xbf16, #tpu.memory_space<vmem>>, vector<16x288xbf16>,
    %60 = vector.extract_strided_slice %11 {offsets = [3, 0, 18], sizes = [1, 16, 288], strides = [1, 1, 1]} : vector<4x16x332xbf16> to vector<1x16x288xbf16>
    %61 = vector.shape_cast %60 : vector<1x16x288xbf16> to vector<16x288xbf16>
    %c256 = arith.constant 256 : index
    %c0_31 = arith.constant 0 : index
    %62 = vector.load %arg5[%c256, %c0_31] : memref<400x1536xbf16, #tpu.memory_space<vmem>>, vector<16x288xbf16>
    tpu.vector_store %arg5[%c256, %c0_31], %61 {strides = array<i32>} : memref<400x1536xbf16, #tpu.memory_space<vmem>>, vector<16x288xbf16>,
    %63 = vector.extract_strided_slice %11 {offsets = [2, 0, 19], sizes = [1, 16, 288], strides = [1, 1, 1]} : vector<4x16x332xbf16> to vector<1x16x288xbf16>
    %64 = vector.shape_cast %63 : vector<1x16x288xbf16> to vector<16x288xbf16>
    %c272 = arith.constant 272 : index
    %c0_32 = arith.constant 0 : index
    %65 = vector.load %arg5[%c272, %c0_32] : memref<400x1536xbf16, #tpu.memory_space<vmem>>, vector<16x288xbf16>
    tpu.vector_store %arg5[%c272, %c0_32], %64 {strides = array<i32>} : memref<400x1536xbf16, #tpu.memory_space<vmem>>, vector<16x288xbf16>,
    %66 = vector.extract_strided_slice %11 {offsets = [3, 0, 19], sizes = [1, 16, 288], strides = [1, 1, 1]} : vector<4x16x332xbf16> to vector<1x16x288xbf16>
    %67 = vector.shape_cast %66 : vector<1x16x288xbf16> to vector<16x288xbf16>
    %c288_33 = arith.constant 288 : index
    %c0_34 = arith.constant 0 : index
    %68 = vector.load %arg5[%c288_33, %c0_34] : memref<400x1536xbf16, #tpu.memory_space<vmem>>, vector<16x288xbf16>
    tpu.vector_store %arg5[%c288_33, %c0_34], %67 {strides = array<i32>} : memref<400x1536xbf16, #tpu.memory_space<vmem>>, vector<16x288xbf16>,
    %69 = vector.extract_strided_slice %11 {offsets = [2, 0, 20], sizes = [1, 16, 288], strides = [1, 1, 1]} : vector<4x16x332xbf16> to vector<1x16x288xbf16>
    %70 = vector.shape_cast %69 : vector<1x16x288xbf16> to vector<16x288xbf16>
    %c304 = arith.constant 304 : index
    %c0_35 = arith.constant 0 : index
    %71 = vector.load %arg5[%c304, %c0_35] : memref<400x1536xbf16, #tpu.memory_space<vmem>>, vector<16x288xbf16>
    tpu.vector_store %arg5[%c304, %c0_35], %70 {strides = array<i32>} : memref<400x1536xbf16, #tpu.memory_space<vmem>>, vector<16x288xbf16>,
    %72 = vector.extract_strided_slice %11 {offsets = [0, 0, 36], sizes = [1, 16, 288], strides = [1, 1, 1]} : vector<4x16x332xbf16> to vector<1x16x288xbf16>
    %73 = vector.shape_cast %72 : vector<1x16x288xbf16> to vector<16x288xbf16>
    %c320 = arith.constant 320 : index
    %c0_36 = arith.constant 0 : index
    %74 = vector.load %arg5[%c320, %c0_36] : memref<400x1536xbf16, #tpu.memory_space<vmem>>, vector<16x288xbf16>
    tpu.vector_store %arg5[%c320, %c0_36], %73 {strides = array<i32>} : memref<400x1536xbf16, #tpu.memory_space<vmem>>, vector<16x288xbf16>,
    %75 = vector.extract_strided_slice %11 {offsets = [1, 0, 36], sizes = [1, 16, 288], strides = [1, 1, 1]} : vector<4x16x332xbf16> to vector<1x16x288xbf16>
    %76 = vector.shape_cast %75 : vector<1x16x288xbf16> to vector<16x288xbf16>
    %c336 = arith.constant 336 : index
    %c0_37 = arith.constant 0 : index
    %77 = vector.load %arg5[%c336, %c0_37] : memref<400x1536xbf16, #tpu.memory_space<vmem>>, vector<16x288xbf16>
    tpu.vector_store %arg5[%c336, %c0_37], %76 {strides = array<i32>} : memref<400x1536xbf16, #tpu.memory_space<vmem>>, vector<16x288xbf16>,
    %78 = vector.extract_strided_slice %11 {offsets = [0, 0, 37], sizes = [1, 16, 288], strides = [1, 1, 1]} : vector<4x16x332xbf16> to vector<1x16x288xbf16>
    %79 = vector.shape_cast %78 : vector<1x16x288xbf16> to vector<16x288xbf16>
    %c352 = arith.constant 352 : index
    %c0_38 = arith.constant 0 : index
    %80 = vector.load %arg5[%c352, %c0_38] : memref<400x1536xbf16, #tpu.memory_space<vmem>>, vector<16x288xbf16>
    tpu.vector_store %arg5[%c352, %c0_38], %79 {strides = array<i32>} : memref<400x1536xbf16, #tpu.memory_space<vmem>>, vector<16x288xbf16>,
    %81 = vector.extract_strided_slice %11 {offsets = [1, 0, 37], sizes = [1, 16, 288], strides = [1, 1, 1]} : vector<4x16x332xbf16> to vector<1x16x288xbf16>
    %82 = vector.shape_cast %81 : vector<1x16x288xbf16> to vector<16x288xbf16>
    %c368 = arith.constant 368 : index
    %c0_39 = arith.constant 0 : index
    %83 = vector.load %arg5[%c368, %c0_39] : memref<400x1536xbf16, #tpu.memory_space<vmem>>, vector<16x288xbf16>
    tpu.vector_store %arg5[%c368, %c0_39], %82 {strides = array<i32>} : memref<400x1536xbf16, #tpu.memory_space<vmem>>, vector<16x288xbf16>,
    %84 = vector.extract_strided_slice %11 {offsets = [0, 0, 38], sizes = [1, 16, 288], strides = [1, 1, 1]} : vector<4x16x332xbf16> to vector<1x16x288xbf16>
    %85 = vector.shape_cast %84 : vector<1x16x288xbf16> to vector<16x288xbf16>
    %c384 = arith.constant 384 : index
    %c0_40 = arith.constant 0 : index
    %86 = vector.load %arg5[%c384, %c0_40] : memref<400x1536xbf16, #tpu.memory_space<vmem>>, vector<16x288xbf16>
    tpu.vector_store %arg5[%c384, %c0_40], %85 {strides = array<i32>} : memref<400x1536xbf16, #tpu.memory_space<vmem>>, vector<16x288xbf16>,
    %87 = vector.extract_strided_slice %11 {offsets = [1, 0, 0], sizes = [1, 16, 288], strides = [1, 1, 1]} : vector<4x16x332xbf16> to vector<1x16x288xbf16>
    %88 = vector.shape_cast %87 : vector<1x16x288xbf16> to vector<16x288xbf16>
    %c0_41 = arith.constant 0 : index
    %c384_42 = arith.constant 384 : index
    %89 = vector.load %arg5[%c0_41, %c384_42] : memref<400x1536xbf16, #tpu.memory_space<vmem>>, vector<16x288xbf16>
    tpu.vector_store %arg5[%c0_41, %c384_42], %88 {strides = array<i32>} : memref<400x1536xbf16, #tpu.memory_space<vmem>>, vector<16x288xbf16>,
    %90 = vector.extract_strided_slice %11 {offsets = [0, 0, 1], sizes = [1, 16, 288], strides = [1, 1, 1]} : vector<4x16x332xbf16> to vector<1x16x288xbf16>
    %91 = vector.shape_cast %90 : vector<1x16x288xbf16> to vector<16x288xbf16>
    %c16_43 = arith.constant 16 : index
    %c384_44 = arith.constant 384 : index
    %92 = vector.load %arg5[%c16_43, %c384_44] : memref<400x1536xbf16, #tpu.memory_space<vmem>>, vector<16x288xbf16>
    tpu.vector_store %arg5[%c16_43, %c384_44], %91 {strides = array<i32>} : memref<400x1536xbf16, #tpu.memory_space<vmem>>, vector<16x288xbf16>,
    %93 = vector.extract_strided_slice %11 {offsets = [1, 0, 1], sizes = [1, 16, 288], strides = [1, 1, 1]} : vector<4x16x332xbf16> to vector<1x16x288xbf16>
    %94 = vector.shape_cast %93 : vector<1x16x288xbf16> to vector<16x288xbf16>
    %c32_45 = arith.constant 32 : index
    %c384_46 = arith.constant 384 : index
    %95 = vector.load %arg5[%c32_45, %c384_46] : memref<400x1536xbf16, #tpu.memory_space<vmem>>, vector<16x288xbf16>
    tpu.vector_store %arg5[%c32_45, %c384_46], %94 {strides = array<i32>} : memref<400x1536xbf16, #tpu.memory_space<vmem>>, vector<16x288xbf16>,
    %96 = vector.extract_strided_slice %11 {offsets = [0, 0, 2], sizes = [1, 16, 288], strides = [1, 1, 1]} : vector<4x16x332xbf16> to vector<1x16x288xbf16>
    %97 = vector.shape_cast %96 : vector<1x16x288xbf16> to vector<16x288xbf16>
    %c48_47 = arith.constant 48 : index
    %c384_48 = arith.constant 384 : index
    %98 = vector.load %arg5[%c48_47, %c384_48] : memref<400x1536xbf16, #tpu.memory_space<vmem>>, vector<16x288xbf16>
    tpu.vector_store %arg5[%c48_47, %c384_48], %97 {strides = array<i32>} : memref<400x1536xbf16, #tpu.memory_space<vmem>>, vector<16x288xbf16>,
    %99 = vector.extract_strided_slice %11 {offsets = [1, 0, 2], sizes = [1, 16, 288], strides = [1, 1, 1]} : vector<4x16x332xbf16> to vector<1x16x288xbf16>
    %100 = vector.shape_cast %99 : vector<1x16x288xbf16> to vector<16x288xbf16>
    %c64_49 = arith.constant 64 : index
    %c384_50 = arith.constant 384 : index
    %101 = vector.load %arg5[%c64_49, %c384_50] : memref<400x1536xbf16, #tpu.memory_space<vmem>>, vector<16x288xbf16>
    tpu.vector_store %arg5[%c64_49, %c384_50], %100 {strides = array<i32>} : memref<400x1536xbf16, #tpu.memory_space<vmem>>, vector<16x288xbf16>,
    %102 = vector.extract_strided_slice %11 {offsets = [3, 0, 0], sizes = [1, 16, 288], strides = [1, 1, 1]} : vector<4x16x332xbf16> to vector<1x16x288xbf16>
    %103 = vector.shape_cast %102 : vector<1x16x288xbf16> to vector<16x288xbf16>
    %c80_51 = arith.constant 80 : index
    %c384_52 = arith.constant 384 : index
    %104 = vector.load %arg5[%c80_51, %c384_52] : memref<400x1536xbf16, #tpu.memory_space<vmem>>, vector<16x288xbf16>
    tpu.vector_store %arg5[%c80_51, %c384_52], %103 {strides = array<i32>} : memref<400x1536xbf16, #tpu.memory_space<vmem>>, vector<16x288xbf16>,
    %105 = vector.extract_strided_slice %11 {offsets = [2, 0, 1], sizes = [1, 16, 288], strides = [1, 1, 1]} : vector<4x16x332xbf16> to vector<1x16x288xbf16>
    %106 = vector.shape_cast %105 : vector<1x16x288xbf16> to vector<16x288xbf16>
    %c96_53 = arith.constant 96 : index
    %c384_54 = arith.constant 384 : index
    %107 = vector.load %arg5[%c96_53, %c384_54] : memref<400x1536xbf16, #tpu.memory_space<vmem>>, vector<16x288xbf16>
    tpu.vector_store %arg5[%c96_53, %c384_54], %106 {strides = array<i32>} : memref<400x1536xbf16, #tpu.memory_space<vmem>>, vector<16x288xbf16>,
    %108 = vector.extract_strided_slice %11 {offsets = [3, 0, 1], sizes = [1, 16, 288], strides = [1, 1, 1]} : vector<4x16x332xbf16> to vector<1x16x288xbf16>
    %109 = vector.shape_cast %108 : vector<1x16x288xbf16> to vector<16x288xbf16>
    %c112_55 = arith.constant 112 : index
    %c384_56 = arith.constant 384 : index
    %110 = vector.load %arg5[%c112_55, %c384_56] : memref<400x1536xbf16, #tpu.memory_space<vmem>>, vector<16x288xbf16>
    tpu.vector_store %arg5[%c112_55, %c384_56], %109 {strides = array<i32>} : memref<400x1536xbf16, #tpu.memory_space<vmem>>, vector<16x288xbf16>,
    %111 = vector.extract_strided_slice %11 {offsets = [2, 0, 2], sizes = [1, 16, 288], strides = [1, 1, 1]} : vector<4x16x332xbf16> to vector<1x16x288xbf16>
    %112 = vector.shape_cast %111 : vector<1x16x288xbf16> to vector<16x288xbf16>
    %c128_57 = arith.constant 128 : index
    %c384_58 = arith.constant 384 : index
    %113 = vector.load %arg5[%c128_57, %c384_58] : memref<400x1536xbf16, #tpu.memory_space<vmem>>, vector<16x288xbf16>
    tpu.vector_store %arg5[%c128_57, %c384_58], %112 {strides = array<i32>} : memref<400x1536xbf16, #tpu.memory_space<vmem>>, vector<16x288xbf16>,
    %114 = vector.extract_strided_slice %11 {offsets = [3, 0, 2], sizes = [1, 16, 288], strides = [1, 1, 1]} : vector<4x16x332xbf16> to vector<1x16x288xbf16>
    %115 = vector.shape_cast %114 : vector<1x16x288xbf16> to vector<16x288xbf16>
    %c144_59 = arith.constant 144 : index
    %c384_60 = arith.constant 384 : index
    %116 = vector.load %arg5[%c144_59, %c384_60] : memref<400x1536xbf16, #tpu.memory_space<vmem>>, vector<16x288xbf16>
    tpu.vector_store %arg5[%c144_59, %c384_60], %115 {strides = array<i32>} : memref<400x1536xbf16, #tpu.memory_space<vmem>>, vector<16x288xbf16>,
    %117 = vector.extract_strided_slice %11 {offsets = [1, 0, 18], sizes = [1, 16, 288], strides = [1, 1, 1]} : vector<4x16x332xbf16> to vector<1x16x288xbf16>
    %118 = vector.shape_cast %117 : vector<1x16x288xbf16> to vector<16x288xbf16>
    %c160_61 = arith.constant 160 : index
    %c384_62 = arith.constant 384 : index
    %119 = vector.load %arg5[%c160_61, %c384_62] : memref<400x1536xbf16, #tpu.memory_space<vmem>>, vector<16x288xbf16>
    tpu.vector_store %arg5[%c160_61, %c384_62], %118 {strides = array<i32>} : memref<400x1536xbf16, #tpu.memory_space<vmem>>, vector<16x288xbf16>,
    %120 = vector.extract_strided_slice %11 {offsets = [0, 0, 19], sizes = [1, 16, 288], strides = [1, 1, 1]} : vector<4x16x332xbf16> to vector<1x16x288xbf16>
    %121 = vector.shape_cast %120 : vector<1x16x288xbf16> to vector<16x288xbf16>
    %c176_63 = arith.constant 176 : index
    %c384_64 = arith.constant 384 : index
    %122 = vector.load %arg5[%c176_63, %c384_64] : memref<400x1536xbf16, #tpu.memory_space<vmem>>, vector<16x288xbf16>
    tpu.vector_store %arg5[%c176_63, %c384_64], %121 {strides = array<i32>} : memref<400x1536xbf16, #tpu.memory_space<vmem>>, vector<16x288xbf16>,
    %123 = vector.extract_strided_slice %11 {offsets = [1, 0, 19], sizes = [1, 16, 288], strides = [1, 1, 1]} : vector<4x16x332xbf16> to vector<1x16x288xbf16>
    %124 = vector.shape_cast %123 : vector<1x16x288xbf16> to vector<16x288xbf16>
    %c192_65 = arith.constant 192 : index
    %c384_66 = arith.constant 384 : index
    %125 = vector.load %arg5[%c192_65, %c384_66] : memref<400x1536xbf16, #tpu.memory_space<vmem>>, vector<16x288xbf16>
    tpu.vector_store %arg5[%c192_65, %c384_66], %124 {strides = array<i32>} : memref<400x1536xbf16, #tpu.memory_space<vmem>>, vector<16x288xbf16>,
    %126 = vector.extract_strided_slice %11 {offsets = [0, 0, 20], sizes = [1, 16, 288], strides = [1, 1, 1]} : vector<4x16x332xbf16> to vector<1x16x288xbf16>
    %127 = vector.shape_cast %126 : vector<1x16x288xbf16> to vector<16x288xbf16>
    %c208_67 = arith.constant 208 : index
    %c384_68 = arith.constant 384 : index
    %128 = vector.load %arg5[%c208_67, %c384_68] : memref<400x1536xbf16, #tpu.memory_space<vmem>>, vector<16x288xbf16>
    tpu.vector_store %arg5[%c208_67, %c384_68], %127 {strides = array<i32>} : memref<400x1536xbf16, #tpu.memory_space<vmem>>, vector<16x288xbf16>,
    %129 = vector.extract_strided_slice %11 {offsets = [1, 0, 20], sizes = [1, 16, 288], strides = [1, 1, 1]} : vector<4x16x332xbf16> to vector<1x16x288xbf16>
    %130 = vector.shape_cast %129 : vector<1x16x288xbf16> to vector<16x288xbf16>
    %c224_69 = arith.constant 224 : index
    %c384_70 = arith.constant 384 : index
    %131 = vector.load %arg5[%c224_69, %c384_70] : memref<400x1536xbf16, #tpu.memory_space<vmem>>, vector<16x288xbf16>
    tpu.vector_store %arg5[%c224_69, %c384_70], %130 {strides = array<i32>} : memref<400x1536xbf16, #tpu.memory_space<vmem>>, vector<16x288xbf16>,
    %132 = vector.extract_strided_slice %11 {offsets = [3, 0, 18], sizes = [1, 16, 288], strides = [1, 1, 1]} : vector<4x16x332xbf16> to vector<1x16x288xbf16>
    %133 = vector.shape_cast %132 : vector<1x16x288xbf16> to vector<16x288xbf16>
    %c240_71 = arith.constant 240 : index
    %c384_72 = arith.constant 384 : index
    %134 = vector.load %arg5[%c240_71, %c384_72] : memref<400x1536xbf16, #tpu.memory_space<vmem>>, vector<16x288xbf16>
    tpu.vector_store %arg5[%c240_71, %c384_72], %133 {strides = array<i32>} : memref<400x1536xbf16, #tpu.memory_space<vmem>>, vector<16x288xbf16>,
    %135 = vector.extract_strided_slice %11 {offsets = [2, 0, 19], sizes = [1, 16, 288], strides = [1, 1, 1]} : vector<4x16x332xbf16> to vector<1x16x288xbf16>
    %136 = vector.shape_cast %135 : vector<1x16x288xbf16> to vector<16x288xbf16>
    %c256_73 = arith.constant 256 : index
    %c384_74 = arith.constant 384 : index
    %137 = vector.load %arg5[%c256_73, %c384_74] : memref<400x1536xbf16, #tpu.memory_space<vmem>>, vector<16x288xbf16>
    tpu.vector_store %arg5[%c256_73, %c384_74], %136 {strides = array<i32>} : memref<400x1536xbf16, #tpu.memory_space<vmem>>, vector<16x288xbf16>,
    %138 = vector.extract_strided_slice %11 {offsets = [3, 0, 19], sizes = [1, 16, 288], strides = [1, 1, 1]} : vector<4x16x332xbf16> to vector<1x16x288xbf16>
    %139 = vector.shape_cast %138 : vector<1x16x288xbf16> to vector<16x288xbf16>
    %c272_75 = arith.constant 272 : index
    %c384_76 = arith.constant 384 : index
    %140 = vector.load %arg5[%c272_75, %c384_76] : memref<400x1536xbf16, #tpu.memory_space<vmem>>, vector<16x288xbf16>
    tpu.vector_store %arg5[%c272_75, %c384_76], %139 {strides = array<i32>} : memref<400x1536xbf16, #tpu.memory_space<vmem>>, vector<16x288xbf16>,
    %141 = vector.extract_strided_slice %11 {offsets = [2, 0, 20], sizes = [1, 16, 288], strides = [1, 1, 1]} : vector<4x16x332xbf16> to vector<1x16x288xbf16>
    %142 = vector.shape_cast %141 : vector<1x16x288xbf16> to vector<16x288xbf16>
    %c288_77 = arith.constant 288 : index
    %c384_78 = arith.constant 384 : index
    %143 = vector.load %arg5[%c288_77, %c384_78] : memref<400x1536xbf16, #tpu.memory_space<vmem>>, vector<16x288xbf16>
    tpu.vector_store %arg5[%c288_77, %c384_78], %142 {strides = array<i32>} : memref<400x1536xbf16, #tpu.memory_space<vmem>>, vector<16x288xbf16>,
    %144 = vector.extract_strided_slice %11 {offsets = [3, 0, 20], sizes = [1, 16, 288], strides = [1, 1, 1]} : vector<4x16x332xbf16> to vector<1x16x288xbf16>
    %145 = vector.shape_cast %144 : vector<1x16x288xbf16> to vector<16x288xbf16>
    %c304_79 = arith.constant 304 : index
    %c384_80 = arith.constant 384 : index
    %146 = vector.load %arg5[%c304_79, %c384_80] : memref<400x1536xbf16, #tpu.memory_space<vmem>>, vector<16x288xbf16>
    tpu.vector_store %arg5[%c304_79, %c384_80], %145 {strides = array<i32>} : memref<400x1536xbf16, #tpu.memory_space<vmem>>, vector<16x288xbf16>,
    %147 = vector.extract_strided_slice %11 {offsets = [1, 0, 36], sizes = [1, 16, 288], strides = [1, 1, 1]} : vector<4x16x332xbf16> to vector<1x16x288xbf16>
    %148 = vector.shape_cast %147 : vector<1x16x288xbf16> to vector<16x288xbf16>
    %c320_81 = arith.constant 320 : index
    %c384_82 = arith.constant 384 : index
    %149 = vector.load %arg5[%c320_81, %c384_82] : memref<400x1536xbf16, #tpu.memory_space<vmem>>, vector<16x288xbf16>
    tpu.vector_store %arg5[%c320_81, %c384_82], %148 {strides = array<i32>} : memref<400x1536xbf16, #tpu.memory_space<vmem>>, vector<16x288xbf16>,
    %150 = vector.extract_strided_slice %11 {offsets = [0, 0, 37], sizes = [1, 16, 288], strides = [1, 1, 1]} : vector<4x16x332xbf16> to vector<1x16x288xbf16>
    %151 = vector.shape_cast %150 : vector<1x16x288xbf16> to vector<16x288xbf16>
    %c336_83 = arith.constant 336 : index
    %c384_84 = arith.constant 384 : index
    %152 = vector.load %arg5[%c336_83, %c384_84] : memref<400x1536xbf16, #tpu.memory_space<vmem>>, vector<16x288xbf16>
    tpu.vector_store %arg5[%c336_83, %c384_84], %151 {strides = array<i32>} : memref<400x1536xbf16, #tpu.memory_space<vmem>>, vector<16x288xbf16>,
    %153 = vector.extract_strided_slice %11 {offsets = [1, 0, 37], sizes = [1, 16, 288], strides = [1, 1, 1]} : vector<4x16x332xbf16> to vector<1x16x288xbf16>
    %154 = vector.shape_cast %153 : vector<1x16x288xbf16> to vector<16x288xbf16>
    %c352_85 = arith.constant 352 : index
    %c384_86 = arith.constant 384 : index
    %155 = vector.load %arg5[%c352_85, %c384_86] : memref<400x1536xbf16, #tpu.memory_space<vmem>>, vector<16x288xbf16>
    tpu.vector_store %arg5[%c352_85, %c384_86], %154 {strides = array<i32>} : memref<400x1536xbf16, #tpu.memory_space<vmem>>, vector<16x288xbf16>,
    %156 = vector.extract_strided_slice %11 {offsets = [0, 0, 38], sizes = [1, 16, 288], strides = [1, 1, 1]} : vector<4x16x332xbf16> to vector<1x16x288xbf16>
    %157 = vector.shape_cast %156 : vector<1x16x288xbf16> to vector<16x288xbf16>
    %c368_87 = arith.constant 368 : index
    %c384_88 = arith.constant 384 : index
    %158 = vector.load %arg5[%c368_87, %c384_88] : memref<400x1536xbf16, #tpu.memory_space<vmem>>, vector<16x288xbf16>
    tpu.vector_store %arg5[%c368_87, %c384_88], %157 {strides = array<i32>} : memref<400x1536xbf16, #tpu.memory_space<vmem>>, vector<16x288xbf16>,
    %159 = vector.extract_strided_slice %11 {offsets = [1, 0, 38], sizes = [1, 16, 288], strides = [1, 1, 1]} : vector<4x16x332xbf16> to vector<1x16x288xbf16>
    %160 = vector.shape_cast %159 : vector<1x16x288xbf16> to vector<16x288xbf16>
    %c384_89 = arith.constant 384 : index
    %c384_90 = arith.constant 384 : index
    %161 = vector.load %arg5[%c384_89, %c384_90] : memref<400x1536xbf16, #tpu.memory_space<vmem>>, vector<16x288xbf16>
    tpu.vector_store %arg5[%c384_89, %c384_90], %160 {strides = array<i32>} : memref<400x1536xbf16, #tpu.memory_space<vmem>>, vector<16x288xbf16>,
    %162 = vector.extract_strided_slice %11 {offsets = [2, 0, 0], sizes = [1, 16, 288], strides = [1, 1, 1]} : vector<4x16x332xbf16> to vector<1x16x288xbf16>
    %163 = vector.shape_cast %162 : vector<1x16x288xbf16> to vector<16x288xbf16>
    %c0_91 = arith.constant 0 : index
    %c768 = arith.constant 768 : index
    %164 = vector.load %arg5[%c0_91, %c768] : memref<400x1536xbf16, #tpu.memory_space<vmem>>, vector<16x288xbf16>
    tpu.vector_store %arg5[%c0_91, %c768], %163 {strides = array<i32>} : memref<400x1536xbf16, #tpu.memory_space<vmem>>, vector<16x288xbf16>,
    %165 = vector.extract_strided_slice %11 {offsets = [3, 0, 0], sizes = [1, 16, 288], strides = [1, 1, 1]} : vector<4x16x332xbf16> to vector<1x16x288xbf16>
    %166 = vector.shape_cast %165 : vector<1x16x288xbf16> to vector<16x288xbf16>
    %c16_92 = arith.constant 16 : index
    %c768_93 = arith.constant 768 : index
    %167 = vector.load %arg5[%c16_92, %c768_93] : memref<400x1536xbf16, #tpu.memory_space<vmem>>, vector<16x288xbf16>
    tpu.vector_store %arg5[%c16_92, %c768_93], %166 {strides = array<i32>} : memref<400x1536xbf16, #tpu.memory_space<vmem>>, vector<16x288xbf16>,
    %168 = vector.extract_strided_slice %11 {offsets = [2, 0, 1], sizes = [1, 16, 288], strides = [1, 1, 1]} : vector<4x16x332xbf16> to vector<1x16x288xbf16>
    %169 = vector.shape_cast %168 : vector<1x16x288xbf16> to vector<16x288xbf16>
    %c32_94 = arith.constant 32 : index
    %c768_95 = arith.constant 768 : index
    %170 = vector.load %arg5[%c32_94, %c768_95] : memref<400x1536xbf16, #tpu.memory_space<vmem>>, vector<16x288xbf16>
    tpu.vector_store %arg5[%c32_94, %c768_95], %169 {strides = array<i32>} : memref<400x1536xbf16, #tpu.memory_space<vmem>>, vector<16x288xbf16>,
    %171 = vector.extract_strided_slice %11 {offsets = [3, 0, 1], sizes = [1, 16, 288], strides = [1, 1, 1]} : vector<4x16x332xbf16> to vector<1x16x288xbf16>
    %172 = vector.shape_cast %171 : vector<1x16x288xbf16> to vector<16x288xbf16>
    %c48_96 = arith.constant 48 : index
    %c768_97 = arith.constant 768 : index
    %173 = vector.load %arg5[%c48_96, %c768_97] : memref<400x1536xbf16, #tpu.memory_space<vmem>>, vector<16x288xbf16>
    tpu.vector_store %arg5[%c48_96, %c768_97], %172 {strides = array<i32>} : memref<400x1536xbf16, #tpu.memory_space<vmem>>, vector<16x288xbf16>,
    %174 = vector.extract_strided_slice %11 {offsets = [2, 0, 2], sizes = [1, 16, 288], strides = [1, 1, 1]} : vector<4x16x332xbf16> to vector<1x16x288xbf16>
    %175 = vector.shape_cast %174 : vector<1x16x288xbf16> to vector<16x288xbf16>
    %c64_98 = arith.constant 64 : index
    %c768_99 = arith.constant 768 : index
    %176 = vector.load %arg5[%c64_98, %c768_99] : memref<400x1536xbf16, #tpu.memory_space<vmem>>, vector<16x288xbf16>
    tpu.vector_store %arg5[%c64_98, %c768_99], %175 {strides = array<i32>} : memref<400x1536xbf16, #tpu.memory_space<vmem>>, vector<16x288xbf16>,
    %177 = vector.extract_strided_slice %11 {offsets = [0, 0, 18], sizes = [1, 16, 288], strides = [1, 1, 1]} : vector<4x16x332xbf16> to vector<1x16x288xbf16>
    %178 = vector.shape_cast %177 : vector<1x16x288xbf16> to vector<16x288xbf16>
    %c80_100 = arith.constant 80 : index
    %c768_101 = arith.constant 768 : index
    %179 = vector.load %arg5[%c80_100, %c768_101] : memref<400x1536xbf16, #tpu.memory_space<vmem>>, vector<16x288xbf16>
    tpu.vector_store %arg5[%c80_100, %c768_101], %178 {strides = array<i32>} : memref<400x1536xbf16, #tpu.memory_space<vmem>>, vector<16x288xbf16>,
    %180 = vector.extract_strided_slice %11 {offsets = [1, 0, 18], sizes = [1, 16, 288], strides = [1, 1, 1]} : vector<4x16x332xbf16> to vector<1x16x288xbf16>
    %181 = vector.shape_cast %180 : vector<1x16x288xbf16> to vector<16x288xbf16>
    %c96_102 = arith.constant 96 : index
    %c768_103 = arith.constant 768 : index
    %182 = vector.load %arg5[%c96_102, %c768_103] : memref<400x1536xbf16, #tpu.memory_space<vmem>>, vector<16x288xbf16>
    tpu.vector_store %arg5[%c96_102, %c768_103], %181 {strides = array<i32>} : memref<400x1536xbf16, #tpu.memory_space<vmem>>, vector<16x288xbf16>,
    %183 = vector.extract_strided_slice %11 {offsets = [0, 0, 19], sizes = [1, 16, 288], strides = [1, 1, 1]} : vector<4x16x332xbf16> to vector<1x16x288xbf16>
    %184 = vector.shape_cast %183 : vector<1x16x288xbf16> to vector<16x288xbf16>
    %c112_104 = arith.constant 112 : index
    %c768_105 = arith.constant 768 : index
    %185 = vector.load %arg5[%c112_104, %c768_105] : memref<400x1536xbf16, #tpu.memory_space<vmem>>, vector<16x288xbf16>
    tpu.vector_store %arg5[%c112_104, %c768_105], %184 {strides = array<i32>} : memref<400x1536xbf16, #tpu.memory_space<vmem>>, vector<16x288xbf16>,
    %186 = vector.extract_strided_slice %11 {offsets = [1, 0, 19], sizes = [1, 16, 288], strides = [1, 1, 1]} : vector<4x16x332xbf16> to vector<1x16x288xbf16>
    %187 = vector.shape_cast %186 : vector<1x16x288xbf16> to vector<16x288xbf16>
    %c128_106 = arith.constant 128 : index
    %c768_107 = arith.constant 768 : index
    %188 = vector.load %arg5[%c128_106, %c768_107] : memref<400x1536xbf16, #tpu.memory_space<vmem>>, vector<16x288xbf16>
    tpu.vector_store %arg5[%c128_106, %c768_107], %187 {strides = array<i32>} : memref<400x1536xbf16, #tpu.memory_space<vmem>>, vector<16x288xbf16>,
    %189 = vector.extract_strided_slice %11 {offsets = [0, 0, 20], sizes = [1, 16, 288], strides = [1, 1, 1]} : vector<4x16x332xbf16> to vector<1x16x288xbf16>
    %190 = vector.shape_cast %189 : vector<1x16x288xbf16> to vector<16x288xbf16>
    %c144_108 = arith.constant 144 : index
    %c768_109 = arith.constant 768 : index
    %191 = vector.load %arg5[%c144_108, %c768_109] : memref<400x1536xbf16, #tpu.memory_space<vmem>>, vector<16x288xbf16>
    tpu.vector_store %arg5[%c144_108, %c768_109], %190 {strides = array<i32>} : memref<400x1536xbf16, #tpu.memory_space<vmem>>, vector<16x288xbf16>,
    %192 = vector.extract_strided_slice %11 {offsets = [2, 0, 18], sizes = [1, 16, 288], strides = [1, 1, 1]} : vector<4x16x332xbf16> to vector<1x16x288xbf16>
    %193 = vector.shape_cast %192 : vector<1x16x288xbf16> to vector<16x288xbf16>
    %c160_110 = arith.constant 160 : index
    %c768_111 = arith.constant 768 : index
    %194 = vector.load %arg5[%c160_110, %c768_111] : memref<400x1536xbf16, #tpu.memory_space<vmem>>, vector<16x288xbf16>
    tpu.vector_store %arg5[%c160_110, %c768_111], %193 {strides = array<i32>} : memref<400x1536xbf16, #tpu.memory_space<vmem>>, vector<16x288xbf16>,
    %195 = vector.extract_strided_slice %11 {offsets = [3, 0, 18], sizes = [1, 16, 288], strides = [1, 1, 1]} : vector<4x16x332xbf16> to vector<1x16x288xbf16>
    %196 = vector.shape_cast %195 : vector<1x16x288xbf16> to vector<16x288xbf16>
    %c176_112 = arith.constant 176 : index
    %c768_113 = arith.constant 768 : index
    %197 = vector.load %arg5[%c176_112, %c768_113] : memref<400x1536xbf16, #tpu.memory_space<vmem>>, vector<16x288xbf16>
    tpu.vector_store %arg5[%c176_112, %c768_113], %196 {strides = array<i32>} : memref<400x1536xbf16, #tpu.memory_space<vmem>>, vector<16x288xbf16>,
    %198 = vector.extract_strided_slice %11 {offsets = [2, 0, 19], sizes = [1, 16, 288], strides = [1, 1, 1]} : vector<4x16x332xbf16> to vector<1x16x288xbf16>
    %199 = vector.shape_cast %198 : vector<1x16x288xbf16> to vector<16x288xbf16>
    %c192_114 = arith.constant 192 : index
    %c768_115 = arith.constant 768 : index
    %200 = vector.load %arg5[%c192_114, %c768_115] : memref<400x1536xbf16, #tpu.memory_space<vmem>>, vector<16x288xbf16>
    tpu.vector_store %arg5[%c192_114, %c768_115], %199 {strides = array<i32>} : memref<400x1536xbf16, #tpu.memory_space<vmem>>, vector<16x288xbf16>,
    %201 = vector.extract_strided_slice %11 {offsets = [3, 0, 19], sizes = [1, 16, 288], strides = [1, 1, 1]} : vector<4x16x332xbf16> to vector<1x16x288xbf16>
    %202 = vector.shape_cast %201 : vector<1x16x288xbf16> to vector<16x288xbf16>
    %c208_116 = arith.constant 208 : index
    %c768_117 = arith.constant 768 : index
    %203 = vector.load %arg5[%c208_116, %c768_117] : memref<400x1536xbf16, #tpu.memory_space<vmem>>, vector<16x288xbf16>
    tpu.vector_store %arg5[%c208_116, %c768_117], %202 {strides = array<i32>} : memref<400x1536xbf16, #tpu.memory_space<vmem>>, vector<16x288xbf16>,
    %204 = vector.extract_strided_slice %11 {offsets = [2, 0, 20], sizes = [1, 16, 288], strides = [1, 1, 1]} : vector<4x16x332xbf16> to vector<1x16x288xbf16>
    %205 = vector.shape_cast %204 : vector<1x16x288xbf16> to vector<16x288xbf16>
    %c224_118 = arith.constant 224 : index
    %c768_119 = arith.constant 768 : index
    %206 = vector.load %arg5[%c224_118, %c768_119] : memref<400x1536xbf16, #tpu.memory_space<vmem>>, vector<16x288xbf16>
    tpu.vector_store %arg5[%c224_118, %c768_119], %205 {strides = array<i32>} : memref<400x1536xbf16, #tpu.memory_space<vmem>>, vector<16x288xbf16>,
    %207 = vector.extract_strided_slice %11 {offsets = [0, 0, 36], sizes = [1, 16, 288], strides = [1, 1, 1]} : vector<4x16x332xbf16> to vector<1x16x288xbf16>
    %208 = vector.shape_cast %207 : vector<1x16x288xbf16> to vector<16x288xbf16>
    %c240_120 = arith.constant 240 : index
    %c768_121 = arith.constant 768 : index
    %209 = vector.load %arg5[%c240_120, %c768_121] : memref<400x1536xbf16, #tpu.memory_space<vmem>>, vector<16x288xbf16>
    tpu.vector_store %arg5[%c240_120, %c768_121], %208 {strides = array<i32>} : memref<400x1536xbf16, #tpu.memory_space<vmem>>, vector<16x288xbf16>,
    %210 = vector.extract_strided_slice %11 {offsets = [1, 0, 36], sizes = [1, 16, 288], strides = [1, 1, 1]} : vector<4x16x332xbf16> to vector<1x16x288xbf16>
    %211 = vector.shape_cast %210 : vector<1x16x288xbf16> to vector<16x288xbf16>
    %c256_122 = arith.constant 256 : index
    %c768_123 = arith.constant 768 : index
    %212 = vector.load %arg5[%c256_122, %c768_123] : memref<400x1536xbf16, #tpu.memory_space<vmem>>, vector<16x288xbf16>
    tpu.vector_store %arg5[%c256_122, %c768_123], %211 {strides = array<i32>} : memref<400x1536xbf16, #tpu.memory_space<vmem>>, vector<16x288xbf16>,
    %213 = vector.extract_strided_slice %11 {offsets = [0, 0, 37], sizes = [1, 16, 288], strides = [1, 1, 1]} : vector<4x16x332xbf16> to vector<1x16x288xbf16>
    %214 = vector.shape_cast %213 : vector<1x16x288xbf16> to vector<16x288xbf16>
    %c272_124 = arith.constant 272 : index
    %c768_125 = arith.constant 768 : index
    %215 = vector.load %arg5[%c272_124, %c768_125] : memref<400x1536xbf16, #tpu.memory_space<vmem>>, vector<16x288xbf16>
    tpu.vector_store %arg5[%c272_124, %c768_125], %214 {strides = array<i32>} : memref<400x1536xbf16, #tpu.memory_space<vmem>>, vector<16x288xbf16>,
    %216 = vector.extract_strided_slice %11 {offsets = [1, 0, 37], sizes = [1, 16, 288], strides = [1, 1, 1]} : vector<4x16x332xbf16> to vector<1x16x288xbf16>
    %217 = vector.shape_cast %216 : vector<1x16x288xbf16> to vector<16x288xbf16>
    %c288_126 = arith.constant 288 : index
    %c768_127 = arith.constant 768 : index
    %218 = vector.load %arg5[%c288_126, %c768_127] : memref<400x1536xbf16, #tpu.memory_space<vmem>>, vector<16x288xbf16>
    tpu.vector_store %arg5[%c288_126, %c768_127], %217 {strides = array<i32>} : memref<400x1536xbf16, #tpu.memory_space<vmem>>, vector<16x288xbf16>,
    %219 = vector.extract_strided_slice %11 {offsets = [0, 0, 38], sizes = [1, 16, 288], strides = [1, 1, 1]} : vector<4x16x332xbf16> to vector<1x16x288xbf16>
    %220 = vector.shape_cast %219 : vector<1x16x288xbf16> to vector<16x288xbf16>
    %c304_128 = arith.constant 304 : index
    %c768_129 = arith.constant 768 : index
    %221 = vector.load %arg5[%c304_128, %c768_129] : memref<400x1536xbf16, #tpu.memory_space<vmem>>, vector<16x288xbf16>
    tpu.vector_store %arg5[%c304_128, %c768_129], %220 {strides = array<i32>} : memref<400x1536xbf16, #tpu.memory_space<vmem>>, vector<16x288xbf16>,
    %222 = vector.extract_strided_slice %11 {offsets = [2, 0, 36], sizes = [1, 16, 288], strides = [1, 1, 1]} : vector<4x16x332xbf16> to vector<1x16x288xbf16>
    %223 = vector.shape_cast %222 : vector<1x16x288xbf16> to vector<16x288xbf16>
    %c320_130 = arith.constant 320 : index
    %c768_131 = arith.constant 768 : index
    %224 = vector.load %arg5[%c320_130, %c768_131] : memref<400x1536xbf16, #tpu.memory_space<vmem>>, vector<16x288xbf16>
    tpu.vector_store %arg5[%c320_130, %c768_131], %223 {strides = array<i32>} : memref<400x1536xbf16, #tpu.memory_space<vmem>>, vector<16x288xbf16>,
    %225 = vector.extract_strided_slice %11 {offsets = [3, 0, 36], sizes = [1, 16, 288], strides = [1, 1, 1]} : vector<4x16x332xbf16> to vector<1x16x288xbf16>
    %226 = vector.shape_cast %225 : vector<1x16x288xbf16> to vector<16x288xbf16>
    %c336_132 = arith.constant 336 : index
    %c768_133 = arith.constant 768 : index
    %227 = vector.load %arg5[%c336_132, %c768_133] : memref<400x1536xbf16, #tpu.memory_space<vmem>>, vector<16x288xbf16>
    tpu.vector_store %arg5[%c336_132, %c768_133], %226 {strides = array<i32>} : memref<400x1536xbf16, #tpu.memory_space<vmem>>, vector<16x288xbf16>,
    %228 = vector.extract_strided_slice %11 {offsets = [2, 0, 37], sizes = [1, 16, 288], strides = [1, 1, 1]} : vector<4x16x332xbf16> to vector<1x16x288xbf16>
    %229 = vector.shape_cast %228 : vector<1x16x288xbf16> to vector<16x288xbf16>
    %c352_134 = arith.constant 352 : index
    %c768_135 = arith.constant 768 : index
    %230 = vector.load %arg5[%c352_134, %c768_135] : memref<400x1536xbf16, #tpu.memory_space<vmem>>, vector<16x288xbf16>
    tpu.vector_store %arg5[%c352_134, %c768_135], %229 {strides = array<i32>} : memref<400x1536xbf16, #tpu.memory_space<vmem>>, vector<16x288xbf16>,
    %231 = vector.extract_strided_slice %11 {offsets = [3, 0, 37], sizes = [1, 16, 288], strides = [1, 1, 1]} : vector<4x16x332xbf16> to vector<1x16x288xbf16>
    %232 = vector.shape_cast %231 : vector<1x16x288xbf16> to vector<16x288xbf16>
    %c368_136 = arith.constant 368 : index
    %c768_137 = arith.constant 768 : index
    %233 = vector.load %arg5[%c368_136, %c768_137] : memref<400x1536xbf16, #tpu.memory_space<vmem>>, vector<16x288xbf16>
    tpu.vector_store %arg5[%c368_136, %c768_137], %232 {strides = array<i32>} : memref<400x1536xbf16, #tpu.memory_space<vmem>>, vector<16x288xbf16>,
    %234 = vector.extract_strided_slice %11 {offsets = [2, 0, 38], sizes = [1, 16, 288], strides = [1, 1, 1]} : vector<4x16x332xbf16> to vector<1x16x288xbf16>
    %235 = vector.shape_cast %234 : vector<1x16x288xbf16> to vector<16x288xbf16>
    %c384_138 = arith.constant 384 : index
    %c768_139 = arith.constant 768 : index
    %236 = vector.load %arg5[%c384_138, %c768_139] : memref<400x1536xbf16, #tpu.memory_space<vmem>>, vector<16x288xbf16>
    tpu.vector_store %arg5[%c384_138, %c768_139], %235 {strides = array<i32>} : memref<400x1536xbf16, #tpu.memory_space<vmem>>, vector<16x288xbf16>,
    %237 = vector.extract_strided_slice %11 {offsets = [3, 0, 0], sizes = [1, 16, 288], strides = [1, 1, 1]} : vector<4x16x332xbf16> to vector<1x16x288xbf16>
    %238 = vector.shape_cast %237 : vector<1x16x288xbf16> to vector<16x288xbf16>
    %c0_140 = arith.constant 0 : index
    %c1152 = arith.constant 1152 : index
    %239 = vector.load %arg5[%c0_140, %c1152] : memref<400x1536xbf16, #tpu.memory_space<vmem>>, vector<16x288xbf16>
    tpu.vector_store %arg5[%c0_140, %c1152], %238 {strides = array<i32>} : memref<400x1536xbf16, #tpu.memory_space<vmem>>, vector<16x288xbf16>,
    %240 = vector.extract_strided_slice %11 {offsets = [2, 0, 1], sizes = [1, 16, 288], strides = [1, 1, 1]} : vector<4x16x332xbf16> to vector<1x16x288xbf16>
    %241 = vector.shape_cast %240 : vector<1x16x288xbf16> to vector<16x288xbf16>
    %c16_141 = arith.constant 16 : index
    %c1152_142 = arith.constant 1152 : index
    %242 = vector.load %arg5[%c16_141, %c1152_142] : memref<400x1536xbf16, #tpu.memory_space<vmem>>, vector<16x288xbf16>
    tpu.vector_store %arg5[%c16_141, %c1152_142], %241 {strides = array<i32>} : memref<400x1536xbf16, #tpu.memory_space<vmem>>, vector<16x288xbf16>,
    %243 = vector.extract_strided_slice %11 {offsets = [3, 0, 1], sizes = [1, 16, 288], strides = [1, 1, 1]} : vector<4x16x332xbf16> to vector<1x16x288xbf16>
    %244 = vector.shape_cast %243 : vector<1x16x288xbf16> to vector<16x288xbf16>
    %c32_143 = arith.constant 32 : index
    %c1152_144 = arith.constant 1152 : index
    %245 = vector.load %arg5[%c32_143, %c1152_144] : memref<400x1536xbf16, #tpu.memory_space<vmem>>, vector<16x288xbf16>
    tpu.vector_store %arg5[%c32_143, %c1152_144], %244 {strides = array<i32>} : memref<400x1536xbf16, #tpu.memory_space<vmem>>, vector<16x288xbf16>,
    %246 = vector.extract_strided_slice %11 {offsets = [2, 0, 2], sizes = [1, 16, 288], strides = [1, 1, 1]} : vector<4x16x332xbf16> to vector<1x16x288xbf16>
    %247 = vector.shape_cast %246 : vector<1x16x288xbf16> to vector<16x288xbf16>
    %c48_145 = arith.constant 48 : index
    %c1152_146 = arith.constant 1152 : index
    %248 = vector.load %arg5[%c48_145, %c1152_146] : memref<400x1536xbf16, #tpu.memory_space<vmem>>, vector<16x288xbf16>
    tpu.vector_store %arg5[%c48_145, %c1152_146], %247 {strides = array<i32>} : memref<400x1536xbf16, #tpu.memory_space<vmem>>, vector<16x288xbf16>,
    %249 = vector.extract_strided_slice %11 {offsets = [3, 0, 2], sizes = [1, 16, 288], strides = [1, 1, 1]} : vector<4x16x332xbf16> to vector<1x16x288xbf16>
    %250 = vector.shape_cast %249 : vector<1x16x288xbf16> to vector<16x288xbf16>
    %c64_147 = arith.constant 64 : index
    %c1152_148 = arith.constant 1152 : index
    %251 = vector.load %arg5[%c64_147, %c1152_148] : memref<400x1536xbf16, #tpu.memory_space<vmem>>, vector<16x288xbf16>
    tpu.vector_store %arg5[%c64_147, %c1152_148], %250 {strides = array<i32>} : memref<400x1536xbf16, #tpu.memory_space<vmem>>, vector<16x288xbf16>,
    %252 = vector.extract_strided_slice %11 {offsets = [1, 0, 18], sizes = [1, 16, 288], strides = [1, 1, 1]} : vector<4x16x332xbf16> to vector<1x16x288xbf16>
    %253 = vector.shape_cast %252 : vector<1x16x288xbf16> to vector<16x288xbf16>
    %c80_149 = arith.constant 80 : index
    %c1152_150 = arith.constant 1152 : index
    %254 = vector.load %arg5[%c80_149, %c1152_150] : memref<400x1536xbf16, #tpu.memory_space<vmem>>, vector<16x288xbf16>
    tpu.vector_store %arg5[%c80_149, %c1152_150], %253 {strides = array<i32>} : memref<400x1536xbf16, #tpu.memory_space<vmem>>, vector<16x288xbf16>,
    %255 = vector.extract_strided_slice %11 {offsets = [0, 0, 19], sizes = [1, 16, 288], strides = [1, 1, 1]} : vector<4x16x332xbf16> to vector<1x16x288xbf16>
    %256 = vector.shape_cast %255 : vector<1x16x288xbf16> to vector<16x288xbf16>
    %c96_151 = arith.constant 96 : index
    %c1152_152 = arith.constant 1152 : index
    %257 = vector.load %arg5[%c96_151, %c1152_152] : memref<400x1536xbf16, #tpu.memory_space<vmem>>, vector<16x288xbf16>
    tpu.vector_store %arg5[%c96_151, %c1152_152], %256 {strides = array<i32>} : memref<400x1536xbf16, #tpu.memory_space<vmem>>, vector<16x288xbf16>,
    %258 = vector.extract_strided_slice %11 {offsets = [1, 0, 19], sizes = [1, 16, 288], strides = [1, 1, 1]} : vector<4x16x332xbf16> to vector<1x16x288xbf16>
    %259 = vector.shape_cast %258 : vector<1x16x288xbf16> to vector<16x288xbf16>
    %c112_153 = arith.constant 112 : index
    %c1152_154 = arith.constant 1152 : index
    %260 = vector.load %arg5[%c112_153, %c1152_154] : memref<400x1536xbf16, #tpu.memory_space<vmem>>, vector<16x288xbf16>
    tpu.vector_store %arg5[%c112_153, %c1152_154], %259 {strides = array<i32>} : memref<400x1536xbf16, #tpu.memory_space<vmem>>, vector<16x288xbf16>,
    %261 = vector.extract_strided_slice %11 {offsets = [0, 0, 20], sizes = [1, 16, 288], strides = [1, 1, 1]} : vector<4x16x332xbf16> to vector<1x16x288xbf16>
    %262 = vector.shape_cast %261 : vector<1x16x288xbf16> to vector<16x288xbf16>
    %c128_155 = arith.constant 128 : index
    %c1152_156 = arith.constant 1152 : index
    %263 = vector.load %arg5[%c128_155, %c1152_156] : memref<400x1536xbf16, #tpu.memory_space<vmem>>, vector<16x288xbf16>
    tpu.vector_store %arg5[%c128_155, %c1152_156], %262 {strides = array<i32>} : memref<400x1536xbf16, #tpu.memory_space<vmem>>, vector<16x288xbf16>,
    %264 = vector.extract_strided_slice %11 {offsets = [1, 0, 20], sizes = [1, 16, 288], strides = [1, 1, 1]} : vector<4x16x332xbf16> to vector<1x16x288xbf16>
    %265 = vector.shape_cast %264 : vector<1x16x288xbf16> to vector<16x288xbf16>
    %c144_157 = arith.constant 144 : index
    %c1152_158 = arith.constant 1152 : index
    %266 = vector.load %arg5[%c144_157, %c1152_158] : memref<400x1536xbf16, #tpu.memory_space<vmem>>, vector<16x288xbf16>
    tpu.vector_store %arg5[%c144_157, %c1152_158], %265 {strides = array<i32>} : memref<400x1536xbf16, #tpu.memory_space<vmem>>, vector<16x288xbf16>,
    %267 = vector.extract_strided_slice %11 {offsets = [3, 0, 18], sizes = [1, 16, 288], strides = [1, 1, 1]} : vector<4x16x332xbf16> to vector<1x16x288xbf16>
    %268 = vector.shape_cast %267 : vector<1x16x288xbf16> to vector<16x288xbf16>
    %c160_159 = arith.constant 160 : index
    %c1152_160 = arith.constant 1152 : index
    %269 = vector.load %arg5[%c160_159, %c1152_160] : memref<400x1536xbf16, #tpu.memory_space<vmem>>, vector<16x288xbf16>
    tpu.vector_store %arg5[%c160_159, %c1152_160], %268 {strides = array<i32>} : memref<400x1536xbf16, #tpu.memory_space<vmem>>, vector<16x288xbf16>,
    %270 = vector.extract_strided_slice %11 {offsets = [2, 0, 19], sizes = [1, 16, 288], strides = [1, 1, 1]} : vector<4x16x332xbf16> to vector<1x16x288xbf16>
    %271 = vector.shape_cast %270 : vector<1x16x288xbf16> to vector<16x288xbf16>
    %c176_161 = arith.constant 176 : index
    %c1152_162 = arith.constant 1152 : index
    %272 = vector.load %arg5[%c176_161, %c1152_162] : memref<400x1536xbf16, #tpu.memory_space<vmem>>, vector<16x288xbf16>
    tpu.vector_store %arg5[%c176_161, %c1152_162], %271 {strides = array<i32>} : memref<400x1536xbf16, #tpu.memory_space<vmem>>, vector<16x288xbf16>,
    %273 = vector.extract_strided_slice %11 {offsets = [3, 0, 19], sizes = [1, 16, 288], strides = [1, 1, 1]} : vector<4x16x332xbf16> to vector<1x16x288xbf16>
    %274 = vector.shape_cast %273 : vector<1x16x288xbf16> to vector<16x288xbf16>
    %c192_163 = arith.constant 192 : index
    %c1152_164 = arith.constant 1152 : index
    %275 = vector.load %arg5[%c192_163, %c1152_164] : memref<400x1536xbf16, #tpu.memory_space<vmem>>, vector<16x288xbf16>
    tpu.vector_store %arg5[%c192_163, %c1152_164], %274 {strides = array<i32>} : memref<400x1536xbf16, #tpu.memory_space<vmem>>, vector<16x288xbf16>,
    %276 = vector.extract_strided_slice %11 {offsets = [2, 0, 20], sizes = [1, 16, 288], strides = [1, 1, 1]} : vector<4x16x332xbf16> to vector<1x16x288xbf16>
    %277 = vector.shape_cast %276 : vector<1x16x288xbf16> to vector<16x288xbf16>
    %c208_165 = arith.constant 208 : index
    %c1152_166 = arith.constant 1152 : index
    %278 = vector.load %arg5[%c208_165, %c1152_166] : memref<400x1536xbf16, #tpu.memory_space<vmem>>, vector<16x288xbf16>
    tpu.vector_store %arg5[%c208_165, %c1152_166], %277 {strides = array<i32>} : memref<400x1536xbf16, #tpu.memory_space<vmem>>, vector<16x288xbf16>,
    %279 = vector.extract_strided_slice %11 {offsets = [3, 0, 20], sizes = [1, 16, 288], strides = [1, 1, 1]} : vector<4x16x332xbf16> to vector<1x16x288xbf16>
    %280 = vector.shape_cast %279 : vector<1x16x288xbf16> to vector<16x288xbf16>
    %c224_167 = arith.constant 224 : index
    %c1152_168 = arith.constant 1152 : index
    %281 = vector.load %arg5[%c224_167, %c1152_168] : memref<400x1536xbf16, #tpu.memory_space<vmem>>, vector<16x288xbf16>
    tpu.vector_store %arg5[%c224_167, %c1152_168], %280 {strides = array<i32>} : memref<400x1536xbf16, #tpu.memory_space<vmem>>, vector<16x288xbf16>,
    %282 = vector.extract_strided_slice %11 {offsets = [1, 0, 36], sizes = [1, 16, 288], strides = [1, 1, 1]} : vector<4x16x332xbf16> to vector<1x16x288xbf16>
    %283 = vector.shape_cast %282 : vector<1x16x288xbf16> to vector<16x288xbf16>
    %c240_169 = arith.constant 240 : index
    %c1152_170 = arith.constant 1152 : index
    %284 = vector.load %arg5[%c240_169, %c1152_170] : memref<400x1536xbf16, #tpu.memory_space<vmem>>, vector<16x288xbf16>
    tpu.vector_store %arg5[%c240_169, %c1152_170], %283 {strides = array<i32>} : memref<400x1536xbf16, #tpu.memory_space<vmem>>, vector<16x288xbf16>,
    %285 = vector.extract_strided_slice %11 {offsets = [0, 0, 37], sizes = [1, 16, 288], strides = [1, 1, 1]} : vector<4x16x332xbf16> to vector<1x16x288xbf16>
    %286 = vector.shape_cast %285 : vector<1x16x288xbf16> to vector<16x288xbf16>
    %c256_171 = arith.constant 256 : index
    %c1152_172 = arith.constant 1152 : index
    %287 = vector.load %arg5[%c256_171, %c1152_172] : memref<400x1536xbf16, #tpu.memory_space<vmem>>, vector<16x288xbf16>
    tpu.vector_store %arg5[%c256_171, %c1152_172], %286 {strides = array<i32>} : memref<400x1536xbf16, #tpu.memory_space<vmem>>, vector<16x288xbf16>,
    %288 = vector.extract_strided_slice %11 {offsets = [1, 0, 37], sizes = [1, 16, 288], strides = [1, 1, 1]} : vector<4x16x332xbf16> to vector<1x16x288xbf16>
    %289 = vector.shape_cast %288 : vector<1x16x288xbf16> to vector<16x288xbf16>
    %c272_173 = arith.constant 272 : index
    %c1152_174 = arith.constant 1152 : index
    %290 = vector.load %arg5[%c272_173, %c1152_174] : memref<400x1536xbf16, #tpu.memory_space<vmem>>, vector<16x288xbf16>
    tpu.vector_store %arg5[%c272_173, %c1152_174], %289 {strides = array<i32>} : memref<400x1536xbf16, #tpu.memory_space<vmem>>, vector<16x288xbf16>,
    %291 = vector.extract_strided_slice %11 {offsets = [0, 0, 38], sizes = [1, 16, 288], strides = [1, 1, 1]} : vector<4x16x332xbf16> to vector<1x16x288xbf16>
    %292 = vector.shape_cast %291 : vector<1x16x288xbf16> to vector<16x288xbf16>
    %c288_175 = arith.constant 288 : index
    %c1152_176 = arith.constant 1152 : index
    %293 = vector.load %arg5[%c288_175, %c1152_176] : memref<400x1536xbf16, #tpu.memory_space<vmem>>, vector<16x288xbf16>
    tpu.vector_store %arg5[%c288_175, %c1152_176], %292 {strides = array<i32>} : memref<400x1536xbf16, #tpu.memory_space<vmem>>, vector<16x288xbf16>,
    %294 = vector.extract_strided_slice %11 {offsets = [1, 0, 38], sizes = [1, 16, 288], strides = [1, 1, 1]} : vector<4x16x332xbf16> to vector<1x16x288xbf16>
    %295 = vector.shape_cast %294 : vector<1x16x288xbf16> to vector<16x288xbf16>
    %c304_177 = arith.constant 304 : index
    %c1152_178 = arith.constant 1152 : index
    %296 = vector.load %arg5[%c304_177, %c1152_178] : memref<400x1536xbf16, #tpu.memory_space<vmem>>, vector<16x288xbf16>
    tpu.vector_store %arg5[%c304_177, %c1152_178], %295 {strides = array<i32>} : memref<400x1536xbf16, #tpu.memory_space<vmem>>, vector<16x288xbf16>,
    %297 = vector.extract_strided_slice %11 {offsets = [3, 0, 36], sizes = [1, 16, 288], strides = [1, 1, 1]} : vector<4x16x332xbf16> to vector<1x16x288xbf16>
    %298 = vector.shape_cast %297 : vector<1x16x288xbf16> to vector<16x288xbf16>
    %c320_179 = arith.constant 320 : index
    %c1152_180 = arith.constant 1152 : index
    %299 = vector.load %arg5[%c320_179, %c1152_180] : memref<400x1536xbf16, #tpu.memory_space<vmem>>, vector<16x288xbf16>
    tpu.vector_store %arg5[%c320_179, %c1152_180], %298 {strides = array<i32>} : memref<400x1536xbf16, #tpu.memory_space<vmem>>, vector<16x288xbf16>,
    %300 = vector.extract_strided_slice %11 {offsets = [2, 0, 37], sizes = [1, 16, 288], strides = [1, 1, 1]} : vector<4x16x332xbf16> to vector<1x16x288xbf16>
    %301 = vector.shape_cast %300 : vector<1x16x288xbf16> to vector<16x288xbf16>
    %c336_181 = arith.constant 336 : index
    %c1152_182 = arith.constant 1152 : index
    %302 = vector.load %arg5[%c336_181, %c1152_182] : memref<400x1536xbf16, #tpu.memory_space<vmem>>, vector<16x288xbf16>
    tpu.vector_store %arg5[%c336_181, %c1152_182], %301 {strides = array<i32>} : memref<400x1536xbf16, #tpu.memory_space<vmem>>, vector<16x288xbf16>,
    %303 = vector.extract_strided_slice %11 {offsets = [3, 0, 37], sizes = [1, 16, 288], strides = [1, 1, 1]} : vector<4x16x332xbf16> to vector<1x16x288xbf16>
    %304 = vector.shape_cast %303 : vector<1x16x288xbf16> to vector<16x288xbf16>
    %c352_183 = arith.constant 352 : index
    %c1152_184 = arith.constant 1152 : index
    %305 = vector.load %arg5[%c352_183, %c1152_184] : memref<400x1536xbf16, #tpu.memory_space<vmem>>, vector<16x288xbf16>
    tpu.vector_store %arg5[%c352_183, %c1152_184], %304 {strides = array<i32>} : memref<400x1536xbf16, #tpu.memory_space<vmem>>, vector<16x288xbf16>,
    %306 = vector.extract_strided_slice %11 {offsets = [2, 0, 38], sizes = [1, 16, 288], strides = [1, 1, 1]} : vector<4x16x332xbf16> to vector<1x16x288xbf16>
    %307 = vector.shape_cast %306 : vector<1x16x288xbf16> to vector<16x288xbf16>
    %c368_185 = arith.constant 368 : index
    %c1152_186 = arith.constant 1152 : index
    %308 = vector.load %arg5[%c368_185, %c1152_186] : memref<400x1536xbf16, #tpu.memory_space<vmem>>, vector<16x288xbf16>
    tpu.vector_store %arg5[%c368_185, %c1152_186], %307 {strides = array<i32>} : memref<400x1536xbf16, #tpu.memory_space<vmem>>, vector<16x288xbf16>,
    %309 = vector.extract_strided_slice %11 {offsets = [3, 0, 38], sizes = [1, 16, 288], strides = [1, 1, 1]} : vector<4x16x332xbf16> to vector<1x16x288xbf16>
    %310 = vector.shape_cast %309 : vector<1x16x288xbf16> to vector<16x288xbf16>
    %c384_187 = arith.constant 384 : index
    %c1152_188 = arith.constant 1152 : index
    %311 = vector.load %arg5[%c384_187, %c1152_188] : memref<400x1536xbf16, #tpu.memory_space<vmem>>, vector<16x288xbf16>
    tpu.vector_store %arg5[%c384_187, %c1152_188], %310 {strides = array<i32>} : memref<400x1536xbf16, #tpu.memory_space<vmem>>, vector<16x288xbf16>,
    %c0_189 = arith.constant 0 : index
    %c0_190 = arith.constant 0 : index
    %312 = vector.load %arg5[%c0_189, %c0_190] : memref<400x1536xbf16, #tpu.memory_space<vmem>>, vector<400x1536xbf16>
    %cst_191 = arith.constant dense<0.000000e+00> : vector<32x1536xf32>
    %313 = tpu.matmul %0, %312, %cst_191 {dimension_numbers = #tpu.dot_dimension_numbers<[1], [0], [0], [1], [0, 0, 1, 1], [], []>} : vector<32x400xbf16>, vector<400x1536xbf16>, vector<32x1536xf32> -> vector<32x1536xf32>
    %314 = vector.extract_strided_slice %313 {offsets = [0, 0], sizes = [32, 384], strides = [1, 1]} : vector<32x1536xf32> to vector<32x384xf32>
    %315 = vector.extract_strided_slice %313 {offsets = [0, 384], sizes = [32, 384], strides = [1, 1]} : vector<32x1536xf32> to vector<32x384xf32>
    %316 = arith.maximumf %314, %315 : vector<32x384xf32>
    %317 = vector.extract_strided_slice %313 {offsets = [0, 768], sizes = [32, 384], strides = [1, 1]} : vector<32x1536xf32> to vector<32x384xf32>
    %318 = vector.extract_strided_slice %313 {offsets = [0, 1152], sizes = [32, 384], strides = [1, 1]} : vector<32x1536xf32> to vector<32x384xf32>
    %319 = arith.maximumf %317, %318 : vector<32x384xf32>
    %320 = arith.maximumf %316, %319 : vector<32x384xf32>
    %321 = vector.broadcast %1 : vector<32x1xf32> to vector<32x384xf32>
    %322 = arith.addf %320, %321 : vector<32x384xf32>
    %323 = arith.truncf %322 : vector<32x384xf32> to vector<32x384xbf16>
    %c0_192 = arith.constant 0 : index
    %c0_193 = arith.constant 0 : index
    %c0_194 = arith.constant 0 : index
    %324 = vector.load %arg4[%c0_192, %c0_193, %c0_194] : memref<1x32x384xbf16, #tpu.memory_space<vmem>>, vector<1x32x384xbf16>
    %325 = vector.shape_cast %324 : vector<1x32x384xbf16> to vector<32x384xbf16>
    %326 = vector.shape_cast %323 : vector<32x384xbf16> to vector<1x32x384xbf16>
    tpu.vector_store %arg4[%c0_192, %c0_193, %c0_194], %326 {strides = array<i32>} : memref<1x32x384xbf16, #tpu.memory_space<vmem>>, vector<1x32x384xbf16>,
    return
  }
  func.func @transform_0(%arg0: i32) -> (i32, i32, i32, i32) {
    %c0_i32 = arith.constant 0 : i32
    %c0_i32_0 = arith.constant 0 : i32
    %c0_i32_1 = arith.constant 0 : i32
    %c0_i32_2 = arith.constant 0 : i32
    return %arg0, %c0_i32, %c0_i32_0, %c0_i32_1 : i32, i32, i32, i32
  }
  func.func @transform_1(%arg0: i32) -> (i32, i32) {
    %c0_i32 = arith.constant 0 : i32
    %c0_i32_0 = arith.constant 0 : i32
    %c0_i32_1 = arith.constant 0 : i32
    return %c0_i32, %c0_i32_0 : i32, i32
  }
  func.func @transform_2(%arg0: i32) -> (i32, i32) {
    %c0_i32 = arith.constant 0 : i32
    %c0_i32_0 = arith.constant 0 : i32
    %c0_i32_1 = arith.constant 0 : i32
    return %c0_i32, %c0_i32_0 : i32, i32
  }
  func.func @transform_3(%arg0: i32) -> (i32, i32, i32) {
    %c0_i32 = arith.constant 0 : i32
    %c0_i32_0 = arith.constant 0 : i32
    %c0_i32_1 = arith.constant 0 : i32
    return %arg0, %c0_i32, %c0_i32_0 : i32, i32, i32
  }
}

module attributes {stable_mosaic.version = 11 : i64} {
  func.func @conv_pool_kernel(%arg0: i32, %arg1: memref<1x4x32x108xbf16, #tpu.memory_space<vmem>>, %arg2: memref<32x800xbf16, #tpu.memory_space<vmem>>, %arg3: memref<32x1xf32, #tpu.memory_space<vmem>>, %arg4: memref<1x32x128xbf16, #tpu.memory_space<vmem>>, %arg5: memref<800x512xbf16, #tpu.memory_space<vmem>>) attributes {dimension_semantics = [#tpu.dimension_semantics<parallel>], iteration_bounds = array<i64: 2>, scalar_prefetch = 0 : i64, scratch_operands = 1 : i64, tpu.core_type = #tpu.core_type<tc>, window_params = [{transform_indices = @transform_0, window_bounds = array<i64: 1, 4, 32, 108>}, {pipeline_mode = #tpu.pipeline_mode<synchronous>, transform_indices = @transform_1, window_bounds = array<i64: 32, 800>}, {pipeline_mode = #tpu.pipeline_mode<synchronous>, transform_indices = @transform_2, window_bounds = array<i64: 32, 1>}, {transform_indices = @transform_3, window_bounds = array<i64: 1, 32, 128>}]} {
    %c0 = arith.constant 0 : index
    %c0_0 = arith.constant 0 : index
    %0 = vector.load %arg2[%c0, %c0_0] : memref<32x800xbf16, #tpu.memory_space<vmem>>, vector<32x800xbf16>
    %c0_1 = arith.constant 0 : index
    %c0_2 = arith.constant 0 : index
    %1 = vector.load %arg3[%c0_1, %c0_2] : memref<32x1xf32, #tpu.memory_space<vmem>>, vector<32x1xf32>
    %cst = arith.constant 0.000000e+00 : bf16
    %2 = vector.broadcast %cst : bf16 to vector<800x48xbf16>
    %c0_3 = arith.constant 0 : index
    %c80 = arith.constant 80 : index
    %3 = vector.load %arg5[%c0_3, %c80] : memref<800x512xbf16, #tpu.memory_space<vmem>>, vector<800x48xbf16>
    tpu.vector_store %arg5[%c0_3, %c80], %2 {strides = array<i32>} : memref<800x512xbf16, #tpu.memory_space<vmem>>, vector<800x48xbf16>,
    %cst_4 = arith.constant 0.000000e+00 : bf16
    %4 = vector.broadcast %cst_4 : bf16 to vector<800x48xbf16>
    %c0_5 = arith.constant 0 : index
    %c208 = arith.constant 208 : index
    %5 = vector.load %arg5[%c0_5, %c208] : memref<800x512xbf16, #tpu.memory_space<vmem>>, vector<800x48xbf16>
    tpu.vector_store %arg5[%c0_5, %c208], %4 {strides = array<i32>} : memref<800x512xbf16, #tpu.memory_space<vmem>>, vector<800x48xbf16>,
    %cst_6 = arith.constant 0.000000e+00 : bf16
    %6 = vector.broadcast %cst_6 : bf16 to vector<800x48xbf16>
    %c0_7 = arith.constant 0 : index
    %c336 = arith.constant 336 : index
    %7 = vector.load %arg5[%c0_7, %c336] : memref<800x512xbf16, #tpu.memory_space<vmem>>, vector<800x48xbf16>
    tpu.vector_store %arg5[%c0_7, %c336], %6 {strides = array<i32>} : memref<800x512xbf16, #tpu.memory_space<vmem>>, vector<800x48xbf16>,
    %cst_8 = arith.constant 0.000000e+00 : bf16
    %8 = vector.broadcast %cst_8 : bf16 to vector<800x48xbf16>
    %c0_9 = arith.constant 0 : index
    %c464 = arith.constant 464 : index
    %9 = vector.load %arg5[%c0_9, %c464] : memref<800x512xbf16, #tpu.memory_space<vmem>>, vector<800x48xbf16>
    tpu.vector_store %arg5[%c0_9, %c464], %8 {strides = array<i32>} : memref<800x512xbf16, #tpu.memory_space<vmem>>, vector<800x48xbf16>,
    %c0_10 = arith.constant 0 : index
    %c0_11 = arith.constant 0 : index
    %c0_12 = arith.constant 0 : index
    %c0_13 = arith.constant 0 : index
    %10 = vector.load %arg1[%c0_10, %c0_11, %c0_12, %c0_13] : memref<1x4x32x108xbf16, #tpu.memory_space<vmem>>, vector<1x4x32x108xbf16>
    %11 = vector.shape_cast %10 : vector<1x4x32x108xbf16> to vector<4x32x108xbf16>
    %12 = vector.extract_strided_slice %11 {offsets = [0, 0, 0], sizes = [1, 32, 80], strides = [1, 1, 1]} : vector<4x32x108xbf16> to vector<1x32x80xbf16>
    %13 = vector.shape_cast %12 : vector<1x32x80xbf16> to vector<32x80xbf16>
    %c0_14 = arith.constant 0 : index
    %c0_15 = arith.constant 0 : index
    %14 = vector.load %arg5[%c0_14, %c0_15] : memref<800x512xbf16, #tpu.memory_space<vmem>>, vector<32x80xbf16>
    tpu.vector_store %arg5[%c0_14, %c0_15], %13 {strides = array<i32>} : memref<800x512xbf16, #tpu.memory_space<vmem>>, vector<32x80xbf16>,
    %15 = vector.extract_strided_slice %11 {offsets = [1, 0, 0], sizes = [1, 32, 80], strides = [1, 1, 1]} : vector<4x32x108xbf16> to vector<1x32x80xbf16>
    %16 = vector.shape_cast %15 : vector<1x32x80xbf16> to vector<32x80xbf16>
    %c32 = arith.constant 32 : index
    %c0_16 = arith.constant 0 : index
    %17 = vector.load %arg5[%c32, %c0_16] : memref<800x512xbf16, #tpu.memory_space<vmem>>, vector<32x80xbf16>
    tpu.vector_store %arg5[%c32, %c0_16], %16 {strides = array<i32>} : memref<800x512xbf16, #tpu.memory_space<vmem>>, vector<32x80xbf16>,
    %18 = vector.extract_strided_slice %11 {offsets = [0, 0, 1], sizes = [1, 32, 80], strides = [1, 1, 1]} : vector<4x32x108xbf16> to vector<1x32x80xbf16>
    %19 = vector.shape_cast %18 : vector<1x32x80xbf16> to vector<32x80xbf16>
    %c64 = arith.constant 64 : index
    %c0_17 = arith.constant 0 : index
    %20 = vector.load %arg5[%c64, %c0_17] : memref<800x512xbf16, #tpu.memory_space<vmem>>, vector<32x80xbf16>
    tpu.vector_store %arg5[%c64, %c0_17], %19 {strides = array<i32>} : memref<800x512xbf16, #tpu.memory_space<vmem>>, vector<32x80xbf16>,
    %21 = vector.extract_strided_slice %11 {offsets = [1, 0, 1], sizes = [1, 32, 80], strides = [1, 1, 1]} : vector<4x32x108xbf16> to vector<1x32x80xbf16>
    %22 = vector.shape_cast %21 : vector<1x32x80xbf16> to vector<32x80xbf16>
    %c96 = arith.constant 96 : index
    %c0_18 = arith.constant 0 : index
    %23 = vector.load %arg5[%c96, %c0_18] : memref<800x512xbf16, #tpu.memory_space<vmem>>, vector<32x80xbf16>
    tpu.vector_store %arg5[%c96, %c0_18], %22 {strides = array<i32>} : memref<800x512xbf16, #tpu.memory_space<vmem>>, vector<32x80xbf16>,
    %24 = vector.extract_strided_slice %11 {offsets = [0, 0, 2], sizes = [1, 32, 80], strides = [1, 1, 1]} : vector<4x32x108xbf16> to vector<1x32x80xbf16>
    %25 = vector.shape_cast %24 : vector<1x32x80xbf16> to vector<32x80xbf16>
    %c128 = arith.constant 128 : index
    %c0_19 = arith.constant 0 : index
    %26 = vector.load %arg5[%c128, %c0_19] : memref<800x512xbf16, #tpu.memory_space<vmem>>, vector<32x80xbf16>
    tpu.vector_store %arg5[%c128, %c0_19], %25 {strides = array<i32>} : memref<800x512xbf16, #tpu.memory_space<vmem>>, vector<32x80xbf16>,
    %27 = vector.extract_strided_slice %11 {offsets = [2, 0, 0], sizes = [1, 32, 80], strides = [1, 1, 1]} : vector<4x32x108xbf16> to vector<1x32x80xbf16>
    %28 = vector.shape_cast %27 : vector<1x32x80xbf16> to vector<32x80xbf16>
    %c160 = arith.constant 160 : index
    %c0_20 = arith.constant 0 : index
    %29 = vector.load %arg5[%c160, %c0_20] : memref<800x512xbf16, #tpu.memory_space<vmem>>, vector<32x80xbf16>
    tpu.vector_store %arg5[%c160, %c0_20], %28 {strides = array<i32>} : memref<800x512xbf16, #tpu.memory_space<vmem>>, vector<32x80xbf16>,
    %30 = vector.extract_strided_slice %11 {offsets = [3, 0, 0], sizes = [1, 32, 80], strides = [1, 1, 1]} : vector<4x32x108xbf16> to vector<1x32x80xbf16>
    %31 = vector.shape_cast %30 : vector<1x32x80xbf16> to vector<32x80xbf16>
    %c192 = arith.constant 192 : index
    %c0_21 = arith.constant 0 : index
    %32 = vector.load %arg5[%c192, %c0_21] : memref<800x512xbf16, #tpu.memory_space<vmem>>, vector<32x80xbf16>
    tpu.vector_store %arg5[%c192, %c0_21], %31 {strides = array<i32>} : memref<800x512xbf16, #tpu.memory_space<vmem>>, vector<32x80xbf16>,
    %33 = vector.extract_strided_slice %11 {offsets = [2, 0, 1], sizes = [1, 32, 80], strides = [1, 1, 1]} : vector<4x32x108xbf16> to vector<1x32x80xbf16>
    %34 = vector.shape_cast %33 : vector<1x32x80xbf16> to vector<32x80xbf16>
    %c224 = arith.constant 224 : index
    %c0_22 = arith.constant 0 : index
    %35 = vector.load %arg5[%c224, %c0_22] : memref<800x512xbf16, #tpu.memory_space<vmem>>, vector<32x80xbf16>
    tpu.vector_store %arg5[%c224, %c0_22], %34 {strides = array<i32>} : memref<800x512xbf16, #tpu.memory_space<vmem>>, vector<32x80xbf16>,
    %36 = vector.extract_strided_slice %11 {offsets = [3, 0, 1], sizes = [1, 32, 80], strides = [1, 1, 1]} : vector<4x32x108xbf16> to vector<1x32x80xbf16>
    %37 = vector.shape_cast %36 : vector<1x32x80xbf16> to vector<32x80xbf16>
    %c256 = arith.constant 256 : index
    %c0_23 = arith.constant 0 : index
    %38 = vector.load %arg5[%c256, %c0_23] : memref<800x512xbf16, #tpu.memory_space<vmem>>, vector<32x80xbf16>
    tpu.vector_store %arg5[%c256, %c0_23], %37 {strides = array<i32>} : memref<800x512xbf16, #tpu.memory_space<vmem>>, vector<32x80xbf16>,
    %39 = vector.extract_strided_slice %11 {offsets = [2, 0, 2], sizes = [1, 32, 80], strides = [1, 1, 1]} : vector<4x32x108xbf16> to vector<1x32x80xbf16>
    %40 = vector.shape_cast %39 : vector<1x32x80xbf16> to vector<32x80xbf16>
    %c288 = arith.constant 288 : index
    %c0_24 = arith.constant 0 : index
    %41 = vector.load %arg5[%c288, %c0_24] : memref<800x512xbf16, #tpu.memory_space<vmem>>, vector<32x80xbf16>
    tpu.vector_store %arg5[%c288, %c0_24], %40 {strides = array<i32>} : memref<800x512xbf16, #tpu.memory_space<vmem>>, vector<32x80xbf16>,
    %42 = vector.extract_strided_slice %11 {offsets = [0, 0, 10], sizes = [1, 32, 80], strides = [1, 1, 1]} : vector<4x32x108xbf16> to vector<1x32x80xbf16>
    %43 = vector.shape_cast %42 : vector<1x32x80xbf16> to vector<32x80xbf16>
    %c320 = arith.constant 320 : index
    %c0_25 = arith.constant 0 : index
    %44 = vector.load %arg5[%c320, %c0_25] : memref<800x512xbf16, #tpu.memory_space<vmem>>, vector<32x80xbf16>
    tpu.vector_store %arg5[%c320, %c0_25], %43 {strides = array<i32>} : memref<800x512xbf16, #tpu.memory_space<vmem>>, vector<32x80xbf16>,
    %45 = vector.extract_strided_slice %11 {offsets = [1, 0, 10], sizes = [1, 32, 80], strides = [1, 1, 1]} : vector<4x32x108xbf16> to vector<1x32x80xbf16>
    %46 = vector.shape_cast %45 : vector<1x32x80xbf16> to vector<32x80xbf16>
    %c352 = arith.constant 352 : index
    %c0_26 = arith.constant 0 : index
    %47 = vector.load %arg5[%c352, %c0_26] : memref<800x512xbf16, #tpu.memory_space<vmem>>, vector<32x80xbf16>
    tpu.vector_store %arg5[%c352, %c0_26], %46 {strides = array<i32>} : memref<800x512xbf16, #tpu.memory_space<vmem>>, vector<32x80xbf16>,
    %48 = vector.extract_strided_slice %11 {offsets = [0, 0, 11], sizes = [1, 32, 80], strides = [1, 1, 1]} : vector<4x32x108xbf16> to vector<1x32x80xbf16>
    %49 = vector.shape_cast %48 : vector<1x32x80xbf16> to vector<32x80xbf16>
    %c384 = arith.constant 384 : index
    %c0_27 = arith.constant 0 : index
    %50 = vector.load %arg5[%c384, %c0_27] : memref<800x512xbf16, #tpu.memory_space<vmem>>, vector<32x80xbf16>
    tpu.vector_store %arg5[%c384, %c0_27], %49 {strides = array<i32>} : memref<800x512xbf16, #tpu.memory_space<vmem>>, vector<32x80xbf16>,
    %51 = vector.extract_strided_slice %11 {offsets = [1, 0, 11], sizes = [1, 32, 80], strides = [1, 1, 1]} : vector<4x32x108xbf16> to vector<1x32x80xbf16>
    %52 = vector.shape_cast %51 : vector<1x32x80xbf16> to vector<32x80xbf16>
    %c416 = arith.constant 416 : index
    %c0_28 = arith.constant 0 : index
    %53 = vector.load %arg5[%c416, %c0_28] : memref<800x512xbf16, #tpu.memory_space<vmem>>, vector<32x80xbf16>
    tpu.vector_store %arg5[%c416, %c0_28], %52 {strides = array<i32>} : memref<800x512xbf16, #tpu.memory_space<vmem>>, vector<32x80xbf16>,
    %54 = vector.extract_strided_slice %11 {offsets = [0, 0, 12], sizes = [1, 32, 80], strides = [1, 1, 1]} : vector<4x32x108xbf16> to vector<1x32x80xbf16>
    %55 = vector.shape_cast %54 : vector<1x32x80xbf16> to vector<32x80xbf16>
    %c448 = arith.constant 448 : index
    %c0_29 = arith.constant 0 : index
    %56 = vector.load %arg5[%c448, %c0_29] : memref<800x512xbf16, #tpu.memory_space<vmem>>, vector<32x80xbf16>
    tpu.vector_store %arg5[%c448, %c0_29], %55 {strides = array<i32>} : memref<800x512xbf16, #tpu.memory_space<vmem>>, vector<32x80xbf16>,
    %57 = vector.extract_strided_slice %11 {offsets = [2, 0, 10], sizes = [1, 32, 80], strides = [1, 1, 1]} : vector<4x32x108xbf16> to vector<1x32x80xbf16>
    %58 = vector.shape_cast %57 : vector<1x32x80xbf16> to vector<32x80xbf16>
    %c480 = arith.constant 480 : index
    %c0_30 = arith.constant 0 : index
    %59 = vector.load %arg5[%c480, %c0_30] : memref<800x512xbf16, #tpu.memory_space<vmem>>, vector<32x80xbf16>
    tpu.vector_store %arg5[%c480, %c0_30], %58 {strides = array<i32>} : memref<800x512xbf16, #tpu.memory_space<vmem>>, vector<32x80xbf16>,
    %60 = vector.extract_strided_slice %11 {offsets = [3, 0, 10], sizes = [1, 32, 80], strides = [1, 1, 1]} : vector<4x32x108xbf16> to vector<1x32x80xbf16>
    %61 = vector.shape_cast %60 : vector<1x32x80xbf16> to vector<32x80xbf16>
    %c512 = arith.constant 512 : index
    %c0_31 = arith.constant 0 : index
    %62 = vector.load %arg5[%c512, %c0_31] : memref<800x512xbf16, #tpu.memory_space<vmem>>, vector<32x80xbf16>
    tpu.vector_store %arg5[%c512, %c0_31], %61 {strides = array<i32>} : memref<800x512xbf16, #tpu.memory_space<vmem>>, vector<32x80xbf16>,
    %63 = vector.extract_strided_slice %11 {offsets = [2, 0, 11], sizes = [1, 32, 80], strides = [1, 1, 1]} : vector<4x32x108xbf16> to vector<1x32x80xbf16>
    %64 = vector.shape_cast %63 : vector<1x32x80xbf16> to vector<32x80xbf16>
    %c544 = arith.constant 544 : index
    %c0_32 = arith.constant 0 : index
    %65 = vector.load %arg5[%c544, %c0_32] : memref<800x512xbf16, #tpu.memory_space<vmem>>, vector<32x80xbf16>
    tpu.vector_store %arg5[%c544, %c0_32], %64 {strides = array<i32>} : memref<800x512xbf16, #tpu.memory_space<vmem>>, vector<32x80xbf16>,
    %66 = vector.extract_strided_slice %11 {offsets = [3, 0, 11], sizes = [1, 32, 80], strides = [1, 1, 1]} : vector<4x32x108xbf16> to vector<1x32x80xbf16>
    %67 = vector.shape_cast %66 : vector<1x32x80xbf16> to vector<32x80xbf16>
    %c576 = arith.constant 576 : index
    %c0_33 = arith.constant 0 : index
    %68 = vector.load %arg5[%c576, %c0_33] : memref<800x512xbf16, #tpu.memory_space<vmem>>, vector<32x80xbf16>
    tpu.vector_store %arg5[%c576, %c0_33], %67 {strides = array<i32>} : memref<800x512xbf16, #tpu.memory_space<vmem>>, vector<32x80xbf16>,
    %69 = vector.extract_strided_slice %11 {offsets = [2, 0, 12], sizes = [1, 32, 80], strides = [1, 1, 1]} : vector<4x32x108xbf16> to vector<1x32x80xbf16>
    %70 = vector.shape_cast %69 : vector<1x32x80xbf16> to vector<32x80xbf16>
    %c608 = arith.constant 608 : index
    %c0_34 = arith.constant 0 : index
    %71 = vector.load %arg5[%c608, %c0_34] : memref<800x512xbf16, #tpu.memory_space<vmem>>, vector<32x80xbf16>
    tpu.vector_store %arg5[%c608, %c0_34], %70 {strides = array<i32>} : memref<800x512xbf16, #tpu.memory_space<vmem>>, vector<32x80xbf16>,
    %72 = vector.extract_strided_slice %11 {offsets = [0, 0, 20], sizes = [1, 32, 80], strides = [1, 1, 1]} : vector<4x32x108xbf16> to vector<1x32x80xbf16>
    %73 = vector.shape_cast %72 : vector<1x32x80xbf16> to vector<32x80xbf16>
    %c640 = arith.constant 640 : index
    %c0_35 = arith.constant 0 : index
    %74 = vector.load %arg5[%c640, %c0_35] : memref<800x512xbf16, #tpu.memory_space<vmem>>, vector<32x80xbf16>
    tpu.vector_store %arg5[%c640, %c0_35], %73 {strides = array<i32>} : memref<800x512xbf16, #tpu.memory_space<vmem>>, vector<32x80xbf16>,
    %75 = vector.extract_strided_slice %11 {offsets = [1, 0, 20], sizes = [1, 32, 80], strides = [1, 1, 1]} : vector<4x32x108xbf16> to vector<1x32x80xbf16>
    %76 = vector.shape_cast %75 : vector<1x32x80xbf16> to vector<32x80xbf16>
    %c672 = arith.constant 672 : index
    %c0_36 = arith.constant 0 : index
    %77 = vector.load %arg5[%c672, %c0_36] : memref<800x512xbf16, #tpu.memory_space<vmem>>, vector<32x80xbf16>
    tpu.vector_store %arg5[%c672, %c0_36], %76 {strides = array<i32>} : memref<800x512xbf16, #tpu.memory_space<vmem>>, vector<32x80xbf16>,
    %78 = vector.extract_strided_slice %11 {offsets = [0, 0, 21], sizes = [1, 32, 80], strides = [1, 1, 1]} : vector<4x32x108xbf16> to vector<1x32x80xbf16>
    %79 = vector.shape_cast %78 : vector<1x32x80xbf16> to vector<32x80xbf16>
    %c704 = arith.constant 704 : index
    %c0_37 = arith.constant 0 : index
    %80 = vector.load %arg5[%c704, %c0_37] : memref<800x512xbf16, #tpu.memory_space<vmem>>, vector<32x80xbf16>
    tpu.vector_store %arg5[%c704, %c0_37], %79 {strides = array<i32>} : memref<800x512xbf16, #tpu.memory_space<vmem>>, vector<32x80xbf16>,
    %81 = vector.extract_strided_slice %11 {offsets = [1, 0, 21], sizes = [1, 32, 80], strides = [1, 1, 1]} : vector<4x32x108xbf16> to vector<1x32x80xbf16>
    %82 = vector.shape_cast %81 : vector<1x32x80xbf16> to vector<32x80xbf16>
    %c736 = arith.constant 736 : index
    %c0_38 = arith.constant 0 : index
    %83 = vector.load %arg5[%c736, %c0_38] : memref<800x512xbf16, #tpu.memory_space<vmem>>, vector<32x80xbf16>
    tpu.vector_store %arg5[%c736, %c0_38], %82 {strides = array<i32>} : memref<800x512xbf16, #tpu.memory_space<vmem>>, vector<32x80xbf16>,
    %84 = vector.extract_strided_slice %11 {offsets = [0, 0, 22], sizes = [1, 32, 80], strides = [1, 1, 1]} : vector<4x32x108xbf16> to vector<1x32x80xbf16>
    %85 = vector.shape_cast %84 : vector<1x32x80xbf16> to vector<32x80xbf16>
    %c768 = arith.constant 768 : index
    %c0_39 = arith.constant 0 : index
    %86 = vector.load %arg5[%c768, %c0_39] : memref<800x512xbf16, #tpu.memory_space<vmem>>, vector<32x80xbf16>
    tpu.vector_store %arg5[%c768, %c0_39], %85 {strides = array<i32>} : memref<800x512xbf16, #tpu.memory_space<vmem>>, vector<32x80xbf16>,
    %87 = vector.extract_strided_slice %11 {offsets = [1, 0, 0], sizes = [1, 32, 80], strides = [1, 1, 1]} : vector<4x32x108xbf16> to vector<1x32x80xbf16>
    %88 = vector.shape_cast %87 : vector<1x32x80xbf16> to vector<32x80xbf16>
    %c0_40 = arith.constant 0 : index
    %c128_41 = arith.constant 128 : index
    %89 = vector.load %arg5[%c0_40, %c128_41] : memref<800x512xbf16, #tpu.memory_space<vmem>>, vector<32x80xbf16>
    tpu.vector_store %arg5[%c0_40, %c128_41], %88 {strides = array<i32>} : memref<800x512xbf16, #tpu.memory_space<vmem>>, vector<32x80xbf16>,
    %90 = vector.extract_strided_slice %11 {offsets = [0, 0, 1], sizes = [1, 32, 80], strides = [1, 1, 1]} : vector<4x32x108xbf16> to vector<1x32x80xbf16>
    %91 = vector.shape_cast %90 : vector<1x32x80xbf16> to vector<32x80xbf16>
    %c32_42 = arith.constant 32 : index
    %c128_43 = arith.constant 128 : index
    %92 = vector.load %arg5[%c32_42, %c128_43] : memref<800x512xbf16, #tpu.memory_space<vmem>>, vector<32x80xbf16>
    tpu.vector_store %arg5[%c32_42, %c128_43], %91 {strides = array<i32>} : memref<800x512xbf16, #tpu.memory_space<vmem>>, vector<32x80xbf16>,
    %93 = vector.extract_strided_slice %11 {offsets = [1, 0, 1], sizes = [1, 32, 80], strides = [1, 1, 1]} : vector<4x32x108xbf16> to vector<1x32x80xbf16>
    %94 = vector.shape_cast %93 : vector<1x32x80xbf16> to vector<32x80xbf16>
    %c64_44 = arith.constant 64 : index
    %c128_45 = arith.constant 128 : index
    %95 = vector.load %arg5[%c64_44, %c128_45] : memref<800x512xbf16, #tpu.memory_space<vmem>>, vector<32x80xbf16>
    tpu.vector_store %arg5[%c64_44, %c128_45], %94 {strides = array<i32>} : memref<800x512xbf16, #tpu.memory_space<vmem>>, vector<32x80xbf16>,
    %96 = vector.extract_strided_slice %11 {offsets = [0, 0, 2], sizes = [1, 32, 80], strides = [1, 1, 1]} : vector<4x32x108xbf16> to vector<1x32x80xbf16>
    %97 = vector.shape_cast %96 : vector<1x32x80xbf16> to vector<32x80xbf16>
    %c96_46 = arith.constant 96 : index
    %c128_47 = arith.constant 128 : index
    %98 = vector.load %arg5[%c96_46, %c128_47] : memref<800x512xbf16, #tpu.memory_space<vmem>>, vector<32x80xbf16>
    tpu.vector_store %arg5[%c96_46, %c128_47], %97 {strides = array<i32>} : memref<800x512xbf16, #tpu.memory_space<vmem>>, vector<32x80xbf16>,
    %99 = vector.extract_strided_slice %11 {offsets = [1, 0, 2], sizes = [1, 32, 80], strides = [1, 1, 1]} : vector<4x32x108xbf16> to vector<1x32x80xbf16>
    %100 = vector.shape_cast %99 : vector<1x32x80xbf16> to vector<32x80xbf16>
    %c128_48 = arith.constant 128 : index
    %c128_49 = arith.constant 128 : index
    %101 = vector.load %arg5[%c128_48, %c128_49] : memref<800x512xbf16, #tpu.memory_space<vmem>>, vector<32x80xbf16>
    tpu.vector_store %arg5[%c128_48, %c128_49], %100 {strides = array<i32>} : memref<800x512xbf16, #tpu.memory_space<vmem>>, vector<32x80xbf16>,
    %102 = vector.extract_strided_slice %11 {offsets = [3, 0, 0], sizes = [1, 32, 80], strides = [1, 1, 1]} : vector<4x32x108xbf16> to vector<1x32x80xbf16>
    %103 = vector.shape_cast %102 : vector<1x32x80xbf16> to vector<32x80xbf16>
    %c160_50 = arith.constant 160 : index
    %c128_51 = arith.constant 128 : index
    %104 = vector.load %arg5[%c160_50, %c128_51] : memref<800x512xbf16, #tpu.memory_space<vmem>>, vector<32x80xbf16>
    tpu.vector_store %arg5[%c160_50, %c128_51], %103 {strides = array<i32>} : memref<800x512xbf16, #tpu.memory_space<vmem>>, vector<32x80xbf16>,
    %105 = vector.extract_strided_slice %11 {offsets = [2, 0, 1], sizes = [1, 32, 80], strides = [1, 1, 1]} : vector<4x32x108xbf16> to vector<1x32x80xbf16>
    %106 = vector.shape_cast %105 : vector<1x32x80xbf16> to vector<32x80xbf16>
    %c192_52 = arith.constant 192 : index
    %c128_53 = arith.constant 128 : index
    %107 = vector.load %arg5[%c192_52, %c128_53] : memref<800x512xbf16, #tpu.memory_space<vmem>>, vector<32x80xbf16>
    tpu.vector_store %arg5[%c192_52, %c128_53], %106 {strides = array<i32>} : memref<800x512xbf16, #tpu.memory_space<vmem>>, vector<32x80xbf16>,
    %108 = vector.extract_strided_slice %11 {offsets = [3, 0, 1], sizes = [1, 32, 80], strides = [1, 1, 1]} : vector<4x32x108xbf16> to vector<1x32x80xbf16>
    %109 = vector.shape_cast %108 : vector<1x32x80xbf16> to vector<32x80xbf16>
    %c224_54 = arith.constant 224 : index
    %c128_55 = arith.constant 128 : index
    %110 = vector.load %arg5[%c224_54, %c128_55] : memref<800x512xbf16, #tpu.memory_space<vmem>>, vector<32x80xbf16>
    tpu.vector_store %arg5[%c224_54, %c128_55], %109 {strides = array<i32>} : memref<800x512xbf16, #tpu.memory_space<vmem>>, vector<32x80xbf16>,
    %111 = vector.extract_strided_slice %11 {offsets = [2, 0, 2], sizes = [1, 32, 80], strides = [1, 1, 1]} : vector<4x32x108xbf16> to vector<1x32x80xbf16>
    %112 = vector.shape_cast %111 : vector<1x32x80xbf16> to vector<32x80xbf16>
    %c256_56 = arith.constant 256 : index
    %c128_57 = arith.constant 128 : index
    %113 = vector.load %arg5[%c256_56, %c128_57] : memref<800x512xbf16, #tpu.memory_space<vmem>>, vector<32x80xbf16>
    tpu.vector_store %arg5[%c256_56, %c128_57], %112 {strides = array<i32>} : memref<800x512xbf16, #tpu.memory_space<vmem>>, vector<32x80xbf16>,
    %114 = vector.extract_strided_slice %11 {offsets = [3, 0, 2], sizes = [1, 32, 80], strides = [1, 1, 1]} : vector<4x32x108xbf16> to vector<1x32x80xbf16>
    %115 = vector.shape_cast %114 : vector<1x32x80xbf16> to vector<32x80xbf16>
    %c288_58 = arith.constant 288 : index
    %c128_59 = arith.constant 128 : index
    %116 = vector.load %arg5[%c288_58, %c128_59] : memref<800x512xbf16, #tpu.memory_space<vmem>>, vector<32x80xbf16>
    tpu.vector_store %arg5[%c288_58, %c128_59], %115 {strides = array<i32>} : memref<800x512xbf16, #tpu.memory_space<vmem>>, vector<32x80xbf16>,
    %117 = vector.extract_strided_slice %11 {offsets = [1, 0, 10], sizes = [1, 32, 80], strides = [1, 1, 1]} : vector<4x32x108xbf16> to vector<1x32x80xbf16>
    %118 = vector.shape_cast %117 : vector<1x32x80xbf16> to vector<32x80xbf16>
    %c320_60 = arith.constant 320 : index
    %c128_61 = arith.constant 128 : index
    %119 = vector.load %arg5[%c320_60, %c128_61] : memref<800x512xbf16, #tpu.memory_space<vmem>>, vector<32x80xbf16>
    tpu.vector_store %arg5[%c320_60, %c128_61], %118 {strides = array<i32>} : memref<800x512xbf16, #tpu.memory_space<vmem>>, vector<32x80xbf16>,
    %120 = vector.extract_strided_slice %11 {offsets = [0, 0, 11], sizes = [1, 32, 80], strides = [1, 1, 1]} : vector<4x32x108xbf16> to vector<1x32x80xbf16>
    %121 = vector.shape_cast %120 : vector<1x32x80xbf16> to vector<32x80xbf16>
    %c352_62 = arith.constant 352 : index
    %c128_63 = arith.constant 128 : index
    %122 = vector.load %arg5[%c352_62, %c128_63] : memref<800x512xbf16, #tpu.memory_space<vmem>>, vector<32x80xbf16>
    tpu.vector_store %arg5[%c352_62, %c128_63], %121 {strides = array<i32>} : memref<800x512xbf16, #tpu.memory_space<vmem>>, vector<32x80xbf16>,
    %123 = vector.extract_strided_slice %11 {offsets = [1, 0, 11], sizes = [1, 32, 80], strides = [1, 1, 1]} : vector<4x32x108xbf16> to vector<1x32x80xbf16>
    %124 = vector.shape_cast %123 : vector<1x32x80xbf16> to vector<32x80xbf16>
    %c384_64 = arith.constant 384 : index
    %c128_65 = arith.constant 128 : index
    %125 = vector.load %arg5[%c384_64, %c128_65] : memref<800x512xbf16, #tpu.memory_space<vmem>>, vector<32x80xbf16>
    tpu.vector_store %arg5[%c384_64, %c128_65], %124 {strides = array<i32>} : memref<800x512xbf16, #tpu.memory_space<vmem>>, vector<32x80xbf16>,
    %126 = vector.extract_strided_slice %11 {offsets = [0, 0, 12], sizes = [1, 32, 80], strides = [1, 1, 1]} : vector<4x32x108xbf16> to vector<1x32x80xbf16>
    %127 = vector.shape_cast %126 : vector<1x32x80xbf16> to vector<32x80xbf16>
    %c416_66 = arith.constant 416 : index
    %c128_67 = arith.constant 128 : index
    %128 = vector.load %arg5[%c416_66, %c128_67] : memref<800x512xbf16, #tpu.memory_space<vmem>>, vector<32x80xbf16>
    tpu.vector_store %arg5[%c416_66, %c128_67], %127 {strides = array<i32>} : memref<800x512xbf16, #tpu.memory_space<vmem>>, vector<32x80xbf16>,
    %129 = vector.extract_strided_slice %11 {offsets = [1, 0, 12], sizes = [1, 32, 80], strides = [1, 1, 1]} : vector<4x32x108xbf16> to vector<1x32x80xbf16>
    %130 = vector.shape_cast %129 : vector<1x32x80xbf16> to vector<32x80xbf16>
    %c448_68 = arith.constant 448 : index
    %c128_69 = arith.constant 128 : index
    %131 = vector.load %arg5[%c448_68, %c128_69] : memref<800x512xbf16, #tpu.memory_space<vmem>>, vector<32x80xbf16>
    tpu.vector_store %arg5[%c448_68, %c128_69], %130 {strides = array<i32>} : memref<800x512xbf16, #tpu.memory_space<vmem>>, vector<32x80xbf16>,
    %132 = vector.extract_strided_slice %11 {offsets = [3, 0, 10], sizes = [1, 32, 80], strides = [1, 1, 1]} : vector<4x32x108xbf16> to vector<1x32x80xbf16>
    %133 = vector.shape_cast %132 : vector<1x32x80xbf16> to vector<32x80xbf16>
    %c480_70 = arith.constant 480 : index
    %c128_71 = arith.constant 128 : index
    %134 = vector.load %arg5[%c480_70, %c128_71] : memref<800x512xbf16, #tpu.memory_space<vmem>>, vector<32x80xbf16>
    tpu.vector_store %arg5[%c480_70, %c128_71], %133 {strides = array<i32>} : memref<800x512xbf16, #tpu.memory_space<vmem>>, vector<32x80xbf16>,
    %135 = vector.extract_strided_slice %11 {offsets = [2, 0, 11], sizes = [1, 32, 80], strides = [1, 1, 1]} : vector<4x32x108xbf16> to vector<1x32x80xbf16>
    %136 = vector.shape_cast %135 : vector<1x32x80xbf16> to vector<32x80xbf16>
    %c512_72 = arith.constant 512 : index
    %c128_73 = arith.constant 128 : index
    %137 = vector.load %arg5[%c512_72, %c128_73] : memref<800x512xbf16, #tpu.memory_space<vmem>>, vector<32x80xbf16>
    tpu.vector_store %arg5[%c512_72, %c128_73], %136 {strides = array<i32>} : memref<800x512xbf16, #tpu.memory_space<vmem>>, vector<32x80xbf16>,
    %138 = vector.extract_strided_slice %11 {offsets = [3, 0, 11], sizes = [1, 32, 80], strides = [1, 1, 1]} : vector<4x32x108xbf16> to vector<1x32x80xbf16>
    %139 = vector.shape_cast %138 : vector<1x32x80xbf16> to vector<32x80xbf16>
    %c544_74 = arith.constant 544 : index
    %c128_75 = arith.constant 128 : index
    %140 = vector.load %arg5[%c544_74, %c128_75] : memref<800x512xbf16, #tpu.memory_space<vmem>>, vector<32x80xbf16>
    tpu.vector_store %arg5[%c544_74, %c128_75], %139 {strides = array<i32>} : memref<800x512xbf16, #tpu.memory_space<vmem>>, vector<32x80xbf16>,
    %141 = vector.extract_strided_slice %11 {offsets = [2, 0, 12], sizes = [1, 32, 80], strides = [1, 1, 1]} : vector<4x32x108xbf16> to vector<1x32x80xbf16>
    %142 = vector.shape_cast %141 : vector<1x32x80xbf16> to vector<32x80xbf16>
    %c576_76 = arith.constant 576 : index
    %c128_77 = arith.constant 128 : index
    %143 = vector.load %arg5[%c576_76, %c128_77] : memref<800x512xbf16, #tpu.memory_space<vmem>>, vector<32x80xbf16>
    tpu.vector_store %arg5[%c576_76, %c128_77], %142 {strides = array<i32>} : memref<800x512xbf16, #tpu.memory_space<vmem>>, vector<32x80xbf16>,
    %144 = vector.extract_strided_slice %11 {offsets = [3, 0, 12], sizes = [1, 32, 80], strides = [1, 1, 1]} : vector<4x32x108xbf16> to vector<1x32x80xbf16>
    %145 = vector.shape_cast %144 : vector<1x32x80xbf16> to vector<32x80xbf16>
    %c608_78 = arith.constant 608 : index
    %c128_79 = arith.constant 128 : index
    %146 = vector.load %arg5[%c608_78, %c128_79] : memref<800x512xbf16, #tpu.memory_space<vmem>>, vector<32x80xbf16>
    tpu.vector_store %arg5[%c608_78, %c128_79], %145 {strides = array<i32>} : memref<800x512xbf16, #tpu.memory_space<vmem>>, vector<32x80xbf16>,
    %147 = vector.extract_strided_slice %11 {offsets = [1, 0, 20], sizes = [1, 32, 80], strides = [1, 1, 1]} : vector<4x32x108xbf16> to vector<1x32x80xbf16>
    %148 = vector.shape_cast %147 : vector<1x32x80xbf16> to vector<32x80xbf16>
    %c640_80 = arith.constant 640 : index
    %c128_81 = arith.constant 128 : index
    %149 = vector.load %arg5[%c640_80, %c128_81] : memref<800x512xbf16, #tpu.memory_space<vmem>>, vector<32x80xbf16>
    tpu.vector_store %arg5[%c640_80, %c128_81], %148 {strides = array<i32>} : memref<800x512xbf16, #tpu.memory_space<vmem>>, vector<32x80xbf16>,
    %150 = vector.extract_strided_slice %11 {offsets = [0, 0, 21], sizes = [1, 32, 80], strides = [1, 1, 1]} : vector<4x32x108xbf16> to vector<1x32x80xbf16>
    %151 = vector.shape_cast %150 : vector<1x32x80xbf16> to vector<32x80xbf16>
    %c672_82 = arith.constant 672 : index
    %c128_83 = arith.constant 128 : index
    %152 = vector.load %arg5[%c672_82, %c128_83] : memref<800x512xbf16, #tpu.memory_space<vmem>>, vector<32x80xbf16>
    tpu.vector_store %arg5[%c672_82, %c128_83], %151 {strides = array<i32>} : memref<800x512xbf16, #tpu.memory_space<vmem>>, vector<32x80xbf16>,
    %153 = vector.extract_strided_slice %11 {offsets = [1, 0, 21], sizes = [1, 32, 80], strides = [1, 1, 1]} : vector<4x32x108xbf16> to vector<1x32x80xbf16>
    %154 = vector.shape_cast %153 : vector<1x32x80xbf16> to vector<32x80xbf16>
    %c704_84 = arith.constant 704 : index
    %c128_85 = arith.constant 128 : index
    %155 = vector.load %arg5[%c704_84, %c128_85] : memref<800x512xbf16, #tpu.memory_space<vmem>>, vector<32x80xbf16>
    tpu.vector_store %arg5[%c704_84, %c128_85], %154 {strides = array<i32>} : memref<800x512xbf16, #tpu.memory_space<vmem>>, vector<32x80xbf16>,
    %156 = vector.extract_strided_slice %11 {offsets = [0, 0, 22], sizes = [1, 32, 80], strides = [1, 1, 1]} : vector<4x32x108xbf16> to vector<1x32x80xbf16>
    %157 = vector.shape_cast %156 : vector<1x32x80xbf16> to vector<32x80xbf16>
    %c736_86 = arith.constant 736 : index
    %c128_87 = arith.constant 128 : index
    %158 = vector.load %arg5[%c736_86, %c128_87] : memref<800x512xbf16, #tpu.memory_space<vmem>>, vector<32x80xbf16>
    tpu.vector_store %arg5[%c736_86, %c128_87], %157 {strides = array<i32>} : memref<800x512xbf16, #tpu.memory_space<vmem>>, vector<32x80xbf16>,
    %159 = vector.extract_strided_slice %11 {offsets = [1, 0, 22], sizes = [1, 32, 80], strides = [1, 1, 1]} : vector<4x32x108xbf16> to vector<1x32x80xbf16>
    %160 = vector.shape_cast %159 : vector<1x32x80xbf16> to vector<32x80xbf16>
    %c768_88 = arith.constant 768 : index
    %c128_89 = arith.constant 128 : index
    %161 = vector.load %arg5[%c768_88, %c128_89] : memref<800x512xbf16, #tpu.memory_space<vmem>>, vector<32x80xbf16>
    tpu.vector_store %arg5[%c768_88, %c128_89], %160 {strides = array<i32>} : memref<800x512xbf16, #tpu.memory_space<vmem>>, vector<32x80xbf16>,
    %162 = vector.extract_strided_slice %11 {offsets = [2, 0, 0], sizes = [1, 32, 80], strides = [1, 1, 1]} : vector<4x32x108xbf16> to vector<1x32x80xbf16>
    %163 = vector.shape_cast %162 : vector<1x32x80xbf16> to vector<32x80xbf16>
    %c0_90 = arith.constant 0 : index
    %c256_91 = arith.constant 256 : index
    %164 = vector.load %arg5[%c0_90, %c256_91] : memref<800x512xbf16, #tpu.memory_space<vmem>>, vector<32x80xbf16>
    tpu.vector_store %arg5[%c0_90, %c256_91], %163 {strides = array<i32>} : memref<800x512xbf16, #tpu.memory_space<vmem>>, vector<32x80xbf16>,
    %165 = vector.extract_strided_slice %11 {offsets = [3, 0, 0], sizes = [1, 32, 80], strides = [1, 1, 1]} : vector<4x32x108xbf16> to vector<1x32x80xbf16>
    %166 = vector.shape_cast %165 : vector<1x32x80xbf16> to vector<32x80xbf16>
    %c32_92 = arith.constant 32 : index
    %c256_93 = arith.constant 256 : index
    %167 = vector.load %arg5[%c32_92, %c256_93] : memref<800x512xbf16, #tpu.memory_space<vmem>>, vector<32x80xbf16>
    tpu.vector_store %arg5[%c32_92, %c256_93], %166 {strides = array<i32>} : memref<800x512xbf16, #tpu.memory_space<vmem>>, vector<32x80xbf16>,
    %168 = vector.extract_strided_slice %11 {offsets = [2, 0, 1], sizes = [1, 32, 80], strides = [1, 1, 1]} : vector<4x32x108xbf16> to vector<1x32x80xbf16>
    %169 = vector.shape_cast %168 : vector<1x32x80xbf16> to vector<32x80xbf16>
    %c64_94 = arith.constant 64 : index
    %c256_95 = arith.constant 256 : index
    %170 = vector.load %arg5[%c64_94, %c256_95] : memref<800x512xbf16, #tpu.memory_space<vmem>>, vector<32x80xbf16>
    tpu.vector_store %arg5[%c64_94, %c256_95], %169 {strides = array<i32>} : memref<800x512xbf16, #tpu.memory_space<vmem>>, vector<32x80xbf16>,
    %171 = vector.extract_strided_slice %11 {offsets = [3, 0, 1], sizes = [1, 32, 80], strides = [1, 1, 1]} : vector<4x32x108xbf16> to vector<1x32x80xbf16>
    %172 = vector.shape_cast %171 : vector<1x32x80xbf16> to vector<32x80xbf16>
    %c96_96 = arith.constant 96 : index
    %c256_97 = arith.constant 256 : index
    %173 = vector.load %arg5[%c96_96, %c256_97] : memref<800x512xbf16, #tpu.memory_space<vmem>>, vector<32x80xbf16>
    tpu.vector_store %arg5[%c96_96, %c256_97], %172 {strides = array<i32>} : memref<800x512xbf16, #tpu.memory_space<vmem>>, vector<32x80xbf16>,
    %174 = vector.extract_strided_slice %11 {offsets = [2, 0, 2], sizes = [1, 32, 80], strides = [1, 1, 1]} : vector<4x32x108xbf16> to vector<1x32x80xbf16>
    %175 = vector.shape_cast %174 : vector<1x32x80xbf16> to vector<32x80xbf16>
    %c128_98 = arith.constant 128 : index
    %c256_99 = arith.constant 256 : index
    %176 = vector.load %arg5[%c128_98, %c256_99] : memref<800x512xbf16, #tpu.memory_space<vmem>>, vector<32x80xbf16>
    tpu.vector_store %arg5[%c128_98, %c256_99], %175 {strides = array<i32>} : memref<800x512xbf16, #tpu.memory_space<vmem>>, vector<32x80xbf16>,
    %177 = vector.extract_strided_slice %11 {offsets = [0, 0, 10], sizes = [1, 32, 80], strides = [1, 1, 1]} : vector<4x32x108xbf16> to vector<1x32x80xbf16>
    %178 = vector.shape_cast %177 : vector<1x32x80xbf16> to vector<32x80xbf16>
    %c160_100 = arith.constant 160 : index
    %c256_101 = arith.constant 256 : index
    %179 = vector.load %arg5[%c160_100, %c256_101] : memref<800x512xbf16, #tpu.memory_space<vmem>>, vector<32x80xbf16>
    tpu.vector_store %arg5[%c160_100, %c256_101], %178 {strides = array<i32>} : memref<800x512xbf16, #tpu.memory_space<vmem>>, vector<32x80xbf16>,
    %180 = vector.extract_strided_slice %11 {offsets = [1, 0, 10], sizes = [1, 32, 80], strides = [1, 1, 1]} : vector<4x32x108xbf16> to vector<1x32x80xbf16>
    %181 = vector.shape_cast %180 : vector<1x32x80xbf16> to vector<32x80xbf16>
    %c192_102 = arith.constant 192 : index
    %c256_103 = arith.constant 256 : index
    %182 = vector.load %arg5[%c192_102, %c256_103] : memref<800x512xbf16, #tpu.memory_space<vmem>>, vector<32x80xbf16>
    tpu.vector_store %arg5[%c192_102, %c256_103], %181 {strides = array<i32>} : memref<800x512xbf16, #tpu.memory_space<vmem>>, vector<32x80xbf16>,
    %183 = vector.extract_strided_slice %11 {offsets = [0, 0, 11], sizes = [1, 32, 80], strides = [1, 1, 1]} : vector<4x32x108xbf16> to vector<1x32x80xbf16>
    %184 = vector.shape_cast %183 : vector<1x32x80xbf16> to vector<32x80xbf16>
    %c224_104 = arith.constant 224 : index
    %c256_105 = arith.constant 256 : index
    %185 = vector.load %arg5[%c224_104, %c256_105] : memref<800x512xbf16, #tpu.memory_space<vmem>>, vector<32x80xbf16>
    tpu.vector_store %arg5[%c224_104, %c256_105], %184 {strides = array<i32>} : memref<800x512xbf16, #tpu.memory_space<vmem>>, vector<32x80xbf16>,
    %186 = vector.extract_strided_slice %11 {offsets = [1, 0, 11], sizes = [1, 32, 80], strides = [1, 1, 1]} : vector<4x32x108xbf16> to vector<1x32x80xbf16>
    %187 = vector.shape_cast %186 : vector<1x32x80xbf16> to vector<32x80xbf16>
    %c256_106 = arith.constant 256 : index
    %c256_107 = arith.constant 256 : index
    %188 = vector.load %arg5[%c256_106, %c256_107] : memref<800x512xbf16, #tpu.memory_space<vmem>>, vector<32x80xbf16>
    tpu.vector_store %arg5[%c256_106, %c256_107], %187 {strides = array<i32>} : memref<800x512xbf16, #tpu.memory_space<vmem>>, vector<32x80xbf16>,
    %189 = vector.extract_strided_slice %11 {offsets = [0, 0, 12], sizes = [1, 32, 80], strides = [1, 1, 1]} : vector<4x32x108xbf16> to vector<1x32x80xbf16>
    %190 = vector.shape_cast %189 : vector<1x32x80xbf16> to vector<32x80xbf16>
    %c288_108 = arith.constant 288 : index
    %c256_109 = arith.constant 256 : index
    %191 = vector.load %arg5[%c288_108, %c256_109] : memref<800x512xbf16, #tpu.memory_space<vmem>>, vector<32x80xbf16>
    tpu.vector_store %arg5[%c288_108, %c256_109], %190 {strides = array<i32>} : memref<800x512xbf16, #tpu.memory_space<vmem>>, vector<32x80xbf16>,
    %192 = vector.extract_strided_slice %11 {offsets = [2, 0, 10], sizes = [1, 32, 80], strides = [1, 1, 1]} : vector<4x32x108xbf16> to vector<1x32x80xbf16>
    %193 = vector.shape_cast %192 : vector<1x32x80xbf16> to vector<32x80xbf16>
    %c320_110 = arith.constant 320 : index
    %c256_111 = arith.constant 256 : index
    %194 = vector.load %arg5[%c320_110, %c256_111] : memref<800x512xbf16, #tpu.memory_space<vmem>>, vector<32x80xbf16>
    tpu.vector_store %arg5[%c320_110, %c256_111], %193 {strides = array<i32>} : memref<800x512xbf16, #tpu.memory_space<vmem>>, vector<32x80xbf16>,
    %195 = vector.extract_strided_slice %11 {offsets = [3, 0, 10], sizes = [1, 32, 80], strides = [1, 1, 1]} : vector<4x32x108xbf16> to vector<1x32x80xbf16>
    %196 = vector.shape_cast %195 : vector<1x32x80xbf16> to vector<32x80xbf16>
    %c352_112 = arith.constant 352 : index
    %c256_113 = arith.constant 256 : index
    %197 = vector.load %arg5[%c352_112, %c256_113] : memref<800x512xbf16, #tpu.memory_space<vmem>>, vector<32x80xbf16>
    tpu.vector_store %arg5[%c352_112, %c256_113], %196 {strides = array<i32>} : memref<800x512xbf16, #tpu.memory_space<vmem>>, vector<32x80xbf16>,
    %198 = vector.extract_strided_slice %11 {offsets = [2, 0, 11], sizes = [1, 32, 80], strides = [1, 1, 1]} : vector<4x32x108xbf16> to vector<1x32x80xbf16>
    %199 = vector.shape_cast %198 : vector<1x32x80xbf16> to vector<32x80xbf16>
    %c384_114 = arith.constant 384 : index
    %c256_115 = arith.constant 256 : index
    %200 = vector.load %arg5[%c384_114, %c256_115] : memref<800x512xbf16, #tpu.memory_space<vmem>>, vector<32x80xbf16>
    tpu.vector_store %arg5[%c384_114, %c256_115], %199 {strides = array<i32>} : memref<800x512xbf16, #tpu.memory_space<vmem>>, vector<32x80xbf16>,
    %201 = vector.extract_strided_slice %11 {offsets = [3, 0, 11], sizes = [1, 32, 80], strides = [1, 1, 1]} : vector<4x32x108xbf16> to vector<1x32x80xbf16>
    %202 = vector.shape_cast %201 : vector<1x32x80xbf16> to vector<32x80xbf16>
    %c416_116 = arith.constant 416 : index
    %c256_117 = arith.constant 256 : index
    %203 = vector.load %arg5[%c416_116, %c256_117] : memref<800x512xbf16, #tpu.memory_space<vmem>>, vector<32x80xbf16>
    tpu.vector_store %arg5[%c416_116, %c256_117], %202 {strides = array<i32>} : memref<800x512xbf16, #tpu.memory_space<vmem>>, vector<32x80xbf16>,
    %204 = vector.extract_strided_slice %11 {offsets = [2, 0, 12], sizes = [1, 32, 80], strides = [1, 1, 1]} : vector<4x32x108xbf16> to vector<1x32x80xbf16>
    %205 = vector.shape_cast %204 : vector<1x32x80xbf16> to vector<32x80xbf16>
    %c448_118 = arith.constant 448 : index
    %c256_119 = arith.constant 256 : index
    %206 = vector.load %arg5[%c448_118, %c256_119] : memref<800x512xbf16, #tpu.memory_space<vmem>>, vector<32x80xbf16>
    tpu.vector_store %arg5[%c448_118, %c256_119], %205 {strides = array<i32>} : memref<800x512xbf16, #tpu.memory_space<vmem>>, vector<32x80xbf16>,
    %207 = vector.extract_strided_slice %11 {offsets = [0, 0, 20], sizes = [1, 32, 80], strides = [1, 1, 1]} : vector<4x32x108xbf16> to vector<1x32x80xbf16>
    %208 = vector.shape_cast %207 : vector<1x32x80xbf16> to vector<32x80xbf16>
    %c480_120 = arith.constant 480 : index
    %c256_121 = arith.constant 256 : index
    %209 = vector.load %arg5[%c480_120, %c256_121] : memref<800x512xbf16, #tpu.memory_space<vmem>>, vector<32x80xbf16>
    tpu.vector_store %arg5[%c480_120, %c256_121], %208 {strides = array<i32>} : memref<800x512xbf16, #tpu.memory_space<vmem>>, vector<32x80xbf16>,
    %210 = vector.extract_strided_slice %11 {offsets = [1, 0, 20], sizes = [1, 32, 80], strides = [1, 1, 1]} : vector<4x32x108xbf16> to vector<1x32x80xbf16>
    %211 = vector.shape_cast %210 : vector<1x32x80xbf16> to vector<32x80xbf16>
    %c512_122 = arith.constant 512 : index
    %c256_123 = arith.constant 256 : index
    %212 = vector.load %arg5[%c512_122, %c256_123] : memref<800x512xbf16, #tpu.memory_space<vmem>>, vector<32x80xbf16>
    tpu.vector_store %arg5[%c512_122, %c256_123], %211 {strides = array<i32>} : memref<800x512xbf16, #tpu.memory_space<vmem>>, vector<32x80xbf16>,
    %213 = vector.extract_strided_slice %11 {offsets = [0, 0, 21], sizes = [1, 32, 80], strides = [1, 1, 1]} : vector<4x32x108xbf16> to vector<1x32x80xbf16>
    %214 = vector.shape_cast %213 : vector<1x32x80xbf16> to vector<32x80xbf16>
    %c544_124 = arith.constant 544 : index
    %c256_125 = arith.constant 256 : index
    %215 = vector.load %arg5[%c544_124, %c256_125] : memref<800x512xbf16, #tpu.memory_space<vmem>>, vector<32x80xbf16>
    tpu.vector_store %arg5[%c544_124, %c256_125], %214 {strides = array<i32>} : memref<800x512xbf16, #tpu.memory_space<vmem>>, vector<32x80xbf16>,
    %216 = vector.extract_strided_slice %11 {offsets = [1, 0, 21], sizes = [1, 32, 80], strides = [1, 1, 1]} : vector<4x32x108xbf16> to vector<1x32x80xbf16>
    %217 = vector.shape_cast %216 : vector<1x32x80xbf16> to vector<32x80xbf16>
    %c576_126 = arith.constant 576 : index
    %c256_127 = arith.constant 256 : index
    %218 = vector.load %arg5[%c576_126, %c256_127] : memref<800x512xbf16, #tpu.memory_space<vmem>>, vector<32x80xbf16>
    tpu.vector_store %arg5[%c576_126, %c256_127], %217 {strides = array<i32>} : memref<800x512xbf16, #tpu.memory_space<vmem>>, vector<32x80xbf16>,
    %219 = vector.extract_strided_slice %11 {offsets = [0, 0, 22], sizes = [1, 32, 80], strides = [1, 1, 1]} : vector<4x32x108xbf16> to vector<1x32x80xbf16>
    %220 = vector.shape_cast %219 : vector<1x32x80xbf16> to vector<32x80xbf16>
    %c608_128 = arith.constant 608 : index
    %c256_129 = arith.constant 256 : index
    %221 = vector.load %arg5[%c608_128, %c256_129] : memref<800x512xbf16, #tpu.memory_space<vmem>>, vector<32x80xbf16>
    tpu.vector_store %arg5[%c608_128, %c256_129], %220 {strides = array<i32>} : memref<800x512xbf16, #tpu.memory_space<vmem>>, vector<32x80xbf16>,
    %222 = vector.extract_strided_slice %11 {offsets = [2, 0, 20], sizes = [1, 32, 80], strides = [1, 1, 1]} : vector<4x32x108xbf16> to vector<1x32x80xbf16>
    %223 = vector.shape_cast %222 : vector<1x32x80xbf16> to vector<32x80xbf16>
    %c640_130 = arith.constant 640 : index
    %c256_131 = arith.constant 256 : index
    %224 = vector.load %arg5[%c640_130, %c256_131] : memref<800x512xbf16, #tpu.memory_space<vmem>>, vector<32x80xbf16>
    tpu.vector_store %arg5[%c640_130, %c256_131], %223 {strides = array<i32>} : memref<800x512xbf16, #tpu.memory_space<vmem>>, vector<32x80xbf16>,
    %225 = vector.extract_strided_slice %11 {offsets = [3, 0, 20], sizes = [1, 32, 80], strides = [1, 1, 1]} : vector<4x32x108xbf16> to vector<1x32x80xbf16>
    %226 = vector.shape_cast %225 : vector<1x32x80xbf16> to vector<32x80xbf16>
    %c672_132 = arith.constant 672 : index
    %c256_133 = arith.constant 256 : index
    %227 = vector.load %arg5[%c672_132, %c256_133] : memref<800x512xbf16, #tpu.memory_space<vmem>>, vector<32x80xbf16>
    tpu.vector_store %arg5[%c672_132, %c256_133], %226 {strides = array<i32>} : memref<800x512xbf16, #tpu.memory_space<vmem>>, vector<32x80xbf16>,
    %228 = vector.extract_strided_slice %11 {offsets = [2, 0, 21], sizes = [1, 32, 80], strides = [1, 1, 1]} : vector<4x32x108xbf16> to vector<1x32x80xbf16>
    %229 = vector.shape_cast %228 : vector<1x32x80xbf16> to vector<32x80xbf16>
    %c704_134 = arith.constant 704 : index
    %c256_135 = arith.constant 256 : index
    %230 = vector.load %arg5[%c704_134, %c256_135] : memref<800x512xbf16, #tpu.memory_space<vmem>>, vector<32x80xbf16>
    tpu.vector_store %arg5[%c704_134, %c256_135], %229 {strides = array<i32>} : memref<800x512xbf16, #tpu.memory_space<vmem>>, vector<32x80xbf16>,
    %231 = vector.extract_strided_slice %11 {offsets = [3, 0, 21], sizes = [1, 32, 80], strides = [1, 1, 1]} : vector<4x32x108xbf16> to vector<1x32x80xbf16>
    %232 = vector.shape_cast %231 : vector<1x32x80xbf16> to vector<32x80xbf16>
    %c736_136 = arith.constant 736 : index
    %c256_137 = arith.constant 256 : index
    %233 = vector.load %arg5[%c736_136, %c256_137] : memref<800x512xbf16, #tpu.memory_space<vmem>>, vector<32x80xbf16>
    tpu.vector_store %arg5[%c736_136, %c256_137], %232 {strides = array<i32>} : memref<800x512xbf16, #tpu.memory_space<vmem>>, vector<32x80xbf16>,
    %234 = vector.extract_strided_slice %11 {offsets = [2, 0, 22], sizes = [1, 32, 80], strides = [1, 1, 1]} : vector<4x32x108xbf16> to vector<1x32x80xbf16>
    %235 = vector.shape_cast %234 : vector<1x32x80xbf16> to vector<32x80xbf16>
    %c768_138 = arith.constant 768 : index
    %c256_139 = arith.constant 256 : index
    %236 = vector.load %arg5[%c768_138, %c256_139] : memref<800x512xbf16, #tpu.memory_space<vmem>>, vector<32x80xbf16>
    tpu.vector_store %arg5[%c768_138, %c256_139], %235 {strides = array<i32>} : memref<800x512xbf16, #tpu.memory_space<vmem>>, vector<32x80xbf16>,
    %237 = vector.extract_strided_slice %11 {offsets = [3, 0, 0], sizes = [1, 32, 80], strides = [1, 1, 1]} : vector<4x32x108xbf16> to vector<1x32x80xbf16>
    %238 = vector.shape_cast %237 : vector<1x32x80xbf16> to vector<32x80xbf16>
    %c0_140 = arith.constant 0 : index
    %c384_141 = arith.constant 384 : index
    %239 = vector.load %arg5[%c0_140, %c384_141] : memref<800x512xbf16, #tpu.memory_space<vmem>>, vector<32x80xbf16>
    tpu.vector_store %arg5[%c0_140, %c384_141], %238 {strides = array<i32>} : memref<800x512xbf16, #tpu.memory_space<vmem>>, vector<32x80xbf16>,
    %240 = vector.extract_strided_slice %11 {offsets = [2, 0, 1], sizes = [1, 32, 80], strides = [1, 1, 1]} : vector<4x32x108xbf16> to vector<1x32x80xbf16>
    %241 = vector.shape_cast %240 : vector<1x32x80xbf16> to vector<32x80xbf16>
    %c32_142 = arith.constant 32 : index
    %c384_143 = arith.constant 384 : index
    %242 = vector.load %arg5[%c32_142, %c384_143] : memref<800x512xbf16, #tpu.memory_space<vmem>>, vector<32x80xbf16>
    tpu.vector_store %arg5[%c32_142, %c384_143], %241 {strides = array<i32>} : memref<800x512xbf16, #tpu.memory_space<vmem>>, vector<32x80xbf16>,
    %243 = vector.extract_strided_slice %11 {offsets = [3, 0, 1], sizes = [1, 32, 80], strides = [1, 1, 1]} : vector<4x32x108xbf16> to vector<1x32x80xbf16>
    %244 = vector.shape_cast %243 : vector<1x32x80xbf16> to vector<32x80xbf16>
    %c64_144 = arith.constant 64 : index
    %c384_145 = arith.constant 384 : index
    %245 = vector.load %arg5[%c64_144, %c384_145] : memref<800x512xbf16, #tpu.memory_space<vmem>>, vector<32x80xbf16>
    tpu.vector_store %arg5[%c64_144, %c384_145], %244 {strides = array<i32>} : memref<800x512xbf16, #tpu.memory_space<vmem>>, vector<32x80xbf16>,
    %246 = vector.extract_strided_slice %11 {offsets = [2, 0, 2], sizes = [1, 32, 80], strides = [1, 1, 1]} : vector<4x32x108xbf16> to vector<1x32x80xbf16>
    %247 = vector.shape_cast %246 : vector<1x32x80xbf16> to vector<32x80xbf16>
    %c96_146 = arith.constant 96 : index
    %c384_147 = arith.constant 384 : index
    %248 = vector.load %arg5[%c96_146, %c384_147] : memref<800x512xbf16, #tpu.memory_space<vmem>>, vector<32x80xbf16>
    tpu.vector_store %arg5[%c96_146, %c384_147], %247 {strides = array<i32>} : memref<800x512xbf16, #tpu.memory_space<vmem>>, vector<32x80xbf16>,
    %249 = vector.extract_strided_slice %11 {offsets = [3, 0, 2], sizes = [1, 32, 80], strides = [1, 1, 1]} : vector<4x32x108xbf16> to vector<1x32x80xbf16>
    %250 = vector.shape_cast %249 : vector<1x32x80xbf16> to vector<32x80xbf16>
    %c128_148 = arith.constant 128 : index
    %c384_149 = arith.constant 384 : index
    %251 = vector.load %arg5[%c128_148, %c384_149] : memref<800x512xbf16, #tpu.memory_space<vmem>>, vector<32x80xbf16>
    tpu.vector_store %arg5[%c128_148, %c384_149], %250 {strides = array<i32>} : memref<800x512xbf16, #tpu.memory_space<vmem>>, vector<32x80xbf16>,
    %252 = vector.extract_strided_slice %11 {offsets = [1, 0, 10], sizes = [1, 32, 80], strides = [1, 1, 1]} : vector<4x32x108xbf16> to vector<1x32x80xbf16>
    %253 = vector.shape_cast %252 : vector<1x32x80xbf16> to vector<32x80xbf16>
    %c160_150 = arith.constant 160 : index
    %c384_151 = arith.constant 384 : index
    %254 = vector.load %arg5[%c160_150, %c384_151] : memref<800x512xbf16, #tpu.memory_space<vmem>>, vector<32x80xbf16>
    tpu.vector_store %arg5[%c160_150, %c384_151], %253 {strides = array<i32>} : memref<800x512xbf16, #tpu.memory_space<vmem>>, vector<32x80xbf16>,
    %255 = vector.extract_strided_slice %11 {offsets = [0, 0, 11], sizes = [1, 32, 80], strides = [1, 1, 1]} : vector<4x32x108xbf16> to vector<1x32x80xbf16>
    %256 = vector.shape_cast %255 : vector<1x32x80xbf16> to vector<32x80xbf16>
    %c192_152 = arith.constant 192 : index
    %c384_153 = arith.constant 384 : index
    %257 = vector.load %arg5[%c192_152, %c384_153] : memref<800x512xbf16, #tpu.memory_space<vmem>>, vector<32x80xbf16>
    tpu.vector_store %arg5[%c192_152, %c384_153], %256 {strides = array<i32>} : memref<800x512xbf16, #tpu.memory_space<vmem>>, vector<32x80xbf16>,
    %258 = vector.extract_strided_slice %11 {offsets = [1, 0, 11], sizes = [1, 32, 80], strides = [1, 1, 1]} : vector<4x32x108xbf16> to vector<1x32x80xbf16>
    %259 = vector.shape_cast %258 : vector<1x32x80xbf16> to vector<32x80xbf16>
    %c224_154 = arith.constant 224 : index
    %c384_155 = arith.constant 384 : index
    %260 = vector.load %arg5[%c224_154, %c384_155] : memref<800x512xbf16, #tpu.memory_space<vmem>>, vector<32x80xbf16>
    tpu.vector_store %arg5[%c224_154, %c384_155], %259 {strides = array<i32>} : memref<800x512xbf16, #tpu.memory_space<vmem>>, vector<32x80xbf16>,
    %261 = vector.extract_strided_slice %11 {offsets = [0, 0, 12], sizes = [1, 32, 80], strides = [1, 1, 1]} : vector<4x32x108xbf16> to vector<1x32x80xbf16>
    %262 = vector.shape_cast %261 : vector<1x32x80xbf16> to vector<32x80xbf16>
    %c256_156 = arith.constant 256 : index
    %c384_157 = arith.constant 384 : index
    %263 = vector.load %arg5[%c256_156, %c384_157] : memref<800x512xbf16, #tpu.memory_space<vmem>>, vector<32x80xbf16>
    tpu.vector_store %arg5[%c256_156, %c384_157], %262 {strides = array<i32>} : memref<800x512xbf16, #tpu.memory_space<vmem>>, vector<32x80xbf16>,
    %264 = vector.extract_strided_slice %11 {offsets = [1, 0, 12], sizes = [1, 32, 80], strides = [1, 1, 1]} : vector<4x32x108xbf16> to vector<1x32x80xbf16>
    %265 = vector.shape_cast %264 : vector<1x32x80xbf16> to vector<32x80xbf16>
    %c288_158 = arith.constant 288 : index
    %c384_159 = arith.constant 384 : index
    %266 = vector.load %arg5[%c288_158, %c384_159] : memref<800x512xbf16, #tpu.memory_space<vmem>>, vector<32x80xbf16>
    tpu.vector_store %arg5[%c288_158, %c384_159], %265 {strides = array<i32>} : memref<800x512xbf16, #tpu.memory_space<vmem>>, vector<32x80xbf16>,
    %267 = vector.extract_strided_slice %11 {offsets = [3, 0, 10], sizes = [1, 32, 80], strides = [1, 1, 1]} : vector<4x32x108xbf16> to vector<1x32x80xbf16>
    %268 = vector.shape_cast %267 : vector<1x32x80xbf16> to vector<32x80xbf16>
    %c320_160 = arith.constant 320 : index
    %c384_161 = arith.constant 384 : index
    %269 = vector.load %arg5[%c320_160, %c384_161] : memref<800x512xbf16, #tpu.memory_space<vmem>>, vector<32x80xbf16>
    tpu.vector_store %arg5[%c320_160, %c384_161], %268 {strides = array<i32>} : memref<800x512xbf16, #tpu.memory_space<vmem>>, vector<32x80xbf16>,
    %270 = vector.extract_strided_slice %11 {offsets = [2, 0, 11], sizes = [1, 32, 80], strides = [1, 1, 1]} : vector<4x32x108xbf16> to vector<1x32x80xbf16>
    %271 = vector.shape_cast %270 : vector<1x32x80xbf16> to vector<32x80xbf16>
    %c352_162 = arith.constant 352 : index
    %c384_163 = arith.constant 384 : index
    %272 = vector.load %arg5[%c352_162, %c384_163] : memref<800x512xbf16, #tpu.memory_space<vmem>>, vector<32x80xbf16>
    tpu.vector_store %arg5[%c352_162, %c384_163], %271 {strides = array<i32>} : memref<800x512xbf16, #tpu.memory_space<vmem>>, vector<32x80xbf16>,
    %273 = vector.extract_strided_slice %11 {offsets = [3, 0, 11], sizes = [1, 32, 80], strides = [1, 1, 1]} : vector<4x32x108xbf16> to vector<1x32x80xbf16>
    %274 = vector.shape_cast %273 : vector<1x32x80xbf16> to vector<32x80xbf16>
    %c384_164 = arith.constant 384 : index
    %c384_165 = arith.constant 384 : index
    %275 = vector.load %arg5[%c384_164, %c384_165] : memref<800x512xbf16, #tpu.memory_space<vmem>>, vector<32x80xbf16>
    tpu.vector_store %arg5[%c384_164, %c384_165], %274 {strides = array<i32>} : memref<800x512xbf16, #tpu.memory_space<vmem>>, vector<32x80xbf16>,
    %276 = vector.extract_strided_slice %11 {offsets = [2, 0, 12], sizes = [1, 32, 80], strides = [1, 1, 1]} : vector<4x32x108xbf16> to vector<1x32x80xbf16>
    %277 = vector.shape_cast %276 : vector<1x32x80xbf16> to vector<32x80xbf16>
    %c416_166 = arith.constant 416 : index
    %c384_167 = arith.constant 384 : index
    %278 = vector.load %arg5[%c416_166, %c384_167] : memref<800x512xbf16, #tpu.memory_space<vmem>>, vector<32x80xbf16>
    tpu.vector_store %arg5[%c416_166, %c384_167], %277 {strides = array<i32>} : memref<800x512xbf16, #tpu.memory_space<vmem>>, vector<32x80xbf16>,
    %279 = vector.extract_strided_slice %11 {offsets = [3, 0, 12], sizes = [1, 32, 80], strides = [1, 1, 1]} : vector<4x32x108xbf16> to vector<1x32x80xbf16>
    %280 = vector.shape_cast %279 : vector<1x32x80xbf16> to vector<32x80xbf16>
    %c448_168 = arith.constant 448 : index
    %c384_169 = arith.constant 384 : index
    %281 = vector.load %arg5[%c448_168, %c384_169] : memref<800x512xbf16, #tpu.memory_space<vmem>>, vector<32x80xbf16>
    tpu.vector_store %arg5[%c448_168, %c384_169], %280 {strides = array<i32>} : memref<800x512xbf16, #tpu.memory_space<vmem>>, vector<32x80xbf16>,
    %282 = vector.extract_strided_slice %11 {offsets = [1, 0, 20], sizes = [1, 32, 80], strides = [1, 1, 1]} : vector<4x32x108xbf16> to vector<1x32x80xbf16>
    %283 = vector.shape_cast %282 : vector<1x32x80xbf16> to vector<32x80xbf16>
    %c480_170 = arith.constant 480 : index
    %c384_171 = arith.constant 384 : index
    %284 = vector.load %arg5[%c480_170, %c384_171] : memref<800x512xbf16, #tpu.memory_space<vmem>>, vector<32x80xbf16>
    tpu.vector_store %arg5[%c480_170, %c384_171], %283 {strides = array<i32>} : memref<800x512xbf16, #tpu.memory_space<vmem>>, vector<32x80xbf16>,
    %285 = vector.extract_strided_slice %11 {offsets = [0, 0, 21], sizes = [1, 32, 80], strides = [1, 1, 1]} : vector<4x32x108xbf16> to vector<1x32x80xbf16>
    %286 = vector.shape_cast %285 : vector<1x32x80xbf16> to vector<32x80xbf16>
    %c512_172 = arith.constant 512 : index
    %c384_173 = arith.constant 384 : index
    %287 = vector.load %arg5[%c512_172, %c384_173] : memref<800x512xbf16, #tpu.memory_space<vmem>>, vector<32x80xbf16>
    tpu.vector_store %arg5[%c512_172, %c384_173], %286 {strides = array<i32>} : memref<800x512xbf16, #tpu.memory_space<vmem>>, vector<32x80xbf16>,
    %288 = vector.extract_strided_slice %11 {offsets = [1, 0, 21], sizes = [1, 32, 80], strides = [1, 1, 1]} : vector<4x32x108xbf16> to vector<1x32x80xbf16>
    %289 = vector.shape_cast %288 : vector<1x32x80xbf16> to vector<32x80xbf16>
    %c544_174 = arith.constant 544 : index
    %c384_175 = arith.constant 384 : index
    %290 = vector.load %arg5[%c544_174, %c384_175] : memref<800x512xbf16, #tpu.memory_space<vmem>>, vector<32x80xbf16>
    tpu.vector_store %arg5[%c544_174, %c384_175], %289 {strides = array<i32>} : memref<800x512xbf16, #tpu.memory_space<vmem>>, vector<32x80xbf16>,
    %291 = vector.extract_strided_slice %11 {offsets = [0, 0, 22], sizes = [1, 32, 80], strides = [1, 1, 1]} : vector<4x32x108xbf16> to vector<1x32x80xbf16>
    %292 = vector.shape_cast %291 : vector<1x32x80xbf16> to vector<32x80xbf16>
    %c576_176 = arith.constant 576 : index
    %c384_177 = arith.constant 384 : index
    %293 = vector.load %arg5[%c576_176, %c384_177] : memref<800x512xbf16, #tpu.memory_space<vmem>>, vector<32x80xbf16>
    tpu.vector_store %arg5[%c576_176, %c384_177], %292 {strides = array<i32>} : memref<800x512xbf16, #tpu.memory_space<vmem>>, vector<32x80xbf16>,
    %294 = vector.extract_strided_slice %11 {offsets = [1, 0, 22], sizes = [1, 32, 80], strides = [1, 1, 1]} : vector<4x32x108xbf16> to vector<1x32x80xbf16>
    %295 = vector.shape_cast %294 : vector<1x32x80xbf16> to vector<32x80xbf16>
    %c608_178 = arith.constant 608 : index
    %c384_179 = arith.constant 384 : index
    %296 = vector.load %arg5[%c608_178, %c384_179] : memref<800x512xbf16, #tpu.memory_space<vmem>>, vector<32x80xbf16>
    tpu.vector_store %arg5[%c608_178, %c384_179], %295 {strides = array<i32>} : memref<800x512xbf16, #tpu.memory_space<vmem>>, vector<32x80xbf16>,
    %297 = vector.extract_strided_slice %11 {offsets = [3, 0, 20], sizes = [1, 32, 80], strides = [1, 1, 1]} : vector<4x32x108xbf16> to vector<1x32x80xbf16>
    %298 = vector.shape_cast %297 : vector<1x32x80xbf16> to vector<32x80xbf16>
    %c640_180 = arith.constant 640 : index
    %c384_181 = arith.constant 384 : index
    %299 = vector.load %arg5[%c640_180, %c384_181] : memref<800x512xbf16, #tpu.memory_space<vmem>>, vector<32x80xbf16>
    tpu.vector_store %arg5[%c640_180, %c384_181], %298 {strides = array<i32>} : memref<800x512xbf16, #tpu.memory_space<vmem>>, vector<32x80xbf16>,
    %300 = vector.extract_strided_slice %11 {offsets = [2, 0, 21], sizes = [1, 32, 80], strides = [1, 1, 1]} : vector<4x32x108xbf16> to vector<1x32x80xbf16>
    %301 = vector.shape_cast %300 : vector<1x32x80xbf16> to vector<32x80xbf16>
    %c672_182 = arith.constant 672 : index
    %c384_183 = arith.constant 384 : index
    %302 = vector.load %arg5[%c672_182, %c384_183] : memref<800x512xbf16, #tpu.memory_space<vmem>>, vector<32x80xbf16>
    tpu.vector_store %arg5[%c672_182, %c384_183], %301 {strides = array<i32>} : memref<800x512xbf16, #tpu.memory_space<vmem>>, vector<32x80xbf16>,
    %303 = vector.extract_strided_slice %11 {offsets = [3, 0, 21], sizes = [1, 32, 80], strides = [1, 1, 1]} : vector<4x32x108xbf16> to vector<1x32x80xbf16>
    %304 = vector.shape_cast %303 : vector<1x32x80xbf16> to vector<32x80xbf16>
    %c704_184 = arith.constant 704 : index
    %c384_185 = arith.constant 384 : index
    %305 = vector.load %arg5[%c704_184, %c384_185] : memref<800x512xbf16, #tpu.memory_space<vmem>>, vector<32x80xbf16>
    tpu.vector_store %arg5[%c704_184, %c384_185], %304 {strides = array<i32>} : memref<800x512xbf16, #tpu.memory_space<vmem>>, vector<32x80xbf16>,
    %306 = vector.extract_strided_slice %11 {offsets = [2, 0, 22], sizes = [1, 32, 80], strides = [1, 1, 1]} : vector<4x32x108xbf16> to vector<1x32x80xbf16>
    %307 = vector.shape_cast %306 : vector<1x32x80xbf16> to vector<32x80xbf16>
    %c736_186 = arith.constant 736 : index
    %c384_187 = arith.constant 384 : index
    %308 = vector.load %arg5[%c736_186, %c384_187] : memref<800x512xbf16, #tpu.memory_space<vmem>>, vector<32x80xbf16>
    tpu.vector_store %arg5[%c736_186, %c384_187], %307 {strides = array<i32>} : memref<800x512xbf16, #tpu.memory_space<vmem>>, vector<32x80xbf16>,
    %309 = vector.extract_strided_slice %11 {offsets = [3, 0, 22], sizes = [1, 32, 80], strides = [1, 1, 1]} : vector<4x32x108xbf16> to vector<1x32x80xbf16>
    %310 = vector.shape_cast %309 : vector<1x32x80xbf16> to vector<32x80xbf16>
    %c768_188 = arith.constant 768 : index
    %c384_189 = arith.constant 384 : index
    %311 = vector.load %arg5[%c768_188, %c384_189] : memref<800x512xbf16, #tpu.memory_space<vmem>>, vector<32x80xbf16>
    tpu.vector_store %arg5[%c768_188, %c384_189], %310 {strides = array<i32>} : memref<800x512xbf16, #tpu.memory_space<vmem>>, vector<32x80xbf16>,
    %c0_190 = arith.constant 0 : index
    %c0_191 = arith.constant 0 : index
    %312 = vector.load %arg5[%c0_190, %c0_191] : memref<800x512xbf16, #tpu.memory_space<vmem>>, vector<800x512xbf16>
    %cst_192 = arith.constant dense<0.000000e+00> : vector<32x512xf32>
    %313 = tpu.matmul %0, %312, %cst_192 {dimension_numbers = #tpu.dot_dimension_numbers<[1], [0], [0], [1], [0, 0, 1, 1], [], []>} : vector<32x800xbf16>, vector<800x512xbf16>, vector<32x512xf32> -> vector<32x512xf32>
    %314 = vector.extract_strided_slice %313 {offsets = [0, 0], sizes = [32, 128], strides = [1, 1]} : vector<32x512xf32> to vector<32x128xf32>
    %315 = vector.extract_strided_slice %313 {offsets = [0, 128], sizes = [32, 128], strides = [1, 1]} : vector<32x512xf32> to vector<32x128xf32>
    %316 = arith.maximumf %314, %315 : vector<32x128xf32>
    %317 = vector.extract_strided_slice %313 {offsets = [0, 256], sizes = [32, 128], strides = [1, 1]} : vector<32x512xf32> to vector<32x128xf32>
    %318 = vector.extract_strided_slice %313 {offsets = [0, 384], sizes = [32, 128], strides = [1, 1]} : vector<32x512xf32> to vector<32x128xf32>
    %319 = arith.maximumf %317, %318 : vector<32x128xf32>
    %320 = arith.maximumf %316, %319 : vector<32x128xf32>
    %321 = vector.broadcast %1 : vector<32x1xf32> to vector<32x128xf32>
    %322 = arith.addf %320, %321 : vector<32x128xf32>
    %323 = arith.truncf %322 : vector<32x128xf32> to vector<32x128xbf16>
    %c0_193 = arith.constant 0 : index
    %c0_194 = arith.constant 0 : index
    %c0_195 = arith.constant 0 : index
    %324 = vector.load %arg4[%c0_193, %c0_194, %c0_195] : memref<1x32x128xbf16, #tpu.memory_space<vmem>>, vector<1x32x128xbf16>
    %325 = vector.shape_cast %324 : vector<1x32x128xbf16> to vector<32x128xbf16>
    %326 = vector.shape_cast %323 : vector<32x128xbf16> to vector<1x32x128xbf16>
    tpu.vector_store %arg4[%c0_193, %c0_194, %c0_195], %326 {strides = array<i32>} : memref<1x32x128xbf16, #tpu.memory_space<vmem>>, vector<1x32x128xbf16>,
    return
  }
  func.func @transform_0(%arg0: i32) -> (i32, i32, i32, i32) {
    %c0_i32 = arith.constant 0 : i32
    %c0_i32_0 = arith.constant 0 : i32
    %c0_i32_1 = arith.constant 0 : i32
    %c0_i32_2 = arith.constant 0 : i32
    return %arg0, %c0_i32, %c0_i32_0, %c0_i32_1 : i32, i32, i32, i32
  }
  func.func @transform_1(%arg0: i32) -> (i32, i32) {
    %c0_i32 = arith.constant 0 : i32
    %c0_i32_0 = arith.constant 0 : i32
    %c0_i32_1 = arith.constant 0 : i32
    return %c0_i32, %c0_i32_0 : i32, i32
  }
  func.func @transform_2(%arg0: i32) -> (i32, i32) {
    %c0_i32 = arith.constant 0 : i32
    %c0_i32_0 = arith.constant 0 : i32
    %c0_i32_1 = arith.constant 0 : i32
    return %c0_i32, %c0_i32_0 : i32, i32
  }
  func.func @transform_3(%arg0: i32) -> (i32, i32, i32) {
    %c0_i32 = arith.constant 0 : i32
    %c0_i32_0 = arith.constant 0 : i32
    %c0_i32_1 = arith.constant 0 : i32
    return %arg0, %c0_i32, %c0_i32_0 : i32, i32, i32
  }
}

module attributes {stable_mosaic.version = 11 : i64} {
  func.func @conv_pool_kernel(%arg0: i32, %arg1: memref<1x4x32x44xbf16, #tpu.memory_space<vmem>>, %arg2: memref<64x800xbf16, #tpu.memory_space<vmem>>, %arg3: memref<64x1xf32, #tpu.memory_space<vmem>>, %arg4: memref<1x64x128xbf16, #tpu.memory_space<vmem>>, %arg5: memref<800x512xbf16, #tpu.memory_space<vmem>>) attributes {dimension_semantics = [#tpu.dimension_semantics<parallel>], iteration_bounds = array<i64: 2>, scalar_prefetch = 0 : i64, scratch_operands = 1 : i64, tpu.core_type = #tpu.core_type<tc>, window_params = [{transform_indices = @transform_0, window_bounds = array<i64: 1, 4, 32, 44>}, {pipeline_mode = #tpu.pipeline_mode<synchronous>, transform_indices = @transform_1, window_bounds = array<i64: 64, 800>}, {pipeline_mode = #tpu.pipeline_mode<synchronous>, transform_indices = @transform_2, window_bounds = array<i64: 64, 1>}, {transform_indices = @transform_3, window_bounds = array<i64: 1, 64, 128>}]} {
    %c0 = arith.constant 0 : index
    %c0_0 = arith.constant 0 : index
    %0 = vector.load %arg2[%c0, %c0_0] : memref<64x800xbf16, #tpu.memory_space<vmem>>, vector<64x800xbf16>
    %c0_1 = arith.constant 0 : index
    %c0_2 = arith.constant 0 : index
    %1 = vector.load %arg3[%c0_1, %c0_2] : memref<64x1xf32, #tpu.memory_space<vmem>>, vector<64x1xf32>
    %cst = arith.constant 0.000000e+00 : bf16
    %2 = vector.broadcast %cst : bf16 to vector<800x104xbf16>
    %c0_3 = arith.constant 0 : index
    %c24 = arith.constant 24 : index
    %3 = vector.load %arg5[%c0_3, %c24] : memref<800x512xbf16, #tpu.memory_space<vmem>>, vector<800x104xbf16>
    tpu.vector_store %arg5[%c0_3, %c24], %2 {strides = array<i32>} : memref<800x512xbf16, #tpu.memory_space<vmem>>, vector<800x104xbf16>,
    %cst_4 = arith.constant 0.000000e+00 : bf16
    %4 = vector.broadcast %cst_4 : bf16 to vector<800x104xbf16>
    %c0_5 = arith.constant 0 : index
    %c152 = arith.constant 152 : index
    %5 = vector.load %arg5[%c0_5, %c152] : memref<800x512xbf16, #tpu.memory_space<vmem>>, vector<800x104xbf16>
    tpu.vector_store %arg5[%c0_5, %c152], %4 {strides = array<i32>} : memref<800x512xbf16, #tpu.memory_space<vmem>>, vector<800x104xbf16>,
    %cst_6 = arith.constant 0.000000e+00 : bf16
    %6 = vector.broadcast %cst_6 : bf16 to vector<800x104xbf16>
    %c0_7 = arith.constant 0 : index
    %c280 = arith.constant 280 : index
    %7 = vector.load %arg5[%c0_7, %c280] : memref<800x512xbf16, #tpu.memory_space<vmem>>, vector<800x104xbf16>
    tpu.vector_store %arg5[%c0_7, %c280], %6 {strides = array<i32>} : memref<800x512xbf16, #tpu.memory_space<vmem>>, vector<800x104xbf16>,
    %cst_8 = arith.constant 0.000000e+00 : bf16
    %8 = vector.broadcast %cst_8 : bf16 to vector<800x104xbf16>
    %c0_9 = arith.constant 0 : index
    %c408 = arith.constant 408 : index
    %9 = vector.load %arg5[%c0_9, %c408] : memref<800x512xbf16, #tpu.memory_space<vmem>>, vector<800x104xbf16>
    tpu.vector_store %arg5[%c0_9, %c408], %8 {strides = array<i32>} : memref<800x512xbf16, #tpu.memory_space<vmem>>, vector<800x104xbf16>,
    %c0_10 = arith.constant 0 : index
    %c0_11 = arith.constant 0 : index
    %c0_12 = arith.constant 0 : index
    %c0_13 = arith.constant 0 : index
    %10 = vector.load %arg1[%c0_10, %c0_11, %c0_12, %c0_13] : memref<1x4x32x44xbf16, #tpu.memory_space<vmem>>, vector<1x4x32x44xbf16>
    %11 = vector.shape_cast %10 : vector<1x4x32x44xbf16> to vector<4x32x44xbf16>
    %12 = vector.extract_strided_slice %11 {offsets = [0, 0, 0], sizes = [1, 32, 24], strides = [1, 1, 1]} : vector<4x32x44xbf16> to vector<1x32x24xbf16>
    %13 = vector.shape_cast %12 : vector<1x32x24xbf16> to vector<32x24xbf16>
    %c0_14 = arith.constant 0 : index
    %c0_15 = arith.constant 0 : index
    %14 = vector.load %arg5[%c0_14, %c0_15] : memref<800x512xbf16, #tpu.memory_space<vmem>>, vector<32x24xbf16>
    tpu.vector_store %arg5[%c0_14, %c0_15], %13 {strides = array<i32>} : memref<800x512xbf16, #tpu.memory_space<vmem>>, vector<32x24xbf16>,
    %15 = vector.extract_strided_slice %11 {offsets = [1, 0, 0], sizes = [1, 32, 24], strides = [1, 1, 1]} : vector<4x32x44xbf16> to vector<1x32x24xbf16>
    %16 = vector.shape_cast %15 : vector<1x32x24xbf16> to vector<32x24xbf16>
    %c32 = arith.constant 32 : index
    %c0_16 = arith.constant 0 : index
    %17 = vector.load %arg5[%c32, %c0_16] : memref<800x512xbf16, #tpu.memory_space<vmem>>, vector<32x24xbf16>
    tpu.vector_store %arg5[%c32, %c0_16], %16 {strides = array<i32>} : memref<800x512xbf16, #tpu.memory_space<vmem>>, vector<32x24xbf16>,
    %18 = vector.extract_strided_slice %11 {offsets = [0, 0, 1], sizes = [1, 32, 24], strides = [1, 1, 1]} : vector<4x32x44xbf16> to vector<1x32x24xbf16>
    %19 = vector.shape_cast %18 : vector<1x32x24xbf16> to vector<32x24xbf16>
    %c64 = arith.constant 64 : index
    %c0_17 = arith.constant 0 : index
    %20 = vector.load %arg5[%c64, %c0_17] : memref<800x512xbf16, #tpu.memory_space<vmem>>, vector<32x24xbf16>
    tpu.vector_store %arg5[%c64, %c0_17], %19 {strides = array<i32>} : memref<800x512xbf16, #tpu.memory_space<vmem>>, vector<32x24xbf16>,
    %21 = vector.extract_strided_slice %11 {offsets = [1, 0, 1], sizes = [1, 32, 24], strides = [1, 1, 1]} : vector<4x32x44xbf16> to vector<1x32x24xbf16>
    %22 = vector.shape_cast %21 : vector<1x32x24xbf16> to vector<32x24xbf16>
    %c96 = arith.constant 96 : index
    %c0_18 = arith.constant 0 : index
    %23 = vector.load %arg5[%c96, %c0_18] : memref<800x512xbf16, #tpu.memory_space<vmem>>, vector<32x24xbf16>
    tpu.vector_store %arg5[%c96, %c0_18], %22 {strides = array<i32>} : memref<800x512xbf16, #tpu.memory_space<vmem>>, vector<32x24xbf16>,
    %24 = vector.extract_strided_slice %11 {offsets = [0, 0, 2], sizes = [1, 32, 24], strides = [1, 1, 1]} : vector<4x32x44xbf16> to vector<1x32x24xbf16>
    %25 = vector.shape_cast %24 : vector<1x32x24xbf16> to vector<32x24xbf16>
    %c128 = arith.constant 128 : index
    %c0_19 = arith.constant 0 : index
    %26 = vector.load %arg5[%c128, %c0_19] : memref<800x512xbf16, #tpu.memory_space<vmem>>, vector<32x24xbf16>
    tpu.vector_store %arg5[%c128, %c0_19], %25 {strides = array<i32>} : memref<800x512xbf16, #tpu.memory_space<vmem>>, vector<32x24xbf16>,
    %27 = vector.extract_strided_slice %11 {offsets = [2, 0, 0], sizes = [1, 32, 24], strides = [1, 1, 1]} : vector<4x32x44xbf16> to vector<1x32x24xbf16>
    %28 = vector.shape_cast %27 : vector<1x32x24xbf16> to vector<32x24xbf16>
    %c160 = arith.constant 160 : index
    %c0_20 = arith.constant 0 : index
    %29 = vector.load %arg5[%c160, %c0_20] : memref<800x512xbf16, #tpu.memory_space<vmem>>, vector<32x24xbf16>
    tpu.vector_store %arg5[%c160, %c0_20], %28 {strides = array<i32>} : memref<800x512xbf16, #tpu.memory_space<vmem>>, vector<32x24xbf16>,
    %30 = vector.extract_strided_slice %11 {offsets = [3, 0, 0], sizes = [1, 32, 24], strides = [1, 1, 1]} : vector<4x32x44xbf16> to vector<1x32x24xbf16>
    %31 = vector.shape_cast %30 : vector<1x32x24xbf16> to vector<32x24xbf16>
    %c192 = arith.constant 192 : index
    %c0_21 = arith.constant 0 : index
    %32 = vector.load %arg5[%c192, %c0_21] : memref<800x512xbf16, #tpu.memory_space<vmem>>, vector<32x24xbf16>
    tpu.vector_store %arg5[%c192, %c0_21], %31 {strides = array<i32>} : memref<800x512xbf16, #tpu.memory_space<vmem>>, vector<32x24xbf16>,
    %33 = vector.extract_strided_slice %11 {offsets = [2, 0, 1], sizes = [1, 32, 24], strides = [1, 1, 1]} : vector<4x32x44xbf16> to vector<1x32x24xbf16>
    %34 = vector.shape_cast %33 : vector<1x32x24xbf16> to vector<32x24xbf16>
    %c224 = arith.constant 224 : index
    %c0_22 = arith.constant 0 : index
    %35 = vector.load %arg5[%c224, %c0_22] : memref<800x512xbf16, #tpu.memory_space<vmem>>, vector<32x24xbf16>
    tpu.vector_store %arg5[%c224, %c0_22], %34 {strides = array<i32>} : memref<800x512xbf16, #tpu.memory_space<vmem>>, vector<32x24xbf16>,
    %36 = vector.extract_strided_slice %11 {offsets = [3, 0, 1], sizes = [1, 32, 24], strides = [1, 1, 1]} : vector<4x32x44xbf16> to vector<1x32x24xbf16>
    %37 = vector.shape_cast %36 : vector<1x32x24xbf16> to vector<32x24xbf16>
    %c256 = arith.constant 256 : index
    %c0_23 = arith.constant 0 : index
    %38 = vector.load %arg5[%c256, %c0_23] : memref<800x512xbf16, #tpu.memory_space<vmem>>, vector<32x24xbf16>
    tpu.vector_store %arg5[%c256, %c0_23], %37 {strides = array<i32>} : memref<800x512xbf16, #tpu.memory_space<vmem>>, vector<32x24xbf16>,
    %39 = vector.extract_strided_slice %11 {offsets = [2, 0, 2], sizes = [1, 32, 24], strides = [1, 1, 1]} : vector<4x32x44xbf16> to vector<1x32x24xbf16>
    %40 = vector.shape_cast %39 : vector<1x32x24xbf16> to vector<32x24xbf16>
    %c288 = arith.constant 288 : index
    %c0_24 = arith.constant 0 : index
    %41 = vector.load %arg5[%c288, %c0_24] : memref<800x512xbf16, #tpu.memory_space<vmem>>, vector<32x24xbf16>
    tpu.vector_store %arg5[%c288, %c0_24], %40 {strides = array<i32>} : memref<800x512xbf16, #tpu.memory_space<vmem>>, vector<32x24xbf16>,
    %42 = vector.extract_strided_slice %11 {offsets = [0, 0, 6], sizes = [1, 32, 24], strides = [1, 1, 1]} : vector<4x32x44xbf16> to vector<1x32x24xbf16>
    %43 = vector.shape_cast %42 : vector<1x32x24xbf16> to vector<32x24xbf16>
    %c320 = arith.constant 320 : index
    %c0_25 = arith.constant 0 : index
    %44 = vector.load %arg5[%c320, %c0_25] : memref<800x512xbf16, #tpu.memory_space<vmem>>, vector<32x24xbf16>
    tpu.vector_store %arg5[%c320, %c0_25], %43 {strides = array<i32>} : memref<800x512xbf16, #tpu.memory_space<vmem>>, vector<32x24xbf16>,
    %45 = vector.extract_strided_slice %11 {offsets = [1, 0, 6], sizes = [1, 32, 24], strides = [1, 1, 1]} : vector<4x32x44xbf16> to vector<1x32x24xbf16>
    %46 = vector.shape_cast %45 : vector<1x32x24xbf16> to vector<32x24xbf16>
    %c352 = arith.constant 352 : index
    %c0_26 = arith.constant 0 : index
    %47 = vector.load %arg5[%c352, %c0_26] : memref<800x512xbf16, #tpu.memory_space<vmem>>, vector<32x24xbf16>
    tpu.vector_store %arg5[%c352, %c0_26], %46 {strides = array<i32>} : memref<800x512xbf16, #tpu.memory_space<vmem>>, vector<32x24xbf16>,
    %48 = vector.extract_strided_slice %11 {offsets = [0, 0, 7], sizes = [1, 32, 24], strides = [1, 1, 1]} : vector<4x32x44xbf16> to vector<1x32x24xbf16>
    %49 = vector.shape_cast %48 : vector<1x32x24xbf16> to vector<32x24xbf16>
    %c384 = arith.constant 384 : index
    %c0_27 = arith.constant 0 : index
    %50 = vector.load %arg5[%c384, %c0_27] : memref<800x512xbf16, #tpu.memory_space<vmem>>, vector<32x24xbf16>
    tpu.vector_store %arg5[%c384, %c0_27], %49 {strides = array<i32>} : memref<800x512xbf16, #tpu.memory_space<vmem>>, vector<32x24xbf16>,
    %51 = vector.extract_strided_slice %11 {offsets = [1, 0, 7], sizes = [1, 32, 24], strides = [1, 1, 1]} : vector<4x32x44xbf16> to vector<1x32x24xbf16>
    %52 = vector.shape_cast %51 : vector<1x32x24xbf16> to vector<32x24xbf16>
    %c416 = arith.constant 416 : index
    %c0_28 = arith.constant 0 : index
    %53 = vector.load %arg5[%c416, %c0_28] : memref<800x512xbf16, #tpu.memory_space<vmem>>, vector<32x24xbf16>
    tpu.vector_store %arg5[%c416, %c0_28], %52 {strides = array<i32>} : memref<800x512xbf16, #tpu.memory_space<vmem>>, vector<32x24xbf16>,
    %54 = vector.extract_strided_slice %11 {offsets = [0, 0, 8], sizes = [1, 32, 24], strides = [1, 1, 1]} : vector<4x32x44xbf16> to vector<1x32x24xbf16>
    %55 = vector.shape_cast %54 : vector<1x32x24xbf16> to vector<32x24xbf16>
    %c448 = arith.constant 448 : index
    %c0_29 = arith.constant 0 : index
    %56 = vector.load %arg5[%c448, %c0_29] : memref<800x512xbf16, #tpu.memory_space<vmem>>, vector<32x24xbf16>
    tpu.vector_store %arg5[%c448, %c0_29], %55 {strides = array<i32>} : memref<800x512xbf16, #tpu.memory_space<vmem>>, vector<32x24xbf16>,
    %57 = vector.extract_strided_slice %11 {offsets = [2, 0, 6], sizes = [1, 32, 24], strides = [1, 1, 1]} : vector<4x32x44xbf16> to vector<1x32x24xbf16>
    %58 = vector.shape_cast %57 : vector<1x32x24xbf16> to vector<32x24xbf16>
    %c480 = arith.constant 480 : index
    %c0_30 = arith.constant 0 : index
    %59 = vector.load %arg5[%c480, %c0_30] : memref<800x512xbf16, #tpu.memory_space<vmem>>, vector<32x24xbf16>
    tpu.vector_store %arg5[%c480, %c0_30], %58 {strides = array<i32>} : memref<800x512xbf16, #tpu.memory_space<vmem>>, vector<32x24xbf16>,
    %60 = vector.extract_strided_slice %11 {offsets = [3, 0, 6], sizes = [1, 32, 24], strides = [1, 1, 1]} : vector<4x32x44xbf16> to vector<1x32x24xbf16>
    %61 = vector.shape_cast %60 : vector<1x32x24xbf16> to vector<32x24xbf16>
    %c512 = arith.constant 512 : index
    %c0_31 = arith.constant 0 : index
    %62 = vector.load %arg5[%c512, %c0_31] : memref<800x512xbf16, #tpu.memory_space<vmem>>, vector<32x24xbf16>
    tpu.vector_store %arg5[%c512, %c0_31], %61 {strides = array<i32>} : memref<800x512xbf16, #tpu.memory_space<vmem>>, vector<32x24xbf16>,
    %63 = vector.extract_strided_slice %11 {offsets = [2, 0, 7], sizes = [1, 32, 24], strides = [1, 1, 1]} : vector<4x32x44xbf16> to vector<1x32x24xbf16>
    %64 = vector.shape_cast %63 : vector<1x32x24xbf16> to vector<32x24xbf16>
    %c544 = arith.constant 544 : index
    %c0_32 = arith.constant 0 : index
    %65 = vector.load %arg5[%c544, %c0_32] : memref<800x512xbf16, #tpu.memory_space<vmem>>, vector<32x24xbf16>
    tpu.vector_store %arg5[%c544, %c0_32], %64 {strides = array<i32>} : memref<800x512xbf16, #tpu.memory_space<vmem>>, vector<32x24xbf16>,
    %66 = vector.extract_strided_slice %11 {offsets = [3, 0, 7], sizes = [1, 32, 24], strides = [1, 1, 1]} : vector<4x32x44xbf16> to vector<1x32x24xbf16>
    %67 = vector.shape_cast %66 : vector<1x32x24xbf16> to vector<32x24xbf16>
    %c576 = arith.constant 576 : index
    %c0_33 = arith.constant 0 : index
    %68 = vector.load %arg5[%c576, %c0_33] : memref<800x512xbf16, #tpu.memory_space<vmem>>, vector<32x24xbf16>
    tpu.vector_store %arg5[%c576, %c0_33], %67 {strides = array<i32>} : memref<800x512xbf16, #tpu.memory_space<vmem>>, vector<32x24xbf16>,
    %69 = vector.extract_strided_slice %11 {offsets = [2, 0, 8], sizes = [1, 32, 24], strides = [1, 1, 1]} : vector<4x32x44xbf16> to vector<1x32x24xbf16>
    %70 = vector.shape_cast %69 : vector<1x32x24xbf16> to vector<32x24xbf16>
    %c608 = arith.constant 608 : index
    %c0_34 = arith.constant 0 : index
    %71 = vector.load %arg5[%c608, %c0_34] : memref<800x512xbf16, #tpu.memory_space<vmem>>, vector<32x24xbf16>
    tpu.vector_store %arg5[%c608, %c0_34], %70 {strides = array<i32>} : memref<800x512xbf16, #tpu.memory_space<vmem>>, vector<32x24xbf16>,
    %72 = vector.extract_strided_slice %11 {offsets = [0, 0, 12], sizes = [1, 32, 24], strides = [1, 1, 1]} : vector<4x32x44xbf16> to vector<1x32x24xbf16>
    %73 = vector.shape_cast %72 : vector<1x32x24xbf16> to vector<32x24xbf16>
    %c640 = arith.constant 640 : index
    %c0_35 = arith.constant 0 : index
    %74 = vector.load %arg5[%c640, %c0_35] : memref<800x512xbf16, #tpu.memory_space<vmem>>, vector<32x24xbf16>
    tpu.vector_store %arg5[%c640, %c0_35], %73 {strides = array<i32>} : memref<800x512xbf16, #tpu.memory_space<vmem>>, vector<32x24xbf16>,
    %75 = vector.extract_strided_slice %11 {offsets = [1, 0, 12], sizes = [1, 32, 24], strides = [1, 1, 1]} : vector<4x32x44xbf16> to vector<1x32x24xbf16>
    %76 = vector.shape_cast %75 : vector<1x32x24xbf16> to vector<32x24xbf16>
    %c672 = arith.constant 672 : index
    %c0_36 = arith.constant 0 : index
    %77 = vector.load %arg5[%c672, %c0_36] : memref<800x512xbf16, #tpu.memory_space<vmem>>, vector<32x24xbf16>
    tpu.vector_store %arg5[%c672, %c0_36], %76 {strides = array<i32>} : memref<800x512xbf16, #tpu.memory_space<vmem>>, vector<32x24xbf16>,
    %78 = vector.extract_strided_slice %11 {offsets = [0, 0, 13], sizes = [1, 32, 24], strides = [1, 1, 1]} : vector<4x32x44xbf16> to vector<1x32x24xbf16>
    %79 = vector.shape_cast %78 : vector<1x32x24xbf16> to vector<32x24xbf16>
    %c704 = arith.constant 704 : index
    %c0_37 = arith.constant 0 : index
    %80 = vector.load %arg5[%c704, %c0_37] : memref<800x512xbf16, #tpu.memory_space<vmem>>, vector<32x24xbf16>
    tpu.vector_store %arg5[%c704, %c0_37], %79 {strides = array<i32>} : memref<800x512xbf16, #tpu.memory_space<vmem>>, vector<32x24xbf16>,
    %81 = vector.extract_strided_slice %11 {offsets = [1, 0, 13], sizes = [1, 32, 24], strides = [1, 1, 1]} : vector<4x32x44xbf16> to vector<1x32x24xbf16>
    %82 = vector.shape_cast %81 : vector<1x32x24xbf16> to vector<32x24xbf16>
    %c736 = arith.constant 736 : index
    %c0_38 = arith.constant 0 : index
    %83 = vector.load %arg5[%c736, %c0_38] : memref<800x512xbf16, #tpu.memory_space<vmem>>, vector<32x24xbf16>
    tpu.vector_store %arg5[%c736, %c0_38], %82 {strides = array<i32>} : memref<800x512xbf16, #tpu.memory_space<vmem>>, vector<32x24xbf16>,
    %84 = vector.extract_strided_slice %11 {offsets = [0, 0, 14], sizes = [1, 32, 24], strides = [1, 1, 1]} : vector<4x32x44xbf16> to vector<1x32x24xbf16>
    %85 = vector.shape_cast %84 : vector<1x32x24xbf16> to vector<32x24xbf16>
    %c768 = arith.constant 768 : index
    %c0_39 = arith.constant 0 : index
    %86 = vector.load %arg5[%c768, %c0_39] : memref<800x512xbf16, #tpu.memory_space<vmem>>, vector<32x24xbf16>
    tpu.vector_store %arg5[%c768, %c0_39], %85 {strides = array<i32>} : memref<800x512xbf16, #tpu.memory_space<vmem>>, vector<32x24xbf16>,
    %87 = vector.extract_strided_slice %11 {offsets = [1, 0, 0], sizes = [1, 32, 24], strides = [1, 1, 1]} : vector<4x32x44xbf16> to vector<1x32x24xbf16>
    %88 = vector.shape_cast %87 : vector<1x32x24xbf16> to vector<32x24xbf16>
    %c0_40 = arith.constant 0 : index
    %c128_41 = arith.constant 128 : index
    %89 = vector.load %arg5[%c0_40, %c128_41] : memref<800x512xbf16, #tpu.memory_space<vmem>>, vector<32x24xbf16>
    tpu.vector_store %arg5[%c0_40, %c128_41], %88 {strides = array<i32>} : memref<800x512xbf16, #tpu.memory_space<vmem>>, vector<32x24xbf16>,
    %90 = vector.extract_strided_slice %11 {offsets = [0, 0, 1], sizes = [1, 32, 24], strides = [1, 1, 1]} : vector<4x32x44xbf16> to vector<1x32x24xbf16>
    %91 = vector.shape_cast %90 : vector<1x32x24xbf16> to vector<32x24xbf16>
    %c32_42 = arith.constant 32 : index
    %c128_43 = arith.constant 128 : index
    %92 = vector.load %arg5[%c32_42, %c128_43] : memref<800x512xbf16, #tpu.memory_space<vmem>>, vector<32x24xbf16>
    tpu.vector_store %arg5[%c32_42, %c128_43], %91 {strides = array<i32>} : memref<800x512xbf16, #tpu.memory_space<vmem>>, vector<32x24xbf16>,
    %93 = vector.extract_strided_slice %11 {offsets = [1, 0, 1], sizes = [1, 32, 24], strides = [1, 1, 1]} : vector<4x32x44xbf16> to vector<1x32x24xbf16>
    %94 = vector.shape_cast %93 : vector<1x32x24xbf16> to vector<32x24xbf16>
    %c64_44 = arith.constant 64 : index
    %c128_45 = arith.constant 128 : index
    %95 = vector.load %arg5[%c64_44, %c128_45] : memref<800x512xbf16, #tpu.memory_space<vmem>>, vector<32x24xbf16>
    tpu.vector_store %arg5[%c64_44, %c128_45], %94 {strides = array<i32>} : memref<800x512xbf16, #tpu.memory_space<vmem>>, vector<32x24xbf16>,
    %96 = vector.extract_strided_slice %11 {offsets = [0, 0, 2], sizes = [1, 32, 24], strides = [1, 1, 1]} : vector<4x32x44xbf16> to vector<1x32x24xbf16>
    %97 = vector.shape_cast %96 : vector<1x32x24xbf16> to vector<32x24xbf16>
    %c96_46 = arith.constant 96 : index
    %c128_47 = arith.constant 128 : index
    %98 = vector.load %arg5[%c96_46, %c128_47] : memref<800x512xbf16, #tpu.memory_space<vmem>>, vector<32x24xbf16>
    tpu.vector_store %arg5[%c96_46, %c128_47], %97 {strides = array<i32>} : memref<800x512xbf16, #tpu.memory_space<vmem>>, vector<32x24xbf16>,
    %99 = vector.extract_strided_slice %11 {offsets = [1, 0, 2], sizes = [1, 32, 24], strides = [1, 1, 1]} : vector<4x32x44xbf16> to vector<1x32x24xbf16>
    %100 = vector.shape_cast %99 : vector<1x32x24xbf16> to vector<32x24xbf16>
    %c128_48 = arith.constant 128 : index
    %c128_49 = arith.constant 128 : index
    %101 = vector.load %arg5[%c128_48, %c128_49] : memref<800x512xbf16, #tpu.memory_space<vmem>>, vector<32x24xbf16>
    tpu.vector_store %arg5[%c128_48, %c128_49], %100 {strides = array<i32>} : memref<800x512xbf16, #tpu.memory_space<vmem>>, vector<32x24xbf16>,
    %102 = vector.extract_strided_slice %11 {offsets = [3, 0, 0], sizes = [1, 32, 24], strides = [1, 1, 1]} : vector<4x32x44xbf16> to vector<1x32x24xbf16>
    %103 = vector.shape_cast %102 : vector<1x32x24xbf16> to vector<32x24xbf16>
    %c160_50 = arith.constant 160 : index
    %c128_51 = arith.constant 128 : index
    %104 = vector.load %arg5[%c160_50, %c128_51] : memref<800x512xbf16, #tpu.memory_space<vmem>>, vector<32x24xbf16>
    tpu.vector_store %arg5[%c160_50, %c128_51], %103 {strides = array<i32>} : memref<800x512xbf16, #tpu.memory_space<vmem>>, vector<32x24xbf16>,
    %105 = vector.extract_strided_slice %11 {offsets = [2, 0, 1], sizes = [1, 32, 24], strides = [1, 1, 1]} : vector<4x32x44xbf16> to vector<1x32x24xbf16>
    %106 = vector.shape_cast %105 : vector<1x32x24xbf16> to vector<32x24xbf16>
    %c192_52 = arith.constant 192 : index
    %c128_53 = arith.constant 128 : index
    %107 = vector.load %arg5[%c192_52, %c128_53] : memref<800x512xbf16, #tpu.memory_space<vmem>>, vector<32x24xbf16>
    tpu.vector_store %arg5[%c192_52, %c128_53], %106 {strides = array<i32>} : memref<800x512xbf16, #tpu.memory_space<vmem>>, vector<32x24xbf16>,
    %108 = vector.extract_strided_slice %11 {offsets = [3, 0, 1], sizes = [1, 32, 24], strides = [1, 1, 1]} : vector<4x32x44xbf16> to vector<1x32x24xbf16>
    %109 = vector.shape_cast %108 : vector<1x32x24xbf16> to vector<32x24xbf16>
    %c224_54 = arith.constant 224 : index
    %c128_55 = arith.constant 128 : index
    %110 = vector.load %arg5[%c224_54, %c128_55] : memref<800x512xbf16, #tpu.memory_space<vmem>>, vector<32x24xbf16>
    tpu.vector_store %arg5[%c224_54, %c128_55], %109 {strides = array<i32>} : memref<800x512xbf16, #tpu.memory_space<vmem>>, vector<32x24xbf16>,
    %111 = vector.extract_strided_slice %11 {offsets = [2, 0, 2], sizes = [1, 32, 24], strides = [1, 1, 1]} : vector<4x32x44xbf16> to vector<1x32x24xbf16>
    %112 = vector.shape_cast %111 : vector<1x32x24xbf16> to vector<32x24xbf16>
    %c256_56 = arith.constant 256 : index
    %c128_57 = arith.constant 128 : index
    %113 = vector.load %arg5[%c256_56, %c128_57] : memref<800x512xbf16, #tpu.memory_space<vmem>>, vector<32x24xbf16>
    tpu.vector_store %arg5[%c256_56, %c128_57], %112 {strides = array<i32>} : memref<800x512xbf16, #tpu.memory_space<vmem>>, vector<32x24xbf16>,
    %114 = vector.extract_strided_slice %11 {offsets = [3, 0, 2], sizes = [1, 32, 24], strides = [1, 1, 1]} : vector<4x32x44xbf16> to vector<1x32x24xbf16>
    %115 = vector.shape_cast %114 : vector<1x32x24xbf16> to vector<32x24xbf16>
    %c288_58 = arith.constant 288 : index
    %c128_59 = arith.constant 128 : index
    %116 = vector.load %arg5[%c288_58, %c128_59] : memref<800x512xbf16, #tpu.memory_space<vmem>>, vector<32x24xbf16>
    tpu.vector_store %arg5[%c288_58, %c128_59], %115 {strides = array<i32>} : memref<800x512xbf16, #tpu.memory_space<vmem>>, vector<32x24xbf16>,
    %117 = vector.extract_strided_slice %11 {offsets = [1, 0, 6], sizes = [1, 32, 24], strides = [1, 1, 1]} : vector<4x32x44xbf16> to vector<1x32x24xbf16>
    %118 = vector.shape_cast %117 : vector<1x32x24xbf16> to vector<32x24xbf16>
    %c320_60 = arith.constant 320 : index
    %c128_61 = arith.constant 128 : index
    %119 = vector.load %arg5[%c320_60, %c128_61] : memref<800x512xbf16, #tpu.memory_space<vmem>>, vector<32x24xbf16>
    tpu.vector_store %arg5[%c320_60, %c128_61], %118 {strides = array<i32>} : memref<800x512xbf16, #tpu.memory_space<vmem>>, vector<32x24xbf16>,
    %120 = vector.extract_strided_slice %11 {offsets = [0, 0, 7], sizes = [1, 32, 24], strides = [1, 1, 1]} : vector<4x32x44xbf16> to vector<1x32x24xbf16>
    %121 = vector.shape_cast %120 : vector<1x32x24xbf16> to vector<32x24xbf16>
    %c352_62 = arith.constant 352 : index
    %c128_63 = arith.constant 128 : index
    %122 = vector.load %arg5[%c352_62, %c128_63] : memref<800x512xbf16, #tpu.memory_space<vmem>>, vector<32x24xbf16>
    tpu.vector_store %arg5[%c352_62, %c128_63], %121 {strides = array<i32>} : memref<800x512xbf16, #tpu.memory_space<vmem>>, vector<32x24xbf16>,
    %123 = vector.extract_strided_slice %11 {offsets = [1, 0, 7], sizes = [1, 32, 24], strides = [1, 1, 1]} : vector<4x32x44xbf16> to vector<1x32x24xbf16>
    %124 = vector.shape_cast %123 : vector<1x32x24xbf16> to vector<32x24xbf16>
    %c384_64 = arith.constant 384 : index
    %c128_65 = arith.constant 128 : index
    %125 = vector.load %arg5[%c384_64, %c128_65] : memref<800x512xbf16, #tpu.memory_space<vmem>>, vector<32x24xbf16>
    tpu.vector_store %arg5[%c384_64, %c128_65], %124 {strides = array<i32>} : memref<800x512xbf16, #tpu.memory_space<vmem>>, vector<32x24xbf16>,
    %126 = vector.extract_strided_slice %11 {offsets = [0, 0, 8], sizes = [1, 32, 24], strides = [1, 1, 1]} : vector<4x32x44xbf16> to vector<1x32x24xbf16>
    %127 = vector.shape_cast %126 : vector<1x32x24xbf16> to vector<32x24xbf16>
    %c416_66 = arith.constant 416 : index
    %c128_67 = arith.constant 128 : index
    %128 = vector.load %arg5[%c416_66, %c128_67] : memref<800x512xbf16, #tpu.memory_space<vmem>>, vector<32x24xbf16>
    tpu.vector_store %arg5[%c416_66, %c128_67], %127 {strides = array<i32>} : memref<800x512xbf16, #tpu.memory_space<vmem>>, vector<32x24xbf16>,
    %129 = vector.extract_strided_slice %11 {offsets = [1, 0, 8], sizes = [1, 32, 24], strides = [1, 1, 1]} : vector<4x32x44xbf16> to vector<1x32x24xbf16>
    %130 = vector.shape_cast %129 : vector<1x32x24xbf16> to vector<32x24xbf16>
    %c448_68 = arith.constant 448 : index
    %c128_69 = arith.constant 128 : index
    %131 = vector.load %arg5[%c448_68, %c128_69] : memref<800x512xbf16, #tpu.memory_space<vmem>>, vector<32x24xbf16>
    tpu.vector_store %arg5[%c448_68, %c128_69], %130 {strides = array<i32>} : memref<800x512xbf16, #tpu.memory_space<vmem>>, vector<32x24xbf16>,
    %132 = vector.extract_strided_slice %11 {offsets = [3, 0, 6], sizes = [1, 32, 24], strides = [1, 1, 1]} : vector<4x32x44xbf16> to vector<1x32x24xbf16>
    %133 = vector.shape_cast %132 : vector<1x32x24xbf16> to vector<32x24xbf16>
    %c480_70 = arith.constant 480 : index
    %c128_71 = arith.constant 128 : index
    %134 = vector.load %arg5[%c480_70, %c128_71] : memref<800x512xbf16, #tpu.memory_space<vmem>>, vector<32x24xbf16>
    tpu.vector_store %arg5[%c480_70, %c128_71], %133 {strides = array<i32>} : memref<800x512xbf16, #tpu.memory_space<vmem>>, vector<32x24xbf16>,
    %135 = vector.extract_strided_slice %11 {offsets = [2, 0, 7], sizes = [1, 32, 24], strides = [1, 1, 1]} : vector<4x32x44xbf16> to vector<1x32x24xbf16>
    %136 = vector.shape_cast %135 : vector<1x32x24xbf16> to vector<32x24xbf16>
    %c512_72 = arith.constant 512 : index
    %c128_73 = arith.constant 128 : index
    %137 = vector.load %arg5[%c512_72, %c128_73] : memref<800x512xbf16, #tpu.memory_space<vmem>>, vector<32x24xbf16>
    tpu.vector_store %arg5[%c512_72, %c128_73], %136 {strides = array<i32>} : memref<800x512xbf16, #tpu.memory_space<vmem>>, vector<32x24xbf16>,
    %138 = vector.extract_strided_slice %11 {offsets = [3, 0, 7], sizes = [1, 32, 24], strides = [1, 1, 1]} : vector<4x32x44xbf16> to vector<1x32x24xbf16>
    %139 = vector.shape_cast %138 : vector<1x32x24xbf16> to vector<32x24xbf16>
    %c544_74 = arith.constant 544 : index
    %c128_75 = arith.constant 128 : index
    %140 = vector.load %arg5[%c544_74, %c128_75] : memref<800x512xbf16, #tpu.memory_space<vmem>>, vector<32x24xbf16>
    tpu.vector_store %arg5[%c544_74, %c128_75], %139 {strides = array<i32>} : memref<800x512xbf16, #tpu.memory_space<vmem>>, vector<32x24xbf16>,
    %141 = vector.extract_strided_slice %11 {offsets = [2, 0, 8], sizes = [1, 32, 24], strides = [1, 1, 1]} : vector<4x32x44xbf16> to vector<1x32x24xbf16>
    %142 = vector.shape_cast %141 : vector<1x32x24xbf16> to vector<32x24xbf16>
    %c576_76 = arith.constant 576 : index
    %c128_77 = arith.constant 128 : index
    %143 = vector.load %arg5[%c576_76, %c128_77] : memref<800x512xbf16, #tpu.memory_space<vmem>>, vector<32x24xbf16>
    tpu.vector_store %arg5[%c576_76, %c128_77], %142 {strides = array<i32>} : memref<800x512xbf16, #tpu.memory_space<vmem>>, vector<32x24xbf16>,
    %144 = vector.extract_strided_slice %11 {offsets = [3, 0, 8], sizes = [1, 32, 24], strides = [1, 1, 1]} : vector<4x32x44xbf16> to vector<1x32x24xbf16>
    %145 = vector.shape_cast %144 : vector<1x32x24xbf16> to vector<32x24xbf16>
    %c608_78 = arith.constant 608 : index
    %c128_79 = arith.constant 128 : index
    %146 = vector.load %arg5[%c608_78, %c128_79] : memref<800x512xbf16, #tpu.memory_space<vmem>>, vector<32x24xbf16>
    tpu.vector_store %arg5[%c608_78, %c128_79], %145 {strides = array<i32>} : memref<800x512xbf16, #tpu.memory_space<vmem>>, vector<32x24xbf16>,
    %147 = vector.extract_strided_slice %11 {offsets = [1, 0, 12], sizes = [1, 32, 24], strides = [1, 1, 1]} : vector<4x32x44xbf16> to vector<1x32x24xbf16>
    %148 = vector.shape_cast %147 : vector<1x32x24xbf16> to vector<32x24xbf16>
    %c640_80 = arith.constant 640 : index
    %c128_81 = arith.constant 128 : index
    %149 = vector.load %arg5[%c640_80, %c128_81] : memref<800x512xbf16, #tpu.memory_space<vmem>>, vector<32x24xbf16>
    tpu.vector_store %arg5[%c640_80, %c128_81], %148 {strides = array<i32>} : memref<800x512xbf16, #tpu.memory_space<vmem>>, vector<32x24xbf16>,
    %150 = vector.extract_strided_slice %11 {offsets = [0, 0, 13], sizes = [1, 32, 24], strides = [1, 1, 1]} : vector<4x32x44xbf16> to vector<1x32x24xbf16>
    %151 = vector.shape_cast %150 : vector<1x32x24xbf16> to vector<32x24xbf16>
    %c672_82 = arith.constant 672 : index
    %c128_83 = arith.constant 128 : index
    %152 = vector.load %arg5[%c672_82, %c128_83] : memref<800x512xbf16, #tpu.memory_space<vmem>>, vector<32x24xbf16>
    tpu.vector_store %arg5[%c672_82, %c128_83], %151 {strides = array<i32>} : memref<800x512xbf16, #tpu.memory_space<vmem>>, vector<32x24xbf16>,
    %153 = vector.extract_strided_slice %11 {offsets = [1, 0, 13], sizes = [1, 32, 24], strides = [1, 1, 1]} : vector<4x32x44xbf16> to vector<1x32x24xbf16>
    %154 = vector.shape_cast %153 : vector<1x32x24xbf16> to vector<32x24xbf16>
    %c704_84 = arith.constant 704 : index
    %c128_85 = arith.constant 128 : index
    %155 = vector.load %arg5[%c704_84, %c128_85] : memref<800x512xbf16, #tpu.memory_space<vmem>>, vector<32x24xbf16>
    tpu.vector_store %arg5[%c704_84, %c128_85], %154 {strides = array<i32>} : memref<800x512xbf16, #tpu.memory_space<vmem>>, vector<32x24xbf16>,
    %156 = vector.extract_strided_slice %11 {offsets = [0, 0, 14], sizes = [1, 32, 24], strides = [1, 1, 1]} : vector<4x32x44xbf16> to vector<1x32x24xbf16>
    %157 = vector.shape_cast %156 : vector<1x32x24xbf16> to vector<32x24xbf16>
    %c736_86 = arith.constant 736 : index
    %c128_87 = arith.constant 128 : index
    %158 = vector.load %arg5[%c736_86, %c128_87] : memref<800x512xbf16, #tpu.memory_space<vmem>>, vector<32x24xbf16>
    tpu.vector_store %arg5[%c736_86, %c128_87], %157 {strides = array<i32>} : memref<800x512xbf16, #tpu.memory_space<vmem>>, vector<32x24xbf16>,
    %159 = vector.extract_strided_slice %11 {offsets = [1, 0, 14], sizes = [1, 32, 24], strides = [1, 1, 1]} : vector<4x32x44xbf16> to vector<1x32x24xbf16>
    %160 = vector.shape_cast %159 : vector<1x32x24xbf16> to vector<32x24xbf16>
    %c768_88 = arith.constant 768 : index
    %c128_89 = arith.constant 128 : index
    %161 = vector.load %arg5[%c768_88, %c128_89] : memref<800x512xbf16, #tpu.memory_space<vmem>>, vector<32x24xbf16>
    tpu.vector_store %arg5[%c768_88, %c128_89], %160 {strides = array<i32>} : memref<800x512xbf16, #tpu.memory_space<vmem>>, vector<32x24xbf16>,
    %162 = vector.extract_strided_slice %11 {offsets = [2, 0, 0], sizes = [1, 32, 24], strides = [1, 1, 1]} : vector<4x32x44xbf16> to vector<1x32x24xbf16>
    %163 = vector.shape_cast %162 : vector<1x32x24xbf16> to vector<32x24xbf16>
    %c0_90 = arith.constant 0 : index
    %c256_91 = arith.constant 256 : index
    %164 = vector.load %arg5[%c0_90, %c256_91] : memref<800x512xbf16, #tpu.memory_space<vmem>>, vector<32x24xbf16>
    tpu.vector_store %arg5[%c0_90, %c256_91], %163 {strides = array<i32>} : memref<800x512xbf16, #tpu.memory_space<vmem>>, vector<32x24xbf16>,
    %165 = vector.extract_strided_slice %11 {offsets = [3, 0, 0], sizes = [1, 32, 24], strides = [1, 1, 1]} : vector<4x32x44xbf16> to vector<1x32x24xbf16>
    %166 = vector.shape_cast %165 : vector<1x32x24xbf16> to vector<32x24xbf16>
    %c32_92 = arith.constant 32 : index
    %c256_93 = arith.constant 256 : index
    %167 = vector.load %arg5[%c32_92, %c256_93] : memref<800x512xbf16, #tpu.memory_space<vmem>>, vector<32x24xbf16>
    tpu.vector_store %arg5[%c32_92, %c256_93], %166 {strides = array<i32>} : memref<800x512xbf16, #tpu.memory_space<vmem>>, vector<32x24xbf16>,
    %168 = vector.extract_strided_slice %11 {offsets = [2, 0, 1], sizes = [1, 32, 24], strides = [1, 1, 1]} : vector<4x32x44xbf16> to vector<1x32x24xbf16>
    %169 = vector.shape_cast %168 : vector<1x32x24xbf16> to vector<32x24xbf16>
    %c64_94 = arith.constant 64 : index
    %c256_95 = arith.constant 256 : index
    %170 = vector.load %arg5[%c64_94, %c256_95] : memref<800x512xbf16, #tpu.memory_space<vmem>>, vector<32x24xbf16>
    tpu.vector_store %arg5[%c64_94, %c256_95], %169 {strides = array<i32>} : memref<800x512xbf16, #tpu.memory_space<vmem>>, vector<32x24xbf16>,
    %171 = vector.extract_strided_slice %11 {offsets = [3, 0, 1], sizes = [1, 32, 24], strides = [1, 1, 1]} : vector<4x32x44xbf16> to vector<1x32x24xbf16>
    %172 = vector.shape_cast %171 : vector<1x32x24xbf16> to vector<32x24xbf16>
    %c96_96 = arith.constant 96 : index
    %c256_97 = arith.constant 256 : index
    %173 = vector.load %arg5[%c96_96, %c256_97] : memref<800x512xbf16, #tpu.memory_space<vmem>>, vector<32x24xbf16>
    tpu.vector_store %arg5[%c96_96, %c256_97], %172 {strides = array<i32>} : memref<800x512xbf16, #tpu.memory_space<vmem>>, vector<32x24xbf16>,
    %174 = vector.extract_strided_slice %11 {offsets = [2, 0, 2], sizes = [1, 32, 24], strides = [1, 1, 1]} : vector<4x32x44xbf16> to vector<1x32x24xbf16>
    %175 = vector.shape_cast %174 : vector<1x32x24xbf16> to vector<32x24xbf16>
    %c128_98 = arith.constant 128 : index
    %c256_99 = arith.constant 256 : index
    %176 = vector.load %arg5[%c128_98, %c256_99] : memref<800x512xbf16, #tpu.memory_space<vmem>>, vector<32x24xbf16>
    tpu.vector_store %arg5[%c128_98, %c256_99], %175 {strides = array<i32>} : memref<800x512xbf16, #tpu.memory_space<vmem>>, vector<32x24xbf16>,
    %177 = vector.extract_strided_slice %11 {offsets = [0, 0, 6], sizes = [1, 32, 24], strides = [1, 1, 1]} : vector<4x32x44xbf16> to vector<1x32x24xbf16>
    %178 = vector.shape_cast %177 : vector<1x32x24xbf16> to vector<32x24xbf16>
    %c160_100 = arith.constant 160 : index
    %c256_101 = arith.constant 256 : index
    %179 = vector.load %arg5[%c160_100, %c256_101] : memref<800x512xbf16, #tpu.memory_space<vmem>>, vector<32x24xbf16>
    tpu.vector_store %arg5[%c160_100, %c256_101], %178 {strides = array<i32>} : memref<800x512xbf16, #tpu.memory_space<vmem>>, vector<32x24xbf16>,
    %180 = vector.extract_strided_slice %11 {offsets = [1, 0, 6], sizes = [1, 32, 24], strides = [1, 1, 1]} : vector<4x32x44xbf16> to vector<1x32x24xbf16>
    %181 = vector.shape_cast %180 : vector<1x32x24xbf16> to vector<32x24xbf16>
    %c192_102 = arith.constant 192 : index
    %c256_103 = arith.constant 256 : index
    %182 = vector.load %arg5[%c192_102, %c256_103] : memref<800x512xbf16, #tpu.memory_space<vmem>>, vector<32x24xbf16>
    tpu.vector_store %arg5[%c192_102, %c256_103], %181 {strides = array<i32>} : memref<800x512xbf16, #tpu.memory_space<vmem>>, vector<32x24xbf16>,
    %183 = vector.extract_strided_slice %11 {offsets = [0, 0, 7], sizes = [1, 32, 24], strides = [1, 1, 1]} : vector<4x32x44xbf16> to vector<1x32x24xbf16>
    %184 = vector.shape_cast %183 : vector<1x32x24xbf16> to vector<32x24xbf16>
    %c224_104 = arith.constant 224 : index
    %c256_105 = arith.constant 256 : index
    %185 = vector.load %arg5[%c224_104, %c256_105] : memref<800x512xbf16, #tpu.memory_space<vmem>>, vector<32x24xbf16>
    tpu.vector_store %arg5[%c224_104, %c256_105], %184 {strides = array<i32>} : memref<800x512xbf16, #tpu.memory_space<vmem>>, vector<32x24xbf16>,
    %186 = vector.extract_strided_slice %11 {offsets = [1, 0, 7], sizes = [1, 32, 24], strides = [1, 1, 1]} : vector<4x32x44xbf16> to vector<1x32x24xbf16>
    %187 = vector.shape_cast %186 : vector<1x32x24xbf16> to vector<32x24xbf16>
    %c256_106 = arith.constant 256 : index
    %c256_107 = arith.constant 256 : index
    %188 = vector.load %arg5[%c256_106, %c256_107] : memref<800x512xbf16, #tpu.memory_space<vmem>>, vector<32x24xbf16>
    tpu.vector_store %arg5[%c256_106, %c256_107], %187 {strides = array<i32>} : memref<800x512xbf16, #tpu.memory_space<vmem>>, vector<32x24xbf16>,
    %189 = vector.extract_strided_slice %11 {offsets = [0, 0, 8], sizes = [1, 32, 24], strides = [1, 1, 1]} : vector<4x32x44xbf16> to vector<1x32x24xbf16>
    %190 = vector.shape_cast %189 : vector<1x32x24xbf16> to vector<32x24xbf16>
    %c288_108 = arith.constant 288 : index
    %c256_109 = arith.constant 256 : index
    %191 = vector.load %arg5[%c288_108, %c256_109] : memref<800x512xbf16, #tpu.memory_space<vmem>>, vector<32x24xbf16>
    tpu.vector_store %arg5[%c288_108, %c256_109], %190 {strides = array<i32>} : memref<800x512xbf16, #tpu.memory_space<vmem>>, vector<32x24xbf16>,
    %192 = vector.extract_strided_slice %11 {offsets = [2, 0, 6], sizes = [1, 32, 24], strides = [1, 1, 1]} : vector<4x32x44xbf16> to vector<1x32x24xbf16>
    %193 = vector.shape_cast %192 : vector<1x32x24xbf16> to vector<32x24xbf16>
    %c320_110 = arith.constant 320 : index
    %c256_111 = arith.constant 256 : index
    %194 = vector.load %arg5[%c320_110, %c256_111] : memref<800x512xbf16, #tpu.memory_space<vmem>>, vector<32x24xbf16>
    tpu.vector_store %arg5[%c320_110, %c256_111], %193 {strides = array<i32>} : memref<800x512xbf16, #tpu.memory_space<vmem>>, vector<32x24xbf16>,
    %195 = vector.extract_strided_slice %11 {offsets = [3, 0, 6], sizes = [1, 32, 24], strides = [1, 1, 1]} : vector<4x32x44xbf16> to vector<1x32x24xbf16>
    %196 = vector.shape_cast %195 : vector<1x32x24xbf16> to vector<32x24xbf16>
    %c352_112 = arith.constant 352 : index
    %c256_113 = arith.constant 256 : index
    %197 = vector.load %arg5[%c352_112, %c256_113] : memref<800x512xbf16, #tpu.memory_space<vmem>>, vector<32x24xbf16>
    tpu.vector_store %arg5[%c352_112, %c256_113], %196 {strides = array<i32>} : memref<800x512xbf16, #tpu.memory_space<vmem>>, vector<32x24xbf16>,
    %198 = vector.extract_strided_slice %11 {offsets = [2, 0, 7], sizes = [1, 32, 24], strides = [1, 1, 1]} : vector<4x32x44xbf16> to vector<1x32x24xbf16>
    %199 = vector.shape_cast %198 : vector<1x32x24xbf16> to vector<32x24xbf16>
    %c384_114 = arith.constant 384 : index
    %c256_115 = arith.constant 256 : index
    %200 = vector.load %arg5[%c384_114, %c256_115] : memref<800x512xbf16, #tpu.memory_space<vmem>>, vector<32x24xbf16>
    tpu.vector_store %arg5[%c384_114, %c256_115], %199 {strides = array<i32>} : memref<800x512xbf16, #tpu.memory_space<vmem>>, vector<32x24xbf16>,
    %201 = vector.extract_strided_slice %11 {offsets = [3, 0, 7], sizes = [1, 32, 24], strides = [1, 1, 1]} : vector<4x32x44xbf16> to vector<1x32x24xbf16>
    %202 = vector.shape_cast %201 : vector<1x32x24xbf16> to vector<32x24xbf16>
    %c416_116 = arith.constant 416 : index
    %c256_117 = arith.constant 256 : index
    %203 = vector.load %arg5[%c416_116, %c256_117] : memref<800x512xbf16, #tpu.memory_space<vmem>>, vector<32x24xbf16>
    tpu.vector_store %arg5[%c416_116, %c256_117], %202 {strides = array<i32>} : memref<800x512xbf16, #tpu.memory_space<vmem>>, vector<32x24xbf16>,
    %204 = vector.extract_strided_slice %11 {offsets = [2, 0, 8], sizes = [1, 32, 24], strides = [1, 1, 1]} : vector<4x32x44xbf16> to vector<1x32x24xbf16>
    %205 = vector.shape_cast %204 : vector<1x32x24xbf16> to vector<32x24xbf16>
    %c448_118 = arith.constant 448 : index
    %c256_119 = arith.constant 256 : index
    %206 = vector.load %arg5[%c448_118, %c256_119] : memref<800x512xbf16, #tpu.memory_space<vmem>>, vector<32x24xbf16>
    tpu.vector_store %arg5[%c448_118, %c256_119], %205 {strides = array<i32>} : memref<800x512xbf16, #tpu.memory_space<vmem>>, vector<32x24xbf16>,
    %207 = vector.extract_strided_slice %11 {offsets = [0, 0, 12], sizes = [1, 32, 24], strides = [1, 1, 1]} : vector<4x32x44xbf16> to vector<1x32x24xbf16>
    %208 = vector.shape_cast %207 : vector<1x32x24xbf16> to vector<32x24xbf16>
    %c480_120 = arith.constant 480 : index
    %c256_121 = arith.constant 256 : index
    %209 = vector.load %arg5[%c480_120, %c256_121] : memref<800x512xbf16, #tpu.memory_space<vmem>>, vector<32x24xbf16>
    tpu.vector_store %arg5[%c480_120, %c256_121], %208 {strides = array<i32>} : memref<800x512xbf16, #tpu.memory_space<vmem>>, vector<32x24xbf16>,
    %210 = vector.extract_strided_slice %11 {offsets = [1, 0, 12], sizes = [1, 32, 24], strides = [1, 1, 1]} : vector<4x32x44xbf16> to vector<1x32x24xbf16>
    %211 = vector.shape_cast %210 : vector<1x32x24xbf16> to vector<32x24xbf16>
    %c512_122 = arith.constant 512 : index
    %c256_123 = arith.constant 256 : index
    %212 = vector.load %arg5[%c512_122, %c256_123] : memref<800x512xbf16, #tpu.memory_space<vmem>>, vector<32x24xbf16>
    tpu.vector_store %arg5[%c512_122, %c256_123], %211 {strides = array<i32>} : memref<800x512xbf16, #tpu.memory_space<vmem>>, vector<32x24xbf16>,
    %213 = vector.extract_strided_slice %11 {offsets = [0, 0, 13], sizes = [1, 32, 24], strides = [1, 1, 1]} : vector<4x32x44xbf16> to vector<1x32x24xbf16>
    %214 = vector.shape_cast %213 : vector<1x32x24xbf16> to vector<32x24xbf16>
    %c544_124 = arith.constant 544 : index
    %c256_125 = arith.constant 256 : index
    %215 = vector.load %arg5[%c544_124, %c256_125] : memref<800x512xbf16, #tpu.memory_space<vmem>>, vector<32x24xbf16>
    tpu.vector_store %arg5[%c544_124, %c256_125], %214 {strides = array<i32>} : memref<800x512xbf16, #tpu.memory_space<vmem>>, vector<32x24xbf16>,
    %216 = vector.extract_strided_slice %11 {offsets = [1, 0, 13], sizes = [1, 32, 24], strides = [1, 1, 1]} : vector<4x32x44xbf16> to vector<1x32x24xbf16>
    %217 = vector.shape_cast %216 : vector<1x32x24xbf16> to vector<32x24xbf16>
    %c576_126 = arith.constant 576 : index
    %c256_127 = arith.constant 256 : index
    %218 = vector.load %arg5[%c576_126, %c256_127] : memref<800x512xbf16, #tpu.memory_space<vmem>>, vector<32x24xbf16>
    tpu.vector_store %arg5[%c576_126, %c256_127], %217 {strides = array<i32>} : memref<800x512xbf16, #tpu.memory_space<vmem>>, vector<32x24xbf16>,
    %219 = vector.extract_strided_slice %11 {offsets = [0, 0, 14], sizes = [1, 32, 24], strides = [1, 1, 1]} : vector<4x32x44xbf16> to vector<1x32x24xbf16>
    %220 = vector.shape_cast %219 : vector<1x32x24xbf16> to vector<32x24xbf16>
    %c608_128 = arith.constant 608 : index
    %c256_129 = arith.constant 256 : index
    %221 = vector.load %arg5[%c608_128, %c256_129] : memref<800x512xbf16, #tpu.memory_space<vmem>>, vector<32x24xbf16>
    tpu.vector_store %arg5[%c608_128, %c256_129], %220 {strides = array<i32>} : memref<800x512xbf16, #tpu.memory_space<vmem>>, vector<32x24xbf16>,
    %222 = vector.extract_strided_slice %11 {offsets = [2, 0, 12], sizes = [1, 32, 24], strides = [1, 1, 1]} : vector<4x32x44xbf16> to vector<1x32x24xbf16>
    %223 = vector.shape_cast %222 : vector<1x32x24xbf16> to vector<32x24xbf16>
    %c640_130 = arith.constant 640 : index
    %c256_131 = arith.constant 256 : index
    %224 = vector.load %arg5[%c640_130, %c256_131] : memref<800x512xbf16, #tpu.memory_space<vmem>>, vector<32x24xbf16>
    tpu.vector_store %arg5[%c640_130, %c256_131], %223 {strides = array<i32>} : memref<800x512xbf16, #tpu.memory_space<vmem>>, vector<32x24xbf16>,
    %225 = vector.extract_strided_slice %11 {offsets = [3, 0, 12], sizes = [1, 32, 24], strides = [1, 1, 1]} : vector<4x32x44xbf16> to vector<1x32x24xbf16>
    %226 = vector.shape_cast %225 : vector<1x32x24xbf16> to vector<32x24xbf16>
    %c672_132 = arith.constant 672 : index
    %c256_133 = arith.constant 256 : index
    %227 = vector.load %arg5[%c672_132, %c256_133] : memref<800x512xbf16, #tpu.memory_space<vmem>>, vector<32x24xbf16>
    tpu.vector_store %arg5[%c672_132, %c256_133], %226 {strides = array<i32>} : memref<800x512xbf16, #tpu.memory_space<vmem>>, vector<32x24xbf16>,
    %228 = vector.extract_strided_slice %11 {offsets = [2, 0, 13], sizes = [1, 32, 24], strides = [1, 1, 1]} : vector<4x32x44xbf16> to vector<1x32x24xbf16>
    %229 = vector.shape_cast %228 : vector<1x32x24xbf16> to vector<32x24xbf16>
    %c704_134 = arith.constant 704 : index
    %c256_135 = arith.constant 256 : index
    %230 = vector.load %arg5[%c704_134, %c256_135] : memref<800x512xbf16, #tpu.memory_space<vmem>>, vector<32x24xbf16>
    tpu.vector_store %arg5[%c704_134, %c256_135], %229 {strides = array<i32>} : memref<800x512xbf16, #tpu.memory_space<vmem>>, vector<32x24xbf16>,
    %231 = vector.extract_strided_slice %11 {offsets = [3, 0, 13], sizes = [1, 32, 24], strides = [1, 1, 1]} : vector<4x32x44xbf16> to vector<1x32x24xbf16>
    %232 = vector.shape_cast %231 : vector<1x32x24xbf16> to vector<32x24xbf16>
    %c736_136 = arith.constant 736 : index
    %c256_137 = arith.constant 256 : index
    %233 = vector.load %arg5[%c736_136, %c256_137] : memref<800x512xbf16, #tpu.memory_space<vmem>>, vector<32x24xbf16>
    tpu.vector_store %arg5[%c736_136, %c256_137], %232 {strides = array<i32>} : memref<800x512xbf16, #tpu.memory_space<vmem>>, vector<32x24xbf16>,
    %234 = vector.extract_strided_slice %11 {offsets = [2, 0, 14], sizes = [1, 32, 24], strides = [1, 1, 1]} : vector<4x32x44xbf16> to vector<1x32x24xbf16>
    %235 = vector.shape_cast %234 : vector<1x32x24xbf16> to vector<32x24xbf16>
    %c768_138 = arith.constant 768 : index
    %c256_139 = arith.constant 256 : index
    %236 = vector.load %arg5[%c768_138, %c256_139] : memref<800x512xbf16, #tpu.memory_space<vmem>>, vector<32x24xbf16>
    tpu.vector_store %arg5[%c768_138, %c256_139], %235 {strides = array<i32>} : memref<800x512xbf16, #tpu.memory_space<vmem>>, vector<32x24xbf16>,
    %237 = vector.extract_strided_slice %11 {offsets = [3, 0, 0], sizes = [1, 32, 24], strides = [1, 1, 1]} : vector<4x32x44xbf16> to vector<1x32x24xbf16>
    %238 = vector.shape_cast %237 : vector<1x32x24xbf16> to vector<32x24xbf16>
    %c0_140 = arith.constant 0 : index
    %c384_141 = arith.constant 384 : index
    %239 = vector.load %arg5[%c0_140, %c384_141] : memref<800x512xbf16, #tpu.memory_space<vmem>>, vector<32x24xbf16>
    tpu.vector_store %arg5[%c0_140, %c384_141], %238 {strides = array<i32>} : memref<800x512xbf16, #tpu.memory_space<vmem>>, vector<32x24xbf16>,
    %240 = vector.extract_strided_slice %11 {offsets = [2, 0, 1], sizes = [1, 32, 24], strides = [1, 1, 1]} : vector<4x32x44xbf16> to vector<1x32x24xbf16>
    %241 = vector.shape_cast %240 : vector<1x32x24xbf16> to vector<32x24xbf16>
    %c32_142 = arith.constant 32 : index
    %c384_143 = arith.constant 384 : index
    %242 = vector.load %arg5[%c32_142, %c384_143] : memref<800x512xbf16, #tpu.memory_space<vmem>>, vector<32x24xbf16>
    tpu.vector_store %arg5[%c32_142, %c384_143], %241 {strides = array<i32>} : memref<800x512xbf16, #tpu.memory_space<vmem>>, vector<32x24xbf16>,
    %243 = vector.extract_strided_slice %11 {offsets = [3, 0, 1], sizes = [1, 32, 24], strides = [1, 1, 1]} : vector<4x32x44xbf16> to vector<1x32x24xbf16>
    %244 = vector.shape_cast %243 : vector<1x32x24xbf16> to vector<32x24xbf16>
    %c64_144 = arith.constant 64 : index
    %c384_145 = arith.constant 384 : index
    %245 = vector.load %arg5[%c64_144, %c384_145] : memref<800x512xbf16, #tpu.memory_space<vmem>>, vector<32x24xbf16>
    tpu.vector_store %arg5[%c64_144, %c384_145], %244 {strides = array<i32>} : memref<800x512xbf16, #tpu.memory_space<vmem>>, vector<32x24xbf16>,
    %246 = vector.extract_strided_slice %11 {offsets = [2, 0, 2], sizes = [1, 32, 24], strides = [1, 1, 1]} : vector<4x32x44xbf16> to vector<1x32x24xbf16>
    %247 = vector.shape_cast %246 : vector<1x32x24xbf16> to vector<32x24xbf16>
    %c96_146 = arith.constant 96 : index
    %c384_147 = arith.constant 384 : index
    %248 = vector.load %arg5[%c96_146, %c384_147] : memref<800x512xbf16, #tpu.memory_space<vmem>>, vector<32x24xbf16>
    tpu.vector_store %arg5[%c96_146, %c384_147], %247 {strides = array<i32>} : memref<800x512xbf16, #tpu.memory_space<vmem>>, vector<32x24xbf16>,
    %249 = vector.extract_strided_slice %11 {offsets = [3, 0, 2], sizes = [1, 32, 24], strides = [1, 1, 1]} : vector<4x32x44xbf16> to vector<1x32x24xbf16>
    %250 = vector.shape_cast %249 : vector<1x32x24xbf16> to vector<32x24xbf16>
    %c128_148 = arith.constant 128 : index
    %c384_149 = arith.constant 384 : index
    %251 = vector.load %arg5[%c128_148, %c384_149] : memref<800x512xbf16, #tpu.memory_space<vmem>>, vector<32x24xbf16>
    tpu.vector_store %arg5[%c128_148, %c384_149], %250 {strides = array<i32>} : memref<800x512xbf16, #tpu.memory_space<vmem>>, vector<32x24xbf16>,
    %252 = vector.extract_strided_slice %11 {offsets = [1, 0, 6], sizes = [1, 32, 24], strides = [1, 1, 1]} : vector<4x32x44xbf16> to vector<1x32x24xbf16>
    %253 = vector.shape_cast %252 : vector<1x32x24xbf16> to vector<32x24xbf16>
    %c160_150 = arith.constant 160 : index
    %c384_151 = arith.constant 384 : index
    %254 = vector.load %arg5[%c160_150, %c384_151] : memref<800x512xbf16, #tpu.memory_space<vmem>>, vector<32x24xbf16>
    tpu.vector_store %arg5[%c160_150, %c384_151], %253 {strides = array<i32>} : memref<800x512xbf16, #tpu.memory_space<vmem>>, vector<32x24xbf16>,
    %255 = vector.extract_strided_slice %11 {offsets = [0, 0, 7], sizes = [1, 32, 24], strides = [1, 1, 1]} : vector<4x32x44xbf16> to vector<1x32x24xbf16>
    %256 = vector.shape_cast %255 : vector<1x32x24xbf16> to vector<32x24xbf16>
    %c192_152 = arith.constant 192 : index
    %c384_153 = arith.constant 384 : index
    %257 = vector.load %arg5[%c192_152, %c384_153] : memref<800x512xbf16, #tpu.memory_space<vmem>>, vector<32x24xbf16>
    tpu.vector_store %arg5[%c192_152, %c384_153], %256 {strides = array<i32>} : memref<800x512xbf16, #tpu.memory_space<vmem>>, vector<32x24xbf16>,
    %258 = vector.extract_strided_slice %11 {offsets = [1, 0, 7], sizes = [1, 32, 24], strides = [1, 1, 1]} : vector<4x32x44xbf16> to vector<1x32x24xbf16>
    %259 = vector.shape_cast %258 : vector<1x32x24xbf16> to vector<32x24xbf16>
    %c224_154 = arith.constant 224 : index
    %c384_155 = arith.constant 384 : index
    %260 = vector.load %arg5[%c224_154, %c384_155] : memref<800x512xbf16, #tpu.memory_space<vmem>>, vector<32x24xbf16>
    tpu.vector_store %arg5[%c224_154, %c384_155], %259 {strides = array<i32>} : memref<800x512xbf16, #tpu.memory_space<vmem>>, vector<32x24xbf16>,
    %261 = vector.extract_strided_slice %11 {offsets = [0, 0, 8], sizes = [1, 32, 24], strides = [1, 1, 1]} : vector<4x32x44xbf16> to vector<1x32x24xbf16>
    %262 = vector.shape_cast %261 : vector<1x32x24xbf16> to vector<32x24xbf16>
    %c256_156 = arith.constant 256 : index
    %c384_157 = arith.constant 384 : index
    %263 = vector.load %arg5[%c256_156, %c384_157] : memref<800x512xbf16, #tpu.memory_space<vmem>>, vector<32x24xbf16>
    tpu.vector_store %arg5[%c256_156, %c384_157], %262 {strides = array<i32>} : memref<800x512xbf16, #tpu.memory_space<vmem>>, vector<32x24xbf16>,
    %264 = vector.extract_strided_slice %11 {offsets = [1, 0, 8], sizes = [1, 32, 24], strides = [1, 1, 1]} : vector<4x32x44xbf16> to vector<1x32x24xbf16>
    %265 = vector.shape_cast %264 : vector<1x32x24xbf16> to vector<32x24xbf16>
    %c288_158 = arith.constant 288 : index
    %c384_159 = arith.constant 384 : index
    %266 = vector.load %arg5[%c288_158, %c384_159] : memref<800x512xbf16, #tpu.memory_space<vmem>>, vector<32x24xbf16>
    tpu.vector_store %arg5[%c288_158, %c384_159], %265 {strides = array<i32>} : memref<800x512xbf16, #tpu.memory_space<vmem>>, vector<32x24xbf16>,
    %267 = vector.extract_strided_slice %11 {offsets = [3, 0, 6], sizes = [1, 32, 24], strides = [1, 1, 1]} : vector<4x32x44xbf16> to vector<1x32x24xbf16>
    %268 = vector.shape_cast %267 : vector<1x32x24xbf16> to vector<32x24xbf16>
    %c320_160 = arith.constant 320 : index
    %c384_161 = arith.constant 384 : index
    %269 = vector.load %arg5[%c320_160, %c384_161] : memref<800x512xbf16, #tpu.memory_space<vmem>>, vector<32x24xbf16>
    tpu.vector_store %arg5[%c320_160, %c384_161], %268 {strides = array<i32>} : memref<800x512xbf16, #tpu.memory_space<vmem>>, vector<32x24xbf16>,
    %270 = vector.extract_strided_slice %11 {offsets = [2, 0, 7], sizes = [1, 32, 24], strides = [1, 1, 1]} : vector<4x32x44xbf16> to vector<1x32x24xbf16>
    %271 = vector.shape_cast %270 : vector<1x32x24xbf16> to vector<32x24xbf16>
    %c352_162 = arith.constant 352 : index
    %c384_163 = arith.constant 384 : index
    %272 = vector.load %arg5[%c352_162, %c384_163] : memref<800x512xbf16, #tpu.memory_space<vmem>>, vector<32x24xbf16>
    tpu.vector_store %arg5[%c352_162, %c384_163], %271 {strides = array<i32>} : memref<800x512xbf16, #tpu.memory_space<vmem>>, vector<32x24xbf16>,
    %273 = vector.extract_strided_slice %11 {offsets = [3, 0, 7], sizes = [1, 32, 24], strides = [1, 1, 1]} : vector<4x32x44xbf16> to vector<1x32x24xbf16>
    %274 = vector.shape_cast %273 : vector<1x32x24xbf16> to vector<32x24xbf16>
    %c384_164 = arith.constant 384 : index
    %c384_165 = arith.constant 384 : index
    %275 = vector.load %arg5[%c384_164, %c384_165] : memref<800x512xbf16, #tpu.memory_space<vmem>>, vector<32x24xbf16>
    tpu.vector_store %arg5[%c384_164, %c384_165], %274 {strides = array<i32>} : memref<800x512xbf16, #tpu.memory_space<vmem>>, vector<32x24xbf16>,
    %276 = vector.extract_strided_slice %11 {offsets = [2, 0, 8], sizes = [1, 32, 24], strides = [1, 1, 1]} : vector<4x32x44xbf16> to vector<1x32x24xbf16>
    %277 = vector.shape_cast %276 : vector<1x32x24xbf16> to vector<32x24xbf16>
    %c416_166 = arith.constant 416 : index
    %c384_167 = arith.constant 384 : index
    %278 = vector.load %arg5[%c416_166, %c384_167] : memref<800x512xbf16, #tpu.memory_space<vmem>>, vector<32x24xbf16>
    tpu.vector_store %arg5[%c416_166, %c384_167], %277 {strides = array<i32>} : memref<800x512xbf16, #tpu.memory_space<vmem>>, vector<32x24xbf16>,
    %279 = vector.extract_strided_slice %11 {offsets = [3, 0, 8], sizes = [1, 32, 24], strides = [1, 1, 1]} : vector<4x32x44xbf16> to vector<1x32x24xbf16>
    %280 = vector.shape_cast %279 : vector<1x32x24xbf16> to vector<32x24xbf16>
    %c448_168 = arith.constant 448 : index
    %c384_169 = arith.constant 384 : index
    %281 = vector.load %arg5[%c448_168, %c384_169] : memref<800x512xbf16, #tpu.memory_space<vmem>>, vector<32x24xbf16>
    tpu.vector_store %arg5[%c448_168, %c384_169], %280 {strides = array<i32>} : memref<800x512xbf16, #tpu.memory_space<vmem>>, vector<32x24xbf16>,
    %282 = vector.extract_strided_slice %11 {offsets = [1, 0, 12], sizes = [1, 32, 24], strides = [1, 1, 1]} : vector<4x32x44xbf16> to vector<1x32x24xbf16>
    %283 = vector.shape_cast %282 : vector<1x32x24xbf16> to vector<32x24xbf16>
    %c480_170 = arith.constant 480 : index
    %c384_171 = arith.constant 384 : index
    %284 = vector.load %arg5[%c480_170, %c384_171] : memref<800x512xbf16, #tpu.memory_space<vmem>>, vector<32x24xbf16>
    tpu.vector_store %arg5[%c480_170, %c384_171], %283 {strides = array<i32>} : memref<800x512xbf16, #tpu.memory_space<vmem>>, vector<32x24xbf16>,
    %285 = vector.extract_strided_slice %11 {offsets = [0, 0, 13], sizes = [1, 32, 24], strides = [1, 1, 1]} : vector<4x32x44xbf16> to vector<1x32x24xbf16>
    %286 = vector.shape_cast %285 : vector<1x32x24xbf16> to vector<32x24xbf16>
    %c512_172 = arith.constant 512 : index
    %c384_173 = arith.constant 384 : index
    %287 = vector.load %arg5[%c512_172, %c384_173] : memref<800x512xbf16, #tpu.memory_space<vmem>>, vector<32x24xbf16>
    tpu.vector_store %arg5[%c512_172, %c384_173], %286 {strides = array<i32>} : memref<800x512xbf16, #tpu.memory_space<vmem>>, vector<32x24xbf16>,
    %288 = vector.extract_strided_slice %11 {offsets = [1, 0, 13], sizes = [1, 32, 24], strides = [1, 1, 1]} : vector<4x32x44xbf16> to vector<1x32x24xbf16>
    %289 = vector.shape_cast %288 : vector<1x32x24xbf16> to vector<32x24xbf16>
    %c544_174 = arith.constant 544 : index
    %c384_175 = arith.constant 384 : index
    %290 = vector.load %arg5[%c544_174, %c384_175] : memref<800x512xbf16, #tpu.memory_space<vmem>>, vector<32x24xbf16>
    tpu.vector_store %arg5[%c544_174, %c384_175], %289 {strides = array<i32>} : memref<800x512xbf16, #tpu.memory_space<vmem>>, vector<32x24xbf16>,
    %291 = vector.extract_strided_slice %11 {offsets = [0, 0, 14], sizes = [1, 32, 24], strides = [1, 1, 1]} : vector<4x32x44xbf16> to vector<1x32x24xbf16>
    %292 = vector.shape_cast %291 : vector<1x32x24xbf16> to vector<32x24xbf16>
    %c576_176 = arith.constant 576 : index
    %c384_177 = arith.constant 384 : index
    %293 = vector.load %arg5[%c576_176, %c384_177] : memref<800x512xbf16, #tpu.memory_space<vmem>>, vector<32x24xbf16>
    tpu.vector_store %arg5[%c576_176, %c384_177], %292 {strides = array<i32>} : memref<800x512xbf16, #tpu.memory_space<vmem>>, vector<32x24xbf16>,
    %294 = vector.extract_strided_slice %11 {offsets = [1, 0, 14], sizes = [1, 32, 24], strides = [1, 1, 1]} : vector<4x32x44xbf16> to vector<1x32x24xbf16>
    %295 = vector.shape_cast %294 : vector<1x32x24xbf16> to vector<32x24xbf16>
    %c608_178 = arith.constant 608 : index
    %c384_179 = arith.constant 384 : index
    %296 = vector.load %arg5[%c608_178, %c384_179] : memref<800x512xbf16, #tpu.memory_space<vmem>>, vector<32x24xbf16>
    tpu.vector_store %arg5[%c608_178, %c384_179], %295 {strides = array<i32>} : memref<800x512xbf16, #tpu.memory_space<vmem>>, vector<32x24xbf16>,
    %297 = vector.extract_strided_slice %11 {offsets = [3, 0, 12], sizes = [1, 32, 24], strides = [1, 1, 1]} : vector<4x32x44xbf16> to vector<1x32x24xbf16>
    %298 = vector.shape_cast %297 : vector<1x32x24xbf16> to vector<32x24xbf16>
    %c640_180 = arith.constant 640 : index
    %c384_181 = arith.constant 384 : index
    %299 = vector.load %arg5[%c640_180, %c384_181] : memref<800x512xbf16, #tpu.memory_space<vmem>>, vector<32x24xbf16>
    tpu.vector_store %arg5[%c640_180, %c384_181], %298 {strides = array<i32>} : memref<800x512xbf16, #tpu.memory_space<vmem>>, vector<32x24xbf16>,
    %300 = vector.extract_strided_slice %11 {offsets = [2, 0, 13], sizes = [1, 32, 24], strides = [1, 1, 1]} : vector<4x32x44xbf16> to vector<1x32x24xbf16>
    %301 = vector.shape_cast %300 : vector<1x32x24xbf16> to vector<32x24xbf16>
    %c672_182 = arith.constant 672 : index
    %c384_183 = arith.constant 384 : index
    %302 = vector.load %arg5[%c672_182, %c384_183] : memref<800x512xbf16, #tpu.memory_space<vmem>>, vector<32x24xbf16>
    tpu.vector_store %arg5[%c672_182, %c384_183], %301 {strides = array<i32>} : memref<800x512xbf16, #tpu.memory_space<vmem>>, vector<32x24xbf16>,
    %303 = vector.extract_strided_slice %11 {offsets = [3, 0, 13], sizes = [1, 32, 24], strides = [1, 1, 1]} : vector<4x32x44xbf16> to vector<1x32x24xbf16>
    %304 = vector.shape_cast %303 : vector<1x32x24xbf16> to vector<32x24xbf16>
    %c704_184 = arith.constant 704 : index
    %c384_185 = arith.constant 384 : index
    %305 = vector.load %arg5[%c704_184, %c384_185] : memref<800x512xbf16, #tpu.memory_space<vmem>>, vector<32x24xbf16>
    tpu.vector_store %arg5[%c704_184, %c384_185], %304 {strides = array<i32>} : memref<800x512xbf16, #tpu.memory_space<vmem>>, vector<32x24xbf16>,
    %306 = vector.extract_strided_slice %11 {offsets = [2, 0, 14], sizes = [1, 32, 24], strides = [1, 1, 1]} : vector<4x32x44xbf16> to vector<1x32x24xbf16>
    %307 = vector.shape_cast %306 : vector<1x32x24xbf16> to vector<32x24xbf16>
    %c736_186 = arith.constant 736 : index
    %c384_187 = arith.constant 384 : index
    %308 = vector.load %arg5[%c736_186, %c384_187] : memref<800x512xbf16, #tpu.memory_space<vmem>>, vector<32x24xbf16>
    tpu.vector_store %arg5[%c736_186, %c384_187], %307 {strides = array<i32>} : memref<800x512xbf16, #tpu.memory_space<vmem>>, vector<32x24xbf16>,
    %309 = vector.extract_strided_slice %11 {offsets = [3, 0, 14], sizes = [1, 32, 24], strides = [1, 1, 1]} : vector<4x32x44xbf16> to vector<1x32x24xbf16>
    %310 = vector.shape_cast %309 : vector<1x32x24xbf16> to vector<32x24xbf16>
    %c768_188 = arith.constant 768 : index
    %c384_189 = arith.constant 384 : index
    %311 = vector.load %arg5[%c768_188, %c384_189] : memref<800x512xbf16, #tpu.memory_space<vmem>>, vector<32x24xbf16>
    tpu.vector_store %arg5[%c768_188, %c384_189], %310 {strides = array<i32>} : memref<800x512xbf16, #tpu.memory_space<vmem>>, vector<32x24xbf16>,
    %c0_190 = arith.constant 0 : index
    %c0_191 = arith.constant 0 : index
    %312 = vector.load %arg5[%c0_190, %c0_191] : memref<800x512xbf16, #tpu.memory_space<vmem>>, vector<800x512xbf16>
    %cst_192 = arith.constant dense<0.000000e+00> : vector<64x512xf32>
    %313 = tpu.matmul %0, %312, %cst_192 {dimension_numbers = #tpu.dot_dimension_numbers<[1], [0], [0], [1], [0, 0, 1, 1], [], []>} : vector<64x800xbf16>, vector<800x512xbf16>, vector<64x512xf32> -> vector<64x512xf32>
    %314 = vector.extract_strided_slice %313 {offsets = [0, 0], sizes = [64, 128], strides = [1, 1]} : vector<64x512xf32> to vector<64x128xf32>
    %315 = vector.extract_strided_slice %313 {offsets = [0, 128], sizes = [64, 128], strides = [1, 1]} : vector<64x512xf32> to vector<64x128xf32>
    %316 = arith.maximumf %314, %315 : vector<64x128xf32>
    %317 = vector.extract_strided_slice %313 {offsets = [0, 256], sizes = [64, 128], strides = [1, 1]} : vector<64x512xf32> to vector<64x128xf32>
    %318 = vector.extract_strided_slice %313 {offsets = [0, 384], sizes = [64, 128], strides = [1, 1]} : vector<64x512xf32> to vector<64x128xf32>
    %319 = arith.maximumf %317, %318 : vector<64x128xf32>
    %320 = arith.maximumf %316, %319 : vector<64x128xf32>
    %321 = vector.broadcast %1 : vector<64x1xf32> to vector<64x128xf32>
    %322 = arith.addf %320, %321 : vector<64x128xf32>
    %323 = arith.truncf %322 : vector<64x128xf32> to vector<64x128xbf16>
    %c0_193 = arith.constant 0 : index
    %c0_194 = arith.constant 0 : index
    %c0_195 = arith.constant 0 : index
    %324 = vector.load %arg4[%c0_193, %c0_194, %c0_195] : memref<1x64x128xbf16, #tpu.memory_space<vmem>>, vector<1x64x128xbf16>
    %325 = vector.shape_cast %324 : vector<1x64x128xbf16> to vector<64x128xbf16>
    %326 = vector.shape_cast %323 : vector<64x128xbf16> to vector<1x64x128xbf16>
    tpu.vector_store %arg4[%c0_193, %c0_194, %c0_195], %326 {strides = array<i32>} : memref<1x64x128xbf16, #tpu.memory_space<vmem>>, vector<1x64x128xbf16>,
    return
  }
  func.func @transform_0(%arg0: i32) -> (i32, i32, i32, i32) {
    %c0_i32 = arith.constant 0 : i32
    %c0_i32_0 = arith.constant 0 : i32
    %c0_i32_1 = arith.constant 0 : i32
    %c0_i32_2 = arith.constant 0 : i32
    return %arg0, %c0_i32, %c0_i32_0, %c0_i32_1 : i32, i32, i32, i32
  }
  func.func @transform_1(%arg0: i32) -> (i32, i32) {
    %c0_i32 = arith.constant 0 : i32
    %c0_i32_0 = arith.constant 0 : i32
    %c0_i32_1 = arith.constant 0 : i32
    return %c0_i32, %c0_i32_0 : i32, i32
  }
  func.func @transform_2(%arg0: i32) -> (i32, i32) {
    %c0_i32 = arith.constant 0 : i32
    %c0_i32_0 = arith.constant 0 : i32
    %c0_i32_1 = arith.constant 0 : i32
    return %c0_i32, %c0_i32_0 : i32, i32
  }
  func.func @transform_3(%arg0: i32) -> (i32, i32, i32) {
    %c0_i32 = arith.constant 0 : i32
    %c0_i32_0 = arith.constant 0 : i32
    %c0_i32_1 = arith.constant 0 : i32
    return %arg0, %c0_i32, %c0_i32_0 : i32, i32, i32
  }
}

module attributes {stable_mosaic.version = 11 : i64} {
  func.func @fc_kernel(%arg0: i32, %arg1: memref<2x1024xbf16, #tpu.memory_space<vmem>>, %arg2: memref<1024x128xbf16, #tpu.memory_space<vmem>>, %arg3: memref<1x128xf32, #tpu.memory_space<vmem>>, %arg4: memref<2x128xf32, #tpu.memory_space<vmem>>) attributes {dimension_semantics = [#tpu.dimension_semantics<parallel>], iteration_bounds = array<i64: 1>, scalar_prefetch = 0 : i64, scratch_operands = 0 : i64, tpu.core_type = #tpu.core_type<tc>, window_params = [{transform_indices = @transform_0, window_bounds = array<i64: 2, 1024>}, {pipeline_mode = #tpu.pipeline_mode<synchronous>, transform_indices = @transform_1, window_bounds = array<i64: 1024, 128>}, {pipeline_mode = #tpu.pipeline_mode<synchronous>, transform_indices = @transform_2, window_bounds = array<i64: 1, 128>}, {transform_indices = @transform_3, window_bounds = array<i64: 2, 128>}]} {
    %c0 = arith.constant 0 : index
    %c0_0 = arith.constant 0 : index
    %0 = vector.load %arg1[%c0, %c0_0] : memref<2x1024xbf16, #tpu.memory_space<vmem>>, vector<2x1024xbf16>
    %c0_1 = arith.constant 0 : index
    %c0_2 = arith.constant 0 : index
    %1 = vector.load %arg2[%c0_1, %c0_2] : memref<1024x128xbf16, #tpu.memory_space<vmem>>, vector<1024x128xbf16>
    %cst = arith.constant dense<0.000000e+00> : vector<2x128xf32>
    %2 = tpu.matmul %0, %1, %cst {dimension_numbers = #tpu.dot_dimension_numbers<[1], [0], [0], [1], [0, 0, 1, 1], [], []>} : vector<2x1024xbf16>, vector<1024x128xbf16>, vector<2x128xf32> -> vector<2x128xf32>
    %c0_3 = arith.constant 0 : index
    %c0_4 = arith.constant 0 : index
    %3 = vector.load %arg3[%c0_3, %c0_4] : memref<1x128xf32, #tpu.memory_space<vmem>>, vector<1x128xf32>
    %4 = vector.broadcast %3 : vector<1x128xf32> to vector<2x128xf32>
    %5 = arith.addf %2, %4 : vector<2x128xf32>
    %c0_5 = arith.constant 0 : index
    %c0_6 = arith.constant 0 : index
    %6 = vector.load %arg4[%c0_5, %c0_6] : memref<2x128xf32, #tpu.memory_space<vmem>>, vector<2x128xf32>
    tpu.vector_store %arg4[%c0_5, %c0_6], %5 {strides = array<i32>} : memref<2x128xf32, #tpu.memory_space<vmem>>, vector<2x128xf32>,
    return
  }
  func.func @transform_0(%arg0: i32) -> (i32, i32) {
    %c0_i32 = arith.constant 0 : i32
    %c0_i32_0 = arith.constant 0 : i32
    return %arg0, %c0_i32 : i32, i32
  }
  func.func @transform_1(%arg0: i32) -> (i32, i32) {
    %c0_i32 = arith.constant 0 : i32
    %c0_i32_0 = arith.constant 0 : i32
    %c0_i32_1 = arith.constant 0 : i32
    return %c0_i32, %c0_i32_0 : i32, i32
  }
  func.func @transform_2(%arg0: i32) -> (i32, i32) {
    %c0_i32 = arith.constant 0 : i32
    %c0_i32_0 = arith.constant 0 : i32
    %c0_i32_1 = arith.constant 0 : i32
    return %c0_i32, %c0_i32_0 : i32, i32
  }
  func.func @transform_3(%arg0: i32) -> (i32, i32) {
    %c0_i32 = arith.constant 0 : i32
    %c0_i32_0 = arith.constant 0 : i32
    return %arg0, %c0_i32 : i32, i32
  }
}

</mosaic_0001>

<bundles_post_ra>
// kernel: forward.4
= control target key start
LH: loop header
LB: loop body
LE: loop exit
PB: predicated region body
PF: predicated region fallthrough
CT: control target
= control target key end

     0   :  { %s2374_s12 = smov 0   ;;  %s3427_s0 = inlined_call_operand.vmem [shape: bf16[2,4,16,332], index: 0, kind: input, shape index: {}]   ;;  %s3428_s1 = inlined_call_operand.vmem [shape: bf16[32,400], index: 1, kind: input, shape index: {}]   ;;  %s3429_s2 = inlined_call_operand.vmem [shape: f32[32,1], index: 2, kind: input, shape index: {}]   ;;  %s3430_s3 = inlined_call_operand.vmem [shape: bf16[2,32,384], index: 3, kind: output, shape index: {}]  }
   0x1 LB: > { %s2178_s13 = sadd.s32 4294967295, %s2343_s12   ;;  %p2182_p0 = scmp.ge.s32.totalorder %s2343_s12, 1  ;;  %s2343_s12 = sphi %s2374_s12, %s13_s12  }
   0x2   : > { %p137_p1 = scmp.lt.s32.totalorder %s2343_s12, 3 }
   0x4   : > { %p138_p2 = pnand %p2182_p0, %p137_p1 }
   0x5   : > { %p2384_p3 = scmp.lt.s32.totalorder (!%p138_p2), %s2178_s13, 1  ;;  %vm184_vm0 = vcmask (!%p138_p2), 1047808   ;;  %v2345_v0 = vmov (!%p138_p2), 0   ;;  %vm319_vm1 = vcmask (!%p138_p2), 261120   ;;  %s2346_s19 = smov (!%p138_p2), 127   ;;  %vm346_vm2 = vcmask (!%p138_p2), 1039360  }
   0x6   : > { %141 = sbr.rel (%p138_p2) target bundleno = 716 (0x2cc), region = 32  ;;  %187 = vst.msk [vmem:[#allocation2 + $0xd0] sm:$0xff] (!%p138_p2), %vm184_vm0, %v2345_v0  ;;  %211 = vst.msk [vmem:[#allocation2 + $0x88] sm:$0xff] (!%p138_p2), %vm184_vm0, %v2345_v0  ;;  %2302 = vset.pattern.permute.xlu0 (!%p138_p2), %v2345_v0  ;;  %2303 = vset.pattern.permute.xlu1 (!%p138_p2), %v2345_v0  ;;  %s2347_s20 = smov (!%p138_p2), 126   ;;  %v2320_v14 = vld [vmem:[%s3428_s1 + $0x4] ss:$16 sps:$4 sm:$0xff] (!%p138_p2)  }
   0x7   : > { %185 = vst.msk [vmem:[#allocation2 + $0x10] sm:$0xff] (!%p138_p2), %vm184_vm0, %v2345_v0  ;;  %186 = vst.msk [vmem:[#allocation2 + $0x70] sm:$0xff] (!%p138_p2), %vm184_vm0, %v2345_v0  ;;  %s2348_s21 = smov (!%p138_p2), 110   ;;  %s2349_s22 = smov (!%p138_p2), 109   ;;  %1403 = vmatprep.mubr.bf16.mxu0 (!%p138_p2), %v2320_v14  ;;  %1509 = vmatprep.mubr.bf16.mxu1 (!%p138_p2), %v2320_v14  ;;  %vm375_vm3 = vcmask (!%p138_p2), 1031168   ;;  %vm470_vm4 = vcmask (!%p138_p2), 900096  }
   0x8   : > { %188 = vst.msk [vmem:[#allocation2 + $0x130] sm:$0xff] (!%p138_p2), %vm184_vm0, %v2345_v0  ;;  %189 = vst.msk [vmem:[#allocation2 + $0x190] sm:$0xff] (!%p138_p2), %vm184_vm0, %v2345_v0  ;;  %s2350_s23 = smov (!%p138_p2), 108   ;;  %s2351_s26 = smov (!%p138_p2), 92   ;;  %vm499_vm5 = vcmask (!%p138_p2), 891904   ;;  %vm528_vm6 = vcmask (!%p138_p2), 883712  }
   0x9   : > { %190 = vst.msk [vmem:[#allocation2 + $0x1f0] sm:$0xff] (!%p138_p2), %vm184_vm0, %v2345_v0  ;;  %191 = vst.msk [vmem:[#allocation2 + $0x250] sm:$0xff] (!%p138_p2), %vm184_vm0, %v2345_v0  ;;  %s2352_s27 = smov (!%p138_p2), 91   ;;  %s2353_s28 = smov (!%p138_p2), 90   ;;  %vm1364_vm7 = vcmask (!%p138_p2), 130048   ;;  %vm613_vm8 = vcmask (!%p138_p2), 752640  }
   0xa   : > { %192 = vst.msk [vmem:[#allocation2 + $0x2b0] sm:$0xff] (!%p138_p2), %vm184_vm0, %v2345_v0  ;;  %193 = vst.msk [vmem:[#allocation2 + $0x310] sm:$0xff] (!%p138_p2), %vm184_vm0, %v2345_v0  ;;  %vm642_vm9 = vcmask (!%p138_p2), 744448   ;;  %vm671_vm10 = vcmask (!%p138_p2), 736256  }
   0xb   : > { %194 = vst.msk [vmem:[#allocation2 + $0x370] sm:$0xff] (!%p138_p2), %vm184_vm0, %v2345_v0  ;;  %195 = vst.msk [vmem:[#allocation2 + $0x3d0] sm:$0xff] (!%p138_p2), %vm184_vm0, %v2345_v0 }
   0xc   : > { %196 = vst.msk [vmem:[#allocation2 + $0x430] sm:$0xff] (!%p138_p2), %vm184_vm0, %v2345_v0  ;;  %197 = vst.msk [vmem:[#allocation2 + $0x490] sm:$0xff] (!%p138_p2), %vm184_vm0, %v2345_v0 }
   0xd   : > { %198 = vst.msk [vmem:[#allocation2 + $0x4f0] sm:$0xff] %vm184_vm0, %v2345_v0  ;;  %199 = vst.msk [vmem:[#allocation2 + $0x550] sm:$0xff] %vm184_vm0, %v2345_v0  ;;  %s3433_s13 = smov (!%p2384_p3, %s2178_s13), 1 }
   0xe   : > { %200 = vst.msk [vmem:[#allocation2 + $0x5b0] sm:$0xff] %vm184_vm0, %v2345_v0  ;;  %201 = vst.msk [vmem:[#allocation2 + $0x610] sm:$0xff] %vm184_vm0, %v2345_v0  ;;  %s2283_s15 = smul.u32 96, %s3433_s13 }
   0xf   : > { %202 = vst.msk [vmem:[#allocation2 + $0x670] sm:$0xff] %vm184_vm0, %v2345_v0  ;;  %203 = vst.msk [vmem:[#allocation2 + $0x6d0] sm:$0xff] %vm184_vm0, %v2345_v0  ;;  %s2284_s9 = smul.u32 48, %s3433_s13 }
  0x10   : > { %204 = vst.msk [vmem:[#allocation2 + $0x730] sm:$0xff] %vm184_vm0, %v2345_v0  ;;  %205 = vst.msk [vmem:[#allocation2 + $0x790] sm:$0xff] %vm184_vm0, %v2345_v0  ;;  %s2600_s18 = scalar_lea.vmem %s3427_s0, %s2283_s15 }
  0x11   : > { %206 = vst.msk [vmem:[#allocation2 + $0x7f0] sm:$0xff] %vm184_vm0, %v2345_v0  ;;  %207 = vst.msk [vmem:[#allocation2 + $0x850] sm:$0xff] %vm184_vm0, %v2345_v0  ;;  %v2603_v1 = vld [vmem:[%s2600_s18 + $0x8] ss:$12 sps:$4 sm:$0xff]   ;;  %v2606_v2 = vld [vmem:[%s2600_s18] ss:$12 sps:$4 sm:$0xff]   ;;  %s3402_s14 = scalar_lea.vmem %s3430_s3, %s2284_s9 }
  0x12   : > { %208 = vst.msk [vmem:[#allocation2 + $0x8b0] sm:$0xff] %vm184_vm0, %v2345_v0  ;;  %209 = vst.msk [vmem:[#allocation2 + $0x910] sm:$0xff] %vm184_vm0, %v2345_v0  ;;  %344 = vrot.lane.b32.xlu1 %v2603_v1, %s2346_s19  ;;  %v2611_v3 = vld [vmem:[%s2600_s18 + $0x18] ss:$12 sps:$4 sm:$0xff]   ;;  %340 = vrot.lane.b32.xlu0 %v2606_v2, %s2346_s19  ;;  %v2621_v5 = vld [vmem:[%s2600_s18 + $0x20] ss:$12 sps:$4 sm:$0xff]  }
  0x13   : > { %210 = vst.msk [vmem:[#allocation2 + $0x28] sm:$0xff] %vm184_vm0, %v2345_v0  ;;  %212 = vst.msk [vmem:[#allocation2 + $0xe8] sm:$0xff] %vm184_vm0, %v2345_v0  ;;  %v2618_v4 = vld [vmem:[%s2600_s18 + $0x4] ss:$12 sps:$4 sm:$0xff]   ;;  %v2624_v6 = vld [vmem:[%s2600_s18 + $0x1c] ss:$12 sps:$4 sm:$0xff]   ;;  %1477 = vmatprep.subr.bf16.mxu1 %v2611_v3 }
  0x14   : > { %213 = vst.msk [vmem:[#allocation2 + $0x148] sm:$0xff] %vm184_vm0, %v2345_v0  ;;  %214 = vst.msk [vmem:[#allocation2 + $0x1a8] sm:$0xff] %vm184_vm0, %v2345_v0  ;;  %v2628_v7 = vld [vmem:[%s2600_s18 + $0x30] ss:$12 sps:$4 sm:$0xff]   ;;  %1371 = vmatprep.subr.bf16.mxu0 %v2618_v4  ;;  %v2635_v8 = vld [vmem:[%s2600_s18 + $0x38] ss:$12 sps:$4 sm:$0xff]  }
  0x15   : > { %215 = vst.msk [vmem:[#allocation2 + $0x208] sm:$0xff] %vm184_vm0, %v2345_v0  ;;  %216 = vst.msk [vmem:[#allocation2 + $0x268] sm:$0xff] %vm184_vm0, %v2345_v0  ;;  %v2638_v9 = vld [vmem:[%s2600_s18 + $0x34] ss:$12 sps:$4 sm:$0xff]   ;;  %1372 = vmatpush1.bf16.msra.mxu0 %v2606_v2  ;;  %v2649_v10 = vld [vmem:[%s2600_s18 + $0x4c] ss:$12 sps:$4 sm:$0xff]  }
  0x16   : > { %217 = vst.msk [vmem:[#allocation2 + $0x2c8] sm:$0xff] %vm184_vm0, %v2345_v0  ;;  %218 = vst.msk [vmem:[#allocation2 + $0x328] sm:$0xff] %vm184_vm0, %v2345_v0  ;;  %355 = vrot.lane.b32.xlu1 %v2611_v3, %s2346_s19  ;;  %342 = vrot.lane.b32.xlu0 %v2618_v4, %s2346_s19  ;;  %v2654_v11 = vld [vmem:[%s2600_s18 + $0x48] ss:$12 sps:$4 sm:$0xff]   ;;  %v2664_v12 = vld [vmem:[%s2600_s18 + $0x50] ss:$12 sps:$4 sm:$0xff]  }
  0x17   : > { %219 = vst.msk [vmem:[#allocation2 + $0x388] sm:$0xff] %vm184_vm0, %v2345_v0  ;;  %220 = vst.msk [vmem:[#allocation2 + $0x3e8] sm:$0xff] %vm184_vm0, %v2345_v0  ;;  %1373 = vmatprep.subr.bf16.mxu0 %v2624_v6 }
  0x18   : > { %221 = vst.msk [vmem:[#allocation2 + $0x448] sm:$0xff] %vm184_vm0, %v2345_v0  ;;  %222 = vst.msk [vmem:[#allocation2 + $0x4a8] sm:$0xff] %vm184_vm0, %v2345_v0 }
  0x19   : > { %223 = vst.msk [vmem:[#allocation2 + $0x508] sm:$0xff] %vm184_vm0, %v2345_v0  ;;  %224 = vst.msk [vmem:[#allocation2 + $0x568] sm:$0xff] %vm184_vm0, %v2345_v0  ;;  %1374 = vmatpush1.bf16.msra.mxu0 %v2611_v3 }
  0x1a   : > { %225 = vst.msk [vmem:[#allocation2 + $0x5c8] sm:$0xff] %vm184_vm0, %v2345_v0  ;;  %226 = vst.msk [vmem:[#allocation2 + $0x628] sm:$0xff] %vm184_vm0, %v2345_v0  ;;  %359 = vrot.lane.b32.xlu1 %v2621_v5, %s2346_s19  ;;  %357 = vrot.lane.b32.xlu0 %v2624_v6, %s2346_s19 }
  0x1b   : > { %227 = vst.msk [vmem:[#allocation2 + $0x688] sm:$0xff] %vm184_vm0, %v2345_v0  ;;  %228 = vst.msk [vmem:[#allocation2 + $0x6e8] sm:$0xff] %vm184_vm0, %v2345_v0 }
  0x1c   : > { %229 = vst.msk [vmem:[#allocation2 + $0x748] sm:$0xff] %vm184_vm0, %v2345_v0  ;;  %230 = vst.msk [vmem:[#allocation2 + $0x7a8] sm:$0xff] %vm184_vm0, %v2345_v0 }
  0x1d   : > { %231 = vst.msk [vmem:[#allocation2 + $0x808] sm:$0xff] %vm184_vm0, %v2345_v0  ;;  %232 = vst.msk [vmem:[#allocation2 + $0x868] sm:$0xff] %vm184_vm0, %v2345_v0 }
  0x1e   : > { %233 = vst.msk [vmem:[#allocation2 + $0x8c8] sm:$0xff] %vm184_vm0, %v2345_v0  ;;  %234 = vst.msk [vmem:[#allocation2 + $0x928] sm:$0xff] %vm184_vm0, %v2345_v0  ;;  %371 = vrot.lane.b32.xlu1 %v2618_v4, %s2347_s20  ;;  %369 = vrot.lane.b32.xlu0 %v2606_v2, %s2347_s20 }
  0x1f   : > { %235 = vst.msk [vmem:[#allocation2 + $0x40] sm:$0xff] %vm184_vm0, %v2345_v0  ;;  %236 = vst.msk [vmem:[#allocation2 + $0xa0] sm:$0xff] %vm184_vm0, %v2345_v0 }
  0x20   : > { %237 = vst.msk [vmem:[#allocation2 + $0x100] sm:$0xff] %vm184_vm0, %v2345_v0  ;;  %238 = vst.msk [vmem:[#allocation2 + $0x160] sm:$0xff] %vm184_vm0, %v2345_v0 }
  0x21   : > { %239 = vst.msk [vmem:[#allocation2 + $0x1c0] sm:$0xff] %vm184_vm0, %v2345_v0  ;;  %240 = vst.msk [vmem:[#allocation2 + $0x220] sm:$0xff] %vm184_vm0, %v2345_v0 }
  0x22   : > { %241 = vst.msk [vmem:[#allocation2 + $0x280] sm:$0xff] %vm184_vm0, %v2345_v0  ;;  %242 = vst.msk [vmem:[#allocation2 + $0x2e0] sm:$0xff] %vm184_vm0, %v2345_v0  ;;  %692 = vrot.lane.b32.xlu1 %v2611_v3, %s2347_s20  ;;  %373 = vrot.lane.b32.xlu0 %v2603_v1, %s2347_s20 }
  0x23   : > { %243 = vst.msk [vmem:[#allocation2 + $0x340] sm:$0xff] %vm184_vm0, %v2345_v0  ;;  %244 = vst.msk [vmem:[#allocation2 + $0x3a0] sm:$0xff] %vm184_vm0, %v2345_v0 }
  0x24   : > { %245 = vst.msk [vmem:[#allocation2 + $0x400] sm:$0xff] %vm184_vm0, %v2345_v0  ;;  %246 = vst.msk [vmem:[#allocation2 + $0x460] sm:$0xff] %vm184_vm0, %v2345_v0 }
  0x25   : > { %247 = vst.msk [vmem:[#allocation2 + $0x4c0] sm:$0xff] %vm184_vm0, %v2345_v0  ;;  %248 = vst.msk [vmem:[#allocation2 + $0x520] sm:$0xff] %vm184_vm0, %v2345_v0 }
  0x26   : > { %249 = vst.msk [vmem:[#allocation2 + $0x580] sm:$0xff] %vm184_vm0, %v2345_v0  ;;  %250 = vst.msk [vmem:[#allocation2 + $0x5e0] sm:$0xff] %vm184_vm0, %v2345_v0  ;;  %422 = vrot.lane.b32.xlu1 %v2628_v7, %s2346_s19  ;;  %694 = vrot.lane.b32.xlu0 %v2624_v6, %s2347_s20 }
  0x27   : > { %251 = vst.msk [vmem:[#allocation2 + $0x640] sm:$0xff] %vm184_vm0, %v2345_v0  ;;  %252 = vst.msk [vmem:[#allocation2 + $0x6a0] sm:$0xff] %vm184_vm0, %v2345_v0 }
  0x28   : > { %253 = vst.msk [vmem:[#allocation2 + $0x700] sm:$0xff] %vm184_vm0, %v2345_v0  ;;  %254 = vst.msk [vmem:[#allocation2 + $0x760] sm:$0xff] %vm184_vm0, %v2345_v0 }
  0x29   : > { %255 = vst.msk [vmem:[#allocation2 + $0x7c0] sm:$0xff] %vm184_vm0, %v2345_v0  ;;  %256 = vst.msk [vmem:[#allocation2 + $0x820] sm:$0xff] %vm184_vm0, %v2345_v0 }
  0x2a   : > { %257 = vst.msk [vmem:[#allocation2 + $0x880] sm:$0xff] %vm184_vm0, %v2345_v0  ;;  %258 = vst.msk [vmem:[#allocation2 + $0x8e0] sm:$0xff] %vm184_vm0, %v2345_v0  ;;  %426 = vrot.lane.b32.xlu1 %v2635_v8, %s2346_s19  ;;  %424 = vrot.lane.b32.xlu0 %v2638_v9, %s2346_s19 }
  0x2b   : > { %259 = vst.msk [vmem:[#allocation2 + $0x940] sm:$0xff] %vm184_vm0, %v2345_v0  ;;  %260 = vst.msk [vmem:[#allocation2 + $0x58] sm:$0xff] %vm184_vm0, %v2345_v0 }
  0x2c   : > { %261 = vst.msk [vmem:[#allocation2 + $0xb8] sm:$0xff] %vm184_vm0, %v2345_v0  ;;  %262 = vst.msk [vmem:[#allocation2 + $0x118] sm:$0xff] %vm184_vm0, %v2345_v0 }
  0x2d   : > { %263 = vst.msk [vmem:[#allocation2 + $0x178] sm:$0xff] %vm184_vm0, %v2345_v0  ;;  %264 = vst.msk [vmem:[#allocation2 + $0x1d8] sm:$0xff] %vm184_vm0, %v2345_v0 }
  0x2e   : > { %265 = vst.msk [vmem:[#allocation2 + $0x238] sm:$0xff] %vm184_vm0, %v2345_v0  ;;  %266 = vst.msk [vmem:[#allocation2 + $0x298] sm:$0xff] %vm184_vm0, %v2345_v0  ;;  %438 = vrot.lane.b32.xlu1 %v2649_v10, %s2346_s19  ;;  %436 = vrot.lane.b32.xlu0 %v2654_v11, %s2346_s19 }
  0x2f   : > { %267 = vst.msk [vmem:[#allocation2 + $0x2f8] sm:$0xff] %vm184_vm0, %v2345_v0  ;;  %268 = vst.msk [vmem:[#allocation2 + $0x358] sm:$0xff] %vm184_vm0, %v2345_v0 }
  0x30   : > { %269 = vst.msk [vmem:[#allocation2 + $0x3b8] sm:$0xff] %vm184_vm0, %v2345_v0  ;;  %270 = vst.msk [vmem:[#allocation2 + $0x418] sm:$0xff] %vm184_vm0, %v2345_v0 }
  0x31   : > { %271 = vst.msk [vmem:[#allocation2 + $0x478] sm:$0xff] %vm184_vm0, %v2345_v0  ;;  %272 = vst.msk [vmem:[#allocation2 + $0x4d8] sm:$0xff] %vm184_vm0, %v2345_v0 }
  0x32   : > { %273 = vst.msk [vmem:[#allocation2 + $0x538] sm:$0xff] %vm184_vm0, %v2345_v0  ;;  %274 = vst.msk [vmem:[#allocation2 + $0x598] sm:$0xff] %vm184_vm0, %v2345_v0  ;;  %450 = vrot.lane.b32.xlu1 %v2628_v7, %s2347_s20  ;;  %440 = vrot.lane.b32.xlu0 %v2664_v12, %s2346_s19 }
  0x33   : > { %275 = vst.msk [vmem:[#allocation2 + $0x5f8] sm:$0xff] %vm184_vm0, %v2345_v0  ;;  %276 = vst.msk [vmem:[#allocation2 + $0x658] sm:$0xff] %vm184_vm0, %v2345_v0 }
  0x34   : > { %277 = vst.msk [vmem:[#allocation2 + $0x6b8] sm:$0xff] %vm184_vm0, %v2345_v0  ;;  %278 = vst.msk [vmem:[#allocation2 + $0x718] sm:$0xff] %vm184_vm0, %v2345_v0 }
  0x35   : > { %279 = vst.msk [vmem:[#allocation2 + $0x778] sm:$0xff] %vm184_vm0, %v2345_v0  ;;  %280 = vst.msk [vmem:[#allocation2 + $0x7d8] sm:$0xff] %vm184_vm0, %v2345_v0 }
  0x36   : > { %281 = vst.msk [vmem:[#allocation2 + $0x838] sm:$0xff] %vm184_vm0, %v2345_v0  ;;  %282 = vst.msk [vmem:[#allocation2 + $0x898] sm:$0xff] %vm184_vm0, %v2345_v0  ;;  %454 = vrot.lane.b32.xlu1 %v2635_v8, %s2347_s20  ;;  %452 = vrot.lane.b32.xlu0 %v2638_v9, %s2347_s20 }
  0x37   : > { %283 = vst.msk [vmem:[#allocation2 + $0x8f8] sm:$0xff] %vm184_vm0, %v2345_v0  ;;  %284 = vst.msk [vmem:[#allocation2 + $0x958] sm:$0xff] %vm184_vm0, %v2345_v0 }
  0x38   : > { %320 = vst.msk [vmem:[#allocation2 + $0x10] sm:$0xff] %vm319_vm1, %v2603_v1  ;;  %681 = vst [vmem:[#allocation2 + $0x20] sm:$0xff] %v2624_v6 }
  0x39   : > { %339 = vst.msk [vmem:[#allocation2 + $0x70] sm:$0xff] %vm319_vm1, %v2621_v5  ;;  %682 = vst.msk [vmem:[#allocation2 + $0x28] sm:$0xff] %vm319_vm1, %v2621_v5 }
  0x3a   : > { %810 = vst [vmem:[#allocation2 + $0x30] sm:$0xff] %v2628_v7  ;;  %811 = vst [vmem:[#allocation2 + $0x38] sm:$0xff] %v2638_v9  ;;  %720 = vrot.lane.b32.xlu1 %v2649_v10, %s2347_s20  ;;  %718 = vrot.lane.b32.xlu0 %v2654_v11, %s2347_s20 }
  0x3b   : > { %402 = vst.msk [vmem:[#allocation2 + $0x1f0] sm:$0xff] %vm319_vm1, %v2635_v8  ;;  %812 = vst.msk [vmem:[#allocation2 + $0x40] sm:$0xff] %vm319_vm1, %v2635_v8 }
  0x3c   : > { %707 = vst [vmem:[#allocation2 + $0x200] sm:$0xff] %v2649_v10  ;;  %814 = vst [vmem:[#allocation2 + $0x98] sm:$0xff] %v2649_v10 }
  0x3d   : > { %941 = vst [vmem:[#allocation2 + $0x50] sm:$0xff] %v2649_v10  ;;  %813 = vst [vmem:[#allocation2 + $0x90] sm:$0xff] %v2654_v11 }
  0x3e   : > { %940 = vst [vmem:[#allocation2 + $0x48] sm:$0xff] %v2654_v11  ;;  %421 = vst.msk [vmem:[#allocation2 + $0x250] sm:$0xff] %vm319_vm1, %v2664_v12  ;;  %468 = vrot.lane.b32.xlu1 %v2603_v1, %s2348_s21  ;;  %466 = vrot.lane.b32.xlu0 %v2618_v4, %s2348_s21 }
  0x3f   : > { %v1028_v13 = vld [vmem:[#allocation2 + $0x10] sm:$0xff]  ;;  %708 = vst.msk [vmem:[#allocation2 + $0x208] sm:$0xff] %vm319_vm1, %v2664_v12  ;;  %815 = vst.msk [vmem:[#allocation2 + $0xa0] sm:$0xff] %vm319_vm1, %v2664_v12 }
  0x40   : > { %942 = vst.msk [vmem:[#allocation2 + $0x58] sm:$0xff] %vm319_vm1, %v2664_v12  ;;  %1478 = vmatpush1.bf16.msra.mxu1 %v1028_v13  ;;  %v1040_v21 = vld [vmem:[#allocation2 + $0x70] sm:$0xff] }
  0x42   : > { %481 = vrot.lane.b32.xlu1 %v2624_v6, %s2348_s21  ;;  %479 = vrot.lane.b32.xlu0 %v2611_v3, %s2348_s21  ;;  %v1088_v42 = vld [vmem:[#allocation2 + $0x1f0] sm:$0xff] }
  0x45   : > { %v1100_v46 = vld [vmem:[#allocation2 + $0x250] sm:$0xff] }
  0x46   : > { %483 = vrot.lane.b32.xlu1 %v2621_v5, %s2348_s21  ;;  %464 = vrot.lane.b32.xlu0 %v2606_v2, %s2348_s21 }
  0x4a   : > { %495 = vrot.lane.b32.xlu1 %v2618_v4, %s2349_s22  ;;  %493 = vrot.lane.b32.xlu0 %v2606_v2, %s2349_s22 }
  0x4e   : > { %508 = vrot.lane.b32.xlu1 %v2611_v3, %s2349_s22  ;;  %497 = vrot.lane.b32.xlu0 %v2603_v1, %s2349_s22 }
  0x52   : > { %512 = vrot.lane.b32.xlu1 %v2621_v5, %s2349_s22  ;;  %510 = vrot.lane.b32.xlu0 %v2624_v6, %s2349_s22 }
  0x56   : > { %524 = vrot.lane.b32.xlu1 %v2618_v4, %s2350_s23  ;;  %522 = vrot.lane.b32.xlu0 %v2606_v2, %s2350_s23 }
  0x5a   : > { %744 = vrot.lane.b32.xlu1 %v2611_v3, %s2350_s23  ;;  %526 = vrot.lane.b32.xlu0 %v2603_v1, %s2350_s23 }
  0x5e   : > { %539 = vrot.lane.b32.xlu1 %v2638_v9, %s2348_s21  ;;  %746 = vrot.lane.b32.xlu0 %v2624_v6, %s2350_s23 }
  0x62   : > { %551 = vrot.lane.b32.xlu1 %v2654_v11, %s2348_s21  ;;  %541 = vrot.lane.b32.xlu0 %v2635_v8, %s2348_s21 }
  0x66   : > { %537 = vrot.lane.b32.xlu1 %v2628_v7, %s2348_s21  ;;  %553 = vrot.lane.b32.xlu0 %v2649_v10, %s2348_s21 }
  0x6a   : > { %565 = vrot.lane.b32.xlu1 %v2628_v7, %s2349_s22  ;;  %555 = vrot.lane.b32.xlu0 %v2664_v12, %s2348_s21 }
  0x6e   : > { %569 = vrot.lane.b32.xlu1 %v2635_v8, %s2349_s22  ;;  %567 = vrot.lane.b32.xlu0 %v2638_v9, %s2349_s22 }
  0x72   : > { %581 = vrot.lane.b32.xlu1 %v2649_v10, %s2349_s22  ;;  %579 = vrot.lane.b32.xlu0 %v2654_v11, %s2349_s22 }
  0x76   : > { %593 = vrot.lane.b32.xlu1 %v2628_v7, %s2350_s23  ;;  %583 = vrot.lane.b32.xlu0 %v2664_v12, %s2349_s22 }
  0x7a   : > { %597 = vrot.lane.b32.xlu1 %v2635_v8, %s2350_s23  ;;  %595 = vrot.lane.b32.xlu0 %v2638_v9, %s2350_s23 }
  0x7e   : > { %772 = vrot.lane.b32.xlu1 %v2649_v10, %s2350_s23  ;;  %770 = vrot.lane.b32.xlu0 %v2654_v11, %s2350_s23 }
  0x82   : > { %611 = vrot.lane.b32.xlu1 %v2603_v1, %s2351_s26  ;;  %609 = vrot.lane.b32.xlu0 %v2618_v4, %s2351_s26 }
  0x84   : > { %v345_v15 = vpop.permute.xlu1 %344  ;;  %v341_v16 = vpop.permute.xlu0 %340 }
  0x85   : > { %354 = vst.msk [vmem:[#allocation2 + $0xd0] sm:$0xff] %vm319_vm1, %v345_v15  ;;  %685 = vst.msk [vmem:[#allocation2 + $0x88] sm:$0xff] %vm319_vm1, %v345_v15 }
  0x86   : > { %624 = vrot.lane.b32.xlu1 %v2624_v6, %s2351_s26  ;;  %622 = vrot.lane.b32.xlu0 %v2611_v3, %s2351_s26 }
  0x88   : > { %v356_v17 = vpop.permute.xlu1 %355  ;;  %v343_v18 = vpop.permute.xlu0 %342 }
  0x89   : > { %v347_v19 = vsel %vm346_vm2, %v341_v16, %v343_v18  ;;  %v348_v20 = vsel %vm346_vm2, %v343_v18, %v345_v15 }
  0x8a   : > { %626 = vrot.lane.b32.xlu1 %v2621_v5, %s2351_s26  ;;  %684 = vst [vmem:[#allocation2 + $0x80] sm:$0xff] %v348_v20  ;;  %607 = vrot.lane.b32.xlu0 %v2606_v2, %s2351_s26 }
  0x8b   : > { %1375 = vmatprep.subr.bf16.mxu0 %v348_v20  ;;  %1479 = vmatprep.subr.bf16.mxu1 %v347_v19 }
  0x8c   : > { %v360_v22 = vpop.permute.xlu1 %359  ;;  %1376 = vmatpush1.bf16.msra.mxu0 %v347_v19  ;;  %v358_v23 = vpop.permute.xlu0 %357  ;;  %1480 = vmatpush1.bf16.msra.mxu1 %v1040_v21  ;;  %v1052_v26 = vld [vmem:[#allocation2 + $0xd0] sm:$0xff] }
  0x8d   : > { %368 = vst.msk [vmem:[#allocation2 + $0x130] sm:$0xff] %vm319_vm1, %v360_v22  ;;  %688 = vst.msk [vmem:[#allocation2 + $0xe8] sm:$0xff] %vm319_vm1, %v360_v22  ;;  %v361_v24 = vsel %vm346_vm2, %v356_v17, %v358_v23  ;;  %v362_v25 = vsel %vm346_vm2, %v358_v23, %v360_v22 }
  0x8e   : > { %638 = vrot.lane.b32.xlu1 %v2618_v4, %s2352_s27  ;;  %687 = vst [vmem:[#allocation2 + $0xe0] sm:$0xff] %v362_v25  ;;  %636 = vrot.lane.b32.xlu0 %v2606_v2, %s2352_s27 }
  0x8f   : > { %1377 = vmatprep.subr.bf16.mxu0 %v362_v25  ;;  %1481 = vmatprep.subr.bf16.mxu1 %v361_v24 }
  0x90   : > { %v372_v27 = vpop.permute.xlu1 %371  ;;  %1378 = vmatpush1.bf16.msra.mxu0 %v361_v24  ;;  %v370_v28 = vpop.permute.xlu0 %369  ;;  %1482 = vmatpush1.bf16.msra.mxu1 %v1052_v26 }
  0x91   : > { %v376_v29 = vsel %vm375_vm3, %v370_v28, %v372_v27 }
  0x92   : > { %651 = vrot.lane.b32.xlu1 %v2611_v3, %s2352_s27  ;;  %640 = vrot.lane.b32.xlu0 %v2603_v1, %s2352_s27 }
  0x93   : > { %1483 = vmatprep.subr.bf16.mxu1 %v376_v29 }
  0x94   : > { %v693_v30 = vpop.permute.xlu1 %692  ;;  %v1064_v31 = vld [vmem:[#allocation2 + $0x130] sm:$0xff]  ;;  %v374_v32 = vpop.permute.xlu0 %373 }
  0x95   : > { %1484 = vmatpush1.bf16.msra.mxu1 %v1064_v31  ;;  %v377_v33 = vsel %vm375_vm3, %v372_v27, %v374_v32  ;;  %383 = vst.msk [vmem:[#allocation2 + $0x190] sm:$0xff] %vm319_vm1, %v374_v32  ;;  %691 = vst.msk [vmem:[#allocation2 + $0x148] sm:$0xff] %vm319_vm1, %v374_v32 }
  0x96   : > { %655 = vrot.lane.b32.xlu1 %v2621_v5, %s2352_s27  ;;  %690 = vst [vmem:[#allocation2 + $0x140] sm:$0xff] %v377_v33  ;;  %653 = vrot.lane.b32.xlu0 %v2624_v6, %s2352_s27 }
  0x97   : > { %1379 = vmatprep.subr.bf16.mxu0 %v377_v33 }
  0x98   : > { %v423_v34 = vpop.permute.xlu1 %422  ;;  %1380 = vmatpush1.bf16.msra.mxu0 %v376_v29  ;;  %v2796_v35 = vpop.permute.xlu0 %694 }
  0x99   : > { %1381 = vmatprep.subr.bf16.mxu0 %v2638_v9  ;;  %v698_v36 = vsel %vm375_vm3, %v693_v30, %v2796_v35 }
  0x9a   : > { %667 = vrot.lane.b32.xlu1 %v2618_v4, %s2353_s28  ;;  %665 = vrot.lane.b32.xlu0 %v2606_v2, %s2353_s28 }
  0x9b   : > { %1485 = vmatprep.subr.bf16.mxu1 %v698_v36 }
  0x9c   : > { %v427_v37 = vpop.permute.xlu1 %426  ;;  %1382 = vmatpush1.bf16.msra.mxu0 %v2628_v7  ;;  %v425_v38 = vpop.permute.xlu0 %424  ;;  %v1076_v39 = vld [vmem:[#allocation2 + $0x190] sm:$0xff] }
  0x9d   : > { %435 = vst.msk [vmem:[#allocation2 + $0x2b0] sm:$0xff] %vm319_vm1, %v427_v37  ;;  %711 = vst.msk [vmem:[#allocation2 + $0x268] sm:$0xff] %vm319_vm1, %v427_v37  ;;  %1383 = vmatprep.subr.bf16.mxu0 %v2649_v10  ;;  %v428_v40 = vsel %vm346_vm2, %v423_v34, %v425_v38  ;;  %v429_v41 = vsel %vm346_vm2, %v425_v38, %v427_v37  ;;  %1486 = vmatpush1.bf16.msra.mxu1 %v1076_v39  ;;  %v2971_v39 = vld [vmem:[%s3428_s1 + $0x24] ss:$16 sps:$4 sm:$0xff]  }
  0x9e   : > { %818 = vst.msk [vmem:[#allocation2 + $0x100] sm:$0xff] %vm319_vm1, %v427_v37  ;;  %945 = vst.msk [vmem:[#allocation2 + $0xb8] sm:$0xff] %vm319_vm1, %v427_v37  ;;  %796 = vrot.lane.b32.xlu1 %v2611_v3, %s2353_s28  ;;  %669 = vrot.lane.b32.xlu0 %v2603_v1, %s2353_s28  ;;  %v2962_v37 = vld [vmem:[%s3428_s1] ss:$16 sps:$4 sm:$0xff]  }
  0x9f   : > { %710 = vst [vmem:[#allocation2 + $0x260] sm:$0xff] %v429_v41  ;;  %816 = vst [vmem:[#allocation2 + $0xf0] sm:$0xff] %v428_v40  ;;  %1487 = vmatprep.subr.bf16.mxu1 %v2654_v11 }
  0xa0   : > { %817 = vst [vmem:[#allocation2 + $0xf8] sm:$0xff] %v429_v41  ;;  %943 = vst [vmem:[#allocation2 + $0xa8] sm:$0xff] %v428_v40  ;;  %v439_v43 = vpop.permute.xlu1 %438  ;;  %1384 = vmatpush1.bf16.msra.mxu0 %v2654_v11  ;;  %v437_v44 = vpop.permute.xlu0 %436 }
  0xa1   : > { %944 = vst [vmem:[#allocation2 + $0xb0] sm:$0xff] %v429_v41  ;;  %1385 = vmatprep.subr.bf16.mxu0 %v429_v41  ;;  %v442_v45 = vsel %vm346_vm2, %v437_v44, %v439_v43  ;;  %1488 = vmatpush1.bf16.msra.mxu1 %v1088_v42 }
  0xa2   : > { %696 = vrot.lane.b32.xlu1 %v2621_v5, %s2347_s20  ;;  %819 = vst [vmem:[#allocation2 + $0x150] sm:$0xff] %v442_v45  ;;  %946 = vst [vmem:[#allocation2 + $0x108] sm:$0xff] %v442_v45  ;;  %798 = vrot.lane.b32.xlu0 %v2624_v6, %s2353_s28 }
  0xa3   : > { %1489 = vmatprep.subr.bf16.mxu1 %v428_v40 }
  0xa4   : > { %v451_v47 = vpop.permute.xlu1 %450  ;;  %1386 = vmatpush1.bf16.msra.mxu0 %v428_v40  ;;  %v441_v48 = vpop.permute.xlu0 %440  ;;  %v1112_v50 = vld [vmem:[#allocation2 + $0x2b0] sm:$0xff] }
  0xa5   : > { %v443_v49 = vsel %vm346_vm2, %v439_v43, %v441_v48  ;;  %449 = vst.msk [vmem:[#allocation2 + $0x310] sm:$0xff] %vm319_vm1, %v441_v48  ;;  %714 = vst.msk [vmem:[#allocation2 + $0x2c8] sm:$0xff] %vm319_vm1, %v441_v48  ;;  %1490 = vmatpush1.bf16.msra.mxu1 %v1100_v46  ;;  %v2995_v46 = vld [vmem:[%s3428_s1 + $0x20] ss:$16 sps:$4 sm:$0xff]  }
  0xa6   : > { %821 = vst.msk [vmem:[#allocation2 + $0x160] sm:$0xff] %vm319_vm1, %v441_v48  ;;  %948 = vst.msk [vmem:[#allocation2 + $0x118] sm:$0xff] %vm319_vm1, %v441_v48  ;;  %748 = vrot.lane.b32.xlu1 %v2621_v5, %s2350_s23  ;;  %722 = vrot.lane.b32.xlu0 %v2664_v12, %s2347_s20 }
  0xa7   : > { %713 = vst [vmem:[#allocation2 + $0x2c0] sm:$0xff] %v443_v49  ;;  %820 = vst [vmem:[#allocation2 + $0x158] sm:$0xff] %v443_v49  ;;  %1491 = vmatprep.subr.bf16.mxu1 %v442_v45  ;;  %1387 = vmatprep.subr.bf16.mxu0 %v443_v49 }
  0xa8   : > { %947 = vst [vmem:[#allocation2 + $0x110] sm:$0xff] %v443_v49  ;;  %v455_v51 = vpop.permute.xlu1 %454  ;;  %v453_v52 = vpop.permute.xlu0 %452  ;;  %1388 = vmatpush1.bf16.msra.mxu0 %v442_v45  ;;  %v3007_v49 = vld [vmem:[%s3428_s1 + $0xc] ss:$16 sps:$4 sm:$0xff]  }
  0xa9   : > { %463 = vst.msk [vmem:[#allocation2 + $0x370] sm:$0xff] %vm319_vm1, %v455_v51  ;;  %717 = vst.msk [vmem:[#allocation2 + $0x328] sm:$0xff] %vm319_vm1, %v455_v51  ;;  %v456_v53 = vsel %vm375_vm3, %v451_v47, %v453_v52  ;;  %v457_v54 = vsel %vm375_vm3, %v453_v52, %v455_v51  ;;  %1492 = vmatpush1.bf16.msra.mxu1 %v1112_v50 }
  0xaa   : > { %824 = vst.msk [vmem:[#allocation2 + $0x1c0] sm:$0xff] %vm319_vm1, %v455_v51  ;;  %951 = vst.msk [vmem:[#allocation2 + $0x178] sm:$0xff] %vm319_vm1, %v455_v51  ;;  %872 = vrot.lane.b32.xlu1 %v2638_v9, %s2351_s26  ;;  %774 = vrot.lane.b32.xlu0 %v2664_v12, %s2350_s23 }
  0xab   : > { %716 = vst [vmem:[#allocation2 + $0x320] sm:$0xff] %v457_v54  ;;  %822 = vst [vmem:[#allocation2 + $0x1b0] sm:$0xff] %v456_v53  ;;  %1389 = vmatprep.subr.bf16.mxu0 %v457_v54  ;;  %1493 = vmatprep.subr.bf16.mxu1 %v456_v53 }
  0xac   : > { %823 = vst [vmem:[#allocation2 + $0x1b8] sm:$0xff] %v457_v54  ;;  %949 = vst [vmem:[#allocation2 + $0x168] sm:$0xff] %v456_v53  ;;  %v2843_v55 = vpop.permute.xlu1 %720  ;;  %v719_v56 = vpop.permute.xlu0 %718  ;;  %1390 = vmatpush1.bf16.msra.mxu0 %v456_v53  ;;  %v1124_v57 = vld [vmem:[#allocation2 + $0x310] sm:$0xff] }
  0xad   : > { %950 = vst [vmem:[#allocation2 + $0x170] sm:$0xff] %v457_v54  ;;  %v724_v58 = vsel %vm375_vm3, %v719_v56, %v2843_v55  ;;  %1494 = vmatpush1.bf16.msra.mxu1 %v1124_v57 }
  0xae   : > { %870 = vrot.lane.b32.xlu1 %v2628_v7, %s2351_s26  ;;  %952 = vst [vmem:[#allocation2 + $0x1c8] sm:$0xff] %v724_v58  ;;  %1495 = vmatprep.subr.bf16.mxu1 %v724_v58 }
  0xaf   : > { %874 = vrot.lane.b32.xlu0 %v2635_v8, %s2351_s26 }
  0xb0   : > { %v469_v59 = vpop.permute.xlu1 %468  ;;  %v1136_v60 = vld [vmem:[#allocation2 + $0x370] sm:$0xff]  ;;  %v467_v61 = vpop.permute.xlu0 %466 }
  0xb1   : > { %478 = vst.msk [vmem:[#allocation2 + $0x3d0] sm:$0xff] %vm319_vm1, %v469_v59  ;;  %827 = vst.msk [vmem:[#allocation2 + $0x220] sm:$0xff] %vm319_vm1, %v469_v59  ;;  %v472_v62 = vsel %vm470_vm4, %v467_v61, %v469_v59  ;;  %1496 = vmatpush1.bf16.msra.mxu1 %v1136_v60 }
  0xb2   : > { %888 = vrot.lane.b32.xlu1 %v2664_v12, %s2351_s26  ;;  %826 = vst [vmem:[#allocation2 + $0x218] sm:$0xff] %v472_v62  ;;  %1391 = vmatprep.subr.bf16.mxu0 %v472_v62 }
  0xb3   : > { %886 = vrot.lane.b32.xlu0 %v2649_v10, %s2351_s26 }
  0xb4   : > { %v482_v63 = vpop.permute.xlu1 %481  ;;  %v480_v0 = vpop.permute.xlu0 %479 }
  0xb5   : > { %v485_v1 = vsel %vm470_vm4, %v480_v0, %v482_v63 }
  0xb6   : > { %900 = vrot.lane.b32.xlu1 %v2638_v9, %s2352_s27  ;;  %828 = vst [vmem:[#allocation2 + $0x270] sm:$0xff] %v485_v1  ;;  %955 = vst [vmem:[#allocation2 + $0x228] sm:$0xff] %v485_v1  ;;  %1497 = vmatprep.subr.bf16.mxu1 %v485_v1 }
  0xb7   : > { %884 = vrot.lane.b32.xlu0 %v2654_v11, %s2351_s26 }
  0xb8   : > { %v484_v2 = vpop.permute.xlu1 %483  ;;  %v1148_v3 = vld [vmem:[#allocation2 + $0x3d0] sm:$0xff]  ;;  %v465_v6 = vpop.permute.xlu0 %464 }
  0xb9   : > { %v2864_v4 = vsel %vm470_vm4, %v482_v63, %v484_v2  ;;  %492 = vst.msk [vmem:[#allocation2 + $0x430] sm:$0xff] %vm319_vm1, %v484_v2  ;;  %734 = vst.msk [vmem:[#allocation2 + $0x3e8] sm:$0xff] %vm319_vm1, %v484_v2  ;;  %1498 = vmatpush1.bf16.msra.mxu1 %v1148_v3  ;;  %v2873_v13 = vsel %vm470_vm4, %v465_v6, %v467_v61 }
  0xba   : > { %830 = vst.msk [vmem:[#allocation2 + $0x280] sm:$0xff] %vm319_vm1, %v484_v2  ;;  %957 = vst.msk [vmem:[#allocation2 + $0x238] sm:$0xff] %vm319_vm1, %v484_v2  ;;  %898 = vrot.lane.b32.xlu1 %v2628_v7, %s2352_s27  ;;  %1392 = vmatpush1.bf16.msra.mxu0 %v2873_v13 }
  0xbb   : > { %733 = vst [vmem:[#allocation2 + $0x3e0] sm:$0xff] %v2864_v4  ;;  %956 = vst [vmem:[#allocation2 + $0x230] sm:$0xff] %v2864_v4  ;;  %902 = vrot.lane.b32.xlu0 %v2635_v8, %s2352_s27  ;;  %1393 = vmatprep.subr.bf16.mxu0 %v2864_v4 }
  0xbc   : > { %v496_v14 = vpop.permute.xlu1 %495  ;;  %v494_v15 = vpop.permute.xlu0 %493 }
  0xbd   : > { %v2882_v16 = vsel %vm499_vm5, %v494_v15, %v496_v14 }
  0xbe   : > { %916 = vrot.lane.b32.xlu1 %v2664_v12, %s2352_s27  ;;  %958 = vst [vmem:[#allocation2 + $0x288] sm:$0xff] %v2882_v16  ;;  %1394 = vmatpush1.bf16.msra.mxu0 %v485_v1 }
  0xbf   : > { %1499 = vmatprep.subr.bf16.mxu1 %v2882_v16  ;;  %914 = vrot.lane.b32.xlu0 %v2649_v10, %s2352_s27 }
  0xc0   : > { %v509_v17 = vpop.permute.xlu1 %508  ;;  %v1160_v18 = vld [vmem:[#allocation2 + $0x430] sm:$0xff]  ;;  %v498_v19 = vpop.permute.xlu0 %497 }
  0xc1   : > { %1500 = vmatpush1.bf16.msra.mxu1 %v1160_v18  ;;  %v2891_v20 = vsel %vm499_vm5, %v496_v14, %v498_v19  ;;  %507 = vst.msk [vmem:[#allocation2 + $0x490] sm:$0xff] %vm319_vm1, %v498_v19  ;;  %737 = vst.msk [vmem:[#allocation2 + $0x448] sm:$0xff] %vm319_vm1, %v498_v19 }
  0xc2   : > { %833 = vst.msk [vmem:[#allocation2 + $0x2e0] sm:$0xff] %vm319_vm1, %v498_v19  ;;  %960 = vst.msk [vmem:[#allocation2 + $0x298] sm:$0xff] %vm319_vm1, %v498_v19  ;;  %928 = vrot.lane.b32.xlu1 %v2638_v9, %s2353_s28  ;;  %1395 = vmatprep.subr.bf16.mxu0 %v2891_v20 }
  0xc3   : > { %959 = vst [vmem:[#allocation2 + $0x290] sm:$0xff] %v2891_v20  ;;  %1396 = vmatpush1.bf16.msra.mxu0 %v2882_v16  ;;  %912 = vrot.lane.b32.xlu0 %v2654_v11, %s2352_s27 }
  0xc4   : > { %v513_v21 = vpop.permute.xlu1 %512  ;;  %v511_v22 = vpop.permute.xlu0 %510 }
  0xc5   : > { %521 = vst.msk [vmem:[#allocation2 + $0x4f0] sm:$0xff] %vm319_vm1, %v513_v21  ;;  %740 = vst.msk [vmem:[#allocation2 + $0x4a8] sm:$0xff] %vm319_vm1, %v513_v21  ;;  %v2909_v9 = vsel %vm499_vm5, %v509_v17, %v511_v22  ;;  %v2912_v23 = vsel %vm499_vm5, %v511_v22, %v513_v21 }
  0xc6   : > { %836 = vst.msk [vmem:[#allocation2 + $0x340] sm:$0xff] %vm319_vm1, %v513_v21  ;;  %963 = vst.msk [vmem:[#allocation2 + $0x2f8] sm:$0xff] %vm319_vm1, %v513_v21  ;;  %800 = vrot.lane.b32.xlu1 %v2621_v5, %s2353_s28  ;;  %1397 = vmatprep.subr.bf16.mxu0 %v2912_v23 }
  0xc7   : > { %961 = vst [vmem:[#allocation2 + $0x2e8] sm:$0xff] %v2909_v9  ;;  %962 = vst [vmem:[#allocation2 + $0x2f0] sm:$0xff] %v2912_v23  ;;  %1501 = vmatprep.subr.bf16.mxu1 %v2909_v9  ;;  %1398 = vmatpush1.bf16.msra.mxu0 %v2909_v9 }
  0xc8   : > { %v525_v24 = vpop.permute.xlu1 %524  ;;  %930 = vrot.lane.b32.xlu0 %v2635_v8, %s2353_s28  ;;  %v523_v25 = vpop.permute.xlu0 %522  ;;  %v1172_v26 = vld [vmem:[#allocation2 + $0x490] sm:$0xff] }
  0xc9   : > { %v2924_v27 = vsel %vm528_vm6, %v523_v25, %v525_v24  ;;  %1502 = vmatpush1.bf16.msra.mxu1 %v1172_v26 }
  0xca   : > { %1012 = vrot.lane.b32.xlu1 %v2654_v11, %s2353_s28  ;;  %964 = vst [vmem:[#allocation2 + $0x348] sm:$0xff] %v2924_v27  ;;  %1503 = vmatprep.subr.bf16.mxu1 %v2924_v27 }
  0xcc   : > { %v745_v5 = vpop.permute.xlu1 %744  ;;  %v1184_v28 = vld [vmem:[#allocation2 + $0x4f0] sm:$0xff]  ;;  %926 = vrot.lane.b32.xlu0 %v2628_v7, %s2353_s28  ;;  %v527_v29 = vpop.permute.xlu0 %526 }
  0xcd   : > { %v2933_v8 = vsel %vm528_vm6, %v525_v24, %v527_v29  ;;  %536 = vst.msk [vmem:[#allocation2 + $0x550] sm:$0xff] %vm319_vm1, %v527_v29  ;;  %743 = vst.msk [vmem:[#allocation2 + $0x508] sm:$0xff] %vm319_vm1, %v527_v29  ;;  %1504 = vmatpush1.bf16.msra.mxu1 %v1184_v28 }
  0xce   : > { %839 = vst.msk [vmem:[#allocation2 + $0x3a0] sm:$0xff] %vm319_vm1, %v527_v29  ;;  %966 = vst.msk [vmem:[#allocation2 + $0x358] sm:$0xff] %vm319_vm1, %v527_v29  ;;  %1016 = vrot.lane.b32.xlu1 %v2664_v12, %s2353_s28  ;;  %1399 = vmatprep.subr.bf16.mxu0 %v2933_v8 }
  0xcf   : > { %965 = vst [vmem:[#allocation2 + $0x350] sm:$0xff] %v2933_v8  ;;  %1400 = vmatpush1.bf16.msra.mxu0 %v2924_v27 }
  0xd0   : > { %v540_v7 = vpop.permute.xlu1 %539  ;;  %1014 = vrot.lane.b32.xlu0 %v2649_v10, %s2353_s28  ;;  %v2946_v11 = vpop.permute.xlu0 %746 }
  0xd1   : > { %v750_v30 = vsel %vm528_vm6, %v745_v5, %v2946_v11 }
  0xd2   : > { %967 = vst [vmem:[#allocation2 + $0x3a8] sm:$0xff] %v750_v30  ;;  %1505 = vmatprep.subr.bf16.mxu1 %v750_v30 }
  0xd4   : > { %v552_v31 = vpop.permute.xlu1 %551  ;;  %v542_v32 = vpop.permute.xlu0 %541  ;;  %v1196_v12 = vld [vmem:[#allocation2 + $0x550] sm:$0xff] }
  0xd5   : > { %v2951_v33 = vsel %vm470_vm4, %v540_v7, %v542_v32  ;;  %550 = vst.msk [vmem:[#allocation2 + $0x5b0] sm:$0xff] %vm319_vm1, %v542_v32  ;;  %842 = vst.msk [vmem:[#allocation2 + $0x400] sm:$0xff] %vm319_vm1, %v542_v32  ;;  %1506 = vmatpush1.bf16.msra.mxu1 %v1196_v12 }
  0xd6   : > { %1401 = vmatprep.subr.bf16.mxu0 %v2951_v33 }
  0xd8   : > { %v538_v10 = vpop.permute.xlu1 %537  ;;  %v554_v36 = vpop.permute.xlu0 %553 }
  0xd9   : > { %v2957_v34 = vsel %vm470_vm4, %v538_v10, %v540_v7  ;;  %v2965_v38 = vsel %vm470_vm4, %v552_v31, %v554_v36 }
  0xda   : > { %1402 = vmatpush1.bf16.msra.mxu0 %v2957_v34  ;;  %970 = vst [vmem:[#allocation2 + $0x408] sm:$0xff] %v2965_v38  ;;  %1507 = vmatprep.subr.bf16.mxu1 %v2965_v38 }
  0xdc   : > { %v566_v40 = vpop.permute.xlu1 %565  ;;  %v556_v41 = vpop.permute.xlu0 %555  ;;  %v1208_v42 = vld [vmem:[#allocation2 + $0x5b0] sm:$0xff] }
  0xdd   : > { %1404 = vmatmul.mubr.bf16.vlgmr.msra.gmra.mrb[0].mxu0 %v2962_v37  ;;  %v2977_v43 = vsel %vm470_vm4, %v554_v36, %v556_v41  ;;  %564 = vst.msk [vmem:[#allocation2 + $0x610] sm:$0xff] %vm319_vm1, %v556_v41  ;;  %760 = vst.msk [vmem:[#allocation2 + $0x5c8] sm:$0xff] %vm319_vm1, %v556_v41  ;;  %1508 = vmatpush1.bf16.msra.mxu1 %v1208_v42 }
  0xde   : > { %845 = vst.msk [vmem:[#allocation2 + $0x460] sm:$0xff] %vm319_vm1, %v556_v41  ;;  %972 = vst.msk [vmem:[#allocation2 + $0x418] sm:$0xff] %vm319_vm1, %v556_v41  ;;  %1413 = vmatprep.mubr.bf16.mxu0 %v2971_v39  ;;  %1424 = vmatprep.subr.bf16.mxu0 %v2977_v43 }
  0xdf   : > { %971 = vst [vmem:[#allocation2 + $0x410] sm:$0xff] %v2977_v43  ;;  %1425 = vmatpush1.bf16.msra.mxu0 %v2965_v38 }
  0xe0   : > { %v570_v44 = vpop.permute.xlu1 %569  ;;  %v568_v45 = vpop.permute.xlu0 %567  ;;  %1510 = vmatmul.mubr.bf16.vlgmr.msra.gmra.mrb[0].mxu1 %v2962_v37 }
  0xe1   : > { %578 = vst.msk [vmem:[#allocation2 + $0x670] sm:$0xff] %vm319_vm1, %v570_v44  ;;  %763 = vst.msk [vmem:[#allocation2 + $0x628] sm:$0xff] %vm319_vm1, %v570_v44  ;;  %v2998_v47 = vsel %vm499_vm5, %v566_v40, %v568_v45  ;;  %v3001_v48 = vsel %vm499_vm5, %v568_v45, %v570_v44  ;;  %1519 = vmatprep.mubr.bf16.mxu1 %v2971_v39 }
  0xe2   : > { %848 = vst.msk [vmem:[#allocation2 + $0x4c0] sm:$0xff] %vm319_vm1, %v570_v44  ;;  %975 = vst.msk [vmem:[#allocation2 + $0x478] sm:$0xff] %vm319_vm1, %v570_v44  ;;  %1426 = vmatprep.subr.bf16.mxu0 %v3001_v48  ;;  %1530 = vmatprep.subr.bf16.mxu1 %v2998_v47 }
  0xe3   : > { %973 = vst [vmem:[#allocation2 + $0x468] sm:$0xff] %v2998_v47  ;;  %974 = vst [vmem:[#allocation2 + $0x470] sm:$0xff] %v3001_v48  ;;  %1427 = vmatpush1.bf16.msra.mxu0 %v2998_v47 }
  0xe4   : > { %v582_v50 = vpop.permute.xlu1 %581  ;;  %v580_v51 = vpop.permute.xlu0 %579  ;;  %v1220_v52 = vld [vmem:[#allocation2 + $0x610] sm:$0xff] }
  0xe5   : > { %1414 = vmatmul.mubr.bf16.gmra.mrb[4].mxu0 %v2995_v46  ;;  %v3016_v53 = vsel %vm499_vm5, %v580_v51, %v582_v50  ;;  %1531 = vmatpush1.bf16.msra.mxu1 %v1220_v52 }
  0xe6   : > { %2205 = vmatprep.mubr.msk.bf16.mxu0 %vm1364_vm7, %v3007_v49  ;;  %976 = vst [vmem:[#allocation2 + $0x4c8] sm:$0xff] %v3016_v53  ;;  %1532 = vmatprep.subr.bf16.mxu1 %v3016_v53 }
  0xe8   : > { %v594_v54 = vpop.permute.xlu1 %593  ;;  %v1232_v56 = vld [vmem:[#allocation2 + $0x670] sm:$0xff]  ;;  %v584_v57 = vpop.permute.xlu0 %583  ;;  %1520 = vmatmul.mubr.bf16.gmra.mrb[4].mxu1 %v2995_v46 }
  0xe9   : > { %v3024_v58 = vsel %vm499_vm5, %v582_v50, %v584_v57  ;;  %592 = vst.msk [vmem:[#allocation2 + $0x6d0] sm:$0xff] %vm319_vm1, %v584_v57  ;;  %766 = vst.msk [vmem:[#allocation2 + $0x688] sm:$0xff] %vm319_vm1, %v584_v57  ;;  %1533 = vmatpush1.bf16.msra.mxu1 %v1232_v56  ;;  %2207 = vmatprep.mubr.msk.bf16.mxu1 %vm1364_vm7, %v3007_v49  ;;  %v1031_v56 = vld [vmem:[#allocation2 + $0x28] sm:$0xff] }
  0xea   : > { %851 = vst.msk [vmem:[#allocation2 + $0x520] sm:$0xff] %vm319_vm1, %v584_v57  ;;  %978 = vst.msk [vmem:[#allocation2 + $0x4d8] sm:$0xff] %vm319_vm1, %v584_v57  ;;  %1428 = vmatprep.subr.bf16.mxu0 %v3024_v58  ;;  %v3124_v57 = vld [vmem:[%s3428_s1 + $0x8] ss:$16 sps:$4 sm:$0xff]  }
  0xeb   : > { %977 = vst [vmem:[#allocation2 + $0x4d0] sm:$0xff] %v3024_v58  ;;  %1429 = vmatpush1.bf16.msra.mxu0 %v3016_v53 }
  0xec   : > { %v598_v59 = vpop.permute.xlu1 %597  ;;  %v596_v60 = vpop.permute.xlu0 %595 }
  0xed   : > { %606 = vst.msk [vmem:[#allocation2 + $0x730] sm:$0xff] %vm319_vm1, %v598_v59  ;;  %769 = vst.msk [vmem:[#allocation2 + $0x6e8] sm:$0xff] %vm319_vm1, %v598_v59  ;;  %v3040_v61 = vsel %vm528_vm6, %v594_v54, %v596_v60  ;;  %v3043_v62 = vsel %vm528_vm6, %v596_v60, %v598_v59  ;;  %v3130_v60 = vld [vmem:[%s3428_s1 + $0x2c] ss:$16 sps:$4 sm:$0xff]  }
  0xee   : > { %854 = vst.msk [vmem:[#allocation2 + $0x580] sm:$0xff] %vm319_vm1, %v598_v59  ;;  %981 = vst.msk [vmem:[#allocation2 + $0x538] sm:$0xff] %vm319_vm1, %v598_v59  ;;  %1430 = vmatprep.subr.bf16.mxu0 %v3043_v62  ;;  %1534 = vmatprep.subr.bf16.mxu1 %v3040_v61 }
  0xef   : > { %979 = vst [vmem:[#allocation2 + $0x528] sm:$0xff] %v3040_v61  ;;  %980 = vst [vmem:[#allocation2 + $0x530] sm:$0xff] %v3043_v62  ;;  %1431 = vmatpush1.bf16.msra.mxu0 %v3040_v61 }
  0xf0   : > { %v3049_v63 = vpop.permute.xlu1 %772  ;;  %v771_v0 = vpop.permute.xlu0 %770  ;;  %v1244_v1 = vld [vmem:[#allocation2 + $0x6d0] sm:$0xff] }
  0xf1   : > { %v776_v2 = vsel %vm528_vm6, %v771_v0, %v3049_v63  ;;  %1535 = vmatpush1.bf16.msra.mxu1 %v1244_v1 }
  0xf2   : > { %982 = vst [vmem:[#allocation2 + $0x588] sm:$0xff] %v776_v2  ;;  %1536 = vmatprep.subr.bf16.mxu1 %v776_v2  ;;  %v1030_v2 = vld [vmem:[#allocation2 + $0x20] sm:$0xff] }
  0xf4   : > { %v612_v3 = vpop.permute.xlu1 %611  ;;  %v1256_v6 = vld [vmem:[#allocation2 + $0x730] sm:$0xff]  ;;  %v610_v14 = vpop.permute.xlu0 %609 }
  0xf5   : > { %621 = vst.msk [vmem:[#allocation2 + $0x790] sm:$0xff] %vm319_vm1, %v612_v3  ;;  %857 = vst.msk [vmem:[#allocation2 + $0x5e0] sm:$0xff] %vm319_vm1, %v612_v3  ;;  %v3057_v15 = vsel %vm613_vm8, %v610_v14, %v612_v3  ;;  %1537 = vmatpush1.bf16.msra.mxu1 %v1256_v6 }
  0xf6   : > { %1432 = vmatprep.subr.bf16.mxu0 %v3057_v15 }
  0xf8   : > { %v625_v17 = vpop.permute.xlu1 %624  ;;  %v623_v18 = vpop.permute.xlu0 %622 }
  0xf9   : > { %v3061_v19 = vsel %vm613_vm8, %v623_v18, %v625_v17 }
  0xfa   : > { %985 = vst [vmem:[#allocation2 + $0x5e8] sm:$0xff] %v3061_v19  ;;  %1538 = vmatprep.subr.bf16.mxu1 %v3061_v19 }
  0xfc   : > { %v627_v21 = vpop.permute.xlu1 %626  ;;  %v1268_v22 = vld [vmem:[#allocation2 + $0x790] sm:$0xff]  ;;  %v608_v25 = vpop.permute.xlu0 %607 }
  0xfd   : > { %v3066_v24 = vsel %vm613_vm8, %v625_v17, %v627_v21  ;;  %635 = vst.msk [vmem:[#allocation2 + $0x7f0] sm:$0xff] %vm319_vm1, %v627_v21  ;;  %786 = vst.msk [vmem:[#allocation2 + $0x7a8] sm:$0xff] %vm319_vm1, %v627_v21  ;;  %1539 = vmatpush1.bf16.msra.mxu1 %v1268_v22  ;;  %v3074_v26 = vsel %vm613_vm8, %v608_v25, %v610_v14  ;;  %v1043_v14 = vld [vmem:[#allocation2 + $0x88] sm:$0xff]  ;;  %v1033_v17 = vld [vmem:[#allocation2 + $0x38] sm:$0xff] }
  0xfe   : > { %860 = vst.msk [vmem:[#allocation2 + $0x640] sm:$0xff] %vm319_vm1, %v627_v21  ;;  %987 = vst.msk [vmem:[#allocation2 + $0x5f8] sm:$0xff] %vm319_vm1, %v627_v21  ;;  %1433 = vmatpush1.bf16.msra.mxu0 %v3074_v26  ;;  %v1042_v25 = vld [vmem:[#allocation2 + $0x80] sm:$0xff] }
  0xff   : > { %986 = vst [vmem:[#allocation2 + $0x5f0] sm:$0xff] %v3066_v24  ;;  %1434 = vmatprep.subr.bf16.mxu0 %v3066_v24 }
 0x100   : > { %v639_v5 = vpop.permute.xlu1 %638  ;;  %v637_v28 = vpop.permute.xlu0 %636 }
 0x101   : > { %v3079_v29 = vsel %vm642_vm9, %v637_v28, %v639_v5 }
 0x102   : > { %988 = vst [vmem:[#allocation2 + $0x648] sm:$0xff] %v3079_v29  ;;  %1435 = vmatpush1.bf16.msra.mxu0 %v3061_v19  ;;  %1540 = vmatprep.subr.bf16.mxu1 %v3079_v29 }
 0x104   : > { %v652_v7 = vpop.permute.xlu1 %651  ;;  %v1280_v30 = vld [vmem:[#allocation2 + $0x7f0] sm:$0xff]  ;;  %v641_v31 = vpop.permute.xlu0 %640 }
 0x105   : > { %1541 = vmatpush1.bf16.msra.mxu1 %v1280_v30  ;;  %v3085_v32 = vsel %vm642_vm9, %v639_v5, %v641_v31  ;;  %650 = vst.msk [vmem:[#allocation2 + $0x850] sm:$0xff] %vm319_vm1, %v641_v31  ;;  %789 = vst.msk [vmem:[#allocation2 + $0x808] sm:$0xff] %vm319_vm1, %v641_v31  ;;  %v3162_v5 = vld [vmem:[%s3428_s1 + $0x28] ss:$16 sps:$4 sm:$0xff]  }
 0x106   : > { %863 = vst.msk [vmem:[#allocation2 + $0x6a0] sm:$0xff] %vm319_vm1, %v641_v31  ;;  %990 = vst.msk [vmem:[#allocation2 + $0x658] sm:$0xff] %vm319_vm1, %v641_v31  ;;  %1436 = vmatprep.subr.bf16.mxu0 %v3085_v32  ;;  %v1045_v30 = vld [vmem:[#allocation2 + $0x98] sm:$0xff] }
 0x107   : > { %989 = vst [vmem:[#allocation2 + $0x650] sm:$0xff] %v3085_v32  ;;  %1437 = vmatpush1.bf16.msra.mxu0 %v3079_v29 }
 0x108   : > { %v656_v12 = vpop.permute.xlu1 %655  ;;  %v654_v10 = vpop.permute.xlu0 %653 }
 0x109   : > { %664 = vst.msk [vmem:[#allocation2 + $0x8b0] sm:$0xff] %vm319_vm1, %v656_v12  ;;  %792 = vst.msk [vmem:[#allocation2 + $0x868] sm:$0xff] %vm319_vm1, %v656_v12  ;;  %v3099_v36 = vsel %vm642_vm9, %v652_v7, %v654_v10  ;;  %v3102_v40 = vsel %vm642_vm9, %v654_v10, %v656_v12  ;;  %v1055_v7 = vld [vmem:[#allocation2 + $0xe8] sm:$0xff]  ;;  %v1044_v10 = vld [vmem:[#allocation2 + $0x90] sm:$0xff] }
 0x10a   : > { %866 = vst.msk [vmem:[#allocation2 + $0x700] sm:$0xff] %vm319_vm1, %v656_v12  ;;  %993 = vst.msk [vmem:[#allocation2 + $0x6b8] sm:$0xff] %vm319_vm1, %v656_v12  ;;  %1438 = vmatprep.subr.bf16.mxu0 %v3102_v40  ;;  %1542 = vmatprep.subr.bf16.mxu1 %v3099_v36  ;;  %v1054_v12 = vld [vmem:[#allocation2 + $0xe0] sm:$0xff] }
 0x10b   : > { %991 = vst [vmem:[#allocation2 + $0x6a8] sm:$0xff] %v3099_v36  ;;  %992 = vst [vmem:[#allocation2 + $0x6b0] sm:$0xff] %v3102_v40  ;;  %1439 = vmatpush1.bf16.msra.mxu0 %v3099_v36 }
 0x10c   : > { %v668_v41 = vpop.permute.xlu1 %667  ;;  %v666_v42 = vpop.permute.xlu0 %665  ;;  %v1292_v44 = vld [vmem:[#allocation2 + $0x850] sm:$0xff] }
 0x10d   : > { %v3110_v45 = vsel %vm671_vm10, %v666_v42, %v668_v41  ;;  %1543 = vmatpush1.bf16.msra.mxu1 %v1292_v44  ;;  %v1067_v42 = vld [vmem:[#allocation2 + $0x148] sm:$0xff] }
 0x10e   : > { %1544 = vmatprep.subr.bf16.mxu1 %v3110_v45 }
 0x110   : > { %v797_v50 = vpop.permute.xlu1 %796  ;;  %v1304_v51 = vld [vmem:[#allocation2 + $0x8b0] sm:$0xff]  ;;  %v670_v52 = vpop.permute.xlu0 %669 }
 0x111   : > { %v3114_v54 = vsel %vm671_vm10, %v668_v41, %v670_v52  ;;  %679 = vst.msk [vmem:[#allocation2 + $0x910] sm:$0xff] %vm319_vm1, %v670_v52  ;;  %795 = vst.msk [vmem:[#allocation2 + $0x8c8] sm:$0xff] %vm319_vm1, %v670_v52  ;;  %1545 = vmatpush1.bf16.msra.mxu1 %v1304_v51  ;;  %v1057_v51 = vld [vmem:[#allocation2 + $0xf8] sm:$0xff] }
 0x112   : > { %869 = vst.msk [vmem:[#allocation2 + $0x760] sm:$0xff] %vm319_vm1, %v670_v52  ;;  %996 = vst.msk [vmem:[#allocation2 + $0x718] sm:$0xff] %vm319_vm1, %v670_v52  ;;  %1440 = vmatprep.subr.bf16.mxu0 %v3114_v54 }
 0x113   : > { %1441 = vmatpush1.bf16.msra.mxu0 %v3110_v45 }
 0x114   : > { %v697_v59 = vpop.permute.xlu1 %696  ;;  %v3137_v1 = vpop.permute.xlu0 %798  ;;  %1583 = vmatprep.subr.bf16.mxu0 %v1031_v56 }
 0x115   : > { %v3134_v0 = vsel %vm375_vm3, %v2796_v35, %v697_v59  ;;  %705 = vst.msk [vmem:[#allocation2 + $0x1a8] sm:$0xff] %vm319_vm1, %v697_v59  ;;  %v3141_v3 = vsel %vm671_vm10, %v797_v50, %v3137_v1  ;;  %v1066_v59 = vld [vmem:[#allocation2 + $0x140] sm:$0xff] }
 0x116   : > { %1457 = vmatmul.mubr.bf16.vlgmr.msra.gmra.mrb[0].mxu0 %v3124_v57  ;;  %1546 = vmatprep.subr.bf16.mxu1 %v3141_v3 }
 0x117   : > { %1584 = vmatpush1.bf16.msra.mxu0 %v1030_v2  ;;  %2206 = vmatprep.mubr.msk.bf16.mxu0 %vm1364_vm7, %v3130_v60 }
 0x118   : > { %v749_v6 = vpop.permute.xlu1 %748  ;;  %v723_v18 = vpop.permute.xlu0 %722  ;;  %v1316_v21 = vld [vmem:[#allocation2 + $0x910] sm:$0xff]  ;;  %1585 = vmatprep.subr.bf16.mxu0 %v1043_v14 }
 0x119   : > { %v3149_v35 = vsel %vm528_vm6, %v2946_v11, %v749_v6  ;;  %757 = vst.msk [vmem:[#allocation2 + $0x568] sm:$0xff] %vm319_vm1, %v749_v6  ;;  %969 = vst.msk [vmem:[#allocation2 + $0x3b8] sm:$0xff] %vm319_vm1, %v749_v6  ;;  %v3155_v22 = vsel %vm375_vm3, %v2843_v55, %v723_v18  ;;  %1547 = vmatpush1.bf16.msra.mxu1 %v1316_v21  ;;  %v1032_v11 = vld [vmem:[#allocation2 + $0x30] sm:$0xff] }
 0x11a   : > { %731 = vst.msk [vmem:[#allocation2 + $0x388] sm:$0xff] %vm319_vm1, %v723_v18  ;;  %954 = vst.msk [vmem:[#allocation2 + $0x1d8] sm:$0xff] %vm319_vm1, %v723_v18  ;;  %1689 = vmatprep.subr.bf16.mxu1 %v1033_v17  ;;  %v1056_v6 = vld [vmem:[#allocation2 + $0xf0] sm:$0xff]  ;;  %v1069_v17 = vld [vmem:[#allocation2 + $0x158] sm:$0xff] }
 0x11b   : > { %1586 = vmatpush1.bf16.msra.mxu0 %v1042_v25  ;;  %v1091_v18 = vld [vmem:[#allocation2 + $0x208] sm:$0xff] }
 0x11c   : > { %v873_v28 = vpop.permute.xlu1 %872  ;;  %v775_v31 = vpop.permute.xlu0 %774  ;;  %1563 = vmatmul.mubr.bf16.vlgmr.msra.gmra.mrb[0].mxu1 %v3124_v57  ;;  %1587 = vmatprep.subr.bf16.mxu0 %v1055_v7  ;;  %v1079_v52 = vld [vmem:[#allocation2 + $0x1a8] sm:$0xff] }
 0x11d   : > { %v3167_v55 = vsel %vm528_vm6, %v3049_v63, %v775_v31  ;;  %783 = vst.msk [vmem:[#allocation2 + $0x748] sm:$0xff] %vm319_vm1, %v775_v31  ;;  %984 = vst.msk [vmem:[#allocation2 + $0x598] sm:$0xff] %vm319_vm1, %v775_v31  ;;  %1690 = vmatpush1.bf16.msra.mxu1 %v1032_v11  ;;  %2208 = vmatprep.mubr.msk.bf16.mxu1 %vm1364_vm7, %v3130_v60  ;;  %v3177_v63 = vld [vmem:[%s3428_s1 + $0x4] ss:$16 sps:$4 sm:$0xff]  }
 0x11e   : > { %1467 = vmatmul.mubr.bf16.gmra.mrb[4].mxu0 %v3162_v5  ;;  %1691 = vmatprep.subr.bf16.mxu1 %v1045_v30  ;;  %v1068_v11 = vld [vmem:[#allocation2 + $0x150] sm:$0xff]  ;;  %v1081_v30 = vld [vmem:[#allocation2 + $0x1b8] sm:$0xff] }
 0x11f   : > { %1588 = vmatpush1.bf16.msra.mxu0 %v1054_v12  ;;  %1615 = vmatprep.mubr.bf16.mxu0 %v3177_v63 }
 0x120   : > { %v871_v41 = vpop.permute.xlu1 %870  ;;  %1589 = vmatprep.subr.bf16.mxu0 %v1067_v42  ;;  %v1080_v42 = vld [vmem:[#allocation2 + $0x1b0] sm:$0xff] }
 0x121   : > { %v3181_v44 = vsel %vm613_vm8, %v871_v41, %v873_v28  ;;  %v875_v50 = vpop.permute.xlu0 %874  ;;  %1692 = vmatpush1.bf16.msra.mxu1 %v1044_v10  ;;  %v1103_v10 = vld [vmem:[#allocation2 + $0x268] sm:$0xff] }
 0x122   : > { %v3184_v56 = vsel %vm613_vm8, %v873_v28, %v875_v50  ;;  %883 = vst.msk [vmem:[#allocation2 + $0x7c0] sm:$0xff] %vm319_vm1, %v875_v50  ;;  %1693 = vmatprep.subr.bf16.mxu1 %v1057_v51  ;;  %v1090_v28 = vld [vmem:[#allocation2 + $0x200] sm:$0xff] }
 0x123   : > { %1590 = vmatpush1.bf16.msra.mxu0 %v1066_v59 }
 0x124   : > { %v889_v2 = vpop.permute.xlu1 %888  ;;  %1573 = vmatmul.mubr.bf16.gmra.mrb[4].mxu1 %v3162_v5  ;;  %1591 = vmatprep.subr.bf16.mxu0 %v1079_v52  ;;  %v1102_v52 = vld [vmem:[#allocation2 + $0x260] sm:$0xff] }
 0x125   : > { %897 = vst.msk [vmem:[#allocation2 + $0x820] sm:$0xff] %vm319_vm1, %v889_v2  ;;  %1002 = vst.msk [vmem:[#allocation2 + $0x7d8] sm:$0xff] %vm319_vm1, %v889_v2  ;;  %v887_v14 = vpop.permute.xlu0 %886  ;;  %1694 = vmatpush1.bf16.msra.mxu1 %v1056_v6  ;;  %1721 = vmatprep.mubr.bf16.mxu1 %v3177_v63 }
 0x126   : > { %v3191_v21 = vsel %vm613_vm8, %v887_v14, %v889_v2  ;;  %1695 = vmatprep.subr.bf16.mxu1 %v1069_v17  ;;  %v1115_v2 = vld [vmem:[#allocation2 + $0x2c8] sm:$0xff] }
 0x127   : > { %1592 = vmatpush1.bf16.msra.mxu0 %v3134_v0  ;;  %v1093_v0 = vld [vmem:[#allocation2 + $0x218] sm:$0xff] }
 0x128   : > { %v901_v25 = vpop.permute.xlu1 %900  ;;  %1593 = vmatprep.subr.bf16.mxu0 %v1091_v18 }
 0x129   : > { %v885_v7 = vpop.permute.xlu0 %884  ;;  %1696 = vmatpush1.bf16.msra.mxu1 %v1068_v11  ;;  %v1104_v11 = vld [vmem:[#allocation2 + $0x270] sm:$0xff] }
 0x12a   : > { %v3196_v31 = vsel %vm613_vm8, %v885_v7, %v887_v14  ;;  %1697 = vmatprep.subr.bf16.mxu1 %v1081_v30  ;;  %v1114_v14 = vld [vmem:[#allocation2 + $0x2c0] sm:$0xff] }
 0x12b   : > { %1594 = vmatpush1.bf16.msra.mxu0 %v1090_v28  ;;  %v1139_v28 = vld [vmem:[#allocation2 + $0x388] sm:$0xff]  ;;  %v1126_v30 = vld [vmem:[#allocation2 + $0x320] sm:$0xff] }
 0x12c   : > { %v899_v12 = vpop.permute.xlu1 %898  ;;  %1595 = vmatprep.subr.bf16.mxu0 %v1103_v10 }
 0x12d   : > { %v3199_v41 = vsel %vm642_vm9, %v899_v12, %v901_v25  ;;  %v903_v50 = vpop.permute.xlu0 %902  ;;  %1698 = vmatpush1.bf16.msra.mxu1 %v1080_v42 }
 0x12e   : > { %v3202_v51 = vsel %vm642_vm9, %v901_v25, %v903_v50  ;;  %911 = vst.msk [vmem:[#allocation2 + $0x880] sm:$0xff] %vm319_vm1, %v903_v50  ;;  %1005 = vst.msk [vmem:[#allocation2 + $0x838] sm:$0xff] %vm319_vm1, %v903_v50  ;;  %1699 = vmatprep.subr.bf16.mxu1 %v1093_v0  ;;  %v1127_v25 = vld [vmem:[#allocation2 + $0x328] sm:$0xff] }
 0x12f   : > { %1596 = vmatpush1.bf16.msra.mxu0 %v1102_v52  ;;  %v1163_v52 = vld [vmem:[#allocation2 + $0x448] sm:$0xff] }
 0x130   : > { %v917_v59 = vpop.permute.xlu1 %916  ;;  %1597 = vmatprep.subr.bf16.mxu0 %v1115_v2  ;;  %v1199_v2 = vld [vmem:[#allocation2 + $0x568] sm:$0xff] }
 0x131   : > { %925 = vst.msk [vmem:[#allocation2 + $0x8e0] sm:$0xff] %vm319_vm1, %v917_v59  ;;  %1008 = vst.msk [vmem:[#allocation2 + $0x898] sm:$0xff] %vm319_vm1, %v917_v59  ;;  %1700 = vmatpush1.bf16.msra.mxu1 %v2873_v13  ;;  %v915_v6 = vpop.permute.xlu0 %914 }
 0x132   : > { %1701 = vmatprep.subr.bf16.mxu1 %v2864_v4  ;;  %v3211_v17 = vsel %vm642_vm9, %v915_v6, %v917_v59  ;;  %v1175_v59 = vld [vmem:[#allocation2 + $0x4a8] sm:$0xff] }
 0x133   : > { %1598 = vmatpush1.bf16.msra.mxu0 %v1114_v14  ;;  %v1048_v14 = vld [vmem:[#allocation2 + $0xb0] sm:$0xff] }
 0x134   : > { %v929_v18 = vpop.permute.xlu1 %928  ;;  %1599 = vmatprep.subr.bf16.mxu0 %v1127_v25  ;;  %v1070_v25 = vld [vmem:[#allocation2 + $0x160] sm:$0xff] }
 0x135   : > { %1702 = vmatpush1.bf16.msra.mxu1 %v1104_v11  ;;  %v913_v7 = vpop.permute.xlu0 %912  ;;  %v1083_v11 = vld [vmem:[#allocation2 + $0x1c8] sm:$0xff] }
 0x136   : > { %1703 = vmatprep.subr.bf16.mxu1 %v2891_v20  ;;  %v3215_v13 = vsel %vm642_vm9, %v913_v7, %v915_v6  ;;  %v1071_v6 = vld [vmem:[#allocation2 + $0x168] sm:$0xff]  ;;  %v1073_v7 = vld [vmem:[#allocation2 + $0x178] sm:$0xff] }
 0x137   : > { %1600 = vmatpush1.bf16.msra.mxu0 %v1126_v30  ;;  %v1082_v30 = vld [vmem:[#allocation2 + $0x1c0] sm:$0xff] }
 0x138   : > { %v801_v12 = vpop.permute.xlu1 %800  ;;  %1601 = vmatprep.subr.bf16.mxu0 %v1139_v28  ;;  %v1060_v28 = vld [vmem:[#allocation2 + $0x110] sm:$0xff] }
 0x139   : > { %v3219_v4 = vsel %vm671_vm10, %v3137_v1, %v801_v12  ;;  %809 = vst.msk [vmem:[#allocation2 + $0x928] sm:$0xff] %vm319_vm1, %v801_v12  ;;  %999 = vst.msk [vmem:[#allocation2 + $0x778] sm:$0xff] %vm319_vm1, %v801_v12  ;;  %1704 = vmatpush1.bf16.msra.mxu1 %v2882_v16  ;;  %v1151_v1 = vld [vmem:[#allocation2 + $0x3e8] sm:$0xff]  ;;  %v1150_v16 = vld [vmem:[#allocation2 + $0x3e0] sm:$0xff] }
 0x13a   : > { %v931_v10 = vpop.permute.xlu0 %930  ;;  %1705 = vmatprep.subr.bf16.mxu1 %v2912_v23  ;;  %v1095_v12 = vld [vmem:[#allocation2 + $0x228] sm:$0xff] }
 0x13b   : > { %v3226_v42 = vsel %vm671_vm10, %v929_v18, %v931_v10  ;;  %939 = vst.msk [vmem:[#allocation2 + $0x940] sm:$0xff] %vm319_vm1, %v931_v10  ;;  %1011 = vst.msk [vmem:[#allocation2 + $0x8f8] sm:$0xff] %vm319_vm1, %v931_v10  ;;  %1602 = vmatpush1.bf16.msra.mxu0 %v3155_v22  ;;  %v1072_v10 = vld [vmem:[#allocation2 + $0x170] sm:$0xff] }
 0x13c   : > { %1603 = vmatprep.subr.bf16.mxu0 %v1151_v1  ;;  %v1085_v1 = vld [vmem:[#allocation2 + $0x1d8] sm:$0xff] }
 0x13d   : > { %1706 = vmatpush1.bf16.msra.mxu1 %v2909_v9  ;;  %v1187_v9 = vld [vmem:[#allocation2 + $0x508] sm:$0xff] }
 0x13e   : > { %v927_v50 = vpop.permute.xlu0 %926  ;;  %1707 = vmatprep.subr.bf16.mxu1 %v2933_v8 }
 0x13f   : > { %v3234_v0 = vsel %vm671_vm10, %v927_v50, %v929_v18  ;;  %1604 = vmatpush1.bf16.msra.mxu0 %v1150_v16  ;;  %v1061_v18 = vld [vmem:[#allocation2 + $0x118] sm:$0xff]  ;;  %v1094_v50 = vld [vmem:[#allocation2 + $0x220] sm:$0xff]  ;;  %v1107_v16 = vld [vmem:[#allocation2 + $0x288] sm:$0xff] }
 0x140   : > { %1605 = vmatprep.subr.bf16.mxu0 %v1163_v52  ;;  %v1097_v52 = vld [vmem:[#allocation2 + $0x238] sm:$0xff] }
 0x141   : > { %1708 = vmatpush1.bf16.msra.mxu1 %v2924_v27 }
 0x142   : > { %1709 = vmatprep.subr.bf16.mxu1 %v2951_v33  ;;  %v1015_v27 = vpop.permute.xlu0 %1014  ;;  %v1223_v33 = vld [vmem:[#allocation2 + $0x628] sm:$0xff] }
 0x143   : > { %1606 = vmatpush1.bf16.msra.mxu0 %v2891_v20  ;;  %v1211_v20 = vld [vmem:[#allocation2 + $0x5c8] sm:$0xff] }
 0x144   : > { %1607 = vmatprep.subr.bf16.mxu0 %v1175_v59  ;;  %v1106_v59 = vld [vmem:[#allocation2 + $0x280] sm:$0xff] }
 0x145   : > { %1710 = vmatpush1.bf16.msra.mxu1 %v2957_v34 }
 0x146   : > { %1711 = vmatprep.subr.bf16.mxu1 %v2977_v43 }
 0x147   : > { %1608 = vmatpush1.bf16.msra.mxu0 %v2912_v23  ;;  %v1013_v23 = vpop.permute.xlu1 %1012 }
 0x148   : > { %1609 = vmatprep.subr.bf16.mxu0 %v1187_v9  ;;  %v1096_v9 = vld [vmem:[#allocation2 + $0x230] sm:$0xff] }
 0x149   : > { %1712 = vmatpush1.bf16.msra.mxu1 %v2965_v38 }
 0x14a   : > { %1713 = vmatprep.subr.bf16.mxu1 %v3001_v48 }
 0x14b   : > { %1610 = vmatpush1.bf16.msra.mxu0 %v2933_v8  ;;  %v3252_v8 = vsel %vm671_vm10, %v1013_v23, %v1015_v27  ;;  %v1017_v34 = vpop.permute.xlu1 %1016  ;;  %v1131_v23 = vld [vmem:[#allocation2 + $0x348] sm:$0xff] }
 0x14c   : > { %1611 = vmatprep.subr.bf16.mxu0 %v1199_v2  ;;  %v3258_v38 = vsel %vm671_vm10, %v1015_v27, %v1017_v34  ;;  %1025 = vst.msk [vmem:[#allocation2 + $0x958] sm:$0xff] %vm319_vm1, %v1017_v34  ;;  %v1109_v2 = vld [vmem:[#allocation2 + $0x298] sm:$0xff]  ;;  %v1108_v27 = vld [vmem:[#allocation2 + $0x290] sm:$0xff]  ;;  %v1130_v34 = vld [vmem:[#allocation2 + $0x340] sm:$0xff] }
 0x14d   : > { %1714 = vmatpush1.bf16.msra.mxu1 %v2998_v47  ;;  %v1247_v47 = vld [vmem:[#allocation2 + $0x6e8] sm:$0xff] }
 0x14e   : > { %1715 = vmatprep.subr.bf16.mxu1 %v3024_v58 }
 0x14f   : > { %1612 = vmatpush1.bf16.msra.mxu0 %v3149_v35 }
 0x150   : > { %1613 = vmatprep.subr.bf16.mxu0 %v1211_v20  ;;  %v1118_v20 = vld [vmem:[#allocation2 + $0x2e0] sm:$0xff] }
 0x151   : > { %1716 = vmatpush1.bf16.msra.mxu1 %v3016_v53  ;;  %v1259_v53 = vld [vmem:[#allocation2 + $0x748] sm:$0xff] }
 0x152   : > { %1717 = vmatprep.subr.bf16.mxu1 %v3043_v62 }
 0x153   : > { %1614 = vmatpush1.bf16.msra.mxu0 %v2977_v43  ;;  %v1235_v43 = vld [vmem:[#allocation2 + $0x688] sm:$0xff] }
 0x154   : > { %1636 = vmatprep.subr.bf16.mxu0 %v1223_v33  ;;  %v1121_v33 = vld [vmem:[#allocation2 + $0x2f8] sm:$0xff] }
 0x155   : > { %1718 = vmatpush1.bf16.msra.mxu1 %v3040_v61  ;;  %v1034_v61 = vld [vmem:[#allocation2 + $0x40] sm:$0xff] }
 0x156   : > { %1719 = vmatprep.subr.bf16.mxu1 %v3057_v15  ;;  %1616 = vmatmul.mubr.bf16.vlgmr.msra.gmra.mrb[8].mxu0 %v2962_v37  ;;  %v1037_v15 = vld [vmem:[#allocation2 + $0x58] sm:$0xff] }
 0x157   : > { %1637 = vmatpush1.bf16.msra.mxu0 %v3001_v48  ;;  %1625 = vmatprep.mubr.bf16.mxu0 %v2971_v39  ;;  %v1295_v48 = vld [vmem:[#allocation2 + $0x868] sm:$0xff] }
 0x158   : > { %1638 = vmatprep.subr.bf16.mxu0 %v1235_v43  ;;  %v1120_v43 = vld [vmem:[#allocation2 + $0x2f0] sm:$0xff] }
 0x159   : > { %1720 = vmatpush1.bf16.msra.mxu1 %v3074_v26  ;;  %v1046_v26 = vld [vmem:[#allocation2 + $0xa0] sm:$0xff] }
 0x15a   : > { %1742 = vmatprep.subr.bf16.mxu1 %v3066_v24 }
 0x15b   : > { %1639 = vmatpush1.bf16.msra.mxu0 %v3024_v58  ;;  %v1035_v58 = vld [vmem:[#allocation2 + $0x48] sm:$0xff] }
 0x15c   : > { %1722 = vmatmul.mubr.bf16.vlgmr.msra.gmra.mrb[8].mxu1 %v2962_v37  ;;  %1640 = vmatprep.subr.bf16.mxu0 %v1247_v47  ;;  %v1271_v37 = vld [vmem:[#allocation2 + $0x7a8] sm:$0xff]  ;;  %v1133_v47 = vld [vmem:[#allocation2 + $0x358] sm:$0xff] }
 0x15d   : > { %1743 = vmatpush1.bf16.msra.mxu1 %v3061_v19  ;;  %1731 = vmatprep.mubr.bf16.mxu1 %v2971_v39  ;;  %v1283_v39 = vld [vmem:[#allocation2 + $0x808] sm:$0xff]  ;;  %v180_v19 = vld [vmem:[%s3429_s2] sm:$0xff] }
 0x15e   : > { %1744 = vmatprep.subr.bf16.mxu1 %v3085_v32  ;;  %1626 = vmatmul.mubr.bf16.gmra.mrb[12].mxu0 %v2995_v46 }
 0x15f   : > { %1641 = vmatpush1.bf16.msra.mxu0 %v3043_v62  ;;  %2209 = vmatprep.mubr.msk.bf16.mxu0 %vm1364_vm7, %v3007_v49  ;;  %v1047_v62 = vld [vmem:[#allocation2 + $0xa8] sm:$0xff] }
 0x160   : > { %1642 = vmatprep.subr.bf16.mxu0 %v1259_v53  ;;  %2045 = vperm.xlu0 %2302, %v180_v19   ;;  %v1142_v53 = vld [vmem:[#allocation2 + $0x3a0] sm:$0xff]  ;;  %v1169_v19 = vld [vmem:[#allocation2 + $0x478] sm:$0xff] }
 0x161   : > { %1745 = vmatpush1.bf16.msra.mxu1 %v3079_v29  ;;  %v1036_v29 = vld [vmem:[#allocation2 + $0x50] sm:$0xff] }
 0x162   : > { %1746 = vmatprep.subr.bf16.mxu1 %v3102_v40 }
 0x163   : > { %1643 = vmatpush1.bf16.msra.mxu0 %v3167_v55 }
 0x164   : > { %1644 = vmatprep.subr.bf16.mxu0 %v1271_v37  ;;  %1732 = vmatmul.mubr.bf16.gmra.mrb[12].mxu1 %v2995_v46  ;;  %v1307_v46 = vld [vmem:[#allocation2 + $0x8c8] sm:$0xff] }
 0x165   : > { %1747 = vmatpush1.bf16.msra.mxu1 %v3099_v36  ;;  %2211 = vmatprep.mubr.msk.bf16.mxu1 %vm1364_vm7, %v3007_v49  ;;  %v1319_v49 = vld [vmem:[#allocation2 + $0x928] sm:$0xff]  ;;  %v1049_v36 = vld [vmem:[#allocation2 + $0xb8] sm:$0xff] }
 0x166   : > { %1748 = vmatprep.subr.bf16.mxu1 %v3114_v54  ;;  %v1155_v37 = vld [vmem:[#allocation2 + $0x408] sm:$0xff] }
 0x167   : > { %1645 = vmatpush1.bf16.msra.mxu0 %v3066_v24  ;;  %v181_v24 = vld [vmem:[%s3429_s2 + $0x8] sm:$0xff] }
 0x168   : > { %1646 = vmatprep.subr.bf16.mxu0 %v1283_v39  ;;  %2050 = vperm.xlu1 %2303, %v181_v24   ;;  %v1132_v39 = vld [vmem:[#allocation2 + $0x350] sm:$0xff]  ;;  %v1178_v24 = vld [vmem:[#allocation2 + $0x4c0] sm:$0xff] }
 0x169   : > { %1749 = vmatpush1.bf16.msra.mxu1 %v3110_v45 }
 0x16a   : > { %1750 = vmatprep.subr.bf16.mxu1 %v3184_v56  ;;  %v183_v56 = vld [vmem:[%s3429_s2 + $0x18] sm:$0xff] }
 0x16b   : > { %1647 = vmatpush1.bf16.msra.mxu0 %v3085_v32  ;;  %v1059_v32 = vld [vmem:[#allocation2 + $0x108] sm:$0xff]  ;;  %2060 = vperm.xlu0 %2302, %v183_v56   ;;  %v1202_v56 = vld [vmem:[#allocation2 + $0x580] sm:$0xff] }
 0x16c   : > { %1648 = vmatprep.subr.bf16.mxu0 %v1295_v48  ;;  %v1145_v48 = vld [vmem:[#allocation2 + $0x3b8] sm:$0xff] }
 0x16d   : > { %1751 = vmatpush1.bf16.msra.mxu1 %v3181_v44  ;;  %v1058_v44 = vld [vmem:[#allocation2 + $0x100] sm:$0xff] }
 0x16e   : > { %1752 = vmatprep.subr.bf16.mxu1 %v3191_v21 }
 0x16f   : > { %1649 = vmatpush1.bf16.msra.mxu0 %v3102_v40  ;;  %v182_v40 = vld [vmem:[%s3429_s2 + $0x10] sm:$0xff] }
 0x170   : > { %1650 = vmatprep.subr.bf16.mxu0 %v1307_v46  ;;  %2055 = vperm.xlu1 %2303, %v182_v40   ;;  %v1154_v46 = vld [vmem:[#allocation2 + $0x400] sm:$0xff]  ;;  %v1180_v40 = vld [vmem:[#allocation2 + $0x4d0] sm:$0xff] }
 0x171   : > { %1753 = vmatpush1.bf16.msra.mxu1 %v3196_v31 }
 0x172   : > { %1754 = vmatprep.subr.bf16.mxu1 %v3202_v51 }
 0x173   : > { %1651 = vmatpush1.bf16.msra.mxu0 %v3114_v54 }
 0x174   : > { %1652 = vmatprep.subr.bf16.mxu0 %v1319_v49  ;;  %v1167_v49 = vld [vmem:[#allocation2 + $0x468] sm:$0xff] }
 0x175   : > { %1755 = vmatpush1.bf16.msra.mxu1 %v3199_v41 }
 0x176   : > { %1756 = vmatprep.subr.bf16.mxu1 %v3211_v17 }
 0x177   : > { %1653 = vmatpush1.bf16.msra.mxu0 %v3219_v4 }
 0x178   : > { %1795 = vmatprep.subr.bf16.mxu0 %v1035_v58  ;;  %v1157_v58 = vld [vmem:[#allocation2 + $0x418] sm:$0xff] }
 0x179   : > { %1757 = vmatpush1.bf16.msra.mxu1 %v3215_v13 }
 0x17a   : > { %1758 = vmatprep.subr.bf16.mxu1 %v3226_v42  ;;  %1669 = vmatmul.mubr.bf16.vlgmr.msra.gmra.mrb[8].mxu0 %v3124_v57 }
 0x17b   : > { %1796 = vmatpush1.bf16.msra.mxu0 %v1034_v61  ;;  %2210 = vmatprep.mubr.msk.bf16.mxu0 %vm1364_vm7, %v3130_v60  ;;  %v1166_v61 = vld [vmem:[#allocation2 + $0x460] sm:$0xff] }
 0x17c   : > { %1797 = vmatprep.subr.bf16.mxu0 %v1047_v62  ;;  %v1179_v62 = vld [vmem:[#allocation2 + $0x4c8] sm:$0xff] }
 0x17d   : > { %1759 = vmatpush1.bf16.msra.mxu1 %v3234_v0 }
 0x17e   : > { %1901 = vmatprep.subr.bf16.mxu1 %v1037_v15  ;;  %v1156_v15 = vld [vmem:[#allocation2 + $0x410] sm:$0xff] }
 0x17f   : > { %1798 = vmatpush1.bf16.msra.mxu0 %v1046_v26  ;;  %v1191_v26 = vld [vmem:[#allocation2 + $0x528] sm:$0xff] }
 0x180   : > { %1775 = vmatmul.mubr.bf16.vlgmr.msra.gmra.mrb[8].mxu1 %v3124_v57  ;;  %1799 = vmatprep.subr.bf16.mxu0 %v1059_v32  ;;  %v1181_v32 = vld [vmem:[#allocation2 + $0x4d8] sm:$0xff] }
 0x181   : > { %1902 = vmatpush1.bf16.msra.mxu1 %v1036_v29  ;;  %2212 = vmatprep.mubr.msk.bf16.mxu1 %vm1364_vm7, %v3130_v60  ;;  %v1168_v29 = vld [vmem:[#allocation2 + $0x470] sm:$0xff] }
 0x182   : > { %1903 = vmatprep.subr.bf16.mxu1 %v1049_v36  ;;  %1679 = vmatmul.mubr.bf16.gmra.mrb[12].mxu0 %v3162_v5  ;;  %v1190_v36 = vld [vmem:[#allocation2 + $0x520] sm:$0xff] }
 0x183   : > { %1800 = vmatpush1.bf16.msra.mxu0 %v1058_v44  ;;  %1827 = vmatprep.mubr.bf16.mxu0 %v3177_v63  ;;  %v1193_v44 = vld [vmem:[#allocation2 + $0x538] sm:$0xff] }
 0x184   : > { %1801 = vmatprep.subr.bf16.mxu0 %v1071_v6  ;;  %v1215_v6 = vld [vmem:[#allocation2 + $0x5e8] sm:$0xff] }
 0x185   : > { %1904 = vmatpush1.bf16.msra.mxu1 %v1048_v14  ;;  %v1192_v14 = vld [vmem:[#allocation2 + $0x530] sm:$0xff] }
 0x186   : > { %1905 = vmatprep.subr.bf16.mxu1 %v1061_v18  ;;  %v1205_v18 = vld [vmem:[#allocation2 + $0x598] sm:$0xff] }
 0x187   : > { %1802 = vmatpush1.bf16.msra.mxu0 %v1070_v25  ;;  %v1214_v25 = vld [vmem:[#allocation2 + $0x5e0] sm:$0xff] }
 0x188   : > { %1785 = vmatmul.mubr.bf16.gmra.mrb[12].mxu1 %v3162_v5  ;;  %1803 = vmatprep.subr.bf16.mxu0 %v1083_v11  ;;  %v1227_v11 = vld [vmem:[#allocation2 + $0x648] sm:$0xff] }
 0x189   : > { %1906 = vmatpush1.bf16.msra.mxu1 %v1060_v28  ;;  %1933 = vmatprep.mubr.bf16.mxu1 %v3177_v63  ;;  %v1119_v63 = vld [vmem:[#allocation2 + $0x2e8] sm:$0xff]  ;;  %v1217_v28 = vld [vmem:[#allocation2 + $0x5f8] sm:$0xff] }
 0x18a   : > { %1907 = vmatprep.subr.bf16.mxu1 %v1073_v7  ;;  %v2333_v7 = vld [vmem:[%s3428_s1] ss:$16 sps:$4 sm:$0xff]  }
 0x18b   : > { %1804 = vmatpush1.bf16.msra.mxu0 %v1082_v30  ;;  %v1226_v30 = vld [vmem:[#allocation2 + $0x640] sm:$0xff] }
 0x18c   : > { %1805 = vmatprep.subr.bf16.mxu0 %v1095_v12  ;;  %v1239_v12 = vld [vmem:[#allocation2 + $0x6a8] sm:$0xff] }
 0x18d   : > { %1908 = vmatpush1.bf16.msra.mxu1 %v1072_v10  ;;  %v2334_v10 = vld [vmem:[%s3428_s1 + $0x24] ss:$16 sps:$4 sm:$0xff]  }
 0x18e   : > { %1909 = vmatprep.subr.bf16.mxu1 %v1085_v1  ;;  %v1216_v1 = vld [vmem:[#allocation2 + $0x5f0] sm:$0xff] }
 0x18f   : > { %1806 = vmatpush1.bf16.msra.mxu0 %v1094_v50  ;;  %v1229_v50 = vld [vmem:[#allocation2 + $0x658] sm:$0xff] }
 0x190   : > { %1807 = vmatprep.subr.bf16.mxu0 %v1107_v16  ;;  %v1228_v16 = vld [vmem:[#allocation2 + $0x650] sm:$0xff] }
 0x191   : > { %1910 = vmatpush1.bf16.msra.mxu1 %v3155_v22  ;;  %v1143_v22 = vld [vmem:[#allocation2 + $0x3a8] sm:$0xff] }
 0x192   : > { %1911 = vmatprep.subr.bf16.mxu1 %v1097_v52  ;;  %v1241_v52 = vld [vmem:[#allocation2 + $0x6b8] sm:$0xff] }
 0x193   : > { %1808 = vmatpush1.bf16.msra.mxu0 %v1106_v59  ;;  %v1250_v59 = vld [vmem:[#allocation2 + $0x700] sm:$0xff] }
 0x194   : > { %1809 = vmatprep.subr.bf16.mxu0 %v1119_v63  ;;  %v2335_v63 = vld [vmem:[%s3428_s1 + $0x20] ss:$16 sps:$4 sm:$0xff]  }
 0x195   : > { %1912 = vmatpush1.bf16.msra.mxu1 %v1096_v9  ;;  %v2336_v9 = vld [vmem:[%s3428_s1 + $0xc] ss:$16 sps:$4 sm:$0xff]  }
 0x196   : > { %1913 = vmatprep.subr.bf16.mxu1 %v1109_v2  ;;  %v1240_v2 = vld [vmem:[#allocation2 + $0x6b0] sm:$0xff] }
 0x197   : > { %1810 = vmatpush1.bf16.msra.mxu0 %v1118_v20  ;;  %v1262_v20 = vld [vmem:[#allocation2 + $0x760] sm:$0xff] }
 0x198   : > { %1811 = vmatprep.subr.bf16.mxu0 %v1131_v23  ;;  %v1265_v23 = vld [vmem:[#allocation2 + $0x778] sm:$0xff] }
 0x199   : > { %1914 = vmatpush1.bf16.msra.mxu1 %v1108_v27  ;;  %v1274_v27 = vld [vmem:[#allocation2 + $0x7c0] sm:$0xff] }
 0x19a   : > { %1915 = vmatprep.subr.bf16.mxu1 %v1121_v33  ;;  %v1286_v33 = vld [vmem:[#allocation2 + $0x820] sm:$0xff] }
 0x19b   : > { %1812 = vmatpush1.bf16.msra.mxu0 %v1130_v34  ;;  %v1301_v34 = vld [vmem:[#allocation2 + $0x898] sm:$0xff] }
 0x19c   : > { %1813 = vmatprep.subr.bf16.mxu0 %v1143_v22 }
 0x19d   : > { %1916 = vmatpush1.bf16.msra.mxu1 %v1120_v43 }
 0x19e   : > { %1917 = vmatprep.subr.bf16.mxu1 %v1133_v47 }
 0x19f   : > { %1814 = vmatpush1.bf16.msra.mxu0 %v1142_v53 }
 0x1a0   : > { %1815 = vmatprep.subr.bf16.mxu0 %v1155_v37 }
 0x1a1   : > { %1918 = vmatpush1.bf16.msra.mxu1 %v1132_v39 }
 0x1a2   : > { %1919 = vmatprep.subr.bf16.mxu1 %v1145_v48 }
 0x1a3   : > { %1816 = vmatpush1.bf16.msra.mxu0 %v1154_v46 }
 0x1a4   : > { %1817 = vmatprep.subr.bf16.mxu0 %v1167_v49 }
 0x1a5   : > { %1920 = vmatpush1.bf16.msra.mxu1 %v3149_v35  ;;  %v1203_v35 = vld [vmem:[#allocation2 + $0x588] sm:$0xff] }
 0x1a6   : > { %1921 = vmatprep.subr.bf16.mxu1 %v1157_v58 }
 0x1a7   : > { %1818 = vmatpush1.bf16.msra.mxu0 %v1166_v61 }
 0x1a8   : > { %1819 = vmatprep.subr.bf16.mxu0 %v1179_v62 }
 0x1a9   : > { %1922 = vmatpush1.bf16.msra.mxu1 %v1156_v15 }
 0x1aa   : > { %1923 = vmatprep.subr.bf16.mxu1 %v1169_v19 }
 0x1ab   : > { %1820 = vmatpush1.bf16.msra.mxu0 %v1178_v24 }
 0x1ac   : > { %1821 = vmatprep.subr.bf16.mxu0 %v1191_v26 }
 0x1ad   : > { %1924 = vmatpush1.bf16.msra.mxu1 %v1168_v29 }
 0x1ae   : > { %1925 = vmatprep.subr.bf16.mxu1 %v1181_v32 }
 0x1af   : > { %1822 = vmatpush1.bf16.msra.mxu0 %v1190_v36 }
 0x1b0   : > { %1823 = vmatprep.subr.bf16.mxu0 %v1203_v35 }
 0x1b1   : > { %1926 = vmatpush1.bf16.msra.mxu1 %v1180_v40 }
 0x1b2   : > { %1927 = vmatprep.subr.bf16.mxu1 %v1193_v44 }
 0x1b3   : > { %1824 = vmatpush1.bf16.msra.mxu0 %v1202_v56 }
 0x1b4   : > { %1825 = vmatprep.subr.bf16.mxu0 %v1215_v6 }
 0x1b5   : > { %1928 = vmatpush1.bf16.msra.mxu1 %v1192_v14 }
 0x1b6   : > { %1929 = vmatprep.subr.bf16.mxu1 %v1205_v18 }
 0x1b7   : > { %1826 = vmatpush1.bf16.msra.mxu0 %v1214_v25 }
 0x1b8   : > { %1848 = vmatprep.subr.bf16.mxu0 %v1227_v11 }
 0x1b9   : > { %1930 = vmatpush1.bf16.msra.mxu1 %v3167_v55  ;;  %v1238_v55 = vld [vmem:[#allocation2 + $0x6a0] sm:$0xff] }
 0x1ba   : > { %1931 = vmatprep.subr.bf16.mxu1 %v1217_v28  ;;  %1828 = vmatmul.mubr.bf16.vlgmr.msra.gmra.mrb[16].mxu0 %v2333_v7 }
 0x1bb   : > { %1849 = vmatpush1.bf16.msra.mxu0 %v1226_v30  ;;  %1837 = vmatprep.mubr.bf16.mxu0 %v2334_v10 }
 0x1bc   : > { %1850 = vmatprep.subr.bf16.mxu0 %v1239_v12 }
 0x1bd   : > { %1932 = vmatpush1.bf16.msra.mxu1 %v1216_v1 }
 0x1be   : > { %1954 = vmatprep.subr.bf16.mxu1 %v1229_v50 }
 0x1bf   : > { %1851 = vmatpush1.bf16.msra.mxu0 %v1238_v55 }
 0x1c0   : > { %1934 = vmatmul.mubr.bf16.vlgmr.msra.gmra.mrb[16].mxu1 %v2333_v7  ;;  %1852 = vmatprep.subr.bf16.mxu0 %v3110_v45  ;;  %v1253_v45 = vld [vmem:[#allocation2 + $0x718] sm:$0xff] }
 0x1c1   : > { %1955 = vmatpush1.bf16.msra.mxu1 %v1228_v16  ;;  %1943 = vmatprep.mubr.bf16.mxu1 %v2334_v10 }
 0x1c2   : > { %1956 = vmatprep.subr.bf16.mxu1 %v1241_v52  ;;  %1838 = vmatmul.mubr.bf16.gmra.mrb[20].mxu0 %v2335_v63 }
 0x1c3   : > { %1853 = vmatpush1.bf16.msra.mxu0 %v1250_v59  ;;  %2213 = vmatprep.mubr.msk.bf16.mxu0 %vm1364_vm7, %v2336_v9 }
 0x1c4   : > { %1854 = vmatprep.subr.bf16.mxu0 %v3141_v3  ;;  %v1277_v3 = vld [vmem:[#allocation2 + $0x7d8] sm:$0xff] }
 0x1c5   : > { %1957 = vmatpush1.bf16.msra.mxu1 %v1240_v2 }
 0x1c6   : > { %1958 = vmatprep.subr.bf16.mxu1 %v1253_v45 }
 0x1c7   : > { %1855 = vmatpush1.bf16.msra.mxu0 %v1262_v20 }
 0x1c8   : > { %1856 = vmatprep.subr.bf16.mxu0 %v3196_v31  ;;  %1944 = vmatmul.mubr.bf16.gmra.mrb[20].mxu1 %v2335_v63  ;;  %v1289_v31 = vld [vmem:[#allocation2 + $0x838] sm:$0xff] }
 0x1c9   : > { %1959 = vmatpush1.bf16.msra.mxu1 %v3114_v54  ;;  %2215 = vmatprep.mubr.msk.bf16.mxu1 %vm1364_vm7, %v2336_v9  ;;  %v1298_v54 = vld [vmem:[#allocation2 + $0x880] sm:$0xff] }
 0x1ca   : > { %1960 = vmatprep.subr.bf16.mxu1 %v1265_v23 }
 0x1cb   : > { %1857 = vmatpush1.bf16.msra.mxu0 %v1274_v27 }
 0x1cc   : > { %1858 = vmatprep.subr.bf16.mxu0 %v3199_v41  ;;  %v1310_v41 = vld [vmem:[#allocation2 + $0x8e0] sm:$0xff] }
 0x1cd   : > { %1961 = vmatpush1.bf16.msra.mxu1 %v3219_v4  ;;  %v1313_v4 = vld [vmem:[#allocation2 + $0x8f8] sm:$0xff] }
 0x1ce   : > { %1962 = vmatprep.subr.bf16.mxu1 %v1277_v3 }
 0x1cf   : > { %1859 = vmatpush1.bf16.msra.mxu0 %v1286_v33 }
 0x1d0   : > { %1860 = vmatprep.subr.bf16.mxu0 %v3215_v13  ;;  %v1322_v13 = vld [vmem:[#allocation2 + $0x940] sm:$0xff] }
 0x1d1   : > { %1963 = vmatpush1.bf16.msra.mxu1 %v3191_v21  ;;  %v1325_v21 = vld [vmem:[#allocation2 + $0x958] sm:$0xff] }
 0x1d2   : > { %1964 = vmatprep.subr.bf16.mxu1 %v1289_v31 }
 0x1d3   : > { %1861 = vmatpush1.bf16.msra.mxu0 %v1298_v54 }
 0x1d4   : > { %1862 = vmatprep.subr.bf16.mxu0 %v3234_v0 }
 0x1d5   : > { %1965 = vmatpush1.bf16.msra.mxu1 %v3202_v51 }
 0x1d6   : > { %1966 = vmatprep.subr.bf16.mxu1 %v1301_v34 }
 0x1d7   : > { %1863 = vmatpush1.bf16.msra.mxu0 %v1310_v41 }
 0x1d8   : > { %1864 = vmatprep.subr.bf16.mxu0 %v3252_v8 }
 0x1d9   : > { %1967 = vmatpush1.bf16.msra.mxu1 %v3211_v17 }
 0x1da   : > { %1968 = vmatprep.subr.bf16.mxu1 %v1313_v4 }
 0x1db   : > { %1865 = vmatpush1.bf16.msra.mxu0 %v1322_v13 }
 0x1dd   : > { %1969 = vmatpush1.bf16.msra.mxu1 %v3226_v42 }
 0x1de   : > { %1881 = vmatmul.mubr.bf16.vlgmr.msra.gmra.mrb[16].mxu0 %v3124_v57  ;;  %1970 = vmatprep.subr.bf16.mxu1 %v1325_v21 }
 0x1df   : > { %2214 = vmatprep.mubr.msk.bf16.mxu0 %vm1364_vm7, %v3130_v60  ;;  %v2046_v3 = vpop.permute.xlu0 %2045 }
 0x1e1   : > { %1971 = vmatpush1.bf16.msra.mxu1 %v3258_v38 }
 0x1e4   : > { %1987 = vmatmul.mubr.bf16.vlgmr.msra.gmra.mrb[16].mxu1 %v3124_v57 }
 0x1e5   : > { %2216 = vmatprep.mubr.msk.bf16.mxu1 %vm1364_vm7, %v3130_v60 }
 0x1e6   : > { %1891 = vmatmul.mubr.bf16.gmra.mrb[20].mxu0 %v3162_v5 }
 0x1e9   : > { %v1458_v51 = vpop.f32.mrb[0].mxu0 }
 0x1ea   : > { %v1460_v17 = vpop.f32.mrb[1].mxu0 }
 0x1eb   : > { %v1462_v0 = vpop.f32.mrb[2].mxu0 }
 0x1ec   : > { %1997 = vmatmul.mubr.bf16.gmra.mrb[20].mxu1 %v3162_v5  ;;  %v3359_v42 = vpop.f32.mrb[3].mxu0 }
 0x1ef   : > { %v1564_v8 = vpop.f32.mrb[0].mxu1 }
 0x1f0   : > { %v1566_v22 = vpop.f32.mrb[1].mxu1 }
 0x1f1   : > { %v2007_v43 = vmax.f32 %v1458_v51, %v1566_v22  ;;  %v3361_v47 = vpop.f32.mrb[2].mxu1  ;;  %v3363_v38 = vpop.f32.mrb[4].mxu0 }
 0x1f2   : > { %v1570_v57 = vpop.f32.mrb[3].mxu1  ;;  %v3365_v53 = vpop.f32.mrb[5].mxu0 }
 0x1f3   : > { %v2010_v60 = vmax.f32 %v1462_v0, %v1570_v57  ;;  %v3367_v37 = vpop.f32.mrb[6].mxu0  ;;  %v2051_v51 = vpop.permute.xlu1 %2050 }
 0x1f4   : > { %v3369_v39 = vpop.f32.mrb[7].mxu0 }
 0x1f7   : > { %v3371_v48 = vpop.f32.mrb[4].mxu1 }
 0x1f8   : > { %v1576_v5 = vpop.f32.mrb[5].mxu1 }
 0x1f9   : > { %v2013_v46 = vmax.f32 %v3363_v38, %v1576_v5  ;;  %v3374_v49 = vpop.f32.mrb[6].mxu1 }
 0x1fa   : > { %v3376_v58 = vpop.f32.mrb[7].mxu1 }
 0x1fb   : > { %v2016_v61 = vmax.f32 %v3367_v37, %v3376_v58 }
 0x24d   : > { %v1670_v62 = vpop.f32.mrb[8].mxu0 }
 0x24e   : > { %v2008_v15 = vmax.f32 %v1460_v17, %v1670_v62  ;;  %v1672_v19 = vpop.f32.mrb[9].mxu0 }
 0x24f   : > { %v2009_v24 = vmax.f32 %v1564_v8, %v1672_v19  ;;  %v1674_v26 = vpop.f32.mrb[10].mxu0 }
 0x250   : > { %v2011_v29 = vmax.f32 %v3359_v42, %v1674_v26  ;;  %v1676_v32 = vpop.f32.mrb[11].mxu0 }
 0x251   : > { %v2012_v36 = vmax.f32 %v3361_v47, %v1676_v32 }
 0x253   : > { %v1776_v35 = vpop.f32.mrb[8].mxu1 }
 0x254   : > { %v1778_v40 = vpop.f32.mrb[9].mxu1 }
 0x255   : > { %v1780_v44 = vpop.f32.mrb[10].mxu1  ;;  %v3382_v56 = vpop.f32.mrb[12].mxu0 }
 0x256   : > { %v1782_v6 = vpop.f32.mrb[11].mxu1  ;;  %v2014_v14 = vmax.f32 %v3365_v53, %v3382_v56  ;;  %v3386_v18 = vpop.f32.mrb[13].mxu0 }
 0x257   : > { %v2015_v25 = vmax.f32 %v3371_v48, %v3386_v18  ;;  %v3390_v11 = vpop.f32.mrb[14].mxu0 }
 0x258   : > { %v2017_v28 = vmax.f32 %v3369_v39, %v3390_v11  ;;  %v3394_v7 = vpop.f32.mrb[15].mxu0 }
 0x259   : > { %v2018_v30 = vmax.f32 %v3374_v49, %v3394_v7 }
 0x25b   : > { %v1786_v12 = vpop.f32.mrb[12].mxu1 }
 0x25c   : > { %v1788_v10 = vpop.f32.mrb[13].mxu1 }
 0x25d   : > { %v1790_v1 = vpop.f32.mrb[14].mxu1 }
 0x25e   : > { %v1792_v50 = vpop.f32.mrb[15].mxu1 }
 0x2b1   : > { %v1882_v55 = vpop.f32.mrb[16].mxu0 }
 0x2b2   : > { %v1884_v16 = vpop.f32.mrb[17].mxu0 }
 0x2b3   : > { %v2019_v52 = vmax.f32 %v1776_v35, %v1884_v16  ;;  %v1886_v59 = vpop.f32.mrb[18].mxu0 }
 0x2b4   : > { %v1888_v63 = vpop.f32.mrb[19].mxu0 }
 0x2b5   : > { %v2031_v9 = vmax.f32 %v2007_v43, %v2019_v52  ;;  %v2022_v2 = vmax.f32 %v1780_v44, %v1888_v63 }
 0x2b7   : > { %v2034_v45 = vmax.f32 %v2010_v60, %v2022_v2  ;;  %v1988_v20 = vpop.f32.mrb[16].mxu1  ;;  %v2063_v8 = vadd.f32 %v2046_v3, %v2031_v9 }
 0x2b8   : > { %v2020_v23 = vmax.f32 %v1778_v40, %v1988_v20  ;;  %v1990_v27 = vpop.f32.mrb[17].mxu1 }
 0x2b9   : > { %v2021_v33 = vmax.f32 %v1882_v55, %v1990_v27  ;;  %v1992_v31 = vpop.f32.mrb[18].mxu1  ;;  %v1892_v54 = vpop.f32.mrb[20].mxu0  ;;  %v2066_v62 = vadd.f32 %v2051_v51, %v2034_v45 }
 0x2ba   : > { %v2032_v34 = vmax.f32 %v2008_v15, %v2020_v23  ;;  %v2023_v41 = vmax.f32 %v1782_v6, %v1992_v31  ;;  %v1994_v4 = vpop.f32.mrb[19].mxu1  ;;  %v1894_v13 = vpop.f32.mrb[21].mxu0 }
 0x2bb   : > { %v2033_v21 = vmax.f32 %v2009_v24, %v2021_v33  ;;  %v2024_v17 = vmax.f32 %v1886_v59, %v1994_v4  ;;  %v2025_v0 = vmax.f32 %v1786_v12, %v1894_v13  ;;  %v1896_v42 = vpop.f32.mrb[22].mxu0 }
 0x2bc   : > { %v2064_v22 = vadd.f32 %v2046_v3, %v2032_v34  ;;  %v2035_v43 = vmax.f32 %v2011_v29, %v2023_v41  ;;  %v1898_v47 = vpop.f32.mrb[23].mxu0 }
 0x2bd   : > { %v2065_v38 = vadd.f32 %v2046_v3, %v2033_v21  ;;  %v2036_v57 = vmax.f32 %v2012_v36, %v2024_v17  ;;  %v2037_v53 = vmax.f32 %v2013_v46, %v2025_v0  ;;  %v2028_v60 = vmax.f32 %v1790_v1, %v1898_v47  ;;  %v2056_v46 = vpop.permute.xlu1 %2055 }
 0x2be   : > { %v2227_v5 = vpack.c.bf16 %v2064_v22, %v2063_v8  ;;  %v2067_v15 = vadd.f32 %v2051_v51, %v2035_v43 }
 0x2bf   : > { %v2228_v19 = vpack.c.bf16 %v2065_v38, %v2065_v38  ;;  %v2068_v24 = vadd.f32 %v2051_v51, %v2036_v57  ;;  %v2040_v26 = vmax.f32 %v2016_v61, %v2028_v60  ;;  %v1998_v29 = vpop.f32.mrb[20].mxu1  ;;  %v2061_v61 = vpop.permute.xlu0 %2060 }
 0x2c0   : > { %2115 = vst [vmem:[%s3402_s14] sm:$0xff] %v2227_v5  ;;  %v2229_v32 = vpack.c.bf16 %v2067_v15, %v2066_v62  ;;  %v2026_v35 = vmax.f32 %v1788_v10, %v1998_v29  ;;  %v2000_v40 = vpop.f32.mrb[21].mxu1  ;;  %v2069_v10 = vadd.f32 %v2056_v46, %v2037_v53 }
 0x2c1   : > { %2116 = vst [vmem:[%s3402_s14 + $0x8] sm:$0xf] %v2228_v19  ;;  %v2230_v36 = vpack.c.bf16 %v2068_v24, %v2068_v24  ;;  %v2027_v44 = vmax.f32 %v1892_v54, %v2000_v40  ;;  %v2002_v56 = vpop.f32.mrb[22].mxu1  ;;  %v2072_v59 = vadd.f32 %v2061_v61, %v2040_v26 }
 0x2c2   : > { %2117 = vst [vmem:[%s3402_s14 + $0xc] sm:$0xff] %v2229_v32  ;;  %v2038_v6 = vmax.f32 %v2014_v14, %v2026_v35  ;;  %v2029_v12 = vmax.f32 %v1792_v50, %v2002_v56  ;;  %v2004_v1 = vpop.f32.mrb[23].mxu1 }
 0x2c3   : > { %2118 = vst [vmem:[%s3402_s14 + $0x14] sm:$0xf] %v2230_v36  ;;  %v2039_v37 = vmax.f32 %v2015_v25, %v2027_v44  ;;  %v2030_v58 = vmax.f32 %v1896_v42, %v2004_v1 }
 0x2c4   : > { %v2070_v55 = vadd.f32 %v2056_v46, %v2038_v6  ;;  %v2041_v16 = vmax.f32 %v2017_v28, %v2029_v12 }
 0x2c5   : > { %v2071_v14 = vadd.f32 %v2056_v46, %v2039_v37  ;;  %v2042_v50 = vmax.f32 %v2018_v30, %v2030_v58 }
 0x2c6   : > { %v2231_v52 = vpack.c.bf16 %v2070_v55, %v2069_v10  ;;  %v2073_v48 = vadd.f32 %v2061_v61, %v2041_v16 }
 0x2c7   : > { %v2232_v18 = vpack.c.bf16 %v2071_v14, %v2071_v14  ;;  %v2074_v25 = vadd.f32 %v2061_v61, %v2042_v50 }
 0x2c8   : > { %2119 = vst [vmem:[%s3402_s14 + $0x18] sm:$0xff] %v2231_v52  ;;  %v2233_v63 = vpack.c.bf16 %v2073_v48, %v2072_v59 }
 0x2c9   : > { %2120 = vst [vmem:[%s3402_s14 + $0x20] sm:$0xf] %v2232_v18  ;;  %v2234_v9 = vpack.c.bf16 %v2074_v25, %v2074_v25 }
 0x2ca   : > { %2121 = vst [vmem:[%s3402_s14 + $0x24] sm:$0xff] %v2233_v63 }
 0x2cb   : > { %2122 = vst [vmem:[%s3402_s14 + $0x2c] sm:$0xf] %v2234_v9 }
 0x2cc PF: > { %s13_s12 = sadd.s32 1, %s2343_s12  }
 0x2cd   : > { %p10_p4 = scmp.ge.s32.totalorder %s13_s12, 4  }
 0x2cf   :  { %12 = sbr.rel (!%p10_p4) target bundleno = 1 (0x1), region = 62 }

// kernel: forward.5
= control target key start
LH: loop header
LB: loop body
LE: loop exit
PB: predicated region body
PF: predicated region fallthrough
CT: control target
= control target key end

     0   :  { %s1852_s12 = smov 0   ;;  %s2657_s0 = inlined_call_operand.vmem [shape: bf16[2,4,32,108], index: 0, kind: input, shape index: {}]   ;;  %s2658_s1 = inlined_call_operand.vmem [shape: bf16[32,800], index: 1, kind: input, shape index: {}]   ;;  %s2659_s2 = inlined_call_operand.vmem [shape: f32[32,1], index: 2, kind: input, shape index: {}]   ;;  %s2660_s3 = inlined_call_operand.vmem [shape: bf16[2,32,128], index: 3, kind: output, shape index: {}]  }
   0x1 LB: > { %s1662_s13 = sadd.s32 4294967295, %s1821_s12   ;;  %p1666_p0 = scmp.ge.s32.totalorder %s1821_s12, 1  ;;  %s1821_s12 = sphi %s1852_s12, %s13_s12  }
   0x2   : > { %p137_p1 = scmp.lt.s32.totalorder %s1821_s12, 3 }
   0x4   : > { %p138_p2 = pnand %p1666_p0, %p137_p1 }
   0x5   : > { %p1862_p3 = scmp.lt.s32.totalorder (!%p138_p2), %s1662_s13, 1  ;;  %vm192_vm0 = vcmask (!%p138_p2), 1048192   ;;  %v1823_v0 = vmov (!%p138_p2), 0   ;;  %vm421_vm1 = vcmask (!%p138_p2), 654336   ;;  %s1824_s19 = smov (!%p138_p2), 127   ;;  %vm1120_vm2 = vcmask (!%p138_p2), 261120  }
   0x6   : > { %141 = sbr.rel (%p138_p2) target bundleno = 577 (0x241), region = 32  ;;  %197 = vst.msk [vmem:[#allocation2 + $0x80] sm:$0xff] (!%p138_p2), %vm192_vm0, %v1823_v0  ;;  %245 = vst.msk [vmem:[#allocation2 + $0x48] sm:$0xff] (!%p138_p2), %vm192_vm0, %v1823_v0  ;;  %1785 = vset.pattern.permute.xlu0 (!%p138_p2), %v1823_v0  ;;  %1786 = vset.pattern.permute.xlu1 (!%p138_p2), %v1823_v0  ;;  %s1825_s20 = smov (!%p138_p2), 126   ;;  %v1797_v17 = vld [vmem:[%s2658_s1 + $0x4] ss:$28 sps:$4 sm:$0xff] (!%p138_p2)  }
   0x7   : > { %193 = vst.msk [vmem:[#allocation2] sm:$0xff] (!%p138_p2), %vm192_vm0, %v1823_v0  ;;  %194 = vst.msk [vmem:[#allocation2 + $0x20] sm:$0xff] (!%p138_p2), %vm192_vm0, %v1823_v0  ;;  %s1826_s21 = smov (!%p138_p2), 118   ;;  %s1827_s22 = smov (!%p138_p2), 117   ;;  %1159 = vmatprep.mubr.bf16.mxu0 (!%p138_p2), %v1797_v17  ;;  %1371 = vmatprep.mubr.bf16.mxu1 (!%p138_p2), %v1797_v17 }
   0x8   : > { %195 = vst.msk [vmem:[#allocation2 + $0x40] sm:$0xff] (!%p138_p2), %vm192_vm0, %v1823_v0  ;;  %196 = vst.msk [vmem:[#allocation2 + $0x60] sm:$0xff] (!%p138_p2), %vm192_vm0, %v1823_v0  ;;  %s1828_s23 = smov (!%p138_p2), 116   ;;  %s1829_s26 = smov (!%p138_p2), 108  }
   0x9   : > { %198 = vst.msk [vmem:[#allocation2 + $0xa0] sm:$0xff] (!%p138_p2), %vm192_vm0, %v1823_v0  ;;  %199 = vst.msk [vmem:[#allocation2 + $0xc0] sm:$0xff] (!%p138_p2), %vm192_vm0, %v1823_v0  ;;  %s1830_s27 = smov (!%p138_p2), 107   ;;  %s1831_s28 = smov (!%p138_p2), 106  }
   0xa   : > { %200 = vst.msk [vmem:[#allocation2 + $0xe0] sm:$0xff] (!%p138_p2), %vm192_vm0, %v1823_v0  ;;  %201 = vst.msk [vmem:[#allocation2 + $0x100] sm:$0xff] (!%p138_p2), %vm192_vm0, %v1823_v0 }
   0xb   : > { %202 = vst.msk [vmem:[#allocation2 + $0x120] sm:$0xff] (!%p138_p2), %vm192_vm0, %v1823_v0  ;;  %203 = vst.msk [vmem:[#allocation2 + $0x140] sm:$0xff] (!%p138_p2), %vm192_vm0, %v1823_v0 }
   0xc   : > { %204 = vst.msk [vmem:[#allocation2 + $0x160] sm:$0xff] (!%p138_p2), %vm192_vm0, %v1823_v0  ;;  %205 = vst.msk [vmem:[#allocation2 + $0x180] sm:$0xff] (!%p138_p2), %vm192_vm0, %v1823_v0 }
   0xd   : > { %206 = vst.msk [vmem:[#allocation2 + $0x1a0] sm:$0xff] %vm192_vm0, %v1823_v0  ;;  %207 = vst.msk [vmem:[#allocation2 + $0x1c0] sm:$0xff] %vm192_vm0, %v1823_v0  ;;  %s2663_s13 = smov (!%p1862_p3, %s1662_s13), 1 }
   0xe   : > { %208 = vst.msk [vmem:[#allocation2 + $0x1e0] sm:$0xff] %vm192_vm0, %v1823_v0  ;;  %209 = vst.msk [vmem:[#allocation2 + $0x200] sm:$0xff] %vm192_vm0, %v1823_v0  ;;  %s1703_s15 = sshll.u32 %s2663_s13, 6  ;;  %s1704_s11 = sshll.u32 %s2663_s13, 4 }
   0xf   : > { %210 = vst.msk [vmem:[#allocation2 + $0x220] sm:$0xff] %vm192_vm0, %v1823_v0  ;;  %211 = vst.msk [vmem:[#allocation2 + $0x240] sm:$0xff] %vm192_vm0, %v1823_v0  ;;  %s165_s18 = scalar_lea.vmem %s2657_s0, %s1703_s15  ;;  %s170_s16 = scalar_lea.vmem %s2660_s3, %s1704_s11 }
  0x10   : > { %212 = vst.msk [vmem:[#allocation2 + $0x260] sm:$0xff] %vm192_vm0, %v1823_v0  ;;  %213 = vst.msk [vmem:[#allocation2 + $0x280] sm:$0xff] %vm192_vm0, %v1823_v0  ;;  %v2278_v1 = vld [vmem:[%s165_s18] sm:$0xff]   ;;  %v2280_v2 = vld [vmem:[%s165_s18 + $0x8] sm:$0xff]  }
  0x11   : > { %214 = vst.msk [vmem:[#allocation2 + $0x2a0] sm:$0xff] %vm192_vm0, %v1823_v0  ;;  %215 = vst.msk [vmem:[#allocation2 + $0x2c0] sm:$0xff] %vm192_vm0, %v1823_v0  ;;  %438 = vrot.lane.b32.xlu0 %v2278_v1, %s1824_s19  ;;  %v2284_v3 = vld [vmem:[%s165_s18 + $0x20] sm:$0xff]   ;;  %440 = vrot.lane.b32.xlu1 %v2280_v2, %s1824_s19  ;;  %v2290_v4 = vld [vmem:[%s165_s18 + $0x28] sm:$0xff]  }
  0x12   : > { %216 = vst.msk [vmem:[#allocation2 + $0x2e0] sm:$0xff] %vm192_vm0, %v1823_v0  ;;  %217 = vst.msk [vmem:[#allocation2 + $0x300] sm:$0xff] %vm192_vm0, %v1823_v0  ;;  %v2294_v5 = vld [vmem:[%s165_s18 + $0x10] sm:$0xff]   ;;  %v2308_v7 = vld [vmem:[%s165_s18 + $0x18] sm:$0xff]  }
  0x13   : > { %218 = vst.msk [vmem:[#allocation2 + $0x320] sm:$0xff] %vm192_vm0, %v1823_v0  ;;  %219 = vst.msk [vmem:[#allocation2 + $0x340] sm:$0xff] %vm192_vm0, %v1823_v0  ;;  %v2300_v6 = vld [vmem:[%s165_s18 + $0x30] sm:$0xff]   ;;  %v2316_v8 = vld [vmem:[%s165_s18 + $0x38] sm:$0xff]  }
  0x14   : > { %220 = vst.msk [vmem:[#allocation2 + $0x360] sm:$0xff] %vm192_vm0, %v1823_v0  ;;  %221 = vst.msk [vmem:[#allocation2 + $0x380] sm:$0xff] %vm192_vm0, %v1823_v0 }
  0x15   : > { %222 = vst.msk [vmem:[#allocation2 + $0x3a0] sm:$0xff] %vm192_vm0, %v1823_v0  ;;  %223 = vst.msk [vmem:[#allocation2 + $0x3c0] sm:$0xff] %vm192_vm0, %v1823_v0  ;;  %490 = vrot.lane.b32.xlu0 %v2284_v3, %s1824_s19  ;;  %492 = vrot.lane.b32.xlu1 %v2290_v4, %s1824_s19 }
  0x16   : > { %224 = vst.msk [vmem:[#allocation2 + $0x3e0] sm:$0xff] %vm192_vm0, %v1823_v0  ;;  %225 = vst.msk [vmem:[#allocation2 + $0x400] sm:$0xff] %vm192_vm0, %v1823_v0 }
  0x17   : > { %226 = vst.msk [vmem:[#allocation2 + $0x420] sm:$0xff] %vm192_vm0, %v1823_v0  ;;  %227 = vst.msk [vmem:[#allocation2 + $0x440] sm:$0xff] %vm192_vm0, %v1823_v0 }
  0x18   : > { %228 = vst.msk [vmem:[#allocation2 + $0x460] sm:$0xff] %vm192_vm0, %v1823_v0  ;;  %229 = vst.msk [vmem:[#allocation2 + $0x480] sm:$0xff] %vm192_vm0, %v1823_v0 }
  0x19   : > { %230 = vst.msk [vmem:[#allocation2 + $0x4a0] sm:$0xff] %vm192_vm0, %v1823_v0  ;;  %231 = vst.msk [vmem:[#allocation2 + $0x4c0] sm:$0xff] %vm192_vm0, %v1823_v0  ;;  %446 = vrot.lane.b32.xlu0 %v2294_v5, %s1824_s19  ;;  %498 = vrot.lane.b32.xlu1 %v2300_v6, %s1824_s19 }
  0x1a   : > { %232 = vst.msk [vmem:[#allocation2 + $0x4e0] sm:$0xff] %vm192_vm0, %v1823_v0  ;;  %233 = vst.msk [vmem:[#allocation2 + $0x500] sm:$0xff] %vm192_vm0, %v1823_v0 }
  0x1b   : > { %234 = vst.msk [vmem:[#allocation2 + $0x520] sm:$0xff] %vm192_vm0, %v1823_v0  ;;  %235 = vst.msk [vmem:[#allocation2 + $0x540] sm:$0xff] %vm192_vm0, %v1823_v0 }
  0x1c   : > { %236 = vst.msk [vmem:[#allocation2 + $0x560] sm:$0xff] %vm192_vm0, %v1823_v0  ;;  %237 = vst.msk [vmem:[#allocation2 + $0x580] sm:$0xff] %vm192_vm0, %v1823_v0 }
  0x1d   : > { %238 = vst.msk [vmem:[#allocation2 + $0x5a0] sm:$0xff] %vm192_vm0, %v1823_v0  ;;  %239 = vst.msk [vmem:[#allocation2 + $0x5c0] sm:$0xff] %vm192_vm0, %v1823_v0  ;;  %448 = vrot.lane.b32.xlu0 %v2308_v7, %s1824_s19  ;;  %500 = vrot.lane.b32.xlu1 %v2316_v8, %s1824_s19 }
  0x1e   : > { %240 = vst.msk [vmem:[#allocation2 + $0x5e0] sm:$0xff] %vm192_vm0, %v1823_v0  ;;  %241 = vst.msk [vmem:[#allocation2 + $0x600] sm:$0xff] %vm192_vm0, %v1823_v0 }
  0x1f   : > { %242 = vst.msk [vmem:[#allocation2 + $0x620] sm:$0xff] %vm192_vm0, %v1823_v0  ;;  %243 = vst.msk [vmem:[#allocation2 + $0x8] sm:$0xff] %vm192_vm0, %v1823_v0 }
  0x20   : > { %244 = vst.msk [vmem:[#allocation2 + $0x28] sm:$0xff] %vm192_vm0, %v1823_v0  ;;  %246 = vst.msk [vmem:[#allocation2 + $0x68] sm:$0xff] %vm192_vm0, %v1823_v0 }
  0x21   : > { %247 = vst.msk [vmem:[#allocation2 + $0x88] sm:$0xff] %vm192_vm0, %v1823_v0  ;;  %248 = vst.msk [vmem:[#allocation2 + $0xa8] sm:$0xff] %vm192_vm0, %v1823_v0  ;;  %454 = vrot.lane.b32.xlu0 %v2278_v1, %s1825_s20  ;;  %506 = vrot.lane.b32.xlu1 %v2284_v3, %s1825_s20 }
  0x22   : > { %249 = vst.msk [vmem:[#allocation2 + $0xc8] sm:$0xff] %vm192_vm0, %v1823_v0  ;;  %250 = vst.msk [vmem:[#allocation2 + $0xe8] sm:$0xff] %vm192_vm0, %v1823_v0 }
  0x23   : > { %251 = vst.msk [vmem:[#allocation2 + $0x108] sm:$0xff] %vm192_vm0, %v1823_v0  ;;  %252 = vst.msk [vmem:[#allocation2 + $0x128] sm:$0xff] %vm192_vm0, %v1823_v0 }
  0x24   : > { %253 = vst.msk [vmem:[#allocation2 + $0x148] sm:$0xff] %vm192_vm0, %v1823_v0  ;;  %254 = vst.msk [vmem:[#allocation2 + $0x168] sm:$0xff] %vm192_vm0, %v1823_v0 }
  0x25   : > { %255 = vst.msk [vmem:[#allocation2 + $0x188] sm:$0xff] %vm192_vm0, %v1823_v0  ;;  %256 = vst.msk [vmem:[#allocation2 + $0x1a8] sm:$0xff] %vm192_vm0, %v1823_v0  ;;  %456 = vrot.lane.b32.xlu0 %v2280_v2, %s1825_s20  ;;  %508 = vrot.lane.b32.xlu1 %v2290_v4, %s1825_s20 }
  0x26   : > { %257 = vst.msk [vmem:[#allocation2 + $0x1c8] sm:$0xff] %vm192_vm0, %v1823_v0  ;;  %258 = vst.msk [vmem:[#allocation2 + $0x1e8] sm:$0xff] %vm192_vm0, %v1823_v0 }
  0x27   : > { %259 = vst.msk [vmem:[#allocation2 + $0x208] sm:$0xff] %vm192_vm0, %v1823_v0  ;;  %260 = vst.msk [vmem:[#allocation2 + $0x228] sm:$0xff] %vm192_vm0, %v1823_v0 }
  0x28   : > { %261 = vst.msk [vmem:[#allocation2 + $0x248] sm:$0xff] %vm192_vm0, %v1823_v0  ;;  %262 = vst.msk [vmem:[#allocation2 + $0x268] sm:$0xff] %vm192_vm0, %v1823_v0 }
  0x29   : > { %263 = vst.msk [vmem:[#allocation2 + $0x288] sm:$0xff] %vm192_vm0, %v1823_v0  ;;  %264 = vst.msk [vmem:[#allocation2 + $0x2a8] sm:$0xff] %vm192_vm0, %v1823_v0  ;;  %642 = vrot.lane.b32.xlu0 %v2294_v5, %s1825_s20  ;;  %658 = vrot.lane.b32.xlu1 %v2300_v6, %s1825_s20 }
  0x2a   : > { %265 = vst.msk [vmem:[#allocation2 + $0x2c8] sm:$0xff] %vm192_vm0, %v1823_v0  ;;  %266 = vst.msk [vmem:[#allocation2 + $0x2e8] sm:$0xff] %vm192_vm0, %v1823_v0 }
  0x2b   : > { %267 = vst.msk [vmem:[#allocation2 + $0x308] sm:$0xff] %vm192_vm0, %v1823_v0  ;;  %268 = vst.msk [vmem:[#allocation2 + $0x328] sm:$0xff] %vm192_vm0, %v1823_v0 }
  0x2c   : > { %269 = vst.msk [vmem:[#allocation2 + $0x348] sm:$0xff] %vm192_vm0, %v1823_v0  ;;  %270 = vst.msk [vmem:[#allocation2 + $0x368] sm:$0xff] %vm192_vm0, %v1823_v0 }
  0x2d   : > { %271 = vst.msk [vmem:[#allocation2 + $0x388] sm:$0xff] %vm192_vm0, %v1823_v0  ;;  %272 = vst.msk [vmem:[#allocation2 + $0x3a8] sm:$0xff] %vm192_vm0, %v1823_v0  ;;  %644 = vrot.lane.b32.xlu0 %v2308_v7, %s1825_s20  ;;  %660 = vrot.lane.b32.xlu1 %v2316_v8, %s1825_s20 }
  0x2e   : > { %273 = vst.msk [vmem:[#allocation2 + $0x3c8] sm:$0xff] %vm192_vm0, %v1823_v0  ;;  %274 = vst.msk [vmem:[#allocation2 + $0x3e8] sm:$0xff] %vm192_vm0, %v1823_v0 }
  0x2f   : > { %275 = vst.msk [vmem:[#allocation2 + $0x408] sm:$0xff] %vm192_vm0, %v1823_v0  ;;  %276 = vst.msk [vmem:[#allocation2 + $0x428] sm:$0xff] %vm192_vm0, %v1823_v0 }
  0x30   : > { %277 = vst.msk [vmem:[#allocation2 + $0x448] sm:$0xff] %vm192_vm0, %v1823_v0  ;;  %278 = vst.msk [vmem:[#allocation2 + $0x468] sm:$0xff] %vm192_vm0, %v1823_v0 }
  0x31   : > { %279 = vst.msk [vmem:[#allocation2 + $0x488] sm:$0xff] %vm192_vm0, %v1823_v0  ;;  %280 = vst.msk [vmem:[#allocation2 + $0x4a8] sm:$0xff] %vm192_vm0, %v1823_v0  ;;  %522 = vrot.lane.b32.xlu0 %v2294_v5, %s1826_s21  ;;  %514 = vrot.lane.b32.xlu1 %v2278_v1, %s1826_s21 }
  0x32   : > { %281 = vst.msk [vmem:[#allocation2 + $0x4c8] sm:$0xff] %vm192_vm0, %v1823_v0  ;;  %282 = vst.msk [vmem:[#allocation2 + $0x4e8] sm:$0xff] %vm192_vm0, %v1823_v0 }
  0x33   : > { %283 = vst.msk [vmem:[#allocation2 + $0x508] sm:$0xff] %vm192_vm0, %v1823_v0  ;;  %284 = vst.msk [vmem:[#allocation2 + $0x528] sm:$0xff] %vm192_vm0, %v1823_v0 }
  0x34   : > { %285 = vst.msk [vmem:[#allocation2 + $0x548] sm:$0xff] %vm192_vm0, %v1823_v0  ;;  %286 = vst.msk [vmem:[#allocation2 + $0x568] sm:$0xff] %vm192_vm0, %v1823_v0 }
  0x35   : > { %287 = vst.msk [vmem:[#allocation2 + $0x588] sm:$0xff] %vm192_vm0, %v1823_v0  ;;  %288 = vst.msk [vmem:[#allocation2 + $0x5a8] sm:$0xff] %vm192_vm0, %v1823_v0  ;;  %524 = vrot.lane.b32.xlu0 %v2308_v7, %s1826_s21  ;;  %516 = vrot.lane.b32.xlu1 %v2280_v2, %s1826_s21 }
  0x36   : > { %289 = vst.msk [vmem:[#allocation2 + $0x5c8] sm:$0xff] %vm192_vm0, %v1823_v0  ;;  %290 = vst.msk [vmem:[#allocation2 + $0x5e8] sm:$0xff] %vm192_vm0, %v1823_v0 }
  0x37   : > { %291 = vst.msk [vmem:[#allocation2 + $0x608] sm:$0xff] %vm192_vm0, %v1823_v0  ;;  %292 = vst.msk [vmem:[#allocation2 + $0x628] sm:$0xff] %vm192_vm0, %v1823_v0 }
  0x38   : > { %293 = vst.msk [vmem:[#allocation2 + $0x10] sm:$0xff] %vm192_vm0, %v1823_v0  ;;  %294 = vst.msk [vmem:[#allocation2 + $0x30] sm:$0xff] %vm192_vm0, %v1823_v0 }
  0x39   : > { %295 = vst.msk [vmem:[#allocation2 + $0x50] sm:$0xff] %vm192_vm0, %v1823_v0  ;;  %296 = vst.msk [vmem:[#allocation2 + $0x70] sm:$0xff] %vm192_vm0, %v1823_v0  ;;  %530 = vrot.lane.b32.xlu0 %v2278_v1, %s1827_s22  ;;  %532 = vrot.lane.b32.xlu1 %v2280_v2, %s1827_s22 }
  0x3a   : > { %297 = vst.msk [vmem:[#allocation2 + $0x90] sm:$0xff] %vm192_vm0, %v1823_v0  ;;  %298 = vst.msk [vmem:[#allocation2 + $0xb0] sm:$0xff] %vm192_vm0, %v1823_v0 }
  0x3b   : > { %299 = vst.msk [vmem:[#allocation2 + $0xd0] sm:$0xff] %vm192_vm0, %v1823_v0  ;;  %300 = vst.msk [vmem:[#allocation2 + $0xf0] sm:$0xff] %vm192_vm0, %v1823_v0 }
  0x3c   : > { %301 = vst.msk [vmem:[#allocation2 + $0x110] sm:$0xff] %vm192_vm0, %v1823_v0  ;;  %302 = vst.msk [vmem:[#allocation2 + $0x130] sm:$0xff] %vm192_vm0, %v1823_v0 }
  0x3d   : > { %303 = vst.msk [vmem:[#allocation2 + $0x150] sm:$0xff] %vm192_vm0, %v1823_v0  ;;  %304 = vst.msk [vmem:[#allocation2 + $0x170] sm:$0xff] %vm192_vm0, %v1823_v0  ;;  %538 = vrot.lane.b32.xlu0 %v2294_v5, %s1827_s22  ;;  %540 = vrot.lane.b32.xlu1 %v2308_v7, %s1827_s22 }
  0x3e   : > { %305 = vst.msk [vmem:[#allocation2 + $0x190] sm:$0xff] %vm192_vm0, %v1823_v0  ;;  %306 = vst.msk [vmem:[#allocation2 + $0x1b0] sm:$0xff] %vm192_vm0, %v1823_v0 }
  0x3f   : > { %307 = vst.msk [vmem:[#allocation2 + $0x1d0] sm:$0xff] %vm192_vm0, %v1823_v0  ;;  %308 = vst.msk [vmem:[#allocation2 + $0x1f0] sm:$0xff] %vm192_vm0, %v1823_v0 }
  0x40   : > { %309 = vst.msk [vmem:[#allocation2 + $0x210] sm:$0xff] %vm192_vm0, %v1823_v0  ;;  %310 = vst.msk [vmem:[#allocation2 + $0x230] sm:$0xff] %vm192_vm0, %v1823_v0 }
  0x41   : > { %311 = vst.msk [vmem:[#allocation2 + $0x250] sm:$0xff] %vm192_vm0, %v1823_v0  ;;  %312 = vst.msk [vmem:[#allocation2 + $0x270] sm:$0xff] %vm192_vm0, %v1823_v0  ;;  %546 = vrot.lane.b32.xlu0 %v2278_v1, %s1828_s23  ;;  %548 = vrot.lane.b32.xlu1 %v2280_v2, %s1828_s23 }
  0x42   : > { %313 = vst.msk [vmem:[#allocation2 + $0x290] sm:$0xff] %vm192_vm0, %v1823_v0  ;;  %314 = vst.msk [vmem:[#allocation2 + $0x2b0] sm:$0xff] %vm192_vm0, %v1823_v0 }
  0x43   : > { %315 = vst.msk [vmem:[#allocation2 + $0x2d0] sm:$0xff] %vm192_vm0, %v1823_v0  ;;  %316 = vst.msk [vmem:[#allocation2 + $0x2f0] sm:$0xff] %vm192_vm0, %v1823_v0 }
  0x44   : > { %317 = vst.msk [vmem:[#allocation2 + $0x310] sm:$0xff] %vm192_vm0, %v1823_v0  ;;  %318 = vst.msk [vmem:[#allocation2 + $0x330] sm:$0xff] %vm192_vm0, %v1823_v0 }
  0x45   : > { %319 = vst.msk [vmem:[#allocation2 + $0x350] sm:$0xff] %vm192_vm0, %v1823_v0  ;;  %320 = vst.msk [vmem:[#allocation2 + $0x370] sm:$0xff] %vm192_vm0, %v1823_v0  ;;  %674 = vrot.lane.b32.xlu0 %v2294_v5, %s1828_s23  ;;  %676 = vrot.lane.b32.xlu1 %v2308_v7, %s1828_s23 }
  0x46   : > { %321 = vst.msk [vmem:[#allocation2 + $0x390] sm:$0xff] %vm192_vm0, %v1823_v0  ;;  %322 = vst.msk [vmem:[#allocation2 + $0x3b0] sm:$0xff] %vm192_vm0, %v1823_v0 }
  0x47   : > { %323 = vst.msk [vmem:[#allocation2 + $0x3d0] sm:$0xff] %vm192_vm0, %v1823_v0  ;;  %324 = vst.msk [vmem:[#allocation2 + $0x3f0] sm:$0xff] %vm192_vm0, %v1823_v0 }
  0x48   : > { %325 = vst.msk [vmem:[#allocation2 + $0x410] sm:$0xff] %vm192_vm0, %v1823_v0  ;;  %326 = vst.msk [vmem:[#allocation2 + $0x430] sm:$0xff] %vm192_vm0, %v1823_v0 }
  0x49   : > { %327 = vst.msk [vmem:[#allocation2 + $0x450] sm:$0xff] %vm192_vm0, %v1823_v0  ;;  %328 = vst.msk [vmem:[#allocation2 + $0x470] sm:$0xff] %vm192_vm0, %v1823_v0  ;;  %562 = vrot.lane.b32.xlu0 %v2300_v6, %s1826_s21  ;;  %554 = vrot.lane.b32.xlu1 %v2284_v3, %s1826_s21 }
  0x4a   : > { %329 = vst.msk [vmem:[#allocation2 + $0x490] sm:$0xff] %vm192_vm0, %v1823_v0  ;;  %330 = vst.msk [vmem:[#allocation2 + $0x4b0] sm:$0xff] %vm192_vm0, %v1823_v0 }
  0x4b   : > { %331 = vst.msk [vmem:[#allocation2 + $0x4d0] sm:$0xff] %vm192_vm0, %v1823_v0  ;;  %332 = vst.msk [vmem:[#allocation2 + $0x4f0] sm:$0xff] %vm192_vm0, %v1823_v0 }
  0x4c   : > { %333 = vst.msk [vmem:[#allocation2 + $0x510] sm:$0xff] %vm192_vm0, %v1823_v0  ;;  %334 = vst.msk [vmem:[#allocation2 + $0x530] sm:$0xff] %vm192_vm0, %v1823_v0 }
  0x4d   : > { %335 = vst.msk [vmem:[#allocation2 + $0x550] sm:$0xff] %vm192_vm0, %v1823_v0  ;;  %336 = vst.msk [vmem:[#allocation2 + $0x570] sm:$0xff] %vm192_vm0, %v1823_v0  ;;  %564 = vrot.lane.b32.xlu0 %v2316_v8, %s1826_s21  ;;  %556 = vrot.lane.b32.xlu1 %v2290_v4, %s1826_s21 }
  0x4e   : > { %337 = vst.msk [vmem:[#allocation2 + $0x590] sm:$0xff] %vm192_vm0, %v1823_v0  ;;  %338 = vst.msk [vmem:[#allocation2 + $0x5b0] sm:$0xff] %vm192_vm0, %v1823_v0 }
  0x4f   : > { %339 = vst.msk [vmem:[#allocation2 + $0x5d0] sm:$0xff] %vm192_vm0, %v1823_v0  ;;  %340 = vst.msk [vmem:[#allocation2 + $0x5f0] sm:$0xff] %vm192_vm0, %v1823_v0 }
  0x50   : > { %341 = vst.msk [vmem:[#allocation2 + $0x610] sm:$0xff] %vm192_vm0, %v1823_v0  ;;  %342 = vst.msk [vmem:[#allocation2 + $0x630] sm:$0xff] %vm192_vm0, %v1823_v0 }
  0x51   : > { %343 = vst.msk [vmem:[#allocation2 + $0x18] sm:$0xff] %vm192_vm0, %v1823_v0  ;;  %344 = vst.msk [vmem:[#allocation2 + $0x38] sm:$0xff] %vm192_vm0, %v1823_v0  ;;  %570 = vrot.lane.b32.xlu0 %v2284_v3, %s1827_s22  ;;  %572 = vrot.lane.b32.xlu1 %v2290_v4, %s1827_s22 }
  0x52   : > { %345 = vst.msk [vmem:[#allocation2 + $0x58] sm:$0xff] %vm192_vm0, %v1823_v0  ;;  %346 = vst.msk [vmem:[#allocation2 + $0x78] sm:$0xff] %vm192_vm0, %v1823_v0 }
  0x53   : > { %347 = vst.msk [vmem:[#allocation2 + $0x98] sm:$0xff] %vm192_vm0, %v1823_v0  ;;  %348 = vst.msk [vmem:[#allocation2 + $0xb8] sm:$0xff] %vm192_vm0, %v1823_v0 }
  0x54   : > { %349 = vst.msk [vmem:[#allocation2 + $0xd8] sm:$0xff] %vm192_vm0, %v1823_v0  ;;  %350 = vst.msk [vmem:[#allocation2 + $0xf8] sm:$0xff] %vm192_vm0, %v1823_v0 }
  0x55   : > { %351 = vst.msk [vmem:[#allocation2 + $0x118] sm:$0xff] %vm192_vm0, %v1823_v0  ;;  %352 = vst.msk [vmem:[#allocation2 + $0x138] sm:$0xff] %vm192_vm0, %v1823_v0  ;;  %578 = vrot.lane.b32.xlu0 %v2300_v6, %s1827_s22  ;;  %580 = vrot.lane.b32.xlu1 %v2316_v8, %s1827_s22 }
  0x56   : > { %353 = vst.msk [vmem:[#allocation2 + $0x158] sm:$0xff] %vm192_vm0, %v1823_v0  ;;  %354 = vst.msk [vmem:[#allocation2 + $0x178] sm:$0xff] %vm192_vm0, %v1823_v0 }
  0x57   : > { %355 = vst.msk [vmem:[#allocation2 + $0x198] sm:$0xff] %vm192_vm0, %v1823_v0  ;;  %356 = vst.msk [vmem:[#allocation2 + $0x1b8] sm:$0xff] %vm192_vm0, %v1823_v0 }
  0x58   : > { %357 = vst.msk [vmem:[#allocation2 + $0x1d8] sm:$0xff] %vm192_vm0, %v1823_v0  ;;  %358 = vst.msk [vmem:[#allocation2 + $0x1f8] sm:$0xff] %vm192_vm0, %v1823_v0 }
  0x59   : > { %359 = vst.msk [vmem:[#allocation2 + $0x218] sm:$0xff] %vm192_vm0, %v1823_v0  ;;  %360 = vst.msk [vmem:[#allocation2 + $0x238] sm:$0xff] %vm192_vm0, %v1823_v0  ;;  %586 = vrot.lane.b32.xlu0 %v2284_v3, %s1828_s23  ;;  %588 = vrot.lane.b32.xlu1 %v2290_v4, %s1828_s23 }
  0x5a   : > { %361 = vst.msk [vmem:[#allocation2 + $0x258] sm:$0xff] %vm192_vm0, %v1823_v0  ;;  %362 = vst.msk [vmem:[#allocation2 + $0x278] sm:$0xff] %vm192_vm0, %v1823_v0 }
  0x5b   : > { %363 = vst.msk [vmem:[#allocation2 + $0x298] sm:$0xff] %vm192_vm0, %v1823_v0  ;;  %364 = vst.msk [vmem:[#allocation2 + $0x2b8] sm:$0xff] %vm192_vm0, %v1823_v0 }
  0x5c   : > { %365 = vst.msk [vmem:[#allocation2 + $0x2d8] sm:$0xff] %vm192_vm0, %v1823_v0  ;;  %366 = vst.msk [vmem:[#allocation2 + $0x2f8] sm:$0xff] %vm192_vm0, %v1823_v0 }
  0x5d   : > { %367 = vst.msk [vmem:[#allocation2 + $0x318] sm:$0xff] %vm192_vm0, %v1823_v0  ;;  %368 = vst.msk [vmem:[#allocation2 + $0x338] sm:$0xff] %vm192_vm0, %v1823_v0  ;;  %690 = vrot.lane.b32.xlu0 %v2300_v6, %s1828_s23  ;;  %692 = vrot.lane.b32.xlu1 %v2316_v8, %s1828_s23 }
  0x5e   : > { %369 = vst.msk [vmem:[#allocation2 + $0x358] sm:$0xff] %vm192_vm0, %v1823_v0  ;;  %370 = vst.msk [vmem:[#allocation2 + $0x378] sm:$0xff] %vm192_vm0, %v1823_v0 }
  0x5f   : > { %371 = vst.msk [vmem:[#allocation2 + $0x398] sm:$0xff] %vm192_vm0, %v1823_v0  ;;  %372 = vst.msk [vmem:[#allocation2 + $0x3b8] sm:$0xff] %vm192_vm0, %v1823_v0 }
  0x60   : > { %373 = vst.msk [vmem:[#allocation2 + $0x3d8] sm:$0xff] %vm192_vm0, %v1823_v0  ;;  %374 = vst.msk [vmem:[#allocation2 + $0x3f8] sm:$0xff] %vm192_vm0, %v1823_v0 }
  0x61   : > { %375 = vst.msk [vmem:[#allocation2 + $0x418] sm:$0xff] %vm192_vm0, %v1823_v0  ;;  %376 = vst.msk [vmem:[#allocation2 + $0x438] sm:$0xff] %vm192_vm0, %v1823_v0  ;;  %602 = vrot.lane.b32.xlu0 %v2294_v5, %s1829_s26  ;;  %594 = vrot.lane.b32.xlu1 %v2278_v1, %s1829_s26 }
  0x62   : > { %377 = vst.msk [vmem:[#allocation2 + $0x458] sm:$0xff] %vm192_vm0, %v1823_v0  ;;  %378 = vst.msk [vmem:[#allocation2 + $0x478] sm:$0xff] %vm192_vm0, %v1823_v0 }
  0x63   : > { %379 = vst.msk [vmem:[#allocation2 + $0x498] sm:$0xff] %vm192_vm0, %v1823_v0  ;;  %380 = vst.msk [vmem:[#allocation2 + $0x4b8] sm:$0xff] %vm192_vm0, %v1823_v0 }
  0x64   : > { %381 = vst.msk [vmem:[#allocation2 + $0x4d8] sm:$0xff] %vm192_vm0, %v1823_v0  ;;  %382 = vst.msk [vmem:[#allocation2 + $0x4f8] sm:$0xff] %vm192_vm0, %v1823_v0 }
  0x65   : > { %383 = vst.msk [vmem:[#allocation2 + $0x518] sm:$0xff] %vm192_vm0, %v1823_v0  ;;  %384 = vst.msk [vmem:[#allocation2 + $0x538] sm:$0xff] %vm192_vm0, %v1823_v0  ;;  %604 = vrot.lane.b32.xlu0 %v2308_v7, %s1829_s26  ;;  %596 = vrot.lane.b32.xlu1 %v2280_v2, %s1829_s26 }
  0x66   : > { %385 = vst.msk [vmem:[#allocation2 + $0x558] sm:$0xff] %vm192_vm0, %v1823_v0  ;;  %386 = vst.msk [vmem:[#allocation2 + $0x578] sm:$0xff] %vm192_vm0, %v1823_v0 }
  0x67   : > { %387 = vst.msk [vmem:[#allocation2 + $0x598] sm:$0xff] %vm192_vm0, %v1823_v0  ;;  %388 = vst.msk [vmem:[#allocation2 + $0x5b8] sm:$0xff] %vm192_vm0, %v1823_v0 }
  0x68   : > { %389 = vst.msk [vmem:[#allocation2 + $0x5d8] sm:$0xff] %vm192_vm0, %v1823_v0  ;;  %390 = vst.msk [vmem:[#allocation2 + $0x5f8] sm:$0xff] %vm192_vm0, %v1823_v0 }
  0x69   : > { %391 = vst.msk [vmem:[#allocation2 + $0x618] sm:$0xff] %vm192_vm0, %v1823_v0  ;;  %392 = vst.msk [vmem:[#allocation2 + $0x638] sm:$0xff] %vm192_vm0, %v1823_v0  ;;  %610 = vrot.lane.b32.xlu0 %v2278_v1, %s1830_s27  ;;  %612 = vrot.lane.b32.xlu1 %v2280_v2, %s1830_s27 }
  0x6a   : > { %422 = vst.msk [vmem:[#allocation2] sm:$0xff] %vm421_vm1, %v2278_v1  ;;  %423 = vst.msk [vmem:[#allocation2 + $0x20] sm:$0xff] %vm421_vm1, %v2280_v2 }
  0x6b   : > { %474 = vst.msk [vmem:[#allocation2 + $0x140] sm:$0xff] %vm421_vm1, %v2284_v3  ;;  %714 = vst.msk [vmem:[#allocation2 + $0x10] sm:$0xff] %vm421_vm1, %v2284_v3 }
  0x6c   : > { %475 = vst.msk [vmem:[#allocation2 + $0x160] sm:$0xff] %vm421_vm1, %v2290_v4  ;;  %715 = vst.msk [vmem:[#allocation2 + $0x30] sm:$0xff] %vm421_vm1, %v2290_v4 }
  0x6d   : > { %634 = vst.msk [vmem:[#allocation2 + $0x8] sm:$0xff] %vm421_vm1, %v2294_v5  ;;  %436 = vst.msk [vmem:[#allocation2 + $0x40] sm:$0xff] %vm421_vm1, %v2294_v5  ;;  %618 = vrot.lane.b32.xlu0 %v2294_v5, %s1830_s27  ;;  %620 = vrot.lane.b32.xlu1 %v2308_v7, %s1830_s27 }
  0x6e   : > { %488 = vst.msk [vmem:[#allocation2 + $0x180] sm:$0xff] %vm421_vm1, %v2300_v6  ;;  %650 = vst.msk [vmem:[#allocation2 + $0x148] sm:$0xff] %vm421_vm1, %v2300_v6 }
  0x6f   : > { %716 = vst.msk [vmem:[#allocation2 + $0x50] sm:$0xff] %vm421_vm1, %v2300_v6  ;;  %794 = vst.msk [vmem:[#allocation2 + $0x18] sm:$0xff] %vm421_vm1, %v2300_v6 }
  0x70   : > { %437 = vst.msk [vmem:[#allocation2 + $0x60] sm:$0xff] %vm421_vm1, %v2308_v7  ;;  %635 = vst.msk [vmem:[#allocation2 + $0x28] sm:$0xff] %vm421_vm1, %v2308_v7 }
  0x71   : > { %489 = vst.msk [vmem:[#allocation2 + $0x1a0] sm:$0xff] %vm421_vm1, %v2316_v8  ;;  %651 = vst.msk [vmem:[#allocation2 + $0x168] sm:$0xff] %vm421_vm1, %v2316_v8  ;;  %v850_v9 = vld [vmem:[#allocation2] sm:$0xff]  ;;  %626 = vrot.lane.b32.xlu0 %v2278_v1, %s1831_s28  ;;  %628 = vrot.lane.b32.xlu1 %v2280_v2, %s1831_s28 }
  0x72   : > { %717 = vst.msk [vmem:[#allocation2 + $0x70] sm:$0xff] %vm421_vm1, %v2316_v8  ;;  %795 = vst.msk [vmem:[#allocation2 + $0x38] sm:$0xff] %vm421_vm1, %v2316_v8  ;;  %v852_v12 = vld [vmem:[#allocation2 + $0x10] sm:$0xff]  ;;  %v854_v14 = vld [vmem:[#allocation2 + $0x20] sm:$0xff] }
  0x73   : > { %v856_v16 = vld [vmem:[#allocation2 + $0x30] sm:$0xff] }
  0x74   : > { %v851_v10 = vld [vmem:[#allocation2 + $0x8] sm:$0xff]  ;;  %v858_v22 = vld [vmem:[#allocation2 + $0x40] sm:$0xff] }
  0x75   : > { %1127 = vmatprep.subr.bf16.mxu0 %v851_v10  ;;  %706 = vrot.lane.b32.xlu0 %v2294_v5, %s1831_s28  ;;  %v891_v2 = vld [vmem:[#allocation2 + $0x148] sm:$0xff] }
  0x76   : > { %v853_v11 = vld [vmem:[#allocation2 + $0x18] sm:$0xff]  ;;  %1128 = vmatpush1.bf16.msra.mxu0 %v850_v9  ;;  %708 = vrot.lane.b32.xlu1 %v2308_v7, %s1831_s28  ;;  %v860_v28 = vld [vmem:[#allocation2 + $0x50] sm:$0xff]  ;;  %v890_v7 = vld [vmem:[#allocation2 + $0x140] sm:$0xff] }
  0x77   : > { %v855_v13 = vld [vmem:[#allocation2 + $0x28] sm:$0xff]  ;;  %1339 = vmatprep.subr.bf16.mxu1 %v853_v11  ;;  %v862_v27 = vld [vmem:[#allocation2 + $0x60] sm:$0xff] }
  0x78   : > { %1129 = vmatprep.subr.bf16.mxu0 %v855_v13  ;;  %1340 = vmatpush1.bf16.msra.mxu1 %v852_v12  ;;  %v895_v9 = vld [vmem:[#allocation2 + $0x168] sm:$0xff]  ;;  %v894_v13 = vld [vmem:[#allocation2 + $0x160] sm:$0xff] }
  0x79   : > { %v857_v15 = vld [vmem:[#allocation2 + $0x38] sm:$0xff]  ;;  %762 = vrot.lane.b32.xlu0 %v2300_v6, %s1829_s26  ;;  %v864_v33 = vld [vmem:[#allocation2 + $0x70] sm:$0xff] }
  0x7a   : > { %1341 = vmatprep.subr.bf16.mxu1 %v857_v15  ;;  %1130 = vmatpush1.bf16.msra.mxu0 %v854_v14 }
  0x7b   : > { %754 = vrot.lane.b32.xlu1 %v2284_v3, %s1829_s26 }
  0x7c   : > { %1342 = vmatpush1.bf16.msra.mxu1 %v856_v16 }
  0x7d   : > { %764 = vrot.lane.b32.xlu0 %v2316_v8, %s1829_s26 }
  0x7f   : > { %756 = vrot.lane.b32.xlu1 %v2290_v4, %s1829_s26 }
  0x81   : > { %770 = vrot.lane.b32.xlu0 %v2284_v3, %s1830_s27 }
  0x83   : > { %772 = vrot.lane.b32.xlu1 %v2290_v4, %s1830_s27  ;;  %v439_v18 = vpop.permute.xlu0 %438  ;;  %v441_v19 = vpop.permute.xlu1 %440 }
  0x84   : > { %444 = vst.msk [vmem:[#allocation2 + $0x80] sm:$0xff] %vm421_vm1, %v439_v18  ;;  %636 = vst.msk [vmem:[#allocation2 + $0x48] sm:$0xff] %vm421_vm1, %v439_v18 }
  0x85   : > { %445 = vst.msk [vmem:[#allocation2 + $0xa0] sm:$0xff] %vm421_vm1, %v441_v19  ;;  %637 = vst.msk [vmem:[#allocation2 + $0x68] sm:$0xff] %vm421_vm1, %v441_v19  ;;  %778 = vrot.lane.b32.xlu0 %v2300_v6, %s1830_s27  ;;  %v898_v19 = vld [vmem:[#allocation2 + $0x180] sm:$0xff] }
  0x87   : > { %780 = vrot.lane.b32.xlu1 %v2316_v8, %s1830_s27  ;;  %v491_v20 = vpop.permute.xlu0 %490  ;;  %v493_v21 = vpop.permute.xlu1 %492 }
  0x88   : > { %496 = vst.msk [vmem:[#allocation2 + $0x1c0] sm:$0xff] %vm421_vm1, %v491_v20  ;;  %652 = vst.msk [vmem:[#allocation2 + $0x188] sm:$0xff] %vm421_vm1, %v491_v20 }
  0x89   : > { %718 = vst.msk [vmem:[#allocation2 + $0x90] sm:$0xff] %vm421_vm1, %v491_v20  ;;  %796 = vst.msk [vmem:[#allocation2 + $0x58] sm:$0xff] %vm421_vm1, %v491_v20  ;;  %786 = vrot.lane.b32.xlu0 %v2284_v3, %s1831_s28 }
  0x8a   : > { %497 = vst.msk [vmem:[#allocation2 + $0x1e0] sm:$0xff] %vm421_vm1, %v493_v21  ;;  %653 = vst.msk [vmem:[#allocation2 + $0x1a8] sm:$0xff] %vm421_vm1, %v493_v21 }
  0x8b   : > { %719 = vst.msk [vmem:[#allocation2 + $0xb0] sm:$0xff] %vm421_vm1, %v493_v21  ;;  %797 = vst.msk [vmem:[#allocation2 + $0x78] sm:$0xff] %vm421_vm1, %v493_v21  ;;  %788 = vrot.lane.b32.xlu1 %v2290_v4, %s1831_s28  ;;  %v447_v23 = vpop.permute.xlu0 %446  ;;  %v859_v24 = vld [vmem:[#allocation2 + $0x48] sm:$0xff]  ;;  %v499_v25 = vpop.permute.xlu1 %498  ;;  %v866_v36 = vld [vmem:[#allocation2 + $0x80] sm:$0xff] }
  0x8c   : > { %452 = vst.msk [vmem:[#allocation2 + $0xc0] sm:$0xff] %vm421_vm1, %v447_v23  ;;  %638 = vst.msk [vmem:[#allocation2 + $0x88] sm:$0xff] %vm421_vm1, %v447_v23  ;;  %1131 = vmatprep.subr.bf16.mxu0 %v859_v24  ;;  %v863_v26 = vld [vmem:[#allocation2 + $0x68] sm:$0xff]  ;;  %v870_v41 = vld [vmem:[#allocation2 + $0xa0] sm:$0xff] }
  0x8d   : > { %1132 = vmatpush1.bf16.msra.mxu0 %v858_v22  ;;  %504 = vst.msk [vmem:[#allocation2 + $0x200] sm:$0xff] %vm421_vm1, %v499_v25  ;;  %654 = vst.msk [vmem:[#allocation2 + $0x1c8] sm:$0xff] %vm421_vm1, %v499_v25  ;;  %842 = vrot.lane.b32.xlu0 %v2300_v6, %s1831_s28 }
  0x8e   : > { %720 = vst.msk [vmem:[#allocation2 + $0xd0] sm:$0xff] %vm421_vm1, %v499_v25  ;;  %798 = vst.msk [vmem:[#allocation2 + $0x98] sm:$0xff] %vm421_vm1, %v499_v25  ;;  %1133 = vmatprep.subr.bf16.mxu0 %v863_v26  ;;  %v902_v25 = vld [vmem:[#allocation2 + $0x1a0] sm:$0xff] }
  0x8f   : > { %844 = vrot.lane.b32.xlu1 %v2316_v8, %s1831_s28  ;;  %v449_v29 = vpop.permute.xlu0 %448  ;;  %v501_v31 = vpop.permute.xlu1 %500  ;;  %v899_v18 = vld [vmem:[#allocation2 + $0x188] sm:$0xff] }
  0x90   : > { %v861_v30 = vld [vmem:[#allocation2 + $0x58] sm:$0xff]  ;;  %453 = vst.msk [vmem:[#allocation2 + $0xe0] sm:$0xff] %vm421_vm1, %v449_v29  ;;  %639 = vst.msk [vmem:[#allocation2 + $0xa8] sm:$0xff] %vm421_vm1, %v449_v29  ;;  %v868_v42 = vld [vmem:[#allocation2 + $0x90] sm:$0xff] }
  0x91   : > { %1343 = vmatprep.subr.bf16.mxu1 %v861_v30  ;;  %1134 = vmatpush1.bf16.msra.mxu0 %v862_v27  ;;  %505 = vst.msk [vmem:[#allocation2 + $0x220] sm:$0xff] %vm421_vm1, %v501_v31  ;;  %655 = vst.msk [vmem:[#allocation2 + $0x1e8] sm:$0xff] %vm421_vm1, %v501_v31  ;;  %v903_v24 = vld [vmem:[#allocation2 + $0x1a8] sm:$0xff] }
  0x92   : > { %v865_v32 = vld [vmem:[#allocation2 + $0x78] sm:$0xff]  ;;  %1344 = vmatpush1.bf16.msra.mxu1 %v860_v28  ;;  %721 = vst.msk [vmem:[#allocation2 + $0xf0] sm:$0xff] %vm421_vm1, %v501_v31  ;;  %799 = vst.msk [vmem:[#allocation2 + $0xb8] sm:$0xff] %vm421_vm1, %v501_v31  ;;  %v872_v48 = vld [vmem:[#allocation2 + $0xb0] sm:$0xff] }
  0x93   : > { %1345 = vmatprep.subr.bf16.mxu1 %v865_v32  ;;  %v455_v34 = vpop.permute.xlu0 %454  ;;  %v867_v35 = vld [vmem:[#allocation2 + $0x88] sm:$0xff]  ;;  %v507_v37 = vpop.permute.xlu1 %506  ;;  %v874_v47 = vld [vmem:[#allocation2 + $0xc0] sm:$0xff] }
  0x94   : > { %460 = vst.msk [vmem:[#allocation2 + $0x100] sm:$0xff] %vm421_vm1, %v455_v34  ;;  %640 = vst.msk [vmem:[#allocation2 + $0xc8] sm:$0xff] %vm421_vm1, %v455_v34  ;;  %1135 = vmatprep.subr.bf16.mxu0 %v867_v35  ;;  %v907_v30 = vld [vmem:[#allocation2 + $0x1c8] sm:$0xff] }
  0x95   : > { %v869_v38 = vld [vmem:[#allocation2 + $0x98] sm:$0xff]  ;;  %1136 = vmatpush1.bf16.msra.mxu0 %v866_v36  ;;  %512 = vst.msk [vmem:[#allocation2 + $0x240] sm:$0xff] %vm421_vm1, %v507_v37  ;;  %656 = vst.msk [vmem:[#allocation2 + $0x208] sm:$0xff] %vm421_vm1, %v507_v37  ;;  %v876_v54 = vld [vmem:[#allocation2 + $0xd0] sm:$0xff] }
  0x96   : > { %1346 = vmatpush1.bf16.msra.mxu1 %v864_v33  ;;  %722 = vst.msk [vmem:[#allocation2 + $0x110] sm:$0xff] %vm421_vm1, %v507_v37  ;;  %800 = vst.msk [vmem:[#allocation2 + $0xd8] sm:$0xff] %vm421_vm1, %v507_v37  ;;  %v906_v33 = vld [vmem:[#allocation2 + $0x1c0] sm:$0xff] }
  0x97   : > { %1347 = vmatprep.subr.bf16.mxu1 %v869_v38  ;;  %v457_v39 = vpop.permute.xlu0 %456  ;;  %v871_v40 = vld [vmem:[#allocation2 + $0xa8] sm:$0xff]  ;;  %v509_v43 = vpop.permute.xlu1 %508  ;;  %v878_v53 = vld [vmem:[#allocation2 + $0xe0] sm:$0xff] }
  0x98   : > { %461 = vst.msk [vmem:[#allocation2 + $0x120] sm:$0xff] %vm421_vm1, %v457_v39  ;;  %641 = vst.msk [vmem:[#allocation2 + $0xe8] sm:$0xff] %vm421_vm1, %v457_v39  ;;  %1137 = vmatprep.subr.bf16.mxu0 %v871_v40  ;;  %v911_v36 = vld [vmem:[#allocation2 + $0x1e8] sm:$0xff]  ;;  %v910_v39 = vld [vmem:[#allocation2 + $0x1e0] sm:$0xff] }
  0x99   : > { %v873_v44 = vld [vmem:[#allocation2 + $0xb8] sm:$0xff]  ;;  %1138 = vmatpush1.bf16.msra.mxu0 %v870_v41  ;;  %513 = vst.msk [vmem:[#allocation2 + $0x260] sm:$0xff] %vm421_vm1, %v509_v43  ;;  %657 = vst.msk [vmem:[#allocation2 + $0x228] sm:$0xff] %vm421_vm1, %v509_v43  ;;  %v880_v60 = vld [vmem:[#allocation2 + $0xf0] sm:$0xff] }
  0x9a   : > { %1348 = vmatpush1.bf16.msra.mxu1 %v868_v42  ;;  %723 = vst.msk [vmem:[#allocation2 + $0x130] sm:$0xff] %vm421_vm1, %v509_v43  ;;  %801 = vst.msk [vmem:[#allocation2 + $0xf8] sm:$0xff] %vm421_vm1, %v509_v43  ;;  %v1795_v41 = vld [vmem:[%s2658_s1] ss:$28 sps:$4 sm:$0xff]  }
  0x9b   : > { %1349 = vmatprep.subr.bf16.mxu1 %v873_v44  ;;  %v643_v45 = vpop.permute.xlu0 %642  ;;  %v875_v46 = vld [vmem:[#allocation2 + $0xc8] sm:$0xff]  ;;  %v659_v49 = vpop.permute.xlu1 %658  ;;  %v882_v59 = vld [vmem:[#allocation2 + $0x100] sm:$0xff] }
  0x9c   : > { %648 = vst.msk [vmem:[#allocation2 + $0x108] sm:$0xff] %vm421_vm1, %v643_v45  ;;  %1139 = vmatprep.subr.bf16.mxu0 %v875_v46  ;;  %664 = vst.msk [vmem:[#allocation2 + $0x248] sm:$0xff] %vm421_vm1, %v659_v49  ;;  %v915_v43 = vld [vmem:[#allocation2 + $0x208] sm:$0xff]  ;;  %v1798_v46 = vld [vmem:[%s2658_s1 + $0x3c] ss:$28 sps:$4 sm:$0xff]  }
  0x9d   : > { %v877_v50 = vld [vmem:[#allocation2 + $0xd8] sm:$0xff]  ;;  %1140 = vmatpush1.bf16.msra.mxu0 %v874_v47  ;;  %802 = vst.msk [vmem:[#allocation2 + $0x118] sm:$0xff] %vm421_vm1, %v659_v49  ;;  %v884_v4 = vld [vmem:[#allocation2 + $0x110] sm:$0xff]  ;;  %v914_v47 = vld [vmem:[#allocation2 + $0x200] sm:$0xff] }
  0x9e   : > { %1350 = vmatpush1.bf16.msra.mxu1 %v872_v48 }
  0x9f   : > { %1351 = vmatprep.subr.bf16.mxu1 %v877_v50  ;;  %v645_v51 = vpop.permute.xlu0 %644  ;;  %v879_v52 = vld [vmem:[#allocation2 + $0xe8] sm:$0xff]  ;;  %v661_v55 = vpop.permute.xlu1 %660  ;;  %v886_v3 = vld [vmem:[#allocation2 + $0x120] sm:$0xff] }
  0xa0   : > { %649 = vst.msk [vmem:[#allocation2 + $0x128] sm:$0xff] %vm421_vm1, %v645_v51  ;;  %1141 = vmatprep.subr.bf16.mxu0 %v879_v52  ;;  %665 = vst.msk [vmem:[#allocation2 + $0x268] sm:$0xff] %vm421_vm1, %v661_v55  ;;  %v919_v50 = vld [vmem:[#allocation2 + $0x228] sm:$0xff] }
  0xa1   : > { %v881_v56 = vld [vmem:[#allocation2 + $0xf8] sm:$0xff]  ;;  %1142 = vmatpush1.bf16.msra.mxu0 %v878_v53  ;;  %803 = vst.msk [vmem:[#allocation2 + $0x138] sm:$0xff] %vm421_vm1, %v661_v55  ;;  %v888_v11 = vld [vmem:[#allocation2 + $0x130] sm:$0xff]  ;;  %v918_v53 = vld [vmem:[#allocation2 + $0x220] sm:$0xff] }
  0xa2   : > { %1352 = vmatpush1.bf16.msra.mxu1 %v876_v54 }
  0xa3   : > { %1353 = vmatprep.subr.bf16.mxu1 %v881_v56  ;;  %v883_v57 = vld [vmem:[#allocation2 + $0x108] sm:$0xff]  ;;  %v523_v58 = vpop.permute.xlu0 %522  ;;  %v515_v61 = vpop.permute.xlu1 %514  ;;  %v1800_v56 = vld [vmem:[%s2658_s1 + $0x38] ss:$28 sps:$4 sm:$0xff]  }
  0xa4   : > { %1143 = vmatprep.subr.bf16.mxu0 %v883_v57  ;;  %528 = vst.msk [vmem:[#allocation2 + $0x2c0] sm:$0xff] %vm421_vm1, %v523_v58  ;;  %666 = vst.msk [vmem:[#allocation2 + $0x288] sm:$0xff] %vm421_vm1, %v523_v58  ;;  %v885_v62 = vld [vmem:[#allocation2 + $0x118] sm:$0xff]  ;;  %v923_v57 = vld [vmem:[#allocation2 + $0x248] sm:$0xff] }
  0xa5   : > { %726 = vst.msk [vmem:[#allocation2 + $0x190] sm:$0xff] %vm421_vm1, %v523_v58  ;;  %804 = vst.msk [vmem:[#allocation2 + $0x158] sm:$0xff] %vm421_vm1, %v523_v58  ;;  %1144 = vmatpush1.bf16.msra.mxu0 %v882_v59 }
  0xa6   : > { %1354 = vmatpush1.bf16.msra.mxu1 %v880_v60  ;;  %520 = vst.msk [vmem:[#allocation2 + $0x280] sm:$0xff] %vm421_vm1, %v515_v61  ;;  %724 = vst.msk [vmem:[#allocation2 + $0x150] sm:$0xff] %vm421_vm1, %v515_v61  ;;  %v1803_v60 = vld [vmem:[%s2658_s1 + $0xc] ss:$28 sps:$4 sm:$0xff]   ;;  %v922_v61 = vld [vmem:[#allocation2 + $0x240] sm:$0xff] }
  0xa7   : > { %1355 = vmatprep.subr.bf16.mxu1 %v885_v62  ;;  %v887_v63 = vld [vmem:[#allocation2 + $0x128] sm:$0xff]  ;;  %v525_v1 = vpop.permute.xlu0 %524  ;;  %v517_v5 = vpop.permute.xlu1 %516 }
  0xa8   : > { %1145 = vmatprep.subr.bf16.mxu0 %v887_v63  ;;  %529 = vst.msk [vmem:[#allocation2 + $0x2e0] sm:$0xff] %vm421_vm1, %v525_v1  ;;  %667 = vst.msk [vmem:[#allocation2 + $0x2a8] sm:$0xff] %vm421_vm1, %v525_v1  ;;  %v889_v6 = vld [vmem:[#allocation2 + $0x138] sm:$0xff] }
  0xa9   : > { %727 = vst.msk [vmem:[#allocation2 + $0x1b0] sm:$0xff] %vm421_vm1, %v525_v1  ;;  %805 = vst.msk [vmem:[#allocation2 + $0x178] sm:$0xff] %vm421_vm1, %v525_v1  ;;  %1146 = vmatpush1.bf16.msra.mxu0 %v886_v3  ;;  %v927_v1 = vld [vmem:[#allocation2 + $0x268] sm:$0xff] }
  0xaa   : > { %1356 = vmatpush1.bf16.msra.mxu1 %v884_v4  ;;  %521 = vst.msk [vmem:[#allocation2 + $0x2a0] sm:$0xff] %vm421_vm1, %v517_v5  ;;  %725 = vst.msk [vmem:[#allocation2 + $0x170] sm:$0xff] %vm421_vm1, %v517_v5  ;;  %1147 = vmatprep.subr.bf16.mxu0 %v891_v2  ;;  %v926_v4 = vld [vmem:[#allocation2 + $0x260] sm:$0xff] }
  0xab   : > { %1357 = vmatprep.subr.bf16.mxu1 %v889_v6  ;;  %v531_v8 = vpop.permute.xlu0 %530  ;;  %v533_v12 = vpop.permute.xlu1 %532 }
  0xac   : > { %v893_v10 = vld [vmem:[#allocation2 + $0x158] sm:$0xff]  ;;  %536 = vst.msk [vmem:[#allocation2 + $0x300] sm:$0xff] %vm421_vm1, %v531_v8  ;;  %668 = vst.msk [vmem:[#allocation2 + $0x2c8] sm:$0xff] %vm421_vm1, %v531_v8  ;;  %v900_v28 = vld [vmem:[#allocation2 + $0x190] sm:$0xff] }
  0xad   : > { %728 = vst.msk [vmem:[#allocation2 + $0x1d0] sm:$0xff] %vm421_vm1, %v531_v8  ;;  %806 = vst.msk [vmem:[#allocation2 + $0x198] sm:$0xff] %vm421_vm1, %v531_v8  ;;  %1148 = vmatpush1.bf16.msra.mxu0 %v890_v7  ;;  %v892_v14 = vld [vmem:[#allocation2 + $0x150] sm:$0xff]  ;;  %v931_v7 = vld [vmem:[#allocation2 + $0x288] sm:$0xff] }
  0xae   : > { %1358 = vmatpush1.bf16.msra.mxu1 %v888_v11  ;;  %537 = vst.msk [vmem:[#allocation2 + $0x320] sm:$0xff] %vm421_vm1, %v533_v12  ;;  %669 = vst.msk [vmem:[#allocation2 + $0x2e8] sm:$0xff] %vm421_vm1, %v533_v12  ;;  %1149 = vmatprep.subr.bf16.mxu0 %v895_v9 }
  0xaf   : > { %729 = vst.msk [vmem:[#allocation2 + $0x1f0] sm:$0xff] %vm421_vm1, %v533_v12  ;;  %807 = vst.msk [vmem:[#allocation2 + $0x1b8] sm:$0xff] %vm421_vm1, %v533_v12  ;;  %1359 = vmatprep.subr.bf16.mxu1 %v893_v10  ;;  %v539_v16 = vpop.permute.xlu0 %538  ;;  %v541_v17 = vpop.permute.xlu1 %540  ;;  %v930_v10 = vld [vmem:[#allocation2 + $0x280] sm:$0xff] }
  0xb0   : > { %v897_v15 = vld [vmem:[#allocation2 + $0x178] sm:$0xff]  ;;  %544 = vst.msk [vmem:[#allocation2 + $0x340] sm:$0xff] %vm421_vm1, %v539_v16  ;;  %670 = vst.msk [vmem:[#allocation2 + $0x308] sm:$0xff] %vm421_vm1, %v539_v16  ;;  %v904_v34 = vld [vmem:[#allocation2 + $0x1b0] sm:$0xff] }
  0xb1   : > { %730 = vst.msk [vmem:[#allocation2 + $0x210] sm:$0xff] %vm421_vm1, %v539_v16  ;;  %808 = vst.msk [vmem:[#allocation2 + $0x1d8] sm:$0xff] %vm421_vm1, %v539_v16  ;;  %1150 = vmatpush1.bf16.msra.mxu0 %v894_v13  ;;  %v896_v20 = vld [vmem:[#allocation2 + $0x170] sm:$0xff]  ;;  %v935_v13 = vld [vmem:[#allocation2 + $0x2a8] sm:$0xff] }
  0xb2   : > { %1360 = vmatpush1.bf16.msra.mxu1 %v892_v14  ;;  %545 = vst.msk [vmem:[#allocation2 + $0x360] sm:$0xff] %vm421_vm1, %v541_v17  ;;  %671 = vst.msk [vmem:[#allocation2 + $0x328] sm:$0xff] %vm421_vm1, %v541_v17  ;;  %1151 = vmatprep.subr.bf16.mxu0 %v899_v18 }
  0xb3   : > { %731 = vst.msk [vmem:[#allocation2 + $0x230] sm:$0xff] %vm421_vm1, %v541_v17  ;;  %809 = vst.msk [vmem:[#allocation2 + $0x1f8] sm:$0xff] %vm421_vm1, %v541_v17  ;;  %1361 = vmatprep.subr.bf16.mxu1 %v897_v15  ;;  %v547_v22 = vpop.permute.xlu0 %546  ;;  %v549_v23 = vpop.permute.xlu1 %548  ;;  %v934_v17 = vld [vmem:[#allocation2 + $0x2a0] sm:$0xff] }
  0xb4   : > { %v901_v21 = vld [vmem:[#allocation2 + $0x198] sm:$0xff]  ;;  %552 = vst.msk [vmem:[#allocation2 + $0x380] sm:$0xff] %vm421_vm1, %v547_v22  ;;  %672 = vst.msk [vmem:[#allocation2 + $0x348] sm:$0xff] %vm421_vm1, %v547_v22  ;;  %v908_v40 = vld [vmem:[#allocation2 + $0x1d0] sm:$0xff] }
  0xb5   : > { %732 = vst.msk [vmem:[#allocation2 + $0x250] sm:$0xff] %vm421_vm1, %v547_v22  ;;  %810 = vst.msk [vmem:[#allocation2 + $0x218] sm:$0xff] %vm421_vm1, %v547_v22  ;;  %1152 = vmatpush1.bf16.msra.mxu0 %v898_v19  ;;  %v939_v19 = vld [vmem:[#allocation2 + $0x2c8] sm:$0xff] }
  0xb6   : > { %1362 = vmatpush1.bf16.msra.mxu1 %v896_v20  ;;  %553 = vst.msk [vmem:[#allocation2 + $0x3a0] sm:$0xff] %vm421_vm1, %v549_v23  ;;  %673 = vst.msk [vmem:[#allocation2 + $0x368] sm:$0xff] %vm421_vm1, %v549_v23  ;;  %1153 = vmatprep.subr.bf16.mxu0 %v903_v24  ;;  %v905_v26 = vld [vmem:[#allocation2 + $0x1b8] sm:$0xff]  ;;  %v912_v48 = vld [vmem:[#allocation2 + $0x1f0] sm:$0xff] }
  0xb7   : > { %733 = vst.msk [vmem:[#allocation2 + $0x270] sm:$0xff] %vm421_vm1, %v549_v23  ;;  %811 = vst.msk [vmem:[#allocation2 + $0x238] sm:$0xff] %vm421_vm1, %v549_v23  ;;  %1363 = vmatprep.subr.bf16.mxu1 %v901_v21  ;;  %v675_v27 = vpop.permute.xlu0 %674  ;;  %v677_v29 = vpop.permute.xlu1 %676  ;;  %v938_v23 = vld [vmem:[#allocation2 + $0x2c0] sm:$0xff] }
  0xb8   : > { %680 = vst.msk [vmem:[#allocation2 + $0x388] sm:$0xff] %vm421_vm1, %v675_v27  ;;  %812 = vst.msk [vmem:[#allocation2 + $0x258] sm:$0xff] %vm421_vm1, %v675_v27  ;;  %v909_v31 = vld [vmem:[#allocation2 + $0x1d8] sm:$0xff]  ;;  %v916_v54 = vld [vmem:[#allocation2 + $0x210] sm:$0xff] }
  0xb9   : > { %1154 = vmatpush1.bf16.msra.mxu0 %v902_v25  ;;  %681 = vst.msk [vmem:[#allocation2 + $0x3a8] sm:$0xff] %vm421_vm1, %v677_v29  ;;  %813 = vst.msk [vmem:[#allocation2 + $0x278] sm:$0xff] %vm421_vm1, %v677_v29  ;;  %v943_v25 = vld [vmem:[#allocation2 + $0x2e8] sm:$0xff] }
  0xba   : > { %1364 = vmatpush1.bf16.msra.mxu1 %v900_v28  ;;  %1155 = vmatprep.subr.bf16.mxu0 %v907_v30  ;;  %v913_v37 = vld [vmem:[#allocation2 + $0x1f8] sm:$0xff]  ;;  %v920_v62 = vld [vmem:[#allocation2 + $0x230] sm:$0xff]  ;;  %v942_v28 = vld [vmem:[#allocation2 + $0x2e0] sm:$0xff] }
  0xbb   : > { %1365 = vmatprep.subr.bf16.mxu1 %v905_v26  ;;  %v563_v32 = vpop.permute.xlu0 %562  ;;  %v555_v35 = vpop.permute.xlu1 %554 }
  0xbc   : > { %568 = vst.msk [vmem:[#allocation2 + $0x400] sm:$0xff] %vm421_vm1, %v563_v32  ;;  %682 = vst.msk [vmem:[#allocation2 + $0x3c8] sm:$0xff] %vm421_vm1, %v563_v32  ;;  %v917_v44 = vld [vmem:[#allocation2 + $0x218] sm:$0xff]  ;;  %v924_v5 = vld [vmem:[#allocation2 + $0x250] sm:$0xff] }
  0xbd   : > { %736 = vst.msk [vmem:[#allocation2 + $0x2d0] sm:$0xff] %vm421_vm1, %v563_v32  ;;  %814 = vst.msk [vmem:[#allocation2 + $0x298] sm:$0xff] %vm421_vm1, %v563_v32  ;;  %1156 = vmatpush1.bf16.msra.mxu0 %v906_v33  ;;  %v188_v32 = vld [vmem:[%s2659_s2] sm:$0xff]  ;;  %v189_v33 = vld [vmem:[%s2659_s2 + $0x8] sm:$0xff] }
  0xbe   : > { %1366 = vmatpush1.bf16.msra.mxu1 %v904_v34  ;;  %560 = vst.msk [vmem:[#allocation2 + $0x3c0] sm:$0xff] %vm421_vm1, %v555_v35  ;;  %734 = vst.msk [vmem:[#allocation2 + $0x290] sm:$0xff] %vm421_vm1, %v555_v35  ;;  %1157 = vmatprep.subr.bf16.mxu0 %v911_v36  ;;  %v921_v51 = vld [vmem:[#allocation2 + $0x238] sm:$0xff]  ;;  %v928_v11 = vld [vmem:[#allocation2 + $0x270] sm:$0xff] }
  0xbf   : > { %1367 = vmatprep.subr.bf16.mxu1 %v909_v31  ;;  %v565_v38 = vpop.permute.xlu0 %564  ;;  %v557_v42 = vpop.permute.xlu1 %556  ;;  %v925_v58 = vld [vmem:[#allocation2 + $0x258] sm:$0xff]  ;;  %v947_v31 = vld [vmem:[#allocation2 + $0x308] sm:$0xff]  ;;  %v946_v34 = vld [vmem:[#allocation2 + $0x300] sm:$0xff]  ;;  %1565 = vperm.xlu0 %1785, %v188_v32  }
  0xc0   : > { %569 = vst.msk [vmem:[#allocation2 + $0x420] sm:$0xff] %vm421_vm1, %v565_v38  ;;  %683 = vst.msk [vmem:[#allocation2 + $0x3e8] sm:$0xff] %vm421_vm1, %v565_v38  ;;  %v929_v2 = vld [vmem:[#allocation2 + $0x278] sm:$0xff]  ;;  %1570 = vperm.xlu1 %1786, %v189_v33   ;;  %v1809_v33 = vld [vmem:[%s2658_s1 + $0x14] ss:$28 sps:$4 sm:$0xff]  }
  0xc1   : > { %737 = vst.msk [vmem:[#allocation2 + $0x2f0] sm:$0xff] %vm421_vm1, %v565_v38  ;;  %815 = vst.msk [vmem:[#allocation2 + $0x2b8] sm:$0xff] %vm421_vm1, %v565_v38  ;;  %1158 = vmatpush1.bf16.msra.mxu0 %v910_v39  ;;  %v190_v39 = vld [vmem:[%s2659_s2 + $0x10] sm:$0xff] }
  0xc2   : > { %1368 = vmatpush1.bf16.msra.mxu1 %v908_v40  ;;  %561 = vst.msk [vmem:[#allocation2 + $0x3e0] sm:$0xff] %vm421_vm1, %v557_v42  ;;  %735 = vst.msk [vmem:[#allocation2 + $0x2b0] sm:$0xff] %vm421_vm1, %v557_v42  ;;  %1180 = vmatprep.subr.bf16.mxu0 %v915_v43  ;;  %v191_v40 = vld [vmem:[%s2659_s2 + $0x18] sm:$0xff] }
  0xc3   : > { %1369 = vmatprep.subr.bf16.mxu1 %v913_v37  ;;  %v571_v45 = vpop.permute.xlu0 %570  ;;  %v573_v49 = vpop.permute.xlu1 %572  ;;  %1580 = vperm.xlu0 %1785, %v191_v40  }
  0xc4   : > { %1160 = vmatmul.mubr.bf16.vlgmr.msra.gmra.mrb[0].mxu0 %v1795_v41  ;;  %576 = vst.msk [vmem:[#allocation2 + $0x440] sm:$0xff] %vm421_vm1, %v571_v45  ;;  %684 = vst.msk [vmem:[#allocation2 + $0x408] sm:$0xff] %vm421_vm1, %v571_v45  ;;  %v933_v8 = vld [vmem:[#allocation2 + $0x298] sm:$0xff]  ;;  %v940_v29 = vld [vmem:[#allocation2 + $0x2d0] sm:$0xff]  ;;  %1575 = vperm.xlu1 %1786, %v190_v39  }
  0xc5   : > { %738 = vst.msk [vmem:[#allocation2 + $0x310] sm:$0xff] %vm421_vm1, %v571_v45  ;;  %816 = vst.msk [vmem:[#allocation2 + $0x2d8] sm:$0xff] %vm421_vm1, %v571_v45  ;;  %1181 = vmatpush1.bf16.msra.mxu0 %v914_v47  ;;  %1169 = vmatprep.mubr.bf16.mxu0 %v1798_v46  ;;  %v932_v14 = vld [vmem:[#allocation2 + $0x290] sm:$0xff]  ;;  %v955_v47 = vld [vmem:[#allocation2 + $0x348] sm:$0xff] }
  0xc6   : > { %1370 = vmatpush1.bf16.msra.mxu1 %v912_v48  ;;  %577 = vst.msk [vmem:[#allocation2 + $0x460] sm:$0xff] %vm421_vm1, %v573_v49  ;;  %685 = vst.msk [vmem:[#allocation2 + $0x428] sm:$0xff] %vm421_vm1, %v573_v49  ;;  %1182 = vmatprep.subr.bf16.mxu0 %v919_v50  ;;  %v954_v50 = vld [vmem:[#allocation2 + $0x340] sm:$0xff] }
  0xc7   : > { %739 = vst.msk [vmem:[#allocation2 + $0x330] sm:$0xff] %vm421_vm1, %v573_v49  ;;  %817 = vst.msk [vmem:[#allocation2 + $0x2f8] sm:$0xff] %vm421_vm1, %v573_v49  ;;  %1392 = vmatprep.subr.bf16.mxu1 %v917_v44  ;;  %v579_v52 = vpop.permute.xlu0 %578  ;;  %v581_v55 = vpop.permute.xlu1 %580  ;;  %v950_v44 = vld [vmem:[#allocation2 + $0x320] sm:$0xff] }
  0xc8   : > { %584 = vst.msk [vmem:[#allocation2 + $0x480] sm:$0xff] %vm421_vm1, %v579_v52  ;;  %686 = vst.msk [vmem:[#allocation2 + $0x448] sm:$0xff] %vm421_vm1, %v579_v52  ;;  %v937_v15 = vld [vmem:[#allocation2 + $0x2b8] sm:$0xff]  ;;  %v944_v37 = vld [vmem:[#allocation2 + $0x2f0] sm:$0xff] }
  0xc9   : > { %1372 = vmatmul.mubr.bf16.vlgmr.msra.gmra.mrb[0].mxu1 %v1795_v41  ;;  %740 = vst.msk [vmem:[#allocation2 + $0x350] sm:$0xff] %vm421_vm1, %v579_v52  ;;  %818 = vst.msk [vmem:[#allocation2 + $0x318] sm:$0xff] %vm421_vm1, %v579_v52  ;;  %1183 = vmatpush1.bf16.msra.mxu0 %v918_v53  ;;  %v936_v20 = vld [vmem:[#allocation2 + $0x2b0] sm:$0xff]  ;;  %v951_v41 = vld [vmem:[#allocation2 + $0x328] sm:$0xff] }
  0xca   : > { %1393 = vmatpush1.bf16.msra.mxu1 %v916_v54  ;;  %585 = vst.msk [vmem:[#allocation2 + $0x4a0] sm:$0xff] %vm421_vm1, %v581_v55  ;;  %687 = vst.msk [vmem:[#allocation2 + $0x468] sm:$0xff] %vm421_vm1, %v581_v55  ;;  %1184 = vmatprep.subr.bf16.mxu0 %v923_v57  ;;  %v959_v53 = vld [vmem:[#allocation2 + $0x368] sm:$0xff] }
  0xcb   : > { %741 = vst.msk [vmem:[#allocation2 + $0x370] sm:$0xff] %vm421_vm1, %v581_v55  ;;  %819 = vst.msk [vmem:[#allocation2 + $0x338] sm:$0xff] %vm421_vm1, %v581_v55  ;;  %1394 = vmatprep.subr.bf16.mxu1 %v921_v51  ;;  %v587_v59 = vpop.permute.xlu0 %586  ;;  %1381 = vmatprep.mubr.bf16.mxu1 %v1798_v46  ;;  %v589_v63 = vpop.permute.xlu1 %588 }
  0xcc   : > { %592 = vst.msk [vmem:[#allocation2 + $0x4c0] sm:$0xff] %vm421_vm1, %v587_v59  ;;  %688 = vst.msk [vmem:[#allocation2 + $0x488] sm:$0xff] %vm421_vm1, %v587_v59  ;;  %1170 = vmatmul.mubr.bf16.gmra.mrb[4].mxu0 %v1800_v56  ;;  %v941_v21 = vld [vmem:[#allocation2 + $0x2d8] sm:$0xff]  ;;  %v948_v45 = vld [vmem:[#allocation2 + $0x310] sm:$0xff] }
  0xcd   : > { %742 = vst.msk [vmem:[#allocation2 + $0x390] sm:$0xff] %vm421_vm1, %v587_v59  ;;  %820 = vst.msk [vmem:[#allocation2 + $0x358] sm:$0xff] %vm421_vm1, %v587_v59  ;;  %1185 = vmatpush1.bf16.msra.mxu0 %v922_v61  ;;  %1212 = vmatprep.mubr.bf16.mxu0 %v1803_v60  ;;  %v963_v59 = vld [vmem:[#allocation2 + $0x388] sm:$0xff] }
  0xce   : > { %1395 = vmatpush1.bf16.msra.mxu1 %v920_v62  ;;  %593 = vst.msk [vmem:[#allocation2 + $0x4e0] sm:$0xff] %vm421_vm1, %v589_v63  ;;  %689 = vst.msk [vmem:[#allocation2 + $0x4a8] sm:$0xff] %vm421_vm1, %v589_v63  ;;  %1186 = vmatprep.subr.bf16.mxu0 %v927_v1  ;;  %v945_v26 = vld [vmem:[#allocation2 + $0x2f8] sm:$0xff]  ;;  %v952_v51 = vld [vmem:[#allocation2 + $0x330] sm:$0xff] }
  0xcf   : > { %743 = vst.msk [vmem:[#allocation2 + $0x3b0] sm:$0xff] %vm421_vm1, %v589_v63  ;;  %821 = vst.msk [vmem:[#allocation2 + $0x378] sm:$0xff] %vm421_vm1, %v589_v63  ;;  %1396 = vmatprep.subr.bf16.mxu1 %v925_v58  ;;  %v691_v3 = vpop.permute.xlu0 %690  ;;  %v693_v6 = vpop.permute.xlu1 %692  ;;  %v962_v62 = vld [vmem:[#allocation2 + $0x380] sm:$0xff] }
  0xd0   : > { %696 = vst.msk [vmem:[#allocation2 + $0x4c8] sm:$0xff] %vm421_vm1, %v691_v3  ;;  %822 = vst.msk [vmem:[#allocation2 + $0x398] sm:$0xff] %vm421_vm1, %v691_v3  ;;  %v949_v35 = vld [vmem:[#allocation2 + $0x318] sm:$0xff]  ;;  %v956_v57 = vld [vmem:[#allocation2 + $0x350] sm:$0xff] }
  0xd1   : > { %1382 = vmatmul.mubr.bf16.gmra.mrb[4].mxu1 %v1800_v56  ;;  %1187 = vmatpush1.bf16.msra.mxu0 %v926_v4  ;;  %697 = vst.msk [vmem:[#allocation2 + $0x4e8] sm:$0xff] %vm421_vm1, %v693_v6  ;;  %823 = vst.msk [vmem:[#allocation2 + $0x3b8] sm:$0xff] %vm421_vm1, %v693_v6  ;;  %v958_v56 = vld [vmem:[#allocation2 + $0x360] sm:$0xff] }
  0xd2   : > { %1397 = vmatpush1.bf16.msra.mxu1 %v924_v5  ;;  %1188 = vmatprep.subr.bf16.mxu0 %v931_v7  ;;  %v953_v42 = vld [vmem:[#allocation2 + $0x338] sm:$0xff]  ;;  %v960_v63 = vld [vmem:[#allocation2 + $0x370] sm:$0xff]  ;;  %v966_v5 = vld [vmem:[#allocation2 + $0x3a0] sm:$0xff] }
  0xd3   : > { %1398 = vmatprep.subr.bf16.mxu1 %v929_v2  ;;  %v603_v9 = vpop.permute.xlu0 %602  ;;  %1424 = vmatprep.mubr.bf16.mxu1 %v1803_v60  ;;  %v595_v12 = vpop.permute.xlu1 %594  ;;  %v967_v2 = vld [vmem:[#allocation2 + $0x3a8] sm:$0xff] }
  0xd4   : > { %608 = vst.msk [vmem:[#allocation2 + $0x540] sm:$0xff] %vm421_vm1, %v603_v9  ;;  %698 = vst.msk [vmem:[#allocation2 + $0x508] sm:$0xff] %vm421_vm1, %v603_v9  ;;  %v957_v48 = vld [vmem:[#allocation2 + $0x358] sm:$0xff]  ;;  %v964_v6 = vld [vmem:[#allocation2 + $0x390] sm:$0xff] }
  0xd5   : > { %746 = vst.msk [vmem:[#allocation2 + $0x410] sm:$0xff] %vm421_vm1, %v603_v9  ;;  %824 = vst.msk [vmem:[#allocation2 + $0x3d8] sm:$0xff] %vm421_vm1, %v603_v9  ;;  %1189 = vmatpush1.bf16.msra.mxu0 %v930_v10  ;;  %v995_v40 = vld [vmem:[#allocation2 + $0x488] sm:$0xff] }
  0xd6   : > { %1399 = vmatpush1.bf16.msra.mxu1 %v928_v11  ;;  %600 = vst.msk [vmem:[#allocation2 + $0x500] sm:$0xff] %vm421_vm1, %v595_v12  ;;  %744 = vst.msk [vmem:[#allocation2 + $0x3d0] sm:$0xff] %vm421_vm1, %v595_v12  ;;  %1190 = vmatprep.subr.bf16.mxu0 %v935_v13  ;;  %v961_v54 = vld [vmem:[#allocation2 + $0x378] sm:$0xff]  ;;  %v970_v11 = vld [vmem:[#allocation2 + $0x3c0] sm:$0xff] }
  0xd7   : > { %1400 = vmatprep.subr.bf16.mxu1 %v933_v8  ;;  %v605_v16 = vpop.permute.xlu0 %604  ;;  %v597_v18 = vpop.permute.xlu1 %596  ;;  %v965_v60 = vld [vmem:[#allocation2 + $0x398] sm:$0xff]  ;;  %v971_v8 = vld [vmem:[#allocation2 + $0x3c8] sm:$0xff]  ;;  %v968_v12 = vld [vmem:[#allocation2 + $0x3b0] sm:$0xff] }
  0xd8   : > { %609 = vst.msk [vmem:[#allocation2 + $0x560] sm:$0xff] %vm421_vm1, %v605_v16  ;;  %699 = vst.msk [vmem:[#allocation2 + $0x528] sm:$0xff] %vm421_vm1, %v605_v16  ;;  %v969_v3 = vld [vmem:[#allocation2 + $0x3b8] sm:$0xff] }
  0xd9   : > { %747 = vst.msk [vmem:[#allocation2 + $0x430] sm:$0xff] %vm421_vm1, %v605_v16  ;;  %825 = vst.msk [vmem:[#allocation2 + $0x3f8] sm:$0xff] %vm421_vm1, %v605_v16  ;;  %1191 = vmatpush1.bf16.msra.mxu0 %v934_v17 }
  0xda   : > { %1401 = vmatpush1.bf16.msra.mxu1 %v932_v14  ;;  %601 = vst.msk [vmem:[#allocation2 + $0x520] sm:$0xff] %vm421_vm1, %v597_v18  ;;  %745 = vst.msk [vmem:[#allocation2 + $0x3f0] sm:$0xff] %vm421_vm1, %v597_v18  ;;  %1192 = vmatprep.subr.bf16.mxu0 %v939_v19  ;;  %v975_v14 = vld [vmem:[#allocation2 + $0x3e8] sm:$0xff]  ;;  %v974_v18 = vld [vmem:[#allocation2 + $0x3e0] sm:$0xff] }
  0xdb   : > { %1402 = vmatprep.subr.bf16.mxu1 %v937_v15  ;;  %v611_v22 = vpop.permute.xlu0 %610  ;;  %v613_v24 = vpop.permute.xlu1 %612  ;;  %v1801_v19 = vld [vmem:[%s2658_s1 + $0x8] ss:$28 sps:$4 sm:$0xff]  }
  0xdc   : > { %616 = vst.msk [vmem:[#allocation2 + $0x580] sm:$0xff] %vm421_vm1, %v611_v22  ;;  %700 = vst.msk [vmem:[#allocation2 + $0x548] sm:$0xff] %vm421_vm1, %v611_v22  ;;  %v973_v9 = vld [vmem:[#allocation2 + $0x3d8] sm:$0xff] }
  0xdd   : > { %748 = vst.msk [vmem:[#allocation2 + $0x450] sm:$0xff] %vm421_vm1, %v611_v22  ;;  %826 = vst.msk [vmem:[#allocation2 + $0x418] sm:$0xff] %vm421_vm1, %v611_v22  ;;  %1193 = vmatpush1.bf16.msra.mxu0 %v938_v23  ;;  %v972_v15 = vld [vmem:[#allocation2 + $0x3d0] sm:$0xff] }
  0xde   : > { %1403 = vmatpush1.bf16.msra.mxu1 %v936_v20  ;;  %617 = vst.msk [vmem:[#allocation2 + $0x5a0] sm:$0xff] %vm421_vm1, %v613_v24  ;;  %701 = vst.msk [vmem:[#allocation2 + $0x568] sm:$0xff] %vm421_vm1, %v613_v24  ;;  %1194 = vmatprep.subr.bf16.mxu0 %v943_v25  ;;  %v978_v25 = vld [vmem:[#allocation2 + $0x400] sm:$0xff] }
  0xdf   : > { %749 = vst.msk [vmem:[#allocation2 + $0x470] sm:$0xff] %vm421_vm1, %v613_v24  ;;  %827 = vst.msk [vmem:[#allocation2 + $0x438] sm:$0xff] %vm421_vm1, %v613_v24  ;;  %1404 = vmatprep.subr.bf16.mxu1 %v941_v21  ;;  %v619_v27 = vpop.permute.xlu0 %618  ;;  %v621_v30 = vpop.permute.xlu1 %620  ;;  %v979_v21 = vld [vmem:[#allocation2 + $0x408] sm:$0xff]  ;;  %v1804_v24 = vld [vmem:[%s2658_s1 + $0x44] ss:$28 sps:$4 sm:$0xff]  }
  0xe0   : > { %624 = vst.msk [vmem:[#allocation2 + $0x5c0] sm:$0xff] %vm421_vm1, %v619_v27  ;;  %702 = vst.msk [vmem:[#allocation2 + $0x588] sm:$0xff] %vm421_vm1, %v619_v27  ;;  %v977_v16 = vld [vmem:[#allocation2 + $0x3f8] sm:$0xff] }
  0xe1   : > { %750 = vst.msk [vmem:[#allocation2 + $0x490] sm:$0xff] %vm421_vm1, %v619_v27  ;;  %828 = vst.msk [vmem:[#allocation2 + $0x458] sm:$0xff] %vm421_vm1, %v619_v27  ;;  %1195 = vmatpush1.bf16.msra.mxu0 %v942_v28  ;;  %v976_v22 = vld [vmem:[#allocation2 + $0x3f0] sm:$0xff]  ;;  %v982_v28 = vld [vmem:[#allocation2 + $0x420] sm:$0xff] }
  0xe2   : > { %1405 = vmatpush1.bf16.msra.mxu1 %v940_v29  ;;  %625 = vst.msk [vmem:[#allocation2 + $0x5e0] sm:$0xff] %vm421_vm1, %v621_v30  ;;  %703 = vst.msk [vmem:[#allocation2 + $0x5a8] sm:$0xff] %vm421_vm1, %v621_v30  ;;  %1196 = vmatprep.subr.bf16.mxu0 %v947_v31  ;;  %v980_v29 = vld [vmem:[#allocation2 + $0x410] sm:$0xff]  ;;  %v987_v31 = vld [vmem:[#allocation2 + $0x448] sm:$0xff] }
  0xe3   : > { %751 = vst.msk [vmem:[#allocation2 + $0x4b0] sm:$0xff] %vm421_vm1, %v621_v30  ;;  %829 = vst.msk [vmem:[#allocation2 + $0x478] sm:$0xff] %vm421_vm1, %v621_v30  ;;  %1406 = vmatprep.subr.bf16.mxu1 %v945_v26  ;;  %v627_v36 = vpop.permute.xlu0 %626  ;;  %v629_v38 = vpop.permute.xlu1 %628  ;;  %v983_v26 = vld [vmem:[#allocation2 + $0x428] sm:$0xff]  ;;  %v1806_v30 = vld [vmem:[%s2658_s1 + $0x40] ss:$28 sps:$4 sm:$0xff]  }
  0xe4   : > { %632 = vst.msk [vmem:[#allocation2 + $0x600] sm:$0xff] %vm421_vm1, %v627_v36  ;;  %704 = vst.msk [vmem:[#allocation2 + $0x5c8] sm:$0xff] %vm421_vm1, %v627_v36  ;;  %v981_v23 = vld [vmem:[#allocation2 + $0x418] sm:$0xff]  ;;  %v988_v39 = vld [vmem:[#allocation2 + $0x450] sm:$0xff] }
  0xe5   : > { %752 = vst.msk [vmem:[#allocation2 + $0x4d0] sm:$0xff] %vm421_vm1, %v627_v36  ;;  %830 = vst.msk [vmem:[#allocation2 + $0x498] sm:$0xff] %vm421_vm1, %v627_v36  ;;  %1197 = vmatpush1.bf16.msra.mxu0 %v946_v34  ;;  %v986_v34 = vld [vmem:[#allocation2 + $0x440] sm:$0xff]  ;;  %v991_v36 = vld [vmem:[#allocation2 + $0x468] sm:$0xff] }
  0xe6   : > { %1407 = vmatpush1.bf16.msra.mxu1 %v944_v37  ;;  %633 = vst.msk [vmem:[#allocation2 + $0x620] sm:$0xff] %vm421_vm1, %v629_v38  ;;  %705 = vst.msk [vmem:[#allocation2 + $0x5e8] sm:$0xff] %vm421_vm1, %v629_v38  ;;  %1198 = vmatprep.subr.bf16.mxu0 %v951_v41  ;;  %v985_v27 = vld [vmem:[#allocation2 + $0x438] sm:$0xff] }
  0xe7   : > { %753 = vst.msk [vmem:[#allocation2 + $0x4f0] sm:$0xff] %vm421_vm1, %v629_v38  ;;  %831 = vst.msk [vmem:[#allocation2 + $0x4b8] sm:$0xff] %vm421_vm1, %v629_v38  ;;  %1408 = vmatprep.subr.bf16.mxu1 %v949_v35  ;;  %v707_v43 = vpop.permute.xlu0 %706  ;;  %v984_v35 = vld [vmem:[#allocation2 + $0x430] sm:$0xff]  ;;  %v990_v38 = vld [vmem:[#allocation2 + $0x460] sm:$0xff] }
  0xe8   : > { %712 = vst.msk [vmem:[#allocation2 + $0x608] sm:$0xff] %vm421_vm1, %v707_v43  ;;  %832 = vst.msk [vmem:[#allocation2 + $0x4d8] sm:$0xff] %vm421_vm1, %v707_v43  ;;  %v709_v46 = vpop.permute.xlu1 %708  ;;  %v989_v32 = vld [vmem:[#allocation2 + $0x458] sm:$0xff]  ;;  %v992_v43 = vld [vmem:[#allocation2 + $0x470] sm:$0xff] }
  0xe9   : > { %1199 = vmatpush1.bf16.msra.mxu0 %v950_v44  ;;  %713 = vst.msk [vmem:[#allocation2 + $0x628] sm:$0xff] %vm421_vm1, %v709_v46  ;;  %833 = vst.msk [vmem:[#allocation2 + $0x4f8] sm:$0xff] %vm421_vm1, %v709_v46  ;;  %v999_v44 = vld [vmem:[#allocation2 + $0x4a8] sm:$0xff]  ;;  %v998_v46 = vld [vmem:[#allocation2 + $0x4a0] sm:$0xff] }
  0xea   : > { %1409 = vmatpush1.bf16.msra.mxu1 %v948_v45  ;;  %1200 = vmatprep.subr.bf16.mxu0 %v955_v47  ;;  %v993_v37 = vld [vmem:[#allocation2 + $0x478] sm:$0xff]  ;;  %v996_v47 = vld [vmem:[#allocation2 + $0x490] sm:$0xff] }
  0xeb   : > { %1410 = vmatprep.subr.bf16.mxu1 %v953_v42  ;;  %v763_v49 = vpop.permute.xlu0 %762  ;;  %v994_v42 = vld [vmem:[#allocation2 + $0x480] sm:$0xff] }
  0xec   : > { %768 = vst.msk [vmem:[#allocation2 + $0x550] sm:$0xff] %vm421_vm1, %v763_v49  ;;  %834 = vst.msk [vmem:[#allocation2 + $0x518] sm:$0xff] %vm421_vm1, %v763_v49  ;;  %v997_v41 = vld [vmem:[#allocation2 + $0x498] sm:$0xff] }
  0xed   : > { %v755_v52 = vpop.permute.xlu1 %754  ;;  %1201 = vmatpush1.bf16.msra.mxu0 %v954_v50  ;;  %v1002_v50 = vld [vmem:[#allocation2 + $0x4c0] sm:$0xff] }
  0xee   : > { %1411 = vmatpush1.bf16.msra.mxu1 %v952_v51  ;;  %760 = vst.msk [vmem:[#allocation2 + $0x510] sm:$0xff] %vm421_vm1, %v755_v52  ;;  %1202 = vmatprep.subr.bf16.mxu0 %v959_v53  ;;  %v1001_v45 = vld [vmem:[#allocation2 + $0x4b8] sm:$0xff]  ;;  %v1000_v51 = vld [vmem:[#allocation2 + $0x4b0] sm:$0xff]  ;;  %v1007_v52 = vld [vmem:[#allocation2 + $0x4e8] sm:$0xff] }
  0xef   : > { %1412 = vmatprep.subr.bf16.mxu1 %v957_v48  ;;  %v765_v55 = vpop.permute.xlu0 %764  ;;  %v1003_v48 = vld [vmem:[#allocation2 + $0x4c8] sm:$0xff]  ;;  %v1005_v49 = vld [vmem:[#allocation2 + $0x4d8] sm:$0xff] }
  0xf0   : > { %769 = vst.msk [vmem:[#allocation2 + $0x570] sm:$0xff] %vm421_vm1, %v765_v55  ;;  %835 = vst.msk [vmem:[#allocation2 + $0x538] sm:$0xff] %vm421_vm1, %v765_v55  ;;  %v1009_v53 = vld [vmem:[#allocation2 + $0x4f8] sm:$0xff]  ;;  %v1004_v55 = vld [vmem:[#allocation2 + $0x4d0] sm:$0xff] }
  0xf1   : > { %v757_v58 = vpop.permute.xlu1 %756  ;;  %1203 = vmatpush1.bf16.msra.mxu0 %v958_v56  ;;  %v1011_v56 = vld [vmem:[#allocation2 + $0x508] sm:$0xff] }
  0xf2   : > { %1413 = vmatpush1.bf16.msra.mxu1 %v956_v57  ;;  %761 = vst.msk [vmem:[#allocation2 + $0x530] sm:$0xff] %vm421_vm1, %v757_v58  ;;  %1204 = vmatprep.subr.bf16.mxu0 %v963_v59  ;;  %v1010_v58 = vld [vmem:[#allocation2 + $0x500] sm:$0xff]  ;;  %v1008_v59 = vld [vmem:[#allocation2 + $0x4f0] sm:$0xff] }
  0xf3   : > { %1414 = vmatprep.subr.bf16.mxu1 %v961_v54  ;;  %v771_v61 = vpop.permute.xlu0 %770  ;;  %v1006_v54 = vld [vmem:[#allocation2 + $0x4e0] sm:$0xff]  ;;  %v1013_v57 = vld [vmem:[#allocation2 + $0x518] sm:$0xff] }
  0xf4   : > { %776 = vst.msk [vmem:[#allocation2 + $0x590] sm:$0xff] %vm421_vm1, %v771_v61  ;;  %836 = vst.msk [vmem:[#allocation2 + $0x558] sm:$0xff] %vm421_vm1, %v771_v61 }
  0xf5   : > { %v773_v1 = vpop.permute.xlu1 %772  ;;  %1205 = vmatpush1.bf16.msra.mxu0 %v962_v62  ;;  %v1012_v61 = vld [vmem:[#allocation2 + $0x510] sm:$0xff] }
  0xf6   : > { %1415 = vmatpush1.bf16.msra.mxu1 %v960_v63  ;;  %777 = vst.msk [vmem:[#allocation2 + $0x5b0] sm:$0xff] %vm421_vm1, %v773_v1  ;;  %837 = vst.msk [vmem:[#allocation2 + $0x578] sm:$0xff] %vm421_vm1, %v773_v1  ;;  %1206 = vmatprep.subr.bf16.mxu0 %v967_v2  ;;  %v1014_v63 = vld [vmem:[#allocation2 + $0x520] sm:$0xff]  ;;  %v1019_v1 = vld [vmem:[#allocation2 + $0x548] sm:$0xff] }
  0xf7   : > { %1416 = vmatprep.subr.bf16.mxu1 %v965_v60  ;;  %v779_v4 = vpop.permute.xlu0 %778  ;;  %v1015_v60 = vld [vmem:[#allocation2 + $0x528] sm:$0xff]  ;;  %v1017_v62 = vld [vmem:[#allocation2 + $0x538] sm:$0xff] }
  0xf8   : > { %784 = vst.msk [vmem:[#allocation2 + $0x5d0] sm:$0xff] %vm421_vm1, %v779_v4  ;;  %838 = vst.msk [vmem:[#allocation2 + $0x598] sm:$0xff] %vm421_vm1, %v779_v4  ;;  %v1018_v4 = vld [vmem:[#allocation2 + $0x540] sm:$0xff] }
  0xf9   : > { %v781_v7 = vpop.permute.xlu1 %780  ;;  %1207 = vmatpush1.bf16.msra.mxu0 %v966_v5  ;;  %v1016_v2 = vld [vmem:[#allocation2 + $0x530] sm:$0xff]  ;;  %v1023_v5 = vld [vmem:[#allocation2 + $0x568] sm:$0xff] }
  0xfa   : > { %1417 = vmatpush1.bf16.msra.mxu1 %v964_v6  ;;  %785 = vst.msk [vmem:[#allocation2 + $0x5f0] sm:$0xff] %vm421_vm1, %v781_v7  ;;  %839 = vst.msk [vmem:[#allocation2 + $0x5b8] sm:$0xff] %vm421_vm1, %v781_v7  ;;  %1208 = vmatprep.subr.bf16.mxu0 %v971_v8  ;;  %v1022_v7 = vld [vmem:[#allocation2 + $0x560] sm:$0xff]  ;;  %v1020_v8 = vld [vmem:[#allocation2 + $0x550] sm:$0xff] }
  0xfb   : > { %1418 = vmatprep.subr.bf16.mxu1 %v969_v3  ;;  %v787_v10 = vpop.permute.xlu0 %786  ;;  %v1021_v3 = vld [vmem:[#allocation2 + $0x558] sm:$0xff] }
  0xfc   : > { %792 = vst.msk [vmem:[#allocation2 + $0x610] sm:$0xff] %vm421_vm1, %v787_v10  ;;  %840 = vst.msk [vmem:[#allocation2 + $0x5d8] sm:$0xff] %vm421_vm1, %v787_v10 }
  0xfd   : > { %v789_v13 = vpop.permute.xlu1 %788  ;;  %1209 = vmatpush1.bf16.msra.mxu0 %v970_v11  ;;  %v1025_v6 = vld [vmem:[#allocation2 + $0x578] sm:$0xff]  ;;  %v1026_v11 = vld [vmem:[#allocation2 + $0x580] sm:$0xff] }
  0xfe   : > { %1419 = vmatpush1.bf16.msra.mxu1 %v968_v12  ;;  %793 = vst.msk [vmem:[#allocation2 + $0x630] sm:$0xff] %vm421_vm1, %v789_v13  ;;  %841 = vst.msk [vmem:[#allocation2 + $0x5f8] sm:$0xff] %vm421_vm1, %v789_v13  ;;  %1210 = vmatprep.subr.bf16.mxu0 %v975_v14  ;;  %v1024_v12 = vld [vmem:[#allocation2 + $0x570] sm:$0xff]  ;;  %v1031_v13 = vld [vmem:[#allocation2 + $0x5a8] sm:$0xff] }
  0xff   : > { %1420 = vmatprep.subr.bf16.mxu1 %v973_v9  ;;  %v843_v17 = vpop.permute.xlu0 %842  ;;  %v1027_v9 = vld [vmem:[#allocation2 + $0x588] sm:$0xff]  ;;  %v1029_v10 = vld [vmem:[#allocation2 + $0x598] sm:$0xff] }
 0x100   : > { %848 = vst.msk [vmem:[#allocation2 + $0x618] sm:$0xff] %vm421_vm1, %v843_v17  ;;  %v1035_v17 = vld [vmem:[#allocation2 + $0x5c8] sm:$0xff] }
 0x101   : > { %v845_v20 = vpop.permute.xlu1 %844  ;;  %1211 = vmatpush1.bf16.msra.mxu0 %v974_v18  ;;  %v1033_v14 = vld [vmem:[#allocation2 + $0x5b8] sm:$0xff] }
 0x102   : > { %1421 = vmatpush1.bf16.msra.mxu1 %v972_v15  ;;  %849 = vst.msk [vmem:[#allocation2 + $0x638] sm:$0xff] %vm421_vm1, %v845_v20  ;;  %1233 = vmatprep.subr.bf16.mxu0 %v979_v21  ;;  %v1030_v15 = vld [vmem:[#allocation2 + $0x5a0] sm:$0xff]  ;;  %v1032_v20 = vld [vmem:[#allocation2 + $0x5b0] sm:$0xff]  ;;  %v1039_v21 = vld [vmem:[#allocation2 + $0x5e8] sm:$0xff] }
 0x103   : > { %1422 = vmatprep.subr.bf16.mxu1 %v977_v16  ;;  %v1028_v16 = vld [vmem:[#allocation2 + $0x590] sm:$0xff]  ;;  %v1037_v18 = vld [vmem:[#allocation2 + $0x5d8] sm:$0xff] }
 0x104   : > { %1213 = vmatmul.mubr.bf16.vlgmr.msra.gmra.mrb[0].mxu0 %v1801_v19 }
 0x105   : > { %1234 = vmatpush1.bf16.msra.mxu0 %v978_v25  ;;  %1222 = vmatprep.mubr.bf16.mxu0 %v1804_v24  ;;  %v1807_v25 = vld [vmem:[%s2658_s1 + $0x10] ss:$28 sps:$4 sm:$0xff]  }
 0x106   : > { %1423 = vmatpush1.bf16.msra.mxu1 %v976_v22  ;;  %1235 = vmatprep.subr.bf16.mxu0 %v983_v26  ;;  %v1041_v22 = vld [vmem:[#allocation2 + $0x5f8] sm:$0xff]  ;;  %v1043_v26 = vld [vmem:[#allocation2 + $0x608] sm:$0xff] }
 0x107   : > { %1445 = vmatprep.subr.bf16.mxu1 %v981_v23  ;;  %v1038_v23 = vld [vmem:[#allocation2 + $0x5e0] sm:$0xff] }
 0x109   : > { %1425 = vmatmul.mubr.bf16.vlgmr.msra.gmra.mrb[0].mxu1 %v1801_v19  ;;  %1236 = vmatpush1.bf16.msra.mxu0 %v982_v28  ;;  %v1034_v19 = vld [vmem:[#allocation2 + $0x5c0] sm:$0xff]  ;;  %v1810_v28 = vld [vmem:[%s2658_s1 + $0x4c] ss:$28 sps:$4 sm:$0xff]  }
 0x10a   : > { %1446 = vmatpush1.bf16.msra.mxu1 %v980_v29  ;;  %1237 = vmatprep.subr.bf16.mxu0 %v987_v31  ;;  %v1042_v29 = vld [vmem:[#allocation2 + $0x600] sm:$0xff]  ;;  %v1047_v31 = vld [vmem:[#allocation2 + $0x628] sm:$0xff] }
 0x10b   : > { %1447 = vmatprep.subr.bf16.mxu1 %v985_v27  ;;  %1434 = vmatprep.mubr.bf16.mxu1 %v1804_v24  ;;  %v1036_v24 = vld [vmem:[#allocation2 + $0x5d0] sm:$0xff]  ;;  %v1045_v27 = vld [vmem:[#allocation2 + $0x618] sm:$0xff] }
 0x10c   : > { %1223 = vmatmul.mubr.bf16.gmra.mrb[4].mxu0 %v1806_v30 }
 0x10d   : > { %1238 = vmatpush1.bf16.msra.mxu0 %v986_v34  ;;  %1265 = vmatprep.mubr.bf16.mxu0 %v1809_v33  ;;  %v1044_v34 = vld [vmem:[#allocation2 + $0x610] sm:$0xff] }
 0x10e   : > { %1448 = vmatpush1.bf16.msra.mxu1 %v984_v35  ;;  %1239 = vmatprep.subr.bf16.mxu0 %v991_v36  ;;  %v1812_v35 = vld [vmem:[%s2658_s1 + $0x48] ss:$28 sps:$4 sm:$0xff]   ;;  %v1048_v36 = vld [vmem:[#allocation2 + $0x630] sm:$0xff] }
 0x10f   : > { %1449 = vmatprep.subr.bf16.mxu1 %v989_v32  ;;  %v1049_v32 = vld [vmem:[#allocation2 + $0x638] sm:$0xff] }
 0x111   : > { %1435 = vmatmul.mubr.bf16.gmra.mrb[4].mxu1 %v1806_v30  ;;  %1240 = vmatpush1.bf16.msra.mxu0 %v990_v38  ;;  %v1040_v30 = vld [vmem:[#allocation2 + $0x5f0] sm:$0xff] }
 0x112   : > { %1450 = vmatpush1.bf16.msra.mxu1 %v988_v39  ;;  %1241 = vmatprep.subr.bf16.mxu0 %v995_v40  ;;  %v1814_v38 = vld [vmem:[%s2658_s1 + $0x50] ss:$28 sps:$4 sm:$0xff]  }
 0x113   : > { %1451 = vmatprep.subr.bf16.mxu1 %v993_v37  ;;  %1477 = vmatprep.mubr.bf16.mxu1 %v1809_v33  ;;  %v1046_v33 = vld [vmem:[#allocation2 + $0x620] sm:$0xff]  ;;  %v1813_v37 = vld [vmem:[%s2658_s1 + $0x18] ss:$28 sps:$4 sm:$0xff]  }
 0x115   : > { %1242 = vmatpush1.bf16.msra.mxu0 %v994_v42 }
 0x116   : > { %1452 = vmatpush1.bf16.msra.mxu1 %v992_v43  ;;  %1243 = vmatprep.subr.bf16.mxu0 %v999_v44 }
 0x117   : > { %1453 = vmatprep.subr.bf16.mxu1 %v997_v41 }
 0x119   : > { %1244 = vmatpush1.bf16.msra.mxu0 %v998_v46 }
 0x11a   : > { %1454 = vmatpush1.bf16.msra.mxu1 %v996_v47  ;;  %1245 = vmatprep.subr.bf16.mxu0 %v1003_v48 }
 0x11b   : > { %1455 = vmatprep.subr.bf16.mxu1 %v1001_v45 }
 0x11d   : > { %1246 = vmatpush1.bf16.msra.mxu0 %v1002_v50 }
 0x11e   : > { %1456 = vmatpush1.bf16.msra.mxu1 %v1000_v51  ;;  %1247 = vmatprep.subr.bf16.mxu0 %v1007_v52 }
 0x11f   : > { %1457 = vmatprep.subr.bf16.mxu1 %v1005_v49 }
 0x121   : > { %1248 = vmatpush1.bf16.msra.mxu0 %v1006_v54 }
 0x122   : > { %1458 = vmatpush1.bf16.msra.mxu1 %v1004_v55  ;;  %1249 = vmatprep.subr.bf16.mxu0 %v1011_v56 }
 0x123   : > { %1459 = vmatprep.subr.bf16.mxu1 %v1009_v53 }
 0x125   : > { %1250 = vmatpush1.bf16.msra.mxu0 %v1010_v58 }
 0x126   : > { %1460 = vmatpush1.bf16.msra.mxu1 %v1008_v59  ;;  %1251 = vmatprep.subr.bf16.mxu0 %v1015_v60 }
 0x127   : > { %1461 = vmatprep.subr.bf16.mxu1 %v1013_v57 }
 0x129   : > { %1252 = vmatpush1.bf16.msra.mxu0 %v1014_v63 }
 0x12a   : > { %1462 = vmatpush1.bf16.msra.mxu1 %v1012_v61  ;;  %1253 = vmatprep.subr.bf16.mxu0 %v1019_v1 }
 0x12b   : > { %1463 = vmatprep.subr.bf16.mxu1 %v1017_v62 }
 0x12d   : > { %1254 = vmatpush1.bf16.msra.mxu0 %v1018_v4 }
 0x12e   : > { %1464 = vmatpush1.bf16.msra.mxu1 %v1016_v2  ;;  %1255 = vmatprep.subr.bf16.mxu0 %v1023_v5 }
 0x12f   : > { %1465 = vmatprep.subr.bf16.mxu1 %v1021_v3 }
 0x131   : > { %1256 = vmatpush1.bf16.msra.mxu0 %v1022_v7 }
 0x132   : > { %1466 = vmatpush1.bf16.msra.mxu1 %v1020_v8  ;;  %1257 = vmatprep.subr.bf16.mxu0 %v1027_v9 }
 0x133   : > { %1467 = vmatprep.subr.bf16.mxu1 %v1025_v6 }
 0x135   : > { %1258 = vmatpush1.bf16.msra.mxu0 %v1026_v11 }
 0x136   : > { %1468 = vmatpush1.bf16.msra.mxu1 %v1024_v12  ;;  %1259 = vmatprep.subr.bf16.mxu0 %v1031_v13 }
 0x137   : > { %1469 = vmatprep.subr.bf16.mxu1 %v1029_v10 }
 0x139   : > { %1260 = vmatpush1.bf16.msra.mxu0 %v1030_v15 }
 0x13a   : > { %1470 = vmatpush1.bf16.msra.mxu1 %v1028_v16  ;;  %1261 = vmatprep.subr.bf16.mxu0 %v1035_v17 }
 0x13b   : > { %1471 = vmatprep.subr.bf16.mxu1 %v1033_v14 }
 0x13d   : > { %1262 = vmatpush1.bf16.msra.mxu0 %v1034_v19 }
 0x13e   : > { %1472 = vmatpush1.bf16.msra.mxu1 %v1032_v20  ;;  %1263 = vmatprep.subr.bf16.mxu0 %v1039_v21  ;;  %v1566_v52 = vpop.permute.xlu0 %1565 }
 0x13f   : > { %1473 = vmatprep.subr.bf16.mxu1 %v1037_v18 }
 0x141   : > { %1264 = vmatpush1.bf16.msra.mxu0 %v1038_v23 }
 0x142   : > { %1474 = vmatpush1.bf16.msra.mxu1 %v1036_v24  ;;  %1286 = vmatprep.subr.bf16.mxu0 %v1043_v26  ;;  %v1581_v9 = vpop.permute.xlu0 %1580 }
 0x143   : > { %1475 = vmatprep.subr.bf16.mxu1 %v1041_v22 }
 0x144   : > { %1266 = vmatmul.mubr.bf16.vlgmr.msra.gmra.mrb[0].mxu0 %v1807_v25 }
 0x145   : > { %1287 = vmatpush1.bf16.msra.mxu0 %v1042_v29  ;;  %1275 = vmatprep.mubr.bf16.mxu0 %v1810_v28 }
 0x146   : > { %1476 = vmatpush1.bf16.msra.mxu1 %v1040_v30  ;;  %1288 = vmatprep.subr.bf16.mxu0 %v1047_v31 }
 0x147   : > { %1498 = vmatprep.subr.bf16.mxu1 %v1045_v27 }
 0x149   : > { %1478 = vmatmul.mubr.bf16.vlgmr.msra.gmra.mrb[0].mxu1 %v1807_v25  ;;  %1289 = vmatpush1.bf16.msra.mxu0 %v1046_v33 }
 0x14a   : > { %1499 = vmatpush1.bf16.msra.mxu1 %v1044_v34  ;;  %1487 = vmatprep.mubr.bf16.mxu1 %v1810_v28 }
 0x14b   : > { %1500 = vmatprep.subr.bf16.mxu1 %v1049_v32 }
 0x14c   : > { %1276 = vmatmul.mubr.bf16.gmra.mrb[4].mxu0 %v1812_v35 }
 0x14d   : > { %1318 = vmatprep.mubr.bf16.mxu0 %v1823_v0 }
 0x14e   : > { %1501 = vmatpush1.bf16.msra.mxu1 %v1048_v36 }
 0x151   : > { %1488 = vmatmul.mubr.bf16.gmra.mrb[4].mxu1 %v1812_v35 }
 0x152   : > { %1530 = vmatprep.mubr.bf16.mxu1 %v1823_v0 }
 0x154   : > { %1693 = vmatmul.mubr.msk.bf16.vlgmr.msra.gmra.mrb[0].mxu0 %vm1120_vm2, %v1813_v37 }
 0x155   : > { %1328 = vmatprep.mubr.bf16.mxu0 %v1823_v0 }
 0x159   : > { %1695 = vmatmul.mubr.msk.bf16.vlgmr.msra.gmra.mrb[0].mxu1 %vm1120_vm2, %v1813_v37 }
 0x15a   : > { %1540 = vmatprep.mubr.bf16.mxu1 %v1823_v0  ;;  %v1571_v0 = vpop.permute.xlu1 %1570 }
 0x15c   : > { %1694 = vmatmul.mubr.msk.bf16.gmra.mrb[4].mxu0 %vm1120_vm2, %v1814_v38 }
 0x15e   : > { %v1576_v8 = vpop.permute.xlu1 %1575 }
 0x161   : > { %1696 = vmatmul.mubr.msk.bf16.gmra.mrb[4].mxu1 %vm1120_vm2, %v1814_v38 }
 0x227   : > { %v1320_v39 = vpop.f32.mrb[0].mxu0 }
 0x228   : > { %v1322_v40 = vpop.f32.mrb[1].mxu0 }
 0x229   : > { %v1551_v41 = vmax.f32 %v1320_v39, %v1322_v40  ;;  %v1324_v42 = vpop.f32.mrb[2].mxu0 }
 0x22a   : > { %v1326_v43 = vpop.f32.mrb[3].mxu0 }
 0x22b   : > { %v1552_v44 = vmax.f32 %v1324_v42, %v1326_v43 }
 0x22c   : > { %v1532_v45 = vpop.f32.mrb[0].mxu1 }
 0x22d   : > { %v1534_v46 = vpop.f32.mrb[1].mxu1 }
 0x22e   : > { %v1555_v47 = vmax.f32 %v1532_v45, %v1534_v46  ;;  %v1536_v48 = vpop.f32.mrb[2].mxu1 }
 0x22f   : > { %v1538_v49 = vpop.f32.mrb[3].mxu1  ;;  %v1330_v51 = vpop.f32.mrb[4].mxu0 }
 0x230   : > { %v1556_v50 = vmax.f32 %v1536_v48, %v1538_v49  ;;  %v1559_v53 = vmax.f32 %v1551_v41, %v1555_v47  ;;  %v1332_v54 = vpop.f32.mrb[5].mxu0 }
 0x231   : > { %v1553_v55 = vmax.f32 %v1330_v51, %v1332_v54  ;;  %v1334_v56 = vpop.f32.mrb[6].mxu0 }
 0x232   : > { %v1560_v57 = vmax.f32 %v1552_v44, %v1556_v50  ;;  %v1336_v58 = vpop.f32.mrb[7].mxu0  ;;  %v1583_v59 = vadd.f32 %v1566_v52, %v1559_v53 }
 0x233   : > { %v1554_v61 = vmax.f32 %v1334_v56, %v1336_v58 }
 0x234   : > { %v1584_v60 = vadd.f32 %v1571_v0, %v1560_v57  ;;  %v1542_v62 = vpop.f32.mrb[4].mxu1 }
 0x235   : > { %v1544_v63 = vpop.f32.mrb[5].mxu1 }
 0x236   : > { %v1712_v1 = vpack.c.bf16 %v1584_v60, %v1583_v59  ;;  %v1557_v2 = vmax.f32 %v1542_v62, %v1544_v63  ;;  %v1546_v3 = vpop.f32.mrb[6].mxu1 }
 0x237   : > { %v1548_v4 = vpop.f32.mrb[7].mxu1 }
 0x238   : > { %1713 = vst [vmem:[%s170_s16] sm:$0xff] %v1712_v1   ;;  %v1558_v5 = vmax.f32 %v1546_v3, %v1548_v4  ;;  %v1561_v6 = vmax.f32 %v1553_v55, %v1557_v2 }
 0x23a   : > { %v1562_v7 = vmax.f32 %v1554_v61, %v1558_v5  ;;  %v1585_v10 = vadd.f32 %v1576_v8, %v1561_v6 }
 0x23c   : > { %v1586_v11 = vadd.f32 %v1581_v9, %v1562_v7 }
 0x23e   : > { %v1717_v12 = vpack.c.bf16 %v1586_v11, %v1585_v10 }
 0x240   : > { %1719 = vst [vmem:[%s170_s16 + $0x8] sm:$0xff] %v1717_v12  }
 0x241 PF: > { %s13_s12 = sadd.s32 1, %s1821_s12  }
 0x242   : > { %p10_p4 = scmp.ge.s32.totalorder %s13_s12, 4  }
 0x244   :  { %12 = sbr.rel (!%p10_p4) target bundleno = 1 (0x1), region = 62 }

// kernel: forward.7
= control target key start
LH: loop header
LB: loop body
LE: loop exit
PB: predicated region body
PF: predicated region fallthrough
CT: control target
= control target key end

     0   :  { %v157_v28 = vlaneseq  ;;  %v1013_v36 = vmov 1966171168   ;;  %s1258_s0 = inlined_call_operand.vmem [shape: bf16[2,1024], index: 0, kind: input, shape index: {}]   ;;  %s1259_s1 = inlined_call_operand.vmem [shape: bf16[1024,128], index: 1, kind: input, shape index: {}]   ;;  %s1260_s2 = inlined_call_operand.vmem [shape: f32[1,128], index: 2, kind: input, shape index: {}]   ;;  %s1261_s3 = inlined_call_operand.hbm [shape: f32[2,128], index: 3, kind: output, shape index: {}]  }
   0x1   :  { %v924_v0 = vld [vmem:[%s1259_s1 + $0x40] sm:$0xff]   ;;  %v928_v4 = vld [vmem:[%s1259_s1 + $0x48] sm:$0xff]   ;;  %v932_v8 = vld [vmem:[%s1259_s1 + $0x50] sm:$0xff]   ;;  %v155_v37 = vunpack.c.l.s4 %v1013_v36 }
   0x2   :  { %v925_v1 = vld [vmem:[%s1259_s1 + $0xc0] sm:$0xff]   ;;  %834 = vmatprep.subr.bf16.mxu0 %v924_v0  ;;  %v929_v5 = vld [vmem:[%s1259_s1 + $0xc8] sm:$0xff]   ;;  %v933_v9 = vld [vmem:[%s1259_s1 + $0xd0] sm:$0xff]   ;;  %v158_v33 = vshrl.u32 %v157_v28, 7 }
   0x3   :  { %v926_v2 = vld [vmem:[%s1259_s1] sm:$0xff]   ;;  %856 = vmatprep.subr.bf16.mxu1 %v925_v1  ;;  %v930_v6 = vld [vmem:[%s1259_s1 + $0x8] sm:$0xff]   ;;  %v934_v10 = vld [vmem:[%s1259_s1 + $0x10] sm:$0xff]   ;;  %v156_v40 = vunpack.c.0.s8 %v155_v37 }
   0x4   :  { %v927_v3 = vld [vmem:[%s1259_s1 + $0x80] sm:$0xff]   ;;  %835 = vmatpush3.bf16.msra.mxu0 %v926_v2  ;;  %v931_v7 = vld [vmem:[%s1259_s1 + $0x88] sm:$0xff]   ;;  %v935_v11 = vld [vmem:[%s1259_s1 + $0x90] sm:$0xff]  }
   0x5   :  { %857 = vmatpush3.bf16.msra.mxu1 %v927_v3  ;;  %836 = vmatprep.subr.bf16.mxu0 %v928_v4  ;;  %v936_v12 = vld [vmem:[%s1259_s1 + $0x58] sm:$0xff]   ;;  %v940_v16 = vld [vmem:[%s1259_s1 + $0x60] sm:$0xff]   ;;  %v944_v20 = vld [vmem:[%s1259_s1 + $0x68] sm:$0xff]   ;;  %v1140_v41 = vsub.s32 %v156_v40, %v158_v33 }
   0x6   :  { %858 = vmatprep.subr.bf16.mxu1 %v929_v5  ;;  %v937_v13 = vld [vmem:[%s1259_s1 + $0xd8] sm:$0xff]   ;;  %v941_v17 = vld [vmem:[%s1259_s1 + $0xe0] sm:$0xff]   ;;  %v945_v21 = vld [vmem:[%s1259_s1 + $0xe8] sm:$0xff]  }
   0x7   :  { %v938_v14 = vld [vmem:[%s1259_s1 + $0x18] sm:$0xff]   ;;  %v942_v18 = vld [vmem:[%s1259_s1 + $0x20] sm:$0xff]   ;;  %v946_v22 = vld [vmem:[%s1259_s1 + $0x28] sm:$0xff]  }
   0x8   :  { %837 = vmatpush3.bf16.msra.mxu0 %v930_v6  ;;  %v939_v15 = vld [vmem:[%s1259_s1 + $0x98] sm:$0xff]   ;;  %v943_v19 = vld [vmem:[%s1259_s1 + $0xa0] sm:$0xff]   ;;  %v947_v23 = vld [vmem:[%s1259_s1 + $0xa8] sm:$0xff]  }
   0x9   :  { %859 = vmatpush3.bf16.msra.mxu1 %v931_v7  ;;  %838 = vmatprep.subr.bf16.mxu0 %v932_v8  ;;  %v948_v24 = vld [vmem:[%s1259_s1 + $0x70] sm:$0xff]   ;;  %v952_v29 = vld [vmem:[%s1259_s1 + $0x78] sm:$0xff]   ;;  %v16_v34 = vld [vmem:[%s1258_s0] sm:$0xff] }
   0xa   :  { %860 = vmatprep.subr.bf16.mxu1 %v933_v9  ;;  %v949_v25 = vld [vmem:[%s1259_s1 + $0xf0] sm:$0xff]   ;;  %v953_v30 = vld [vmem:[%s1259_s1 + $0xf8] sm:$0xff]   ;;  %v957_v35 = vld [vmem:[%s1259_s1 + $0x140] sm:$0xff]   ;;  %v153_v39 = vcombine.high %v16_v34, %v16_v34  ;;  %v160_v42 = vrot.slane %v16_v34, %v1140_v41 }
   0xb   :  { %v950_v26 = vld [vmem:[%s1259_s1 + $0x30] sm:$0xff]   ;;  %v954_v31 = vld [vmem:[%s1259_s1 + $0x38] sm:$0xff]   ;;  %v958_v38 = vld [vmem:[%s1259_s1 + $0x1c0] sm:$0xff]  }
   0xc   :  { %839 = vmatpush3.bf16.msra.mxu0 %v934_v10  ;;  %v951_v27 = vld [vmem:[%s1259_s1 + $0xb0] sm:$0xff]   ;;  %v955_v32 = vld [vmem:[%s1259_s1 + $0xb8] sm:$0xff]   ;;  %v1144_v43 = vrot.slane %v153_v39, %v1140_v41  ;;  %v168_v44 = vcombine.high %v160_v42, %v160_v42  ;;  %v176_v45 = vrot.slane %v160_v42, %v1140_v41  ;;  %v959_v48 = vld [vmem:[%s1259_s1 + $0x100] sm:$0xff]  }
   0xd   :  { %861 = vmatpush3.bf16.msra.mxu1 %v935_v11  ;;  %840 = vmatprep.subr.bf16.mxu0 %v936_v12  ;;  %v961_v51 = vld [vmem:[%s1259_s1 + $0x148] sm:$0xff]   ;;  %v960_v53 = vld [vmem:[%s1259_s1 + $0x180] sm:$0xff]   ;;  %v965_v57 = vld [vmem:[%s1259_s1 + $0x150] sm:$0xff]  }
   0xe   :  { %862 = vmatprep.subr.bf16.mxu1 %v937_v13  ;;  %v169_v46 = vcombine.high %v1144_v43, %v1144_v43  ;;  %v190_v47 = vrot.slane %v168_v44, %v1140_v41  ;;  %v198_v50 = vcombine.high %v176_v45, %v176_v45  ;;  %v962_v54 = vld [vmem:[%s1259_s1 + $0x1c8] sm:$0xff]   ;;  %v966_v59 = vld [vmem:[%s1259_s1 + $0x1d0] sm:$0xff]   ;;  %v969_v61 = vld [vmem:[%s1259_s1 + $0x158] sm:$0xff]  }
   0xf   :  { %v963_v56 = vld [vmem:[%s1259_s1 + $0x108] sm:$0xff]   ;;  %v967_v60 = vld [vmem:[%s1259_s1 + $0x110] sm:$0xff]   ;;  %v970_v63 = vld [vmem:[%s1259_s1 + $0x1d8] sm:$0xff]  }
  0x10   :  { %841 = vmatpush3.bf16.msra.mxu0 %v938_v14  ;;  %v197_v49 = vrot.slane %v169_v46, %v1140_v41  ;;  %626 = vmatprep.mubr.bf16.mxu0 %v190_v47  ;;  %v200_v52 = vcombine.high %v190_v47, %v190_v47  ;;  %v964_v58 = vld [vmem:[%s1259_s1 + $0x188] sm:$0xff]   ;;  %v968_v62 = vld [vmem:[%s1259_s1 + $0x190] sm:$0xff]   ;;  %v971_v0 = vld [vmem:[%s1259_s1 + $0x118] sm:$0xff]  }
  0x11   :  { %863 = vmatpush3.bf16.msra.mxu1 %v939_v15  ;;  %842 = vmatprep.subr.bf16.mxu0 %v940_v16  ;;  %v973_v1 = vld [vmem:[%s1259_s1 + $0x160] sm:$0xff]   ;;  %v972_v2 = vld [vmem:[%s1259_s1 + $0x198] sm:$0xff]   ;;  %v977_v5 = vld [vmem:[%s1259_s1 + $0x168] sm:$0xff]  }
  0x12   :  { %864 = vmatprep.subr.bf16.mxu1 %v941_v17  ;;  %v201_v55 = vcombine.high %v197_v49, %v197_v49  ;;  %666 = vmatprep.mubr.bf16.mxu1 %v200_v52  ;;  %v974_v3 = vld [vmem:[%s1259_s1 + $0x1e0] sm:$0xff]   ;;  %v978_v7 = vld [vmem:[%s1259_s1 + $0x1e8] sm:$0xff]   ;;  %v981_v9 = vld [vmem:[%s1259_s1 + $0x170] sm:$0xff]  }
  0x13   :  { %v975_v4 = vld [vmem:[%s1259_s1 + $0x120] sm:$0xff]   ;;  %v979_v8 = vld [vmem:[%s1259_s1 + $0x128] sm:$0xff]  }
  0x14   :  { %843 = vmatpush3.bf16.msra.mxu0 %v942_v18  ;;  %v976_v6 = vld [vmem:[%s1259_s1 + $0x1a0] sm:$0xff]  }
  0x15   :  { %865 = vmatpush3.bf16.msra.mxu1 %v943_v19  ;;  %844 = vmatprep.subr.bf16.mxu0 %v944_v20 }
  0x16   :  { %866 = vmatprep.subr.bf16.mxu1 %v945_v21 }
  0x18   :  { %845 = vmatpush3.bf16.msra.mxu0 %v946_v22 }
  0x19   :  { %867 = vmatpush3.bf16.msra.mxu1 %v947_v23  ;;  %846 = vmatprep.subr.bf16.mxu0 %v948_v24 }
  0x1a   :  { %868 = vmatprep.subr.bf16.mxu1 %v949_v25 }
  0x1c   :  { %847 = vmatpush3.bf16.msra.mxu0 %v950_v26 }
  0x1d   :  { %869 = vmatpush3.bf16.msra.mxu1 %v951_v27  ;;  %848 = vmatprep.subr.bf16.mxu0 %v952_v29 }
  0x1e   :  { %870 = vmatprep.subr.bf16.mxu1 %v953_v30 }
  0x20   :  { %849 = vmatpush3.bf16.msra.mxu0 %v954_v31 }
  0x21   :  { %871 = vmatpush3.bf16.msra.mxu1 %v955_v32  ;;  %878 = vmatprep.subr.bf16.mxu0 %v957_v35 }
  0x22   :  { %900 = vmatprep.subr.bf16.mxu1 %v958_v38 }
  0x23   :  { %627 = vmatmul.mubr.bf16.vlgmr.msra.gmra.mrb[0].mxu0 %v176_v45 }
  0x24   :  { %879 = vmatpush3.bf16.msra.mxu0 %v959_v48  ;;  %667 = vmatmul.mubr.bf16.vlgmr.msra.gmra.mrb[0].mxu1 %v198_v50 }
  0x25   :  { %880 = vmatprep.subr.bf16.mxu0 %v961_v51  ;;  %901 = vmatpush3.bf16.msra.mxu1 %v960_v53 }
  0x26   :  { %706 = vmatprep.mubr.bf16.mxu0 %v197_v49  ;;  %902 = vmatprep.subr.bf16.mxu1 %v962_v54 }
  0x27   :  { %746 = vmatprep.mubr.bf16.mxu1 %v201_v55 }
  0x28   :  { %881 = vmatpush3.bf16.msra.mxu0 %v963_v56 }
  0x29   :  { %882 = vmatprep.subr.bf16.mxu0 %v965_v57  ;;  %903 = vmatpush3.bf16.msra.mxu1 %v964_v58 }
  0x2a   :  { %904 = vmatprep.subr.bf16.mxu1 %v966_v59 }
  0x2c   :  { %883 = vmatpush3.bf16.msra.mxu0 %v967_v60 }
  0x2d   :  { %884 = vmatprep.subr.bf16.mxu0 %v969_v61  ;;  %905 = vmatpush3.bf16.msra.mxu1 %v968_v62 }
  0x2e   :  { %906 = vmatprep.subr.bf16.mxu1 %v970_v63 }
  0x30   :  { %885 = vmatpush3.bf16.msra.mxu0 %v971_v0 }
  0x31   :  { %886 = vmatprep.subr.bf16.mxu0 %v973_v1  ;;  %907 = vmatpush3.bf16.msra.mxu1 %v972_v2 }
  0x32   :  { %908 = vmatprep.subr.bf16.mxu1 %v974_v3 }
  0x34   :  { %887 = vmatpush3.bf16.msra.mxu0 %v975_v4 }
  0x35   :  { %888 = vmatprep.subr.bf16.mxu0 %v977_v5 }
  0x36   :  { %8 = vsyncpa [#allocation3], 0  ;;  %909 = vmatpush3.bf16.msra.mxu1 %v976_v6  ;;  %v980_v10 = vld [vmem:[%s1259_s1 + $0x1a8] sm:$0xff]   ;;  %v982_v11 = vld [vmem:[%s1259_s1 + $0x1f0] sm:$0xff]   ;;  %v183_v17 = vrot.slane %v1144_v43, %v1140_v41 }
  0x37   :  { %910 = vmatprep.subr.bf16.mxu1 %v978_v7  ;;  %v983_v12 = vld [vmem:[%s1259_s1 + $0x130] sm:$0xff]   ;;  %v985_v13 = vld [vmem:[%s1259_s1 + $0x178] sm:$0xff]   ;;  %v769_v21 = vld [vmem:[%s1260_s2] ss:$0 sm:$0xff] }
  0x38   :  { %889 = vmatpush3.bf16.msra.mxu0 %v979_v8  ;;  %v984_v14 = vld [vmem:[%s1259_s1 + $0x1b0] sm:$0xff]   ;;  %v986_v15 = vld [vmem:[%s1259_s1 + $0x1f8] sm:$0xff]   ;;  %v199_v19 = vcombine.high %v183_v17, %v183_v17 }
  0x39   :  { %890 = vmatprep.subr.bf16.mxu0 %v981_v9  ;;  %v987_v16 = vld [vmem:[%s1259_s1 + $0x138] sm:$0xff]  }
  0x3a   :  { %911 = vmatpush3.bf16.msra.mxu1 %v980_v10  ;;  %v988_v18 = vld [vmem:[%s1259_s1 + $0x1b8] sm:$0xff]   ;;  %s1014_s1 = smov [#allocation2]  }
  0x3b   :  { %912 = vmatprep.subr.bf16.mxu1 %v982_v11  ;;  %s761_s2 = sshll.u32 %s1014_s1, 4  ;;  %s762_s2 = int_to_ptr.vmem [resolvable:$true] %s761_s2 }
  0x3c   :  { %891 = vmatpush3.bf16.msra.mxu0 %v983_v12  ;;  %s989_s6 = scalar_lea.vmem %s762_s2, 32  ;;  %p994_p1 = scmp.lt.s32.totalorder %s762_s2, %s762_s2 }
  0x3d   :  { %892 = vmatprep.subr.bf16.mxu0 %v985_v13  ;;  %p990_p0 = scmp.ne.s32.totalorder %s762_s2, %s989_s6  ;;  %p995_p2 = scmp.lt.s32.totalorder %s989_s6, %s989_s6 }
  0x3e   :  { %913 = vmatpush3.bf16.msra.mxu1 %v984_v14 }
  0x3f   :  { %914 = vmatprep.subr.bf16.mxu1 %v986_v15  ;;  %p996_p3 = por %p995_p2, %p994_p1 }
  0x40   :  { %893 = vmatpush3.bf16.msra.mxu0 %v987_v16 }
  0x41   :  { %p997_p4 = pnand %p996_p3, %p990_p0 }
  0x42   :  { %915 = vmatpush3.bf16.msra.mxu1 %v988_v18 }
  0x43   :  { %707 = vmatmul.mubr.bf16.vlgmr.msra.gmra.mrb[4].mxu0 %v183_v17 }
  0x45   :  { %747 = vmatmul.mubr.bf16.vlgmr.msra.gmra.mrb[4].mxu1 %v199_v19 }
  0xf6   :  { %v850_v20 = vpop.f32.mrb[0].mxu0 }
  0xf7   :  { %v851_v22 = vpop.f32.mrb[1].mxu0  ;;  %v872_v23 = vpop.f32.mrb[0].mxu1 }
  0xf8   :  { %v852_v24 = vadd.f32 %v851_v22, %v850_v20  ;;  %v853_v25 = vpop.f32.mrb[2].mxu0  ;;  %v873_v26 = vpop.f32.mrb[1].mxu1 }
  0xf9   :  { %v854_v27 = vpop.f32.mrb[3].mxu0  ;;  %v874_v29 = vadd.f32 %v873_v26, %v872_v23  ;;  %v875_v30 = vpop.f32.mrb[2].mxu1 }
  0xfa   :  { %v629_v28 = vadd.f32 %v852_v24, %v769_v21  ;;  %v876_v31 = vpop.f32.mrb[3].mxu1 }
  0xfc   :  { %v669_v32 = vadd.f32 %v874_v29, %v629_v28 }
 0x116   :  { %v894_v33 = vpop.f32.mrb[4].mxu0 }
 0x117   :  { %v895_v34 = vpop.f32.mrb[5].mxu0 }
 0x118   :  { %v916_v35 = vpop.f32.mrb[4].mxu1  ;;  %v896_v36 = vadd.f32 %v895_v34, %v894_v33  ;;  %v897_v37 = vpop.f32.mrb[6].mxu0 }
 0x119   :  { %v917_v38 = vpop.f32.mrb[5].mxu1  ;;  %v898_v39 = vpop.f32.mrb[7].mxu0 }
 0x11a   :  { %v709_v40 = vadd.f32 %v896_v36, %v669_v32  ;;  %v918_v41 = vadd.f32 %v917_v38, %v916_v35  ;;  %v919_v42 = vpop.f32.mrb[6].mxu1 }
 0x11b   :  { %v920_v43 = vpop.f32.mrb[7].mxu1 }
 0x11c   :  { %v749_v44 = vadd.f32 %v918_v41, %v709_v40 }
 0x11e   :  { %754 = vst [vmem:[#allocation2] sm:$0x3] %v749_v44 }
 0x11f   :  { %1000 = shalt.err (!%p997_p4)
}
 0x120   :  { %s1001_s9 = scalar_lea.hbm %s1261_s3, 32 }
 0x121   :  { %p1002_p5 = scmp.ne.s32.totalorder %s1261_s3, %s1001_s9  ;;  %p1005_p6 = scmp.lt.u32.totalorder %s1001_s9, %s1261_s3 }
 0x123   :  { %p1007_p7 = pnand %p1005_p6, %p1002_p5 }
 0x125   :  { %1010 = shalt.err (!%p1007_p7)
}
 0x126   :  { %764 = dma.vmem_to_hbm [thread:$0]  %s762_s2, 32, %s1261_s3, [#allocation3]  }
 0x127   :  { %1011 = dma.done.wait [#allocation3], 32  }
 0x128   :  { %1012 = vsyncadd [#allocation3], 4294967264 }
 0x129   :  { %768 = vsyncpa [#allocation3], 1 }

// kernel: forward.6
= control target key start
LH: loop header
LB: loop body
LE: loop exit
PB: predicated region body
PF: predicated region fallthrough
CT: control target
= control target key end

     0   :  { %s2270_s12 = smov 0   ;;  %s3147_s0 = inlined_call_operand.vmem [shape: bf16[2,4,32,44], index: 0, kind: input, shape index: {}]   ;;  %s3148_s1 = inlined_call_operand.vmem [shape: bf16[64,800], index: 1, kind: input, shape index: {}]   ;;  %s3149_s2 = inlined_call_operand.vmem [shape: f32[64,1], index: 2, kind: input, shape index: {}]   ;;  %s3150_s3 = inlined_call_operand.vmem [shape: bf16[2,64,128], index: 3, kind: output, shape index: {}]  }
   0x1 LB: > { %s1974_s13 = sadd.s32 4294967295, %s2239_s12   ;;  %p1978_p0 = scmp.ge.s32.totalorder %s2239_s12, 1  ;;  %s2239_s12 = sphi %s2270_s12, %s13_s12  }
   0x2   : > { %p137_p1 = scmp.lt.s32.totalorder %s2239_s12, 3 }
   0x4   : > { %p138_p2 = pnand %p1978_p0, %p137_p1 }
   0x5   : > { %p2280_p3 = scmp.lt.s32.totalorder (!%p138_p2), %s1974_s13, 1  ;;  %vm212_vm0 = vcmask (!%p138_p2), 1047744   ;;  %v2241_v0 = vmov (!%p138_p2), 0   ;;  %vm441_vm1 = vcmask (!%p138_p2), 195584   ;;  %s2242_s19 = smov (!%p138_p2), 127   ;;  %vm1210_vm2 = vcmask (!%p138_p2), 261120  }
   0x6   : > { %141 = sbr.rel (%p138_p2) target bundleno = 609 (0x261), region = 32  ;;  %217 = vst.msk [vmem:[#allocation2 + $0x80] sm:$0xff] (!%p138_p2), %vm212_vm0, %v2241_v0  ;;  %265 = vst.msk [vmem:[#allocation2 + $0x48] sm:$0xff] (!%p138_p2), %vm212_vm0, %v2241_v0  ;;  %2183 = vset.pattern.permute.xlu0 (!%p138_p2), %v2241_v0  ;;  %2184 = vset.pattern.permute.xlu1 (!%p138_p2), %v2241_v0  ;;  %s2243_s20 = smov (!%p138_p2), 126   ;;  %v2195_v17 = vld [vmem:[%s3148_s1 + $0x4] ss:$28 sps:$4 sm:$0xff] (!%p138_p2)  }
   0x7   : > { %213 = vst.msk [vmem:[#allocation2] sm:$0xff] (!%p138_p2), %vm212_vm0, %v2241_v0  ;;  %214 = vst.msk [vmem:[#allocation2 + $0x20] sm:$0xff] (!%p138_p2), %vm212_vm0, %v2241_v0  ;;  %s2244_s21 = smov (!%p138_p2), 122   ;;  %s2245_s22 = smov (!%p138_p2), 121   ;;  %1255 = vmatprep.mubr.bf16.mxu0 (!%p138_p2), %v2195_v17  ;;  %1547 = vmatprep.mubr.bf16.mxu1 (!%p138_p2), %v2195_v17 }
   0x8   : > { %215 = vst.msk [vmem:[#allocation2 + $0x40] sm:$0xff] (!%p138_p2), %vm212_vm0, %v2241_v0  ;;  %216 = vst.msk [vmem:[#allocation2 + $0x60] sm:$0xff] (!%p138_p2), %vm212_vm0, %v2241_v0  ;;  %s2246_s23 = smov (!%p138_p2), 120   ;;  %s2247_s26 = smov (!%p138_p2), 116  }
   0x9   : > { %218 = vst.msk [vmem:[#allocation2 + $0xa0] sm:$0xff] (!%p138_p2), %vm212_vm0, %v2241_v0  ;;  %219 = vst.msk [vmem:[#allocation2 + $0xc0] sm:$0xff] (!%p138_p2), %vm212_vm0, %v2241_v0  ;;  %s2248_s27 = smov (!%p138_p2), 115   ;;  %s2249_s28 = smov (!%p138_p2), 114  }
   0xa   : > { %220 = vst.msk [vmem:[#allocation2 + $0xe0] sm:$0xff] (!%p138_p2), %vm212_vm0, %v2241_v0  ;;  %221 = vst.msk [vmem:[#allocation2 + $0x100] sm:$0xff] (!%p138_p2), %vm212_vm0, %v2241_v0 }
   0xb   : > { %222 = vst.msk [vmem:[#allocation2 + $0x120] sm:$0xff] (!%p138_p2), %vm212_vm0, %v2241_v0  ;;  %223 = vst.msk [vmem:[#allocation2 + $0x140] sm:$0xff] (!%p138_p2), %vm212_vm0, %v2241_v0 }
   0xc   : > { %224 = vst.msk [vmem:[#allocation2 + $0x160] sm:$0xff] (!%p138_p2), %vm212_vm0, %v2241_v0  ;;  %225 = vst.msk [vmem:[#allocation2 + $0x180] sm:$0xff] (!%p138_p2), %vm212_vm0, %v2241_v0 }
   0xd   : > { %226 = vst.msk [vmem:[#allocation2 + $0x1a0] sm:$0xff] %vm212_vm0, %v2241_v0  ;;  %227 = vst.msk [vmem:[#allocation2 + $0x1c0] sm:$0xff] %vm212_vm0, %v2241_v0  ;;  %s3153_s13 = smov (!%p2280_p3, %s1974_s13), 1 }
   0xe   : > { %228 = vst.msk [vmem:[#allocation2 + $0x1e0] sm:$0xff] %vm212_vm0, %v2241_v0  ;;  %229 = vst.msk [vmem:[#allocation2 + $0x200] sm:$0xff] %vm212_vm0, %v2241_v0  ;;  %s2037_s15 = sshll.u32 %s3153_s13, 6  ;;  %s2038_s24 = sshll.u32 %s3153_s13, 5 }
   0xf   : > { %230 = vst.msk [vmem:[#allocation2 + $0x220] sm:$0xff] %vm212_vm0, %v2241_v0  ;;  %231 = vst.msk [vmem:[#allocation2 + $0x240] sm:$0xff] %vm212_vm0, %v2241_v0  ;;  %s165_s18 = scalar_lea.vmem %s3147_s0, %s2037_s15 }
  0x10   : > { %232 = vst.msk [vmem:[#allocation2 + $0x260] sm:$0xff] %vm212_vm0, %v2241_v0  ;;  %233 = vst.msk [vmem:[#allocation2 + $0x280] sm:$0xff] %vm212_vm0, %v2241_v0  ;;  %v2696_v1 = vld [vmem:[%s165_s18] sm:$0xff]   ;;  %v2698_v2 = vld [vmem:[%s165_s18 + $0x8] sm:$0xff]  }
  0x11   : > { %234 = vst.msk [vmem:[#allocation2 + $0x2a0] sm:$0xff] %vm212_vm0, %v2241_v0  ;;  %235 = vst.msk [vmem:[#allocation2 + $0x2c0] sm:$0xff] %vm212_vm0, %v2241_v0  ;;  %458 = vrot.lane.b32.xlu0 %v2696_v1, %s2242_s19  ;;  %v2702_v3 = vld [vmem:[%s165_s18 + $0x20] sm:$0xff]   ;;  %460 = vrot.lane.b32.xlu1 %v2698_v2, %s2242_s19  ;;  %v2708_v4 = vld [vmem:[%s165_s18 + $0x28] sm:$0xff]  }
  0x12   : > { %236 = vst.msk [vmem:[#allocation2 + $0x2e0] sm:$0xff] %vm212_vm0, %v2241_v0  ;;  %237 = vst.msk [vmem:[#allocation2 + $0x300] sm:$0xff] %vm212_vm0, %v2241_v0  ;;  %v2712_v5 = vld [vmem:[%s165_s18 + $0x10] sm:$0xff]   ;;  %v2726_v7 = vld [vmem:[%s165_s18 + $0x18] sm:$0xff]  }
  0x13   : > { %238 = vst.msk [vmem:[#allocation2 + $0x320] sm:$0xff] %vm212_vm0, %v2241_v0  ;;  %239 = vst.msk [vmem:[#allocation2 + $0x340] sm:$0xff] %vm212_vm0, %v2241_v0  ;;  %v2718_v6 = vld [vmem:[%s165_s18 + $0x30] sm:$0xff]   ;;  %v2734_v8 = vld [vmem:[%s165_s18 + $0x38] sm:$0xff]  }
  0x14   : > { %240 = vst.msk [vmem:[#allocation2 + $0x360] sm:$0xff] %vm212_vm0, %v2241_v0  ;;  %241 = vst.msk [vmem:[#allocation2 + $0x380] sm:$0xff] %vm212_vm0, %v2241_v0 }
  0x15   : > { %242 = vst.msk [vmem:[#allocation2 + $0x3a0] sm:$0xff] %vm212_vm0, %v2241_v0  ;;  %243 = vst.msk [vmem:[#allocation2 + $0x3c0] sm:$0xff] %vm212_vm0, %v2241_v0  ;;  %510 = vrot.lane.b32.xlu0 %v2702_v3, %s2242_s19  ;;  %512 = vrot.lane.b32.xlu1 %v2708_v4, %s2242_s19 }
  0x16   : > { %244 = vst.msk [vmem:[#allocation2 + $0x3e0] sm:$0xff] %vm212_vm0, %v2241_v0  ;;  %245 = vst.msk [vmem:[#allocation2 + $0x400] sm:$0xff] %vm212_vm0, %v2241_v0 }
  0x17   : > { %246 = vst.msk [vmem:[#allocation2 + $0x420] sm:$0xff] %vm212_vm0, %v2241_v0  ;;  %247 = vst.msk [vmem:[#allocation2 + $0x440] sm:$0xff] %vm212_vm0, %v2241_v0 }
  0x18   : > { %248 = vst.msk [vmem:[#allocation2 + $0x460] sm:$0xff] %vm212_vm0, %v2241_v0  ;;  %249 = vst.msk [vmem:[#allocation2 + $0x480] sm:$0xff] %vm212_vm0, %v2241_v0 }
  0x19   : > { %250 = vst.msk [vmem:[#allocation2 + $0x4a0] sm:$0xff] %vm212_vm0, %v2241_v0  ;;  %251 = vst.msk [vmem:[#allocation2 + $0x4c0] sm:$0xff] %vm212_vm0, %v2241_v0  ;;  %466 = vrot.lane.b32.xlu0 %v2712_v5, %s2242_s19  ;;  %518 = vrot.lane.b32.xlu1 %v2718_v6, %s2242_s19 }
  0x1a   : > { %252 = vst.msk [vmem:[#allocation2 + $0x4e0] sm:$0xff] %vm212_vm0, %v2241_v0  ;;  %253 = vst.msk [vmem:[#allocation2 + $0x500] sm:$0xff] %vm212_vm0, %v2241_v0 }
  0x1b   : > { %254 = vst.msk [vmem:[#allocation2 + $0x520] sm:$0xff] %vm212_vm0, %v2241_v0  ;;  %255 = vst.msk [vmem:[#allocation2 + $0x540] sm:$0xff] %vm212_vm0, %v2241_v0 }
  0x1c   : > { %256 = vst.msk [vmem:[#allocation2 + $0x560] sm:$0xff] %vm212_vm0, %v2241_v0  ;;  %257 = vst.msk [vmem:[#allocation2 + $0x580] sm:$0xff] %vm212_vm0, %v2241_v0 }
  0x1d   : > { %258 = vst.msk [vmem:[#allocation2 + $0x5a0] sm:$0xff] %vm212_vm0, %v2241_v0  ;;  %259 = vst.msk [vmem:[#allocation2 + $0x5c0] sm:$0xff] %vm212_vm0, %v2241_v0  ;;  %468 = vrot.lane.b32.xlu0 %v2726_v7, %s2242_s19  ;;  %520 = vrot.lane.b32.xlu1 %v2734_v8, %s2242_s19 }
  0x1e   : > { %260 = vst.msk [vmem:[#allocation2 + $0x5e0] sm:$0xff] %vm212_vm0, %v2241_v0  ;;  %261 = vst.msk [vmem:[#allocation2 + $0x600] sm:$0xff] %vm212_vm0, %v2241_v0 }
  0x1f   : > { %262 = vst.msk [vmem:[#allocation2 + $0x620] sm:$0xff] %vm212_vm0, %v2241_v0  ;;  %263 = vst.msk [vmem:[#allocation2 + $0x8] sm:$0xff] %vm212_vm0, %v2241_v0 }
  0x20   : > { %264 = vst.msk [vmem:[#allocation2 + $0x28] sm:$0xff] %vm212_vm0, %v2241_v0  ;;  %266 = vst.msk [vmem:[#allocation2 + $0x68] sm:$0xff] %vm212_vm0, %v2241_v0 }
  0x21   : > { %267 = vst.msk [vmem:[#allocation2 + $0x88] sm:$0xff] %vm212_vm0, %v2241_v0  ;;  %268 = vst.msk [vmem:[#allocation2 + $0xa8] sm:$0xff] %vm212_vm0, %v2241_v0  ;;  %474 = vrot.lane.b32.xlu0 %v2696_v1, %s2243_s20  ;;  %526 = vrot.lane.b32.xlu1 %v2702_v3, %s2243_s20 }
  0x22   : > { %269 = vst.msk [vmem:[#allocation2 + $0xc8] sm:$0xff] %vm212_vm0, %v2241_v0  ;;  %270 = vst.msk [vmem:[#allocation2 + $0xe8] sm:$0xff] %vm212_vm0, %v2241_v0 }
  0x23   : > { %271 = vst.msk [vmem:[#allocation2 + $0x108] sm:$0xff] %vm212_vm0, %v2241_v0  ;;  %272 = vst.msk [vmem:[#allocation2 + $0x128] sm:$0xff] %vm212_vm0, %v2241_v0 }
  0x24   : > { %273 = vst.msk [vmem:[#allocation2 + $0x148] sm:$0xff] %vm212_vm0, %v2241_v0  ;;  %274 = vst.msk [vmem:[#allocation2 + $0x168] sm:$0xff] %vm212_vm0, %v2241_v0 }
  0x25   : > { %275 = vst.msk [vmem:[#allocation2 + $0x188] sm:$0xff] %vm212_vm0, %v2241_v0  ;;  %276 = vst.msk [vmem:[#allocation2 + $0x1a8] sm:$0xff] %vm212_vm0, %v2241_v0  ;;  %476 = vrot.lane.b32.xlu0 %v2698_v2, %s2243_s20  ;;  %528 = vrot.lane.b32.xlu1 %v2708_v4, %s2243_s20 }
  0x26   : > { %277 = vst.msk [vmem:[#allocation2 + $0x1c8] sm:$0xff] %vm212_vm0, %v2241_v0  ;;  %278 = vst.msk [vmem:[#allocation2 + $0x1e8] sm:$0xff] %vm212_vm0, %v2241_v0 }
  0x27   : > { %279 = vst.msk [vmem:[#allocation2 + $0x208] sm:$0xff] %vm212_vm0, %v2241_v0  ;;  %280 = vst.msk [vmem:[#allocation2 + $0x228] sm:$0xff] %vm212_vm0, %v2241_v0 }
  0x28   : > { %281 = vst.msk [vmem:[#allocation2 + $0x248] sm:$0xff] %vm212_vm0, %v2241_v0  ;;  %282 = vst.msk [vmem:[#allocation2 + $0x268] sm:$0xff] %vm212_vm0, %v2241_v0 }
  0x29   : > { %283 = vst.msk [vmem:[#allocation2 + $0x288] sm:$0xff] %vm212_vm0, %v2241_v0  ;;  %284 = vst.msk [vmem:[#allocation2 + $0x2a8] sm:$0xff] %vm212_vm0, %v2241_v0  ;;  %662 = vrot.lane.b32.xlu0 %v2712_v5, %s2243_s20  ;;  %678 = vrot.lane.b32.xlu1 %v2718_v6, %s2243_s20 }
  0x2a   : > { %285 = vst.msk [vmem:[#allocation2 + $0x2c8] sm:$0xff] %vm212_vm0, %v2241_v0  ;;  %286 = vst.msk [vmem:[#allocation2 + $0x2e8] sm:$0xff] %vm212_vm0, %v2241_v0 }
  0x2b   : > { %287 = vst.msk [vmem:[#allocation2 + $0x308] sm:$0xff] %vm212_vm0, %v2241_v0  ;;  %288 = vst.msk [vmem:[#allocation2 + $0x328] sm:$0xff] %vm212_vm0, %v2241_v0 }
  0x2c   : > { %289 = vst.msk [vmem:[#allocation2 + $0x348] sm:$0xff] %vm212_vm0, %v2241_v0  ;;  %290 = vst.msk [vmem:[#allocation2 + $0x368] sm:$0xff] %vm212_vm0, %v2241_v0 }
  0x2d   : > { %291 = vst.msk [vmem:[#allocation2 + $0x388] sm:$0xff] %vm212_vm0, %v2241_v0  ;;  %292 = vst.msk [vmem:[#allocation2 + $0x3a8] sm:$0xff] %vm212_vm0, %v2241_v0  ;;  %664 = vrot.lane.b32.xlu0 %v2726_v7, %s2243_s20  ;;  %680 = vrot.lane.b32.xlu1 %v2734_v8, %s2243_s20 }
  0x2e   : > { %293 = vst.msk [vmem:[#allocation2 + $0x3c8] sm:$0xff] %vm212_vm0, %v2241_v0  ;;  %294 = vst.msk [vmem:[#allocation2 + $0x3e8] sm:$0xff] %vm212_vm0, %v2241_v0 }
  0x2f   : > { %295 = vst.msk [vmem:[#allocation2 + $0x408] sm:$0xff] %vm212_vm0, %v2241_v0  ;;  %296 = vst.msk [vmem:[#allocation2 + $0x428] sm:$0xff] %vm212_vm0, %v2241_v0 }
  0x30   : > { %297 = vst.msk [vmem:[#allocation2 + $0x448] sm:$0xff] %vm212_vm0, %v2241_v0  ;;  %298 = vst.msk [vmem:[#allocation2 + $0x468] sm:$0xff] %vm212_vm0, %v2241_v0 }
  0x31   : > { %299 = vst.msk [vmem:[#allocation2 + $0x488] sm:$0xff] %vm212_vm0, %v2241_v0  ;;  %300 = vst.msk [vmem:[#allocation2 + $0x4a8] sm:$0xff] %vm212_vm0, %v2241_v0  ;;  %542 = vrot.lane.b32.xlu0 %v2712_v5, %s2244_s21  ;;  %534 = vrot.lane.b32.xlu1 %v2696_v1, %s2244_s21 }
  0x32   : > { %301 = vst.msk [vmem:[#allocation2 + $0x4c8] sm:$0xff] %vm212_vm0, %v2241_v0  ;;  %302 = vst.msk [vmem:[#allocation2 + $0x4e8] sm:$0xff] %vm212_vm0, %v2241_v0 }
  0x33   : > { %303 = vst.msk [vmem:[#allocation2 + $0x508] sm:$0xff] %vm212_vm0, %v2241_v0  ;;  %304 = vst.msk [vmem:[#allocation2 + $0x528] sm:$0xff] %vm212_vm0, %v2241_v0 }
  0x34   : > { %305 = vst.msk [vmem:[#allocation2 + $0x548] sm:$0xff] %vm212_vm0, %v2241_v0  ;;  %306 = vst.msk [vmem:[#allocation2 + $0x568] sm:$0xff] %vm212_vm0, %v2241_v0 }
  0x35   : > { %307 = vst.msk [vmem:[#allocation2 + $0x588] sm:$0xff] %vm212_vm0, %v2241_v0  ;;  %308 = vst.msk [vmem:[#allocation2 + $0x5a8] sm:$0xff] %vm212_vm0, %v2241_v0  ;;  %544 = vrot.lane.b32.xlu0 %v2726_v7, %s2244_s21  ;;  %536 = vrot.lane.b32.xlu1 %v2698_v2, %s2244_s21 }
  0x36   : > { %309 = vst.msk [vmem:[#allocation2 + $0x5c8] sm:$0xff] %vm212_vm0, %v2241_v0  ;;  %310 = vst.msk [vmem:[#allocation2 + $0x5e8] sm:$0xff] %vm212_vm0, %v2241_v0 }
  0x37   : > { %311 = vst.msk [vmem:[#allocation2 + $0x608] sm:$0xff] %vm212_vm0, %v2241_v0  ;;  %312 = vst.msk [vmem:[#allocation2 + $0x628] sm:$0xff] %vm212_vm0, %v2241_v0 }
  0x38   : > { %313 = vst.msk [vmem:[#allocation2 + $0x10] sm:$0xff] %vm212_vm0, %v2241_v0  ;;  %314 = vst.msk [vmem:[#allocation2 + $0x30] sm:$0xff] %vm212_vm0, %v2241_v0 }
  0x39   : > { %315 = vst.msk [vmem:[#allocation2 + $0x50] sm:$0xff] %vm212_vm0, %v2241_v0  ;;  %316 = vst.msk [vmem:[#allocation2 + $0x70] sm:$0xff] %vm212_vm0, %v2241_v0  ;;  %550 = vrot.lane.b32.xlu0 %v2696_v1, %s2245_s22  ;;  %552 = vrot.lane.b32.xlu1 %v2698_v2, %s2245_s22 }
  0x3a   : > { %317 = vst.msk [vmem:[#allocation2 + $0x90] sm:$0xff] %vm212_vm0, %v2241_v0  ;;  %318 = vst.msk [vmem:[#allocation2 + $0xb0] sm:$0xff] %vm212_vm0, %v2241_v0 }
  0x3b   : > { %319 = vst.msk [vmem:[#allocation2 + $0xd0] sm:$0xff] %vm212_vm0, %v2241_v0  ;;  %320 = vst.msk [vmem:[#allocation2 + $0xf0] sm:$0xff] %vm212_vm0, %v2241_v0 }
  0x3c   : > { %321 = vst.msk [vmem:[#allocation2 + $0x110] sm:$0xff] %vm212_vm0, %v2241_v0  ;;  %322 = vst.msk [vmem:[#allocation2 + $0x130] sm:$0xff] %vm212_vm0, %v2241_v0 }
  0x3d   : > { %323 = vst.msk [vmem:[#allocation2 + $0x150] sm:$0xff] %vm212_vm0, %v2241_v0  ;;  %324 = vst.msk [vmem:[#allocation2 + $0x170] sm:$0xff] %vm212_vm0, %v2241_v0  ;;  %558 = vrot.lane.b32.xlu0 %v2712_v5, %s2245_s22  ;;  %560 = vrot.lane.b32.xlu1 %v2726_v7, %s2245_s22 }
  0x3e   : > { %325 = vst.msk [vmem:[#allocation2 + $0x190] sm:$0xff] %vm212_vm0, %v2241_v0  ;;  %326 = vst.msk [vmem:[#allocation2 + $0x1b0] sm:$0xff] %vm212_vm0, %v2241_v0 }
  0x3f   : > { %327 = vst.msk [vmem:[#allocation2 + $0x1d0] sm:$0xff] %vm212_vm0, %v2241_v0  ;;  %328 = vst.msk [vmem:[#allocation2 + $0x1f0] sm:$0xff] %vm212_vm0, %v2241_v0 }
  0x40   : > { %329 = vst.msk [vmem:[#allocation2 + $0x210] sm:$0xff] %vm212_vm0, %v2241_v0  ;;  %330 = vst.msk [vmem:[#allocation2 + $0x230] sm:$0xff] %vm212_vm0, %v2241_v0 }
  0x41   : > { %331 = vst.msk [vmem:[#allocation2 + $0x250] sm:$0xff] %vm212_vm0, %v2241_v0  ;;  %332 = vst.msk [vmem:[#allocation2 + $0x270] sm:$0xff] %vm212_vm0, %v2241_v0  ;;  %566 = vrot.lane.b32.xlu0 %v2696_v1, %s2246_s23  ;;  %568 = vrot.lane.b32.xlu1 %v2698_v2, %s2246_s23 }
  0x42   : > { %333 = vst.msk [vmem:[#allocation2 + $0x290] sm:$0xff] %vm212_vm0, %v2241_v0  ;;  %334 = vst.msk [vmem:[#allocation2 + $0x2b0] sm:$0xff] %vm212_vm0, %v2241_v0 }
  0x43   : > { %335 = vst.msk [vmem:[#allocation2 + $0x2d0] sm:$0xff] %vm212_vm0, %v2241_v0  ;;  %336 = vst.msk [vmem:[#allocation2 + $0x2f0] sm:$0xff] %vm212_vm0, %v2241_v0 }
  0x44   : > { %337 = vst.msk [vmem:[#allocation2 + $0x310] sm:$0xff] %vm212_vm0, %v2241_v0  ;;  %338 = vst.msk [vmem:[#allocation2 + $0x330] sm:$0xff] %vm212_vm0, %v2241_v0 }
  0x45   : > { %339 = vst.msk [vmem:[#allocation2 + $0x350] sm:$0xff] %vm212_vm0, %v2241_v0  ;;  %340 = vst.msk [vmem:[#allocation2 + $0x370] sm:$0xff] %vm212_vm0, %v2241_v0  ;;  %694 = vrot.lane.b32.xlu0 %v2712_v5, %s2246_s23  ;;  %696 = vrot.lane.b32.xlu1 %v2726_v7, %s2246_s23 }
  0x46   : > { %341 = vst.msk [vmem:[#allocation2 + $0x390] sm:$0xff] %vm212_vm0, %v2241_v0  ;;  %342 = vst.msk [vmem:[#allocation2 + $0x3b0] sm:$0xff] %vm212_vm0, %v2241_v0 }
  0x47   : > { %343 = vst.msk [vmem:[#allocation2 + $0x3d0] sm:$0xff] %vm212_vm0, %v2241_v0  ;;  %344 = vst.msk [vmem:[#allocation2 + $0x3f0] sm:$0xff] %vm212_vm0, %v2241_v0 }
  0x48   : > { %345 = vst.msk [vmem:[#allocation2 + $0x410] sm:$0xff] %vm212_vm0, %v2241_v0  ;;  %346 = vst.msk [vmem:[#allocation2 + $0x430] sm:$0xff] %vm212_vm0, %v2241_v0 }
  0x49   : > { %347 = vst.msk [vmem:[#allocation2 + $0x450] sm:$0xff] %vm212_vm0, %v2241_v0  ;;  %348 = vst.msk [vmem:[#allocation2 + $0x470] sm:$0xff] %vm212_vm0, %v2241_v0  ;;  %582 = vrot.lane.b32.xlu0 %v2718_v6, %s2244_s21  ;;  %574 = vrot.lane.b32.xlu1 %v2702_v3, %s2244_s21 }
  0x4a   : > { %349 = vst.msk [vmem:[#allocation2 + $0x490] sm:$0xff] %vm212_vm0, %v2241_v0  ;;  %350 = vst.msk [vmem:[#allocation2 + $0x4b0] sm:$0xff] %vm212_vm0, %v2241_v0 }
  0x4b   : > { %351 = vst.msk [vmem:[#allocation2 + $0x4d0] sm:$0xff] %vm212_vm0, %v2241_v0  ;;  %352 = vst.msk [vmem:[#allocation2 + $0x4f0] sm:$0xff] %vm212_vm0, %v2241_v0 }
  0x4c   : > { %353 = vst.msk [vmem:[#allocation2 + $0x510] sm:$0xff] %vm212_vm0, %v2241_v0  ;;  %354 = vst.msk [vmem:[#allocation2 + $0x530] sm:$0xff] %vm212_vm0, %v2241_v0 }
  0x4d   : > { %355 = vst.msk [vmem:[#allocation2 + $0x550] sm:$0xff] %vm212_vm0, %v2241_v0  ;;  %356 = vst.msk [vmem:[#allocation2 + $0x570] sm:$0xff] %vm212_vm0, %v2241_v0  ;;  %584 = vrot.lane.b32.xlu0 %v2734_v8, %s2244_s21  ;;  %576 = vrot.lane.b32.xlu1 %v2708_v4, %s2244_s21 }
  0x4e   : > { %357 = vst.msk [vmem:[#allocation2 + $0x590] sm:$0xff] %vm212_vm0, %v2241_v0  ;;  %358 = vst.msk [vmem:[#allocation2 + $0x5b0] sm:$0xff] %vm212_vm0, %v2241_v0 }
  0x4f   : > { %359 = vst.msk [vmem:[#allocation2 + $0x5d0] sm:$0xff] %vm212_vm0, %v2241_v0  ;;  %360 = vst.msk [vmem:[#allocation2 + $0x5f0] sm:$0xff] %vm212_vm0, %v2241_v0 }
  0x50   : > { %361 = vst.msk [vmem:[#allocation2 + $0x610] sm:$0xff] %vm212_vm0, %v2241_v0  ;;  %362 = vst.msk [vmem:[#allocation2 + $0x630] sm:$0xff] %vm212_vm0, %v2241_v0 }
  0x51   : > { %363 = vst.msk [vmem:[#allocation2 + $0x18] sm:$0xff] %vm212_vm0, %v2241_v0  ;;  %364 = vst.msk [vmem:[#allocation2 + $0x38] sm:$0xff] %vm212_vm0, %v2241_v0  ;;  %590 = vrot.lane.b32.xlu0 %v2702_v3, %s2245_s22  ;;  %592 = vrot.lane.b32.xlu1 %v2708_v4, %s2245_s22 }
  0x52   : > { %365 = vst.msk [vmem:[#allocation2 + $0x58] sm:$0xff] %vm212_vm0, %v2241_v0  ;;  %366 = vst.msk [vmem:[#allocation2 + $0x78] sm:$0xff] %vm212_vm0, %v2241_v0 }
  0x53   : > { %367 = vst.msk [vmem:[#allocation2 + $0x98] sm:$0xff] %vm212_vm0, %v2241_v0  ;;  %368 = vst.msk [vmem:[#allocation2 + $0xb8] sm:$0xff] %vm212_vm0, %v2241_v0 }
  0x54   : > { %369 = vst.msk [vmem:[#allocation2 + $0xd8] sm:$0xff] %vm212_vm0, %v2241_v0  ;;  %370 = vst.msk [vmem:[#allocation2 + $0xf8] sm:$0xff] %vm212_vm0, %v2241_v0 }
  0x55   : > { %371 = vst.msk [vmem:[#allocation2 + $0x118] sm:$0xff] %vm212_vm0, %v2241_v0  ;;  %372 = vst.msk [vmem:[#allocation2 + $0x138] sm:$0xff] %vm212_vm0, %v2241_v0  ;;  %598 = vrot.lane.b32.xlu0 %v2718_v6, %s2245_s22  ;;  %600 = vrot.lane.b32.xlu1 %v2734_v8, %s2245_s22 }
  0x56   : > { %373 = vst.msk [vmem:[#allocation2 + $0x158] sm:$0xff] %vm212_vm0, %v2241_v0  ;;  %374 = vst.msk [vmem:[#allocation2 + $0x178] sm:$0xff] %vm212_vm0, %v2241_v0 }
  0x57   : > { %375 = vst.msk [vmem:[#allocation2 + $0x198] sm:$0xff] %vm212_vm0, %v2241_v0  ;;  %376 = vst.msk [vmem:[#allocation2 + $0x1b8] sm:$0xff] %vm212_vm0, %v2241_v0 }
  0x58   : > { %377 = vst.msk [vmem:[#allocation2 + $0x1d8] sm:$0xff] %vm212_vm0, %v2241_v0  ;;  %378 = vst.msk [vmem:[#allocation2 + $0x1f8] sm:$0xff] %vm212_vm0, %v2241_v0 }
  0x59   : > { %379 = vst.msk [vmem:[#allocation2 + $0x218] sm:$0xff] %vm212_vm0, %v2241_v0  ;;  %380 = vst.msk [vmem:[#allocation2 + $0x238] sm:$0xff] %vm212_vm0, %v2241_v0  ;;  %606 = vrot.lane.b32.xlu0 %v2702_v3, %s2246_s23  ;;  %608 = vrot.lane.b32.xlu1 %v2708_v4, %s2246_s23 }
  0x5a   : > { %381 = vst.msk [vmem:[#allocation2 + $0x258] sm:$0xff] %vm212_vm0, %v2241_v0  ;;  %382 = vst.msk [vmem:[#allocation2 + $0x278] sm:$0xff] %vm212_vm0, %v2241_v0 }
  0x5b   : > { %383 = vst.msk [vmem:[#allocation2 + $0x298] sm:$0xff] %vm212_vm0, %v2241_v0  ;;  %384 = vst.msk [vmem:[#allocation2 + $0x2b8] sm:$0xff] %vm212_vm0, %v2241_v0 }
  0x5c   : > { %385 = vst.msk [vmem:[#allocation2 + $0x2d8] sm:$0xff] %vm212_vm0, %v2241_v0  ;;  %386 = vst.msk [vmem:[#allocation2 + $0x2f8] sm:$0xff] %vm212_vm0, %v2241_v0 }
  0x5d   : > { %387 = vst.msk [vmem:[#allocation2 + $0x318] sm:$0xff] %vm212_vm0, %v2241_v0  ;;  %388 = vst.msk [vmem:[#allocation2 + $0x338] sm:$0xff] %vm212_vm0, %v2241_v0  ;;  %710 = vrot.lane.b32.xlu0 %v2718_v6, %s2246_s23  ;;  %712 = vrot.lane.b32.xlu1 %v2734_v8, %s2246_s23 }
  0x5e   : > { %389 = vst.msk [vmem:[#allocation2 + $0x358] sm:$0xff] %vm212_vm0, %v2241_v0  ;;  %390 = vst.msk [vmem:[#allocation2 + $0x378] sm:$0xff] %vm212_vm0, %v2241_v0 }
  0x5f   : > { %391 = vst.msk [vmem:[#allocation2 + $0x398] sm:$0xff] %vm212_vm0, %v2241_v0  ;;  %392 = vst.msk [vmem:[#allocation2 + $0x3b8] sm:$0xff] %vm212_vm0, %v2241_v0 }
  0x60   : > { %393 = vst.msk [vmem:[#allocation2 + $0x3d8] sm:$0xff] %vm212_vm0, %v2241_v0  ;;  %394 = vst.msk [vmem:[#allocation2 + $0x3f8] sm:$0xff] %vm212_vm0, %v2241_v0 }
  0x61   : > { %395 = vst.msk [vmem:[#allocation2 + $0x418] sm:$0xff] %vm212_vm0, %v2241_v0  ;;  %396 = vst.msk [vmem:[#allocation2 + $0x438] sm:$0xff] %vm212_vm0, %v2241_v0  ;;  %622 = vrot.lane.b32.xlu0 %v2712_v5, %s2247_s26  ;;  %614 = vrot.lane.b32.xlu1 %v2696_v1, %s2247_s26 }
  0x62   : > { %397 = vst.msk [vmem:[#allocation2 + $0x458] sm:$0xff] %vm212_vm0, %v2241_v0  ;;  %398 = vst.msk [vmem:[#allocation2 + $0x478] sm:$0xff] %vm212_vm0, %v2241_v0 }
  0x63   : > { %399 = vst.msk [vmem:[#allocation2 + $0x498] sm:$0xff] %vm212_vm0, %v2241_v0  ;;  %400 = vst.msk [vmem:[#allocation2 + $0x4b8] sm:$0xff] %vm212_vm0, %v2241_v0 }
  0x64   : > { %401 = vst.msk [vmem:[#allocation2 + $0x4d8] sm:$0xff] %vm212_vm0, %v2241_v0  ;;  %402 = vst.msk [vmem:[#allocation2 + $0x4f8] sm:$0xff] %vm212_vm0, %v2241_v0 }
  0x65   : > { %403 = vst.msk [vmem:[#allocation2 + $0x518] sm:$0xff] %vm212_vm0, %v2241_v0  ;;  %404 = vst.msk [vmem:[#allocation2 + $0x538] sm:$0xff] %vm212_vm0, %v2241_v0  ;;  %624 = vrot.lane.b32.xlu0 %v2726_v7, %s2247_s26  ;;  %616 = vrot.lane.b32.xlu1 %v2698_v2, %s2247_s26 }
  0x66   : > { %405 = vst.msk [vmem:[#allocation2 + $0x558] sm:$0xff] %vm212_vm0, %v2241_v0  ;;  %406 = vst.msk [vmem:[#allocation2 + $0x578] sm:$0xff] %vm212_vm0, %v2241_v0 }
  0x67   : > { %407 = vst.msk [vmem:[#allocation2 + $0x598] sm:$0xff] %vm212_vm0, %v2241_v0  ;;  %408 = vst.msk [vmem:[#allocation2 + $0x5b8] sm:$0xff] %vm212_vm0, %v2241_v0 }
  0x68   : > { %409 = vst.msk [vmem:[#allocation2 + $0x5d8] sm:$0xff] %vm212_vm0, %v2241_v0  ;;  %410 = vst.msk [vmem:[#allocation2 + $0x5f8] sm:$0xff] %vm212_vm0, %v2241_v0 }
  0x69   : > { %411 = vst.msk [vmem:[#allocation2 + $0x618] sm:$0xff] %vm212_vm0, %v2241_v0  ;;  %412 = vst.msk [vmem:[#allocation2 + $0x638] sm:$0xff] %vm212_vm0, %v2241_v0  ;;  %630 = vrot.lane.b32.xlu0 %v2696_v1, %s2248_s27  ;;  %632 = vrot.lane.b32.xlu1 %v2698_v2, %s2248_s27 }
  0x6a   : > { %442 = vst.msk [vmem:[#allocation2] sm:$0xff] %vm441_vm1, %v2696_v1  ;;  %443 = vst.msk [vmem:[#allocation2 + $0x20] sm:$0xff] %vm441_vm1, %v2698_v2 }
  0x6b   : > { %494 = vst.msk [vmem:[#allocation2 + $0x140] sm:$0xff] %vm441_vm1, %v2702_v3  ;;  %734 = vst.msk [vmem:[#allocation2 + $0x10] sm:$0xff] %vm441_vm1, %v2702_v3 }
  0x6c   : > { %495 = vst.msk [vmem:[#allocation2 + $0x160] sm:$0xff] %vm441_vm1, %v2708_v4  ;;  %735 = vst.msk [vmem:[#allocation2 + $0x30] sm:$0xff] %vm441_vm1, %v2708_v4 }
  0x6d   : > { %654 = vst.msk [vmem:[#allocation2 + $0x8] sm:$0xff] %vm441_vm1, %v2712_v5  ;;  %456 = vst.msk [vmem:[#allocation2 + $0x40] sm:$0xff] %vm441_vm1, %v2712_v5  ;;  %638 = vrot.lane.b32.xlu0 %v2712_v5, %s2248_s27  ;;  %640 = vrot.lane.b32.xlu1 %v2726_v7, %s2248_s27 }
  0x6e   : > { %508 = vst.msk [vmem:[#allocation2 + $0x180] sm:$0xff] %vm441_vm1, %v2718_v6  ;;  %670 = vst.msk [vmem:[#allocation2 + $0x148] sm:$0xff] %vm441_vm1, %v2718_v6 }
  0x6f   : > { %736 = vst.msk [vmem:[#allocation2 + $0x50] sm:$0xff] %vm441_vm1, %v2718_v6  ;;  %814 = vst.msk [vmem:[#allocation2 + $0x18] sm:$0xff] %vm441_vm1, %v2718_v6 }
  0x70   : > { %457 = vst.msk [vmem:[#allocation2 + $0x60] sm:$0xff] %vm441_vm1, %v2726_v7  ;;  %655 = vst.msk [vmem:[#allocation2 + $0x28] sm:$0xff] %vm441_vm1, %v2726_v7 }
  0x71   : > { %509 = vst.msk [vmem:[#allocation2 + $0x1a0] sm:$0xff] %vm441_vm1, %v2734_v8  ;;  %671 = vst.msk [vmem:[#allocation2 + $0x168] sm:$0xff] %vm441_vm1, %v2734_v8  ;;  %v870_v9 = vld [vmem:[#allocation2] sm:$0xff]  ;;  %646 = vrot.lane.b32.xlu0 %v2696_v1, %s2249_s28  ;;  %648 = vrot.lane.b32.xlu1 %v2698_v2, %s2249_s28 }
  0x72   : > { %737 = vst.msk [vmem:[#allocation2 + $0x70] sm:$0xff] %vm441_vm1, %v2734_v8  ;;  %815 = vst.msk [vmem:[#allocation2 + $0x38] sm:$0xff] %vm441_vm1, %v2734_v8  ;;  %v872_v12 = vld [vmem:[#allocation2 + $0x10] sm:$0xff]  ;;  %v874_v14 = vld [vmem:[#allocation2 + $0x20] sm:$0xff] }
  0x73   : > { %v876_v16 = vld [vmem:[#allocation2 + $0x30] sm:$0xff] }
  0x74   : > { %v871_v10 = vld [vmem:[#allocation2 + $0x8] sm:$0xff]  ;;  %v878_v22 = vld [vmem:[#allocation2 + $0x40] sm:$0xff] }
  0x75   : > { %1223 = vmatprep.subr.bf16.mxu0 %v871_v10  ;;  %726 = vrot.lane.b32.xlu0 %v2712_v5, %s2249_s28  ;;  %v911_v2 = vld [vmem:[#allocation2 + $0x148] sm:$0xff] }
  0x76   : > { %v873_v11 = vld [vmem:[#allocation2 + $0x18] sm:$0xff]  ;;  %1224 = vmatpush1.bf16.msra.mxu0 %v870_v9  ;;  %728 = vrot.lane.b32.xlu1 %v2726_v7, %s2249_s28  ;;  %v880_v28 = vld [vmem:[#allocation2 + $0x50] sm:$0xff]  ;;  %v910_v7 = vld [vmem:[#allocation2 + $0x140] sm:$0xff] }
  0x77   : > { %v875_v13 = vld [vmem:[#allocation2 + $0x28] sm:$0xff]  ;;  %1515 = vmatprep.subr.bf16.mxu1 %v873_v11  ;;  %v882_v27 = vld [vmem:[#allocation2 + $0x60] sm:$0xff] }
  0x78   : > { %1225 = vmatprep.subr.bf16.mxu0 %v875_v13  ;;  %1516 = vmatpush1.bf16.msra.mxu1 %v872_v12  ;;  %v915_v9 = vld [vmem:[#allocation2 + $0x168] sm:$0xff]  ;;  %v914_v13 = vld [vmem:[#allocation2 + $0x160] sm:$0xff] }
  0x79   : > { %v877_v15 = vld [vmem:[#allocation2 + $0x38] sm:$0xff]  ;;  %782 = vrot.lane.b32.xlu0 %v2718_v6, %s2247_s26  ;;  %v884_v33 = vld [vmem:[#allocation2 + $0x70] sm:$0xff] }
  0x7a   : > { %1517 = vmatprep.subr.bf16.mxu1 %v877_v15  ;;  %1226 = vmatpush1.bf16.msra.mxu0 %v874_v14 }
  0x7b   : > { %774 = vrot.lane.b32.xlu1 %v2702_v3, %s2247_s26 }
  0x7c   : > { %1518 = vmatpush1.bf16.msra.mxu1 %v876_v16 }
  0x7d   : > { %784 = vrot.lane.b32.xlu0 %v2734_v8, %s2247_s26 }
  0x7f   : > { %776 = vrot.lane.b32.xlu1 %v2708_v4, %s2247_s26 }
  0x81   : > { %790 = vrot.lane.b32.xlu0 %v2702_v3, %s2248_s27 }
  0x83   : > { %792 = vrot.lane.b32.xlu1 %v2708_v4, %s2248_s27  ;;  %v459_v18 = vpop.permute.xlu0 %458  ;;  %v461_v19 = vpop.permute.xlu1 %460 }
  0x84   : > { %464 = vst.msk [vmem:[#allocation2 + $0x80] sm:$0xff] %vm441_vm1, %v459_v18  ;;  %656 = vst.msk [vmem:[#allocation2 + $0x48] sm:$0xff] %vm441_vm1, %v459_v18 }
  0x85   : > { %465 = vst.msk [vmem:[#allocation2 + $0xa0] sm:$0xff] %vm441_vm1, %v461_v19  ;;  %657 = vst.msk [vmem:[#allocation2 + $0x68] sm:$0xff] %vm441_vm1, %v461_v19  ;;  %798 = vrot.lane.b32.xlu0 %v2718_v6, %s2248_s27  ;;  %v918_v19 = vld [vmem:[#allocation2 + $0x180] sm:$0xff] }
  0x87   : > { %800 = vrot.lane.b32.xlu1 %v2734_v8, %s2248_s27  ;;  %v511_v20 = vpop.permute.xlu0 %510  ;;  %v513_v21 = vpop.permute.xlu1 %512  ;;  %s3138_s27 = scalar_lea.vmem %s3150_s3, %s2038_s24 }
  0x88   : > { %516 = vst.msk [vmem:[#allocation2 + $0x1c0] sm:$0xff] %vm441_vm1, %v511_v20  ;;  %672 = vst.msk [vmem:[#allocation2 + $0x188] sm:$0xff] %vm441_vm1, %v511_v20 }
  0x89   : > { %738 = vst.msk [vmem:[#allocation2 + $0x90] sm:$0xff] %vm441_vm1, %v511_v20  ;;  %816 = vst.msk [vmem:[#allocation2 + $0x58] sm:$0xff] %vm441_vm1, %v511_v20  ;;  %806 = vrot.lane.b32.xlu0 %v2702_v3, %s2249_s28 }
  0x8a   : > { %517 = vst.msk [vmem:[#allocation2 + $0x1e0] sm:$0xff] %vm441_vm1, %v513_v21  ;;  %673 = vst.msk [vmem:[#allocation2 + $0x1a8] sm:$0xff] %vm441_vm1, %v513_v21 }
  0x8b   : > { %739 = vst.msk [vmem:[#allocation2 + $0xb0] sm:$0xff] %vm441_vm1, %v513_v21  ;;  %817 = vst.msk [vmem:[#allocation2 + $0x78] sm:$0xff] %vm441_vm1, %v513_v21  ;;  %808 = vrot.lane.b32.xlu1 %v2708_v4, %s2249_s28  ;;  %v467_v23 = vpop.permute.xlu0 %466  ;;  %v879_v24 = vld [vmem:[#allocation2 + $0x48] sm:$0xff]  ;;  %v519_v25 = vpop.permute.xlu1 %518  ;;  %v886_v36 = vld [vmem:[#allocation2 + $0x80] sm:$0xff] }
  0x8c   : > { %472 = vst.msk [vmem:[#allocation2 + $0xc0] sm:$0xff] %vm441_vm1, %v467_v23  ;;  %658 = vst.msk [vmem:[#allocation2 + $0x88] sm:$0xff] %vm441_vm1, %v467_v23  ;;  %1227 = vmatprep.subr.bf16.mxu0 %v879_v24  ;;  %v883_v26 = vld [vmem:[#allocation2 + $0x68] sm:$0xff]  ;;  %v890_v41 = vld [vmem:[#allocation2 + $0xa0] sm:$0xff] }
  0x8d   : > { %1228 = vmatpush1.bf16.msra.mxu0 %v878_v22  ;;  %524 = vst.msk [vmem:[#allocation2 + $0x200] sm:$0xff] %vm441_vm1, %v519_v25  ;;  %674 = vst.msk [vmem:[#allocation2 + $0x1c8] sm:$0xff] %vm441_vm1, %v519_v25  ;;  %862 = vrot.lane.b32.xlu0 %v2718_v6, %s2249_s28 }
  0x8e   : > { %740 = vst.msk [vmem:[#allocation2 + $0xd0] sm:$0xff] %vm441_vm1, %v519_v25  ;;  %818 = vst.msk [vmem:[#allocation2 + $0x98] sm:$0xff] %vm441_vm1, %v519_v25  ;;  %1229 = vmatprep.subr.bf16.mxu0 %v883_v26  ;;  %v922_v25 = vld [vmem:[#allocation2 + $0x1a0] sm:$0xff] }
  0x8f   : > { %864 = vrot.lane.b32.xlu1 %v2734_v8, %s2249_s28  ;;  %v469_v29 = vpop.permute.xlu0 %468  ;;  %v521_v31 = vpop.permute.xlu1 %520  ;;  %v919_v18 = vld [vmem:[#allocation2 + $0x188] sm:$0xff] }
  0x90   : > { %v881_v30 = vld [vmem:[#allocation2 + $0x58] sm:$0xff]  ;;  %473 = vst.msk [vmem:[#allocation2 + $0xe0] sm:$0xff] %vm441_vm1, %v469_v29  ;;  %659 = vst.msk [vmem:[#allocation2 + $0xa8] sm:$0xff] %vm441_vm1, %v469_v29  ;;  %v888_v42 = vld [vmem:[#allocation2 + $0x90] sm:$0xff] }
  0x91   : > { %1519 = vmatprep.subr.bf16.mxu1 %v881_v30  ;;  %1230 = vmatpush1.bf16.msra.mxu0 %v882_v27  ;;  %525 = vst.msk [vmem:[#allocation2 + $0x220] sm:$0xff] %vm441_vm1, %v521_v31  ;;  %675 = vst.msk [vmem:[#allocation2 + $0x1e8] sm:$0xff] %vm441_vm1, %v521_v31  ;;  %v923_v24 = vld [vmem:[#allocation2 + $0x1a8] sm:$0xff] }
  0x92   : > { %v885_v32 = vld [vmem:[#allocation2 + $0x78] sm:$0xff]  ;;  %1520 = vmatpush1.bf16.msra.mxu1 %v880_v28  ;;  %741 = vst.msk [vmem:[#allocation2 + $0xf0] sm:$0xff] %vm441_vm1, %v521_v31  ;;  %819 = vst.msk [vmem:[#allocation2 + $0xb8] sm:$0xff] %vm441_vm1, %v521_v31  ;;  %v892_v48 = vld [vmem:[#allocation2 + $0xb0] sm:$0xff] }
  0x93   : > { %1521 = vmatprep.subr.bf16.mxu1 %v885_v32  ;;  %v475_v34 = vpop.permute.xlu0 %474  ;;  %v887_v35 = vld [vmem:[#allocation2 + $0x88] sm:$0xff]  ;;  %v527_v37 = vpop.permute.xlu1 %526  ;;  %v894_v47 = vld [vmem:[#allocation2 + $0xc0] sm:$0xff] }
  0x94   : > { %480 = vst.msk [vmem:[#allocation2 + $0x100] sm:$0xff] %vm441_vm1, %v475_v34  ;;  %660 = vst.msk [vmem:[#allocation2 + $0xc8] sm:$0xff] %vm441_vm1, %v475_v34  ;;  %1231 = vmatprep.subr.bf16.mxu0 %v887_v35  ;;  %v927_v30 = vld [vmem:[#allocation2 + $0x1c8] sm:$0xff] }
  0x95   : > { %v889_v38 = vld [vmem:[#allocation2 + $0x98] sm:$0xff]  ;;  %1232 = vmatpush1.bf16.msra.mxu0 %v886_v36  ;;  %532 = vst.msk [vmem:[#allocation2 + $0x240] sm:$0xff] %vm441_vm1, %v527_v37  ;;  %676 = vst.msk [vmem:[#allocation2 + $0x208] sm:$0xff] %vm441_vm1, %v527_v37  ;;  %v896_v54 = vld [vmem:[#allocation2 + $0xd0] sm:$0xff] }
  0x96   : > { %1522 = vmatpush1.bf16.msra.mxu1 %v884_v33  ;;  %742 = vst.msk [vmem:[#allocation2 + $0x110] sm:$0xff] %vm441_vm1, %v527_v37  ;;  %820 = vst.msk [vmem:[#allocation2 + $0xd8] sm:$0xff] %vm441_vm1, %v527_v37  ;;  %v926_v33 = vld [vmem:[#allocation2 + $0x1c0] sm:$0xff] }
  0x97   : > { %1523 = vmatprep.subr.bf16.mxu1 %v889_v38  ;;  %v477_v39 = vpop.permute.xlu0 %476  ;;  %v891_v40 = vld [vmem:[#allocation2 + $0xa8] sm:$0xff]  ;;  %v529_v43 = vpop.permute.xlu1 %528  ;;  %v898_v53 = vld [vmem:[#allocation2 + $0xe0] sm:$0xff] }
  0x98   : > { %481 = vst.msk [vmem:[#allocation2 + $0x120] sm:$0xff] %vm441_vm1, %v477_v39  ;;  %661 = vst.msk [vmem:[#allocation2 + $0xe8] sm:$0xff] %vm441_vm1, %v477_v39  ;;  %1233 = vmatprep.subr.bf16.mxu0 %v891_v40  ;;  %v931_v36 = vld [vmem:[#allocation2 + $0x1e8] sm:$0xff]  ;;  %v930_v39 = vld [vmem:[#allocation2 + $0x1e0] sm:$0xff] }
  0x99   : > { %v893_v44 = vld [vmem:[#allocation2 + $0xb8] sm:$0xff]  ;;  %1234 = vmatpush1.bf16.msra.mxu0 %v890_v41  ;;  %533 = vst.msk [vmem:[#allocation2 + $0x260] sm:$0xff] %vm441_vm1, %v529_v43  ;;  %677 = vst.msk [vmem:[#allocation2 + $0x228] sm:$0xff] %vm441_vm1, %v529_v43  ;;  %v900_v60 = vld [vmem:[#allocation2 + $0xf0] sm:$0xff] }
  0x9a   : > { %1524 = vmatpush1.bf16.msra.mxu1 %v888_v42  ;;  %743 = vst.msk [vmem:[#allocation2 + $0x130] sm:$0xff] %vm441_vm1, %v529_v43  ;;  %821 = vst.msk [vmem:[#allocation2 + $0xf8] sm:$0xff] %vm441_vm1, %v529_v43  ;;  %v2193_v41 = vld [vmem:[%s3148_s1] ss:$28 sps:$4 sm:$0xff]  }
  0x9b   : > { %1525 = vmatprep.subr.bf16.mxu1 %v893_v44  ;;  %v663_v45 = vpop.permute.xlu0 %662  ;;  %v895_v46 = vld [vmem:[#allocation2 + $0xc8] sm:$0xff]  ;;  %v679_v49 = vpop.permute.xlu1 %678  ;;  %v902_v59 = vld [vmem:[#allocation2 + $0x100] sm:$0xff] }
  0x9c   : > { %668 = vst.msk [vmem:[#allocation2 + $0x108] sm:$0xff] %vm441_vm1, %v663_v45  ;;  %1235 = vmatprep.subr.bf16.mxu0 %v895_v46  ;;  %684 = vst.msk [vmem:[#allocation2 + $0x248] sm:$0xff] %vm441_vm1, %v679_v49  ;;  %v935_v43 = vld [vmem:[#allocation2 + $0x208] sm:$0xff]  ;;  %v2196_v46 = vld [vmem:[%s3148_s1 + $0x3c] ss:$28 sps:$4 sm:$0xff]  }
  0x9d   : > { %v897_v50 = vld [vmem:[#allocation2 + $0xd8] sm:$0xff]  ;;  %1236 = vmatpush1.bf16.msra.mxu0 %v894_v47  ;;  %822 = vst.msk [vmem:[#allocation2 + $0x118] sm:$0xff] %vm441_vm1, %v679_v49  ;;  %v904_v4 = vld [vmem:[#allocation2 + $0x110] sm:$0xff]  ;;  %v934_v47 = vld [vmem:[#allocation2 + $0x200] sm:$0xff] }
  0x9e   : > { %1526 = vmatpush1.bf16.msra.mxu1 %v892_v48 }
  0x9f   : > { %1527 = vmatprep.subr.bf16.mxu1 %v897_v50  ;;  %v665_v51 = vpop.permute.xlu0 %664  ;;  %v899_v52 = vld [vmem:[#allocation2 + $0xe8] sm:$0xff]  ;;  %v681_v55 = vpop.permute.xlu1 %680  ;;  %v906_v3 = vld [vmem:[#allocation2 + $0x120] sm:$0xff] }
  0xa0   : > { %669 = vst.msk [vmem:[#allocation2 + $0x128] sm:$0xff] %vm441_vm1, %v665_v51  ;;  %1237 = vmatprep.subr.bf16.mxu0 %v899_v52  ;;  %685 = vst.msk [vmem:[#allocation2 + $0x268] sm:$0xff] %vm441_vm1, %v681_v55  ;;  %v939_v50 = vld [vmem:[#allocation2 + $0x228] sm:$0xff] }
  0xa1   : > { %v901_v56 = vld [vmem:[#allocation2 + $0xf8] sm:$0xff]  ;;  %1238 = vmatpush1.bf16.msra.mxu0 %v898_v53  ;;  %823 = vst.msk [vmem:[#allocation2 + $0x138] sm:$0xff] %vm441_vm1, %v681_v55  ;;  %v908_v11 = vld [vmem:[#allocation2 + $0x130] sm:$0xff]  ;;  %v938_v53 = vld [vmem:[#allocation2 + $0x220] sm:$0xff] }
  0xa2   : > { %1528 = vmatpush1.bf16.msra.mxu1 %v896_v54 }
  0xa3   : > { %1529 = vmatprep.subr.bf16.mxu1 %v901_v56  ;;  %v903_v57 = vld [vmem:[#allocation2 + $0x108] sm:$0xff]  ;;  %v543_v58 = vpop.permute.xlu0 %542  ;;  %v535_v61 = vpop.permute.xlu1 %534  ;;  %v2198_v56 = vld [vmem:[%s3148_s1 + $0x38] ss:$28 sps:$4 sm:$0xff]  }
  0xa4   : > { %1239 = vmatprep.subr.bf16.mxu0 %v903_v57  ;;  %548 = vst.msk [vmem:[#allocation2 + $0x2c0] sm:$0xff] %vm441_vm1, %v543_v58  ;;  %686 = vst.msk [vmem:[#allocation2 + $0x288] sm:$0xff] %vm441_vm1, %v543_v58  ;;  %v905_v62 = vld [vmem:[#allocation2 + $0x118] sm:$0xff]  ;;  %v943_v57 = vld [vmem:[#allocation2 + $0x248] sm:$0xff] }
  0xa5   : > { %746 = vst.msk [vmem:[#allocation2 + $0x190] sm:$0xff] %vm441_vm1, %v543_v58  ;;  %824 = vst.msk [vmem:[#allocation2 + $0x158] sm:$0xff] %vm441_vm1, %v543_v58  ;;  %1240 = vmatpush1.bf16.msra.mxu0 %v902_v59 }
  0xa6   : > { %1530 = vmatpush1.bf16.msra.mxu1 %v900_v60  ;;  %540 = vst.msk [vmem:[#allocation2 + $0x280] sm:$0xff] %vm441_vm1, %v535_v61  ;;  %744 = vst.msk [vmem:[#allocation2 + $0x150] sm:$0xff] %vm441_vm1, %v535_v61  ;;  %v2199_v60 = vld [vmem:[%s3148_s1 + $0x74] ss:$28 sps:$4 sm:$0xff]   ;;  %v942_v61 = vld [vmem:[#allocation2 + $0x240] sm:$0xff] }
  0xa7   : > { %1531 = vmatprep.subr.bf16.mxu1 %v905_v62  ;;  %v907_v63 = vld [vmem:[#allocation2 + $0x128] sm:$0xff]  ;;  %v545_v1 = vpop.permute.xlu0 %544  ;;  %v537_v5 = vpop.permute.xlu1 %536 }
  0xa8   : > { %1241 = vmatprep.subr.bf16.mxu0 %v907_v63  ;;  %549 = vst.msk [vmem:[#allocation2 + $0x2e0] sm:$0xff] %vm441_vm1, %v545_v1  ;;  %687 = vst.msk [vmem:[#allocation2 + $0x2a8] sm:$0xff] %vm441_vm1, %v545_v1  ;;  %v909_v6 = vld [vmem:[#allocation2 + $0x138] sm:$0xff] }
  0xa9   : > { %747 = vst.msk [vmem:[#allocation2 + $0x1b0] sm:$0xff] %vm441_vm1, %v545_v1  ;;  %825 = vst.msk [vmem:[#allocation2 + $0x178] sm:$0xff] %vm441_vm1, %v545_v1  ;;  %1242 = vmatpush1.bf16.msra.mxu0 %v906_v3  ;;  %v947_v1 = vld [vmem:[#allocation2 + $0x268] sm:$0xff] }
  0xaa   : > { %1532 = vmatpush1.bf16.msra.mxu1 %v904_v4  ;;  %541 = vst.msk [vmem:[#allocation2 + $0x2a0] sm:$0xff] %vm441_vm1, %v537_v5  ;;  %745 = vst.msk [vmem:[#allocation2 + $0x170] sm:$0xff] %vm441_vm1, %v537_v5  ;;  %1243 = vmatprep.subr.bf16.mxu0 %v911_v2  ;;  %v946_v4 = vld [vmem:[#allocation2 + $0x260] sm:$0xff] }
  0xab   : > { %1533 = vmatprep.subr.bf16.mxu1 %v909_v6  ;;  %v551_v8 = vpop.permute.xlu0 %550  ;;  %v553_v12 = vpop.permute.xlu1 %552 }
  0xac   : > { %v913_v10 = vld [vmem:[#allocation2 + $0x158] sm:$0xff]  ;;  %556 = vst.msk [vmem:[#allocation2 + $0x300] sm:$0xff] %vm441_vm1, %v551_v8  ;;  %688 = vst.msk [vmem:[#allocation2 + $0x2c8] sm:$0xff] %vm441_vm1, %v551_v8  ;;  %v920_v28 = vld [vmem:[#allocation2 + $0x190] sm:$0xff] }
  0xad   : > { %748 = vst.msk [vmem:[#allocation2 + $0x1d0] sm:$0xff] %vm441_vm1, %v551_v8  ;;  %826 = vst.msk [vmem:[#allocation2 + $0x198] sm:$0xff] %vm441_vm1, %v551_v8  ;;  %1244 = vmatpush1.bf16.msra.mxu0 %v910_v7  ;;  %v912_v14 = vld [vmem:[#allocation2 + $0x150] sm:$0xff]  ;;  %v951_v8 = vld [vmem:[#allocation2 + $0x288] sm:$0xff] }
  0xae   : > { %1534 = vmatpush1.bf16.msra.mxu1 %v908_v11  ;;  %557 = vst.msk [vmem:[#allocation2 + $0x320] sm:$0xff] %vm441_vm1, %v553_v12  ;;  %689 = vst.msk [vmem:[#allocation2 + $0x2e8] sm:$0xff] %vm441_vm1, %v553_v12  ;;  %1245 = vmatprep.subr.bf16.mxu0 %v915_v9  ;;  %v2201_v7 = vld [vmem:[%s3148_s1 + $0x70] ss:$28 sps:$4 sm:$0xff]  }
  0xaf   : > { %749 = vst.msk [vmem:[#allocation2 + $0x1f0] sm:$0xff] %vm441_vm1, %v553_v12  ;;  %827 = vst.msk [vmem:[#allocation2 + $0x1b8] sm:$0xff] %vm441_vm1, %v553_v12  ;;  %1535 = vmatprep.subr.bf16.mxu1 %v913_v10  ;;  %v559_v16 = vpop.permute.xlu0 %558  ;;  %v561_v17 = vpop.permute.xlu1 %560  ;;  %v2202_v11 = vld [vmem:[%s3148_s1 + $0xac] ss:$28 sps:$4 sm:$0xff]   ;;  %v950_v12 = vld [vmem:[#allocation2 + $0x280] sm:$0xff] }
  0xb0   : > { %v917_v15 = vld [vmem:[#allocation2 + $0x178] sm:$0xff]  ;;  %564 = vst.msk [vmem:[#allocation2 + $0x340] sm:$0xff] %vm441_vm1, %v559_v16  ;;  %690 = vst.msk [vmem:[#allocation2 + $0x308] sm:$0xff] %vm441_vm1, %v559_v16  ;;  %v924_v34 = vld [vmem:[#allocation2 + $0x1b0] sm:$0xff] }
  0xb1   : > { %750 = vst.msk [vmem:[#allocation2 + $0x210] sm:$0xff] %vm441_vm1, %v559_v16  ;;  %828 = vst.msk [vmem:[#allocation2 + $0x1d8] sm:$0xff] %vm441_vm1, %v559_v16  ;;  %1246 = vmatpush1.bf16.msra.mxu0 %v914_v13  ;;  %v916_v20 = vld [vmem:[#allocation2 + $0x170] sm:$0xff] }
  0xb2   : > { %1536 = vmatpush1.bf16.msra.mxu1 %v912_v14  ;;  %565 = vst.msk [vmem:[#allocation2 + $0x360] sm:$0xff] %vm441_vm1, %v561_v17  ;;  %691 = vst.msk [vmem:[#allocation2 + $0x328] sm:$0xff] %vm441_vm1, %v561_v17  ;;  %1247 = vmatprep.subr.bf16.mxu0 %v919_v18 }
  0xb3   : > { %751 = vst.msk [vmem:[#allocation2 + $0x230] sm:$0xff] %vm441_vm1, %v561_v17  ;;  %829 = vst.msk [vmem:[#allocation2 + $0x1f8] sm:$0xff] %vm441_vm1, %v561_v17  ;;  %1537 = vmatprep.subr.bf16.mxu1 %v917_v15  ;;  %v567_v22 = vpop.permute.xlu0 %566  ;;  %v569_v23 = vpop.permute.xlu1 %568  ;;  %v955_v15 = vld [vmem:[#allocation2 + $0x2a8] sm:$0xff] }
  0xb4   : > { %v921_v21 = vld [vmem:[#allocation2 + $0x198] sm:$0xff]  ;;  %572 = vst.msk [vmem:[#allocation2 + $0x380] sm:$0xff] %vm441_vm1, %v567_v22  ;;  %692 = vst.msk [vmem:[#allocation2 + $0x348] sm:$0xff] %vm441_vm1, %v567_v22  ;;  %v928_v40 = vld [vmem:[#allocation2 + $0x1d0] sm:$0xff] }
  0xb5   : > { %752 = vst.msk [vmem:[#allocation2 + $0x250] sm:$0xff] %vm441_vm1, %v567_v22  ;;  %830 = vst.msk [vmem:[#allocation2 + $0x218] sm:$0xff] %vm441_vm1, %v567_v22  ;;  %1248 = vmatpush1.bf16.msra.mxu0 %v918_v19  ;;  %v954_v19 = vld [vmem:[#allocation2 + $0x2a0] sm:$0xff]  ;;  %v959_v22 = vld [vmem:[#allocation2 + $0x2c8] sm:$0xff] }
  0xb6   : > { %1538 = vmatpush1.bf16.msra.mxu1 %v916_v20  ;;  %573 = vst.msk [vmem:[#allocation2 + $0x3a0] sm:$0xff] %vm441_vm1, %v569_v23  ;;  %693 = vst.msk [vmem:[#allocation2 + $0x368] sm:$0xff] %vm441_vm1, %v569_v23  ;;  %1249 = vmatprep.subr.bf16.mxu0 %v923_v24  ;;  %v925_v26 = vld [vmem:[#allocation2 + $0x1b8] sm:$0xff]  ;;  %v932_v48 = vld [vmem:[#allocation2 + $0x1f0] sm:$0xff] }
  0xb7   : > { %753 = vst.msk [vmem:[#allocation2 + $0x270] sm:$0xff] %vm441_vm1, %v569_v23  ;;  %831 = vst.msk [vmem:[#allocation2 + $0x238] sm:$0xff] %vm441_vm1, %v569_v23  ;;  %1539 = vmatprep.subr.bf16.mxu1 %v921_v21  ;;  %v695_v27 = vpop.permute.xlu0 %694  ;;  %v697_v29 = vpop.permute.xlu1 %696  ;;  %v2204_v21 = vld [vmem:[%s3148_s1 + $0xa8] ss:$28 sps:$4 sm:$0xff]  }
  0xb8   : > { %700 = vst.msk [vmem:[#allocation2 + $0x388] sm:$0xff] %vm441_vm1, %v695_v27  ;;  %832 = vst.msk [vmem:[#allocation2 + $0x258] sm:$0xff] %vm441_vm1, %v695_v27  ;;  %v929_v31 = vld [vmem:[#allocation2 + $0x1d8] sm:$0xff]  ;;  %v936_v54 = vld [vmem:[#allocation2 + $0x210] sm:$0xff] }
  0xb9   : > { %1250 = vmatpush1.bf16.msra.mxu0 %v922_v25  ;;  %701 = vst.msk [vmem:[#allocation2 + $0x3a8] sm:$0xff] %vm441_vm1, %v697_v29  ;;  %833 = vst.msk [vmem:[#allocation2 + $0x278] sm:$0xff] %vm441_vm1, %v697_v29  ;;  %v958_v27 = vld [vmem:[#allocation2 + $0x2c0] sm:$0xff]  ;;  %v963_v29 = vld [vmem:[#allocation2 + $0x2e8] sm:$0xff] }
  0xba   : > { %1540 = vmatpush1.bf16.msra.mxu1 %v920_v28  ;;  %1251 = vmatprep.subr.bf16.mxu0 %v927_v30  ;;  %v933_v37 = vld [vmem:[#allocation2 + $0x1f8] sm:$0xff]  ;;  %v940_v62 = vld [vmem:[#allocation2 + $0x230] sm:$0xff] }
  0xbb   : > { %1541 = vmatprep.subr.bf16.mxu1 %v925_v26  ;;  %v583_v32 = vpop.permute.xlu0 %582  ;;  %v575_v35 = vpop.permute.xlu1 %574  ;;  %v2207_v26 = vld [vmem:[%s3148_s1 + $0xc] ss:$28 sps:$4 sm:$0xff]  }
  0xbc   : > { %588 = vst.msk [vmem:[#allocation2 + $0x400] sm:$0xff] %vm441_vm1, %v583_v32  ;;  %702 = vst.msk [vmem:[#allocation2 + $0x3c8] sm:$0xff] %vm441_vm1, %v583_v32  ;;  %v937_v44 = vld [vmem:[#allocation2 + $0x218] sm:$0xff]  ;;  %v944_v5 = vld [vmem:[#allocation2 + $0x250] sm:$0xff] }
  0xbd   : > { %756 = vst.msk [vmem:[#allocation2 + $0x2d0] sm:$0xff] %vm441_vm1, %v583_v32  ;;  %834 = vst.msk [vmem:[#allocation2 + $0x298] sm:$0xff] %vm441_vm1, %v583_v32  ;;  %1252 = vmatpush1.bf16.msra.mxu0 %v926_v33  ;;  %v962_v32 = vld [vmem:[#allocation2 + $0x2e0] sm:$0xff] }
  0xbe   : > { %1542 = vmatpush1.bf16.msra.mxu1 %v924_v34  ;;  %580 = vst.msk [vmem:[#allocation2 + $0x3c0] sm:$0xff] %vm441_vm1, %v575_v35  ;;  %754 = vst.msk [vmem:[#allocation2 + $0x290] sm:$0xff] %vm441_vm1, %v575_v35  ;;  %1253 = vmatprep.subr.bf16.mxu0 %v931_v36  ;;  %v941_v51 = vld [vmem:[#allocation2 + $0x238] sm:$0xff]  ;;  %v948_v13 = vld [vmem:[#allocation2 + $0x270] sm:$0xff] }
  0xbf   : > { %1543 = vmatprep.subr.bf16.mxu1 %v929_v31  ;;  %v585_v38 = vpop.permute.xlu0 %584  ;;  %v577_v42 = vpop.permute.xlu1 %576  ;;  %v945_v58 = vld [vmem:[#allocation2 + $0x258] sm:$0xff]  ;;  %v967_v35 = vld [vmem:[#allocation2 + $0x308] sm:$0xff] }
  0xc0   : > { %589 = vst.msk [vmem:[#allocation2 + $0x420] sm:$0xff] %vm441_vm1, %v585_v38  ;;  %703 = vst.msk [vmem:[#allocation2 + $0x3e8] sm:$0xff] %vm441_vm1, %v585_v38  ;;  %v949_v2 = vld [vmem:[#allocation2 + $0x278] sm:$0xff] }
  0xc1   : > { %757 = vst.msk [vmem:[#allocation2 + $0x2f0] sm:$0xff] %vm441_vm1, %v585_v38  ;;  %835 = vst.msk [vmem:[#allocation2 + $0x2b8] sm:$0xff] %vm441_vm1, %v585_v38  ;;  %1254 = vmatpush1.bf16.msra.mxu0 %v930_v39  ;;  %v966_v38 = vld [vmem:[#allocation2 + $0x300] sm:$0xff] }
  0xc2   : > { %1544 = vmatpush1.bf16.msra.mxu1 %v928_v40  ;;  %581 = vst.msk [vmem:[#allocation2 + $0x3e0] sm:$0xff] %vm441_vm1, %v577_v42  ;;  %755 = vst.msk [vmem:[#allocation2 + $0x2b0] sm:$0xff] %vm441_vm1, %v577_v42  ;;  %1296 = vmatprep.subr.bf16.mxu0 %v935_v43 }
  0xc3   : > { %1545 = vmatprep.subr.bf16.mxu1 %v933_v37  ;;  %v591_v45 = vpop.permute.xlu0 %590  ;;  %v593_v49 = vpop.permute.xlu1 %592 }
  0xc4   : > { %1256 = vmatmul.mubr.bf16.vlgmr.msra.gmra.mrb[0].mxu0 %v2193_v41  ;;  %596 = vst.msk [vmem:[#allocation2 + $0x440] sm:$0xff] %vm441_vm1, %v591_v45  ;;  %704 = vst.msk [vmem:[#allocation2 + $0x408] sm:$0xff] %vm441_vm1, %v591_v45  ;;  %v953_v9 = vld [vmem:[#allocation2 + $0x298] sm:$0xff]  ;;  %v960_v33 = vld [vmem:[#allocation2 + $0x2d0] sm:$0xff] }
  0xc5   : > { %758 = vst.msk [vmem:[#allocation2 + $0x310] sm:$0xff] %vm441_vm1, %v591_v45  ;;  %836 = vst.msk [vmem:[#allocation2 + $0x2d8] sm:$0xff] %vm441_vm1, %v591_v45  ;;  %1297 = vmatpush1.bf16.msra.mxu0 %v934_v47  ;;  %1265 = vmatprep.mubr.bf16.mxu0 %v2196_v46  ;;  %v952_v16 = vld [vmem:[#allocation2 + $0x290] sm:$0xff]  ;;  %v975_v47 = vld [vmem:[#allocation2 + $0x348] sm:$0xff] }
  0xc6   : > { %1546 = vmatpush1.bf16.msra.mxu1 %v932_v48  ;;  %597 = vst.msk [vmem:[#allocation2 + $0x460] sm:$0xff] %vm441_vm1, %v593_v49  ;;  %705 = vst.msk [vmem:[#allocation2 + $0x428] sm:$0xff] %vm441_vm1, %v593_v49  ;;  %1298 = vmatprep.subr.bf16.mxu0 %v939_v50  ;;  %v974_v50 = vld [vmem:[#allocation2 + $0x340] sm:$0xff] }
  0xc7   : > { %759 = vst.msk [vmem:[#allocation2 + $0x330] sm:$0xff] %vm441_vm1, %v593_v49  ;;  %837 = vst.msk [vmem:[#allocation2 + $0x2f8] sm:$0xff] %vm441_vm1, %v593_v49  ;;  %1588 = vmatprep.subr.bf16.mxu1 %v937_v44  ;;  %v599_v52 = vpop.permute.xlu0 %598  ;;  %v601_v55 = vpop.permute.xlu1 %600  ;;  %v970_v44 = vld [vmem:[#allocation2 + $0x320] sm:$0xff] }
  0xc8   : > { %604 = vst.msk [vmem:[#allocation2 + $0x480] sm:$0xff] %vm441_vm1, %v599_v52  ;;  %706 = vst.msk [vmem:[#allocation2 + $0x448] sm:$0xff] %vm441_vm1, %v599_v52  ;;  %v957_v17 = vld [vmem:[#allocation2 + $0x2b8] sm:$0xff]  ;;  %v964_v39 = vld [vmem:[#allocation2 + $0x2f0] sm:$0xff] }
  0xc9   : > { %1548 = vmatmul.mubr.bf16.vlgmr.msra.gmra.mrb[0].mxu1 %v2193_v41  ;;  %760 = vst.msk [vmem:[#allocation2 + $0x350] sm:$0xff] %vm441_vm1, %v599_v52  ;;  %838 = vst.msk [vmem:[#allocation2 + $0x318] sm:$0xff] %vm441_vm1, %v599_v52  ;;  %1299 = vmatpush1.bf16.msra.mxu0 %v938_v53  ;;  %v956_v23 = vld [vmem:[#allocation2 + $0x2b0] sm:$0xff]  ;;  %v971_v41 = vld [vmem:[#allocation2 + $0x328] sm:$0xff] }
  0xca   : > { %1589 = vmatpush1.bf16.msra.mxu1 %v936_v54  ;;  %605 = vst.msk [vmem:[#allocation2 + $0x4a0] sm:$0xff] %vm441_vm1, %v601_v55  ;;  %707 = vst.msk [vmem:[#allocation2 + $0x468] sm:$0xff] %vm441_vm1, %v601_v55  ;;  %1300 = vmatprep.subr.bf16.mxu0 %v943_v57  ;;  %v979_v53 = vld [vmem:[#allocation2 + $0x368] sm:$0xff] }
  0xcb   : > { %761 = vst.msk [vmem:[#allocation2 + $0x370] sm:$0xff] %vm441_vm1, %v601_v55  ;;  %839 = vst.msk [vmem:[#allocation2 + $0x338] sm:$0xff] %vm441_vm1, %v601_v55  ;;  %1590 = vmatprep.subr.bf16.mxu1 %v941_v51  ;;  %v607_v59 = vpop.permute.xlu0 %606  ;;  %1557 = vmatprep.mubr.bf16.mxu1 %v2196_v46  ;;  %v609_v63 = vpop.permute.xlu1 %608 }
  0xcc   : > { %612 = vst.msk [vmem:[#allocation2 + $0x4c0] sm:$0xff] %vm441_vm1, %v607_v59  ;;  %708 = vst.msk [vmem:[#allocation2 + $0x488] sm:$0xff] %vm441_vm1, %v607_v59  ;;  %1266 = vmatmul.mubr.bf16.gmra.mrb[4].mxu0 %v2198_v56  ;;  %v961_v24 = vld [vmem:[#allocation2 + $0x2d8] sm:$0xff]  ;;  %v968_v45 = vld [vmem:[#allocation2 + $0x310] sm:$0xff] }
  0xcd   : > { %762 = vst.msk [vmem:[#allocation2 + $0x390] sm:$0xff] %vm441_vm1, %v607_v59  ;;  %840 = vst.msk [vmem:[#allocation2 + $0x358] sm:$0xff] %vm441_vm1, %v607_v59  ;;  %1301 = vmatpush1.bf16.msra.mxu0 %v942_v61  ;;  %1275 = vmatprep.mubr.bf16.mxu0 %v2199_v60  ;;  %v983_v59 = vld [vmem:[#allocation2 + $0x388] sm:$0xff] }
  0xce   : > { %1591 = vmatpush1.bf16.msra.mxu1 %v940_v62  ;;  %613 = vst.msk [vmem:[#allocation2 + $0x4e0] sm:$0xff] %vm441_vm1, %v609_v63  ;;  %709 = vst.msk [vmem:[#allocation2 + $0x4a8] sm:$0xff] %vm441_vm1, %v609_v63  ;;  %1302 = vmatprep.subr.bf16.mxu0 %v947_v1  ;;  %v965_v30 = vld [vmem:[#allocation2 + $0x2f8] sm:$0xff]  ;;  %v972_v51 = vld [vmem:[#allocation2 + $0x330] sm:$0xff] }
  0xcf   : > { %763 = vst.msk [vmem:[#allocation2 + $0x3b0] sm:$0xff] %vm441_vm1, %v609_v63  ;;  %841 = vst.msk [vmem:[#allocation2 + $0x378] sm:$0xff] %vm441_vm1, %v609_v63  ;;  %1592 = vmatprep.subr.bf16.mxu1 %v945_v58  ;;  %v711_v3 = vpop.permute.xlu0 %710  ;;  %v713_v6 = vpop.permute.xlu1 %712  ;;  %v982_v62 = vld [vmem:[#allocation2 + $0x380] sm:$0xff] }
  0xd0   : > { %716 = vst.msk [vmem:[#allocation2 + $0x4c8] sm:$0xff] %vm441_vm1, %v711_v3  ;;  %842 = vst.msk [vmem:[#allocation2 + $0x398] sm:$0xff] %vm441_vm1, %v711_v3  ;;  %v969_v36 = vld [vmem:[#allocation2 + $0x318] sm:$0xff]  ;;  %v976_v57 = vld [vmem:[#allocation2 + $0x350] sm:$0xff] }
  0xd1   : > { %1558 = vmatmul.mubr.bf16.gmra.mrb[4].mxu1 %v2198_v56  ;;  %1303 = vmatpush1.bf16.msra.mxu0 %v946_v4  ;;  %717 = vst.msk [vmem:[#allocation2 + $0x4e8] sm:$0xff] %vm441_vm1, %v713_v6  ;;  %843 = vst.msk [vmem:[#allocation2 + $0x3b8] sm:$0xff] %vm441_vm1, %v713_v6  ;;  %v978_v56 = vld [vmem:[#allocation2 + $0x360] sm:$0xff] }
  0xd2   : > { %1593 = vmatpush1.bf16.msra.mxu1 %v944_v5  ;;  %1304 = vmatprep.subr.bf16.mxu0 %v951_v8  ;;  %v973_v42 = vld [vmem:[#allocation2 + $0x338] sm:$0xff]  ;;  %v980_v63 = vld [vmem:[#allocation2 + $0x370] sm:$0xff]  ;;  %v986_v5 = vld [vmem:[#allocation2 + $0x3a0] sm:$0xff] }
  0xd3   : > { %1594 = vmatprep.subr.bf16.mxu1 %v949_v2  ;;  %v623_v10 = vpop.permute.xlu0 %622  ;;  %1567 = vmatprep.mubr.bf16.mxu1 %v2199_v60  ;;  %v615_v14 = vpop.permute.xlu1 %614  ;;  %v987_v2 = vld [vmem:[#allocation2 + $0x3a8] sm:$0xff] }
  0xd4   : > { %1276 = vmatmul.mubr.bf16.gmra.mrb[8].mxu0 %v2201_v7  ;;  %628 = vst.msk [vmem:[#allocation2 + $0x540] sm:$0xff] %vm441_vm1, %v623_v10  ;;  %718 = vst.msk [vmem:[#allocation2 + $0x508] sm:$0xff] %vm441_vm1, %v623_v10  ;;  %v977_v48 = vld [vmem:[#allocation2 + $0x358] sm:$0xff]  ;;  %v984_v6 = vld [vmem:[#allocation2 + $0x390] sm:$0xff] }
  0xd5   : > { %766 = vst.msk [vmem:[#allocation2 + $0x410] sm:$0xff] %vm441_vm1, %v623_v10  ;;  %844 = vst.msk [vmem:[#allocation2 + $0x3d8] sm:$0xff] %vm441_vm1, %v623_v10  ;;  %1305 = vmatpush1.bf16.msra.mxu0 %v950_v12  ;;  %1285 = vmatprep.mubr.bf16.mxu0 %v2202_v11  ;;  %v991_v8 = vld [vmem:[#allocation2 + $0x3c8] sm:$0xff] }
  0xd6   : > { %1595 = vmatpush1.bf16.msra.mxu1 %v948_v13  ;;  %620 = vst.msk [vmem:[#allocation2 + $0x500] sm:$0xff] %vm441_vm1, %v615_v14  ;;  %764 = vst.msk [vmem:[#allocation2 + $0x3d0] sm:$0xff] %vm441_vm1, %v615_v14  ;;  %1306 = vmatprep.subr.bf16.mxu0 %v955_v15  ;;  %v981_v54 = vld [vmem:[#allocation2 + $0x378] sm:$0xff]  ;;  %v988_v12 = vld [vmem:[#allocation2 + $0x3b0] sm:$0xff] }
  0xd7   : > { %1596 = vmatprep.subr.bf16.mxu1 %v953_v9  ;;  %v625_v18 = vpop.permute.xlu0 %624  ;;  %v617_v20 = vpop.permute.xlu1 %616  ;;  %v985_v60 = vld [vmem:[#allocation2 + $0x398] sm:$0xff]  ;;  %v995_v14 = vld [vmem:[#allocation2 + $0x3e8] sm:$0xff] }
  0xd8   : > { %629 = vst.msk [vmem:[#allocation2 + $0x560] sm:$0xff] %vm441_vm1, %v625_v18  ;;  %719 = vst.msk [vmem:[#allocation2 + $0x528] sm:$0xff] %vm441_vm1, %v625_v18  ;;  %v989_v3 = vld [vmem:[#allocation2 + $0x3b8] sm:$0xff] }
  0xd9   : > { %1568 = vmatmul.mubr.bf16.gmra.mrb[8].mxu1 %v2201_v7  ;;  %767 = vst.msk [vmem:[#allocation2 + $0x430] sm:$0xff] %vm441_vm1, %v625_v18  ;;  %845 = vst.msk [vmem:[#allocation2 + $0x3f8] sm:$0xff] %vm441_vm1, %v625_v18  ;;  %1307 = vmatpush1.bf16.msra.mxu0 %v954_v19  ;;  %v994_v18 = vld [vmem:[#allocation2 + $0x3e0] sm:$0xff] }
  0xda   : > { %1597 = vmatpush1.bf16.msra.mxu1 %v952_v16  ;;  %621 = vst.msk [vmem:[#allocation2 + $0x520] sm:$0xff] %vm441_vm1, %v617_v20  ;;  %765 = vst.msk [vmem:[#allocation2 + $0x3f0] sm:$0xff] %vm441_vm1, %v617_v20  ;;  %1308 = vmatprep.subr.bf16.mxu0 %v959_v22  ;;  %v2205_v19 = vld [vmem:[%s3148_s1 + $0x8] ss:$28 sps:$4 sm:$0xff]  }
  0xdb   : > { %1598 = vmatprep.subr.bf16.mxu1 %v957_v17  ;;  %v631_v25 = vpop.permute.xlu0 %630  ;;  %1577 = vmatprep.mubr.bf16.mxu1 %v2202_v11  ;;  %v633_v28 = vpop.permute.xlu1 %632  ;;  %v990_v11 = vld [vmem:[#allocation2 + $0x3c0] sm:$0xff]  ;;  %v999_v22 = vld [vmem:[#allocation2 + $0x408] sm:$0xff] }
  0xdc   : > { %1286 = vmatmul.mubr.bf16.gmra.mrb[12].mxu0 %v2204_v21  ;;  %636 = vst.msk [vmem:[#allocation2 + $0x580] sm:$0xff] %vm441_vm1, %v631_v25  ;;  %720 = vst.msk [vmem:[#allocation2 + $0x548] sm:$0xff] %vm441_vm1, %v631_v25  ;;  %v993_v9 = vld [vmem:[#allocation2 + $0x3d8] sm:$0xff] }
  0xdd   : > { %768 = vst.msk [vmem:[#allocation2 + $0x450] sm:$0xff] %vm441_vm1, %v631_v25  ;;  %846 = vst.msk [vmem:[#allocation2 + $0x418] sm:$0xff] %vm441_vm1, %v631_v25  ;;  %1309 = vmatpush1.bf16.msra.mxu0 %v958_v27  ;;  %1328 = vmatprep.mubr.bf16.mxu0 %v2207_v26  ;;  %v992_v15 = vld [vmem:[#allocation2 + $0x3d0] sm:$0xff]  ;;  %v998_v27 = vld [vmem:[#allocation2 + $0x400] sm:$0xff] }
  0xde   : > { %1599 = vmatpush1.bf16.msra.mxu1 %v956_v23  ;;  %637 = vst.msk [vmem:[#allocation2 + $0x5a0] sm:$0xff] %vm441_vm1, %v633_v28  ;;  %721 = vst.msk [vmem:[#allocation2 + $0x568] sm:$0xff] %vm441_vm1, %v633_v28  ;;  %1310 = vmatprep.subr.bf16.mxu0 %v963_v29  ;;  %v205_v23 = vld [vmem:[%s3149_s2 + $0x8] sm:$0xff] }
  0xdf   : > { %769 = vst.msk [vmem:[#allocation2 + $0x470] sm:$0xff] %vm441_vm1, %v633_v28  ;;  %847 = vst.msk [vmem:[#allocation2 + $0x438] sm:$0xff] %vm441_vm1, %v633_v28  ;;  %1600 = vmatprep.subr.bf16.mxu1 %v961_v24  ;;  %v639_v31 = vpop.permute.xlu0 %638  ;;  %v641_v34 = vpop.permute.xlu1 %640  ;;  %1838 = vperm.xlu1 %2184, %v205_v23   ;;  %v206_v28 = vld [vmem:[%s3149_s2 + $0x10] sm:$0xff]  ;;  %v1003_v29 = vld [vmem:[#allocation2 + $0x428] sm:$0xff] }
  0xe0   : > { %644 = vst.msk [vmem:[#allocation2 + $0x5c0] sm:$0xff] %vm441_vm1, %v639_v31  ;;  %722 = vst.msk [vmem:[#allocation2 + $0x588] sm:$0xff] %vm441_vm1, %v639_v31  ;;  %v997_v16 = vld [vmem:[#allocation2 + $0x3f8] sm:$0xff] }
  0xe1   : > { %1578 = vmatmul.mubr.bf16.gmra.mrb[12].mxu1 %v2204_v21  ;;  %770 = vst.msk [vmem:[#allocation2 + $0x490] sm:$0xff] %vm441_vm1, %v639_v31  ;;  %848 = vst.msk [vmem:[#allocation2 + $0x458] sm:$0xff] %vm441_vm1, %v639_v31  ;;  %1311 = vmatpush1.bf16.msra.mxu0 %v962_v32  ;;  %v204_v21 = vld [vmem:[%s3149_s2] sm:$0xff]  ;;  %v996_v24 = vld [vmem:[#allocation2 + $0x3f0] sm:$0xff] }
  0xe2   : > { %1601 = vmatpush1.bf16.msra.mxu1 %v960_v33  ;;  %645 = vst.msk [vmem:[#allocation2 + $0x5e0] sm:$0xff] %vm441_vm1, %v641_v34  ;;  %723 = vst.msk [vmem:[#allocation2 + $0x5a8] sm:$0xff] %vm441_vm1, %v641_v34  ;;  %1312 = vmatprep.subr.bf16.mxu0 %v967_v35  ;;  %v2210_v32 = vld [vmem:[%s3148_s1 + $0x40] ss:$28 sps:$4 sm:$0xff]  }
  0xe3   : > { %771 = vst.msk [vmem:[#allocation2 + $0x4b0] sm:$0xff] %vm441_vm1, %v641_v34  ;;  %849 = vst.msk [vmem:[#allocation2 + $0x478] sm:$0xff] %vm441_vm1, %v641_v34  ;;  %1602 = vmatprep.subr.bf16.mxu1 %v965_v30  ;;  %1620 = vmatprep.mubr.bf16.mxu1 %v2207_v26  ;;  %v647_v37 = vpop.permute.xlu0 %646  ;;  %v649_v40 = vpop.permute.xlu1 %648  ;;  %v2208_v26 = vld [vmem:[%s3148_s1 + $0x44] ss:$28 sps:$4 sm:$0xff]   ;;  %v207_v30 = vld [vmem:[%s3149_s2 + $0x18] sm:$0xff] }
  0xe4   : > { %652 = vst.msk [vmem:[#allocation2 + $0x600] sm:$0xff] %vm441_vm1, %v647_v37  ;;  %724 = vst.msk [vmem:[#allocation2 + $0x5c8] sm:$0xff] %vm441_vm1, %v647_v37  ;;  %v1001_v25 = vld [vmem:[#allocation2 + $0x418] sm:$0xff]  ;;  %1833 = vperm.xlu0 %2183, %v204_v21   ;;  %1843 = vperm.xlu1 %2184, %v206_v28   ;;  %v1002_v33 = vld [vmem:[#allocation2 + $0x420] sm:$0xff] }
  0xe5   : > { %772 = vst.msk [vmem:[#allocation2 + $0x4d0] sm:$0xff] %vm441_vm1, %v647_v37  ;;  %850 = vst.msk [vmem:[#allocation2 + $0x498] sm:$0xff] %vm441_vm1, %v647_v37  ;;  %1313 = vmatpush1.bf16.msra.mxu0 %v966_v38  ;;  %v1000_v34 = vld [vmem:[#allocation2 + $0x410] sm:$0xff]  ;;  %v208_v35 = vld [vmem:[%s3149_s2 + $0x20] sm:$0xff] }
  0xe6   : > { %1603 = vmatpush1.bf16.msra.mxu1 %v964_v39  ;;  %653 = vst.msk [vmem:[#allocation2 + $0x620] sm:$0xff] %vm441_vm1, %v649_v40  ;;  %725 = vst.msk [vmem:[#allocation2 + $0x5e8] sm:$0xff] %vm441_vm1, %v649_v40  ;;  %1314 = vmatprep.subr.bf16.mxu0 %v971_v41  ;;  %v1005_v31 = vld [vmem:[#allocation2 + $0x438] sm:$0xff]  ;;  %v209_v37 = vld [vmem:[%s3149_s2 + $0x28] sm:$0xff] }
  0xe7   : > { %773 = vst.msk [vmem:[#allocation2 + $0x4f0] sm:$0xff] %vm441_vm1, %v649_v40  ;;  %851 = vst.msk [vmem:[#allocation2 + $0x4b8] sm:$0xff] %vm441_vm1, %v649_v40  ;;  %1604 = vmatprep.subr.bf16.mxu1 %v969_v36  ;;  %v727_v43 = vpop.permute.xlu0 %726  ;;  %v1007_v36 = vld [vmem:[#allocation2 + $0x448] sm:$0xff]  ;;  %v2211_v39 = vld [vmem:[%s3148_s1 + $0x7c] ss:$28 sps:$4 sm:$0xff]  }
  0xe8   : > { %732 = vst.msk [vmem:[#allocation2 + $0x608] sm:$0xff] %vm441_vm1, %v727_v43  ;;  %852 = vst.msk [vmem:[#allocation2 + $0x4d8] sm:$0xff] %vm441_vm1, %v727_v43  ;;  %v729_v46 = vpop.permute.xlu1 %728  ;;  %1848 = vperm.xlu0 %2183, %v207_v30   ;;  %v1009_v38 = vld [vmem:[#allocation2 + $0x458] sm:$0xff]  ;;  %1853 = vperm.xlu1 %2184, %v208_v35   ;;  %v1006_v40 = vld [vmem:[#allocation2 + $0x440] sm:$0xff] }
  0xe9   : > { %1315 = vmatpush1.bf16.msra.mxu0 %v970_v44  ;;  %733 = vst.msk [vmem:[#allocation2 + $0x628] sm:$0xff] %vm441_vm1, %v729_v46  ;;  %853 = vst.msk [vmem:[#allocation2 + $0x4f8] sm:$0xff] %vm441_vm1, %v729_v46  ;;  %v1004_v41 = vld [vmem:[#allocation2 + $0x430] sm:$0xff]  ;;  %v1011_v43 = vld [vmem:[#allocation2 + $0x468] sm:$0xff] }
  0xea   : > { %1605 = vmatpush1.bf16.msra.mxu1 %v968_v45  ;;  %1316 = vmatprep.subr.bf16.mxu0 %v975_v47  ;;  %v211_v44 = vld [vmem:[%s3149_s2 + $0x38] sm:$0xff]  ;;  %v1010_v46 = vld [vmem:[#allocation2 + $0x460] sm:$0xff]  ;;  %v1008_v47 = vld [vmem:[#allocation2 + $0x450] sm:$0xff] }
  0xeb   : > { %1606 = vmatprep.subr.bf16.mxu1 %v973_v42  ;;  %v783_v49 = vpop.permute.xlu0 %782  ;;  %v210_v42 = vld [vmem:[%s3149_s2 + $0x30] sm:$0xff]  ;;  %v1013_v45 = vld [vmem:[#allocation2 + $0x478] sm:$0xff]  ;;  %v1047_v21 = vld [vmem:[#allocation2 + $0x588] sm:$0xff] }
  0xec   : > { %788 = vst.msk [vmem:[#allocation2 + $0x550] sm:$0xff] %vm441_vm1, %v783_v49  ;;  %854 = vst.msk [vmem:[#allocation2 + $0x518] sm:$0xff] %vm441_vm1, %v783_v49  ;;  %1858 = vperm.xlu0 %2183, %v209_v37   ;;  %1863 = vperm.xlu1 %2184, %v210_v42   ;;  %v1015_v49 = vld [vmem:[#allocation2 + $0x488] sm:$0xff]  ;;  %v1046_v23 = vld [vmem:[#allocation2 + $0x580] sm:$0xff] }
  0xed   : > { %v775_v52 = vpop.permute.xlu1 %774  ;;  %1317 = vmatpush1.bf16.msra.mxu0 %v974_v50  ;;  %v1017_v50 = vld [vmem:[#allocation2 + $0x498] sm:$0xff]  ;;  %v1058_v35 = vld [vmem:[#allocation2 + $0x5e0] sm:$0xff]  ;;  %v2217_v37 = vld [vmem:[%s3148_s1 + $0x10] ss:$28 sps:$4 sm:$0xff]  }
  0xee   : > { %1607 = vmatpush1.bf16.msra.mxu1 %v972_v51  ;;  %780 = vst.msk [vmem:[#allocation2 + $0x510] sm:$0xff] %vm441_vm1, %v775_v52  ;;  %1318 = vmatprep.subr.bf16.mxu0 %v979_v53  ;;  %v2214_v51 = vld [vmem:[%s3148_s1 + $0xb4] ss:$28 sps:$4 sm:$0xff]   ;;  %v1014_v52 = vld [vmem:[#allocation2 + $0x480] sm:$0xff] }
  0xef   : > { %1608 = vmatprep.subr.bf16.mxu1 %v977_v48  ;;  %v785_v55 = vpop.permute.xlu0 %784  ;;  %v2213_v48 = vld [vmem:[%s3148_s1 + $0x78] ss:$28 sps:$4 sm:$0xff]  }
  0xf0   : > { %789 = vst.msk [vmem:[#allocation2 + $0x570] sm:$0xff] %vm441_vm1, %v785_v55  ;;  %855 = vst.msk [vmem:[#allocation2 + $0x538] sm:$0xff] %vm441_vm1, %v785_v55  ;;  %1868 = vperm.xlu0 %2183, %v211_v44   ;;  %v1012_v53 = vld [vmem:[#allocation2 + $0x470] sm:$0xff]  ;;  %v1021_v55 = vld [vmem:[#allocation2 + $0x4b8] sm:$0xff] }
  0xf1   : > { %v777_v58 = vpop.permute.xlu1 %776  ;;  %1319 = vmatpush1.bf16.msra.mxu0 %v978_v56  ;;  %v1018_v56 = vld [vmem:[#allocation2 + $0x4a0] sm:$0xff] }
  0xf2   : > { %1609 = vmatpush1.bf16.msra.mxu1 %v976_v57  ;;  %781 = vst.msk [vmem:[#allocation2 + $0x530] sm:$0xff] %vm441_vm1, %v777_v58  ;;  %1320 = vmatprep.subr.bf16.mxu0 %v983_v59  ;;  %v1016_v57 = vld [vmem:[#allocation2 + $0x490] sm:$0xff]  ;;  %v1023_v59 = vld [vmem:[#allocation2 + $0x4c8] sm:$0xff] }
  0xf3   : > { %1610 = vmatprep.subr.bf16.mxu1 %v981_v54  ;;  %v791_v61 = vpop.permute.xlu0 %790  ;;  %v1019_v54 = vld [vmem:[#allocation2 + $0x4a8] sm:$0xff] }
  0xf4   : > { %796 = vst.msk [vmem:[#allocation2 + $0x590] sm:$0xff] %vm441_vm1, %v791_v61  ;;  %856 = vst.msk [vmem:[#allocation2 + $0x558] sm:$0xff] %vm441_vm1, %v791_v61  ;;  %v2216_v58 = vld [vmem:[%s3148_s1 + $0xb0] ss:$28 sps:$4 sm:$0xff]  }
  0xf5   : > { %v793_v1 = vpop.permute.xlu1 %792  ;;  %1321 = vmatpush1.bf16.msra.mxu0 %v982_v62  ;;  %v2219_v61 = vld [vmem:[%s3148_s1 + $0x14] ss:$28 sps:$4 sm:$0xff]   ;;  %v1022_v62 = vld [vmem:[#allocation2 + $0x4c0] sm:$0xff] }
  0xf6   : > { %1611 = vmatpush1.bf16.msra.mxu1 %v980_v63  ;;  %797 = vst.msk [vmem:[#allocation2 + $0x5b0] sm:$0xff] %vm441_vm1, %v793_v1  ;;  %857 = vst.msk [vmem:[#allocation2 + $0x578] sm:$0xff] %vm441_vm1, %v793_v1  ;;  %1322 = vmatprep.subr.bf16.mxu0 %v987_v2  ;;  %v1020_v63 = vld [vmem:[#allocation2 + $0x4b0] sm:$0xff]  ;;  %v1027_v1 = vld [vmem:[#allocation2 + $0x4e8] sm:$0xff] }
  0xf7   : > { %1612 = vmatprep.subr.bf16.mxu1 %v985_v60  ;;  %v799_v4 = vpop.permute.xlu0 %798  ;;  %v1025_v60 = vld [vmem:[#allocation2 + $0x4d8] sm:$0xff] }
  0xf8   : > { %804 = vst.msk [vmem:[#allocation2 + $0x5d0] sm:$0xff] %vm441_vm1, %v799_v4  ;;  %858 = vst.msk [vmem:[#allocation2 + $0x598] sm:$0xff] %vm441_vm1, %v799_v4  ;;  %v1029_v2 = vld [vmem:[#allocation2 + $0x4f8] sm:$0xff]  ;;  %v1024_v4 = vld [vmem:[#allocation2 + $0x4d0] sm:$0xff] }
  0xf9   : > { %v801_v7 = vpop.permute.xlu1 %800  ;;  %1323 = vmatpush1.bf16.msra.mxu0 %v986_v5  ;;  %v1031_v5 = vld [vmem:[#allocation2 + $0x508] sm:$0xff] }
  0xfa   : > { %1613 = vmatpush1.bf16.msra.mxu1 %v984_v6  ;;  %805 = vst.msk [vmem:[#allocation2 + $0x5f0] sm:$0xff] %vm441_vm1, %v801_v7  ;;  %859 = vst.msk [vmem:[#allocation2 + $0x5b8] sm:$0xff] %vm441_vm1, %v801_v7  ;;  %1324 = vmatprep.subr.bf16.mxu0 %v991_v8  ;;  %v1033_v6 = vld [vmem:[#allocation2 + $0x518] sm:$0xff]  ;;  %v1030_v7 = vld [vmem:[#allocation2 + $0x500] sm:$0xff] }
  0xfb   : > { %1614 = vmatprep.subr.bf16.mxu1 %v989_v3  ;;  %v807_v10 = vpop.permute.xlu0 %806  ;;  %v1026_v3 = vld [vmem:[#allocation2 + $0x4e0] sm:$0xff]  ;;  %v1028_v8 = vld [vmem:[#allocation2 + $0x4f0] sm:$0xff] }
  0xfc   : > { %812 = vst.msk [vmem:[#allocation2 + $0x610] sm:$0xff] %vm441_vm1, %v807_v10  ;;  %860 = vst.msk [vmem:[#allocation2 + $0x5d8] sm:$0xff] %vm441_vm1, %v807_v10  ;;  %v1032_v10 = vld [vmem:[#allocation2 + $0x510] sm:$0xff] }
  0xfd   : > { %v809_v13 = vpop.permute.xlu1 %808  ;;  %1325 = vmatpush1.bf16.msra.mxu0 %v990_v11  ;;  %v1037_v11 = vld [vmem:[#allocation2 + $0x538] sm:$0xff]  ;;  %v1048_v28 = vld [vmem:[#allocation2 + $0x590] sm:$0xff] }
  0xfe   : > { %1615 = vmatpush1.bf16.msra.mxu1 %v988_v12  ;;  %813 = vst.msk [vmem:[#allocation2 + $0x630] sm:$0xff] %vm441_vm1, %v809_v13  ;;  %861 = vst.msk [vmem:[#allocation2 + $0x5f8] sm:$0xff] %vm441_vm1, %v809_v13  ;;  %1326 = vmatprep.subr.bf16.mxu0 %v995_v14  ;;  %v1034_v12 = vld [vmem:[#allocation2 + $0x520] sm:$0xff]  ;;  %v1039_v13 = vld [vmem:[#allocation2 + $0x548] sm:$0xff] }
  0xff   : > { %1616 = vmatprep.subr.bf16.mxu1 %v993_v9  ;;  %v863_v17 = vpop.permute.xlu0 %862  ;;  %v1035_v9 = vld [vmem:[#allocation2 + $0x528] sm:$0xff]  ;;  %v1036_v14 = vld [vmem:[#allocation2 + $0x530] sm:$0xff] }
 0x100   : > { %868 = vst.msk [vmem:[#allocation2 + $0x618] sm:$0xff] %vm441_vm1, %v863_v17  ;;  %v1043_v17 = vld [vmem:[#allocation2 + $0x568] sm:$0xff] }
 0x101   : > { %v865_v20 = vpop.permute.xlu1 %864  ;;  %1327 = vmatpush1.bf16.msra.mxu0 %v994_v18  ;;  %v1045_v18 = vld [vmem:[#allocation2 + $0x578] sm:$0xff]  ;;  %v1060_v42 = vld [vmem:[#allocation2 + $0x5f0] sm:$0xff] }
 0x102   : > { %1617 = vmatpush1.bf16.msra.mxu1 %v992_v15  ;;  %869 = vst.msk [vmem:[#allocation2 + $0x638] sm:$0xff] %vm441_vm1, %v865_v20  ;;  %1369 = vmatprep.subr.bf16.mxu0 %v999_v22  ;;  %v1041_v15 = vld [vmem:[#allocation2 + $0x558] sm:$0xff]  ;;  %v1040_v20 = vld [vmem:[#allocation2 + $0x550] sm:$0xff] }
 0x103   : > { %1618 = vmatprep.subr.bf16.mxu1 %v997_v16  ;;  %v1038_v16 = vld [vmem:[#allocation2 + $0x540] sm:$0xff]  ;;  %v1049_v22 = vld [vmem:[#allocation2 + $0x598] sm:$0xff] }
 0x104   : > { %1329 = vmatmul.mubr.bf16.vlgmr.msra.gmra.mrb[0].mxu0 %v2205_v19  ;;  %v1057_v30 = vld [vmem:[#allocation2 + $0x5d8] sm:$0xff] }
 0x105   : > { %1370 = vmatpush1.bf16.msra.mxu0 %v998_v27  ;;  %1338 = vmatprep.mubr.bf16.mxu0 %v2208_v26  ;;  %v1050_v27 = vld [vmem:[#allocation2 + $0x5a0] sm:$0xff] }
 0x106   : > { %1619 = vmatpush1.bf16.msra.mxu1 %v996_v24  ;;  %1371 = vmatprep.subr.bf16.mxu0 %v1003_v29  ;;  %v1044_v24 = vld [vmem:[#allocation2 + $0x570] sm:$0xff]  ;;  %v1055_v29 = vld [vmem:[#allocation2 + $0x5c8] sm:$0xff] }
 0x107   : > { %1661 = vmatprep.subr.bf16.mxu1 %v1001_v25  ;;  %v1051_v25 = vld [vmem:[#allocation2 + $0x5a8] sm:$0xff] }
 0x109   : > { %1621 = vmatmul.mubr.bf16.vlgmr.msra.gmra.mrb[0].mxu1 %v2205_v19  ;;  %1372 = vmatpush1.bf16.msra.mxu0 %v1002_v33  ;;  %v1042_v19 = vld [vmem:[#allocation2 + $0x560] sm:$0xff]  ;;  %v1059_v33 = vld [vmem:[#allocation2 + $0x5e8] sm:$0xff]  ;;  %v1069_v44 = vld [vmem:[#allocation2 + $0x638] sm:$0xff] }
 0x10a   : > { %1662 = vmatpush1.bf16.msra.mxu1 %v1000_v34  ;;  %1373 = vmatprep.subr.bf16.mxu0 %v1007_v36  ;;  %v1061_v34 = vld [vmem:[#allocation2 + $0x5f8] sm:$0xff]  ;;  %v1056_v36 = vld [vmem:[#allocation2 + $0x5d0] sm:$0xff] }
 0x10b   : > { %1663 = vmatprep.subr.bf16.mxu1 %v1005_v31  ;;  %1630 = vmatprep.mubr.bf16.mxu1 %v2208_v26  ;;  %v1053_v26 = vld [vmem:[#allocation2 + $0x5b8] sm:$0xff]  ;;  %v1054_v31 = vld [vmem:[#allocation2 + $0x5c0] sm:$0xff] }
 0x10c   : > { %1339 = vmatmul.mubr.bf16.gmra.mrb[4].mxu0 %v2210_v32 }
 0x10d   : > { %1374 = vmatpush1.bf16.msra.mxu0 %v1006_v40  ;;  %1348 = vmatprep.mubr.bf16.mxu0 %v2211_v39  ;;  %v2220_v40 = vld [vmem:[%s3148_s1 + $0x4c] ss:$28 sps:$4 sm:$0xff]  }
 0x10e   : > { %1664 = vmatpush1.bf16.msra.mxu1 %v1004_v41  ;;  %1375 = vmatprep.subr.bf16.mxu0 %v1011_v43  ;;  %v1062_v41 = vld [vmem:[#allocation2 + $0x600] sm:$0xff]  ;;  %v1067_v43 = vld [vmem:[#allocation2 + $0x628] sm:$0xff] }
 0x10f   : > { %1665 = vmatprep.subr.bf16.mxu1 %v1009_v38  ;;  %v1063_v38 = vld [vmem:[#allocation2 + $0x608] sm:$0xff] }
 0x111   : > { %1631 = vmatmul.mubr.bf16.gmra.mrb[4].mxu1 %v2210_v32  ;;  %1376 = vmatpush1.bf16.msra.mxu0 %v1010_v46  ;;  %v1052_v32 = vld [vmem:[#allocation2 + $0x5b0] sm:$0xff] }
 0x112   : > { %1666 = vmatpush1.bf16.msra.mxu1 %v1008_v47  ;;  %1377 = vmatprep.subr.bf16.mxu0 %v1015_v49  ;;  %v1064_v46 = vld [vmem:[#allocation2 + $0x610] sm:$0xff]  ;;  %v2222_v47 = vld [vmem:[%s3148_s1 + $0x48] ss:$28 sps:$4 sm:$0xff]  }
 0x113   : > { %1667 = vmatprep.subr.bf16.mxu1 %v1013_v45  ;;  %1640 = vmatprep.mubr.bf16.mxu1 %v2211_v39  ;;  %v1065_v39 = vld [vmem:[#allocation2 + $0x618] sm:$0xff]  ;;  %v1066_v45 = vld [vmem:[#allocation2 + $0x620] sm:$0xff]  ;;  %v1068_v49 = vld [vmem:[#allocation2 + $0x630] sm:$0xff] }
 0x114   : > { %1349 = vmatmul.mubr.bf16.gmra.mrb[8].mxu0 %v2213_v48 }
 0x115   : > { %1378 = vmatpush1.bf16.msra.mxu0 %v1014_v52  ;;  %1358 = vmatprep.mubr.bf16.mxu0 %v2214_v51  ;;  %v2228_v52 = vld [vmem:[%s3148_s1 + $0xb8] ss:$28 sps:$4 sm:$0xff]  }
 0x116   : > { %1668 = vmatpush1.bf16.msra.mxu1 %v1012_v53  ;;  %1379 = vmatprep.subr.bf16.mxu0 %v1019_v54  ;;  %v2229_v53 = vld [vmem:[%s3148_s1 + $0x18] ss:$28 sps:$4 sm:$0xff]   ;;  %v2230_v54 = vld [vmem:[%s3148_s1 + $0x50] ss:$28 sps:$4 sm:$0xff]  }
 0x117   : > { %1669 = vmatprep.subr.bf16.mxu1 %v1017_v50  ;;  %v2225_v50 = vld [vmem:[%s3148_s1 + $0x80] ss:$28 sps:$4 sm:$0xff]  }
 0x119   : > { %1641 = vmatmul.mubr.bf16.gmra.mrb[8].mxu1 %v2213_v48  ;;  %1380 = vmatpush1.bf16.msra.mxu0 %v1018_v56  ;;  %v2223_v48 = vld [vmem:[%s3148_s1 + $0x84] ss:$28 sps:$4 sm:$0xff]  }
 0x11a   : > { %1670 = vmatpush1.bf16.msra.mxu1 %v1016_v57  ;;  %1381 = vmatprep.subr.bf16.mxu0 %v1023_v59  ;;  %v2232_v56 = vld [vmem:[%s3148_s1 + $0xc0] ss:$28 sps:$4 sm:$0xff]  }
 0x11b   : > { %1671 = vmatprep.subr.bf16.mxu1 %v1021_v55  ;;  %1650 = vmatprep.mubr.bf16.mxu1 %v2214_v51  ;;  %v2226_v51 = vld [vmem:[%s3148_s1 + $0xbc] ss:$28 sps:$4 sm:$0xff]   ;;  %v2231_v55 = vld [vmem:[%s3148_s1 + $0x88] ss:$28 sps:$4 sm:$0xff]  }
 0x11c   : > { %1359 = vmatmul.mubr.bf16.gmra.mrb[12].mxu0 %v2216_v58 }
 0x11d   : > { %1382 = vmatpush1.bf16.msra.mxu0 %v1022_v62  ;;  %1401 = vmatprep.mubr.bf16.mxu0 %v2219_v61 }
 0x11e   : > { %1672 = vmatpush1.bf16.msra.mxu1 %v1020_v63  ;;  %1383 = vmatprep.subr.bf16.mxu0 %v1027_v1 }
 0x11f   : > { %1673 = vmatprep.subr.bf16.mxu1 %v1025_v60 }
 0x121   : > { %1651 = vmatmul.mubr.bf16.gmra.mrb[12].mxu1 %v2216_v58  ;;  %1384 = vmatpush1.bf16.msra.mxu0 %v1026_v3 }
 0x122   : > { %1674 = vmatpush1.bf16.msra.mxu1 %v1024_v4  ;;  %1385 = vmatprep.subr.bf16.mxu0 %v1031_v5 }
 0x123   : > { %1675 = vmatprep.subr.bf16.mxu1 %v1029_v2  ;;  %1693 = vmatprep.mubr.bf16.mxu1 %v2219_v61 }
 0x125   : > { %1386 = vmatpush1.bf16.msra.mxu0 %v1030_v7 }
 0x126   : > { %1676 = vmatpush1.bf16.msra.mxu1 %v1028_v8  ;;  %1387 = vmatprep.subr.bf16.mxu0 %v1035_v9 }
 0x127   : > { %1677 = vmatprep.subr.bf16.mxu1 %v1033_v6 }
 0x129   : > { %1388 = vmatpush1.bf16.msra.mxu0 %v1034_v12 }
 0x12a   : > { %1678 = vmatpush1.bf16.msra.mxu1 %v1032_v10  ;;  %1389 = vmatprep.subr.bf16.mxu0 %v1039_v13 }
 0x12b   : > { %1679 = vmatprep.subr.bf16.mxu1 %v1037_v11 }
 0x12d   : > { %1390 = vmatpush1.bf16.msra.mxu0 %v1038_v16 }
 0x12e   : > { %1680 = vmatpush1.bf16.msra.mxu1 %v1036_v14  ;;  %1391 = vmatprep.subr.bf16.mxu0 %v1043_v17 }
 0x12f   : > { %1681 = vmatprep.subr.bf16.mxu1 %v1041_v15 }
 0x131   : > { %1392 = vmatpush1.bf16.msra.mxu0 %v1042_v19 }
 0x132   : > { %1682 = vmatpush1.bf16.msra.mxu1 %v1040_v20  ;;  %1393 = vmatprep.subr.bf16.mxu0 %v1047_v21 }
 0x133   : > { %1683 = vmatprep.subr.bf16.mxu1 %v1045_v18 }
 0x135   : > { %1394 = vmatpush1.bf16.msra.mxu0 %v1046_v23 }
 0x136   : > { %1684 = vmatpush1.bf16.msra.mxu1 %v1044_v24  ;;  %1395 = vmatprep.subr.bf16.mxu0 %v1051_v25 }
 0x137   : > { %1685 = vmatprep.subr.bf16.mxu1 %v1049_v22 }
 0x139   : > { %1396 = vmatpush1.bf16.msra.mxu0 %v1050_v27 }
 0x13a   : > { %1686 = vmatpush1.bf16.msra.mxu1 %v1048_v28  ;;  %1397 = vmatprep.subr.bf16.mxu0 %v1055_v29 }
 0x13b   : > { %1687 = vmatprep.subr.bf16.mxu1 %v1053_v26 }
 0x13d   : > { %1398 = vmatpush1.bf16.msra.mxu0 %v1054_v31 }
 0x13e   : > { %1688 = vmatpush1.bf16.msra.mxu1 %v1052_v32  ;;  %1399 = vmatprep.subr.bf16.mxu0 %v1059_v33 }
 0x13f   : > { %1689 = vmatprep.subr.bf16.mxu1 %v1057_v30 }
 0x141   : > { %1400 = vmatpush1.bf16.msra.mxu0 %v1058_v35 }
 0x142   : > { %1690 = vmatpush1.bf16.msra.mxu1 %v1056_v36  ;;  %1442 = vmatprep.subr.bf16.mxu0 %v1063_v38 }
 0x143   : > { %1691 = vmatprep.subr.bf16.mxu1 %v1061_v34 }
 0x144   : > { %1402 = vmatmul.mubr.bf16.vlgmr.msra.gmra.mrb[0].mxu0 %v2217_v37 }
 0x145   : > { %1443 = vmatpush1.bf16.msra.mxu0 %v1062_v41  ;;  %1411 = vmatprep.mubr.bf16.mxu0 %v2220_v40 }
 0x146   : > { %1692 = vmatpush1.bf16.msra.mxu1 %v1060_v42  ;;  %1444 = vmatprep.subr.bf16.mxu0 %v1067_v43 }
 0x147   : > { %1734 = vmatprep.subr.bf16.mxu1 %v1065_v39 }
 0x149   : > { %1694 = vmatmul.mubr.bf16.vlgmr.msra.gmra.mrb[0].mxu1 %v2217_v37  ;;  %1445 = vmatpush1.bf16.msra.mxu0 %v1066_v45 }
 0x14a   : > { %1735 = vmatpush1.bf16.msra.mxu1 %v1064_v46  ;;  %1703 = vmatprep.mubr.bf16.mxu1 %v2220_v40 }
 0x14b   : > { %1736 = vmatprep.subr.bf16.mxu1 %v1069_v44 }
 0x14c   : > { %1412 = vmatmul.mubr.bf16.gmra.mrb[4].mxu0 %v2222_v47 }
 0x14d   : > { %1421 = vmatprep.mubr.bf16.mxu0 %v2223_v48 }
 0x14e   : > { %1737 = vmatpush1.bf16.msra.mxu1 %v1068_v49 }
 0x151   : > { %1704 = vmatmul.mubr.bf16.gmra.mrb[4].mxu1 %v2222_v47 }
 0x152   : > { %1713 = vmatprep.mubr.bf16.mxu1 %v2223_v48 }
 0x154   : > { %1422 = vmatmul.mubr.bf16.gmra.mrb[8].mxu0 %v2225_v50 }
 0x155   : > { %1431 = vmatprep.mubr.bf16.mxu0 %v2226_v51 }
 0x159   : > { %1714 = vmatmul.mubr.bf16.gmra.mrb[8].mxu1 %v2225_v50 }
 0x15a   : > { %1723 = vmatprep.mubr.bf16.mxu1 %v2226_v51 }
 0x15c   : > { %1432 = vmatmul.mubr.bf16.gmra.mrb[12].mxu0 %v2228_v52 }
 0x15d   : > { %1474 = vmatprep.mubr.bf16.mxu0 %v2241_v0 }
 0x15e   : > { %v1839_v9 = vpop.permute.xlu1 %1838 }
 0x161   : > { %1724 = vmatmul.mubr.bf16.gmra.mrb[12].mxu1 %v2228_v52 }
 0x162   : > { %1766 = vmatprep.mubr.bf16.mxu1 %v2241_v0 }
 0x163   : > { %v1834_v7 = vpop.permute.xlu0 %1833  ;;  %v1844_v27 = vpop.permute.xlu1 %1843 }
 0x164   : > { %2019 = vmatmul.mubr.msk.bf16.vlgmr.msra.gmra.mrb[0].mxu0 %vm1210_vm2, %v2229_v53 }
 0x165   : > { %1484 = vmatprep.mubr.bf16.mxu0 %v2241_v0 }
 0x167   : > { %v1849_v31 = vpop.permute.xlu0 %1848  ;;  %v1854_v46 = vpop.permute.xlu1 %1853 }
 0x169   : > { %2023 = vmatmul.mubr.msk.bf16.vlgmr.msra.gmra.mrb[0].mxu1 %vm1210_vm2, %v2229_v53 }
 0x16a   : > { %1776 = vmatprep.mubr.bf16.mxu1 %v2241_v0 }
 0x16b   : > { %v1859_v50 = vpop.permute.xlu0 %1858 }
 0x16c   : > { %2020 = vmatmul.mubr.msk.bf16.gmra.mrb[4].mxu0 %vm1210_vm2, %v2230_v54 }
 0x16d   : > { %1494 = vmatprep.mubr.bf16.mxu0 %v2241_v0 }
 0x171   : > { %2024 = vmatmul.mubr.msk.bf16.gmra.mrb[4].mxu1 %vm1210_vm2, %v2230_v54 }
 0x172   : > { %1786 = vmatprep.mubr.bf16.mxu1 %v2241_v0 }
 0x174   : > { %2021 = vmatmul.mubr.msk.bf16.gmra.mrb[8].mxu0 %vm1210_vm2, %v2231_v55 }
 0x175   : > { %1504 = vmatprep.mubr.bf16.mxu0 %v2241_v0 }
 0x179   : > { %2025 = vmatmul.mubr.msk.bf16.gmra.mrb[8].mxu1 %vm1210_vm2, %v2231_v55 }
 0x17a   : > { %1796 = vmatprep.mubr.bf16.mxu1 %v2241_v0 }
 0x17c   : > { %2022 = vmatmul.mubr.msk.bf16.gmra.mrb[12].mxu0 %vm1210_vm2, %v2232_v56 }
 0x181   : > { %2026 = vmatmul.mubr.msk.bf16.gmra.mrb[12].mxu1 %vm1210_vm2, %v2232_v56 }
 0x237   : > { %v1476_v57 = vpop.f32.mrb[0].mxu0 }
 0x238   : > { %v1478_v58 = vpop.f32.mrb[1].mxu0 }
 0x239   : > { %v1807_v59 = vmax.f32 %v1476_v57, %v1478_v58  ;;  %v1480_v60 = vpop.f32.mrb[2].mxu0 }
 0x23a   : > { %v1482_v61 = vpop.f32.mrb[3].mxu0 }
 0x23b   : > { %v1808_v62 = vmax.f32 %v1480_v60, %v1482_v61 }
 0x23c   : > { %v1768_v63 = vpop.f32.mrb[0].mxu1 }
 0x23d   : > { %v1770_v1 = vpop.f32.mrb[1].mxu1 }
 0x23e   : > { %v1815_v2 = vmax.f32 %v1768_v63, %v1770_v1  ;;  %v1772_v3 = vpop.f32.mrb[2].mxu1  ;;  %v1864_v1 = vpop.permute.xlu1 %1863 }
 0x23f   : > { %v1774_v4 = vpop.f32.mrb[3].mxu1  ;;  %v1486_v6 = vpop.f32.mrb[4].mxu0 }
 0x240   : > { %v1816_v5 = vmax.f32 %v1772_v3, %v1774_v4  ;;  %v1823_v0 = vmax.f32 %v1807_v59, %v1815_v2  ;;  %v1488_v8 = vpop.f32.mrb[5].mxu0  ;;  %v1869_v2 = vpop.permute.xlu0 %1868 }
 0x241   : > { %v1809_v10 = vmax.f32 %v1486_v6, %v1488_v8  ;;  %v1490_v11 = vpop.f32.mrb[6].mxu0 }
 0x242   : > { %v1824_v12 = vmax.f32 %v1808_v62, %v1816_v5  ;;  %v1492_v13 = vpop.f32.mrb[7].mxu0  ;;  %v1871_v14 = vadd.f32 %v1834_v7, %v1823_v0 }
 0x243   : > { %v1810_v16 = vmax.f32 %v1490_v11, %v1492_v13 }
 0x244   : > { %v1872_v15 = vadd.f32 %v1839_v9, %v1824_v12  ;;  %v1778_v17 = vpop.f32.mrb[4].mxu1 }
 0x245   : > { %v1780_v18 = vpop.f32.mrb[5].mxu1 }
 0x246   : > { %v2050_v19 = vpack.c.bf16 %v1872_v15, %v1871_v14  ;;  %v1817_v20 = vmax.f32 %v1778_v17, %v1780_v18  ;;  %v1782_v21 = vpop.f32.mrb[6].mxu1 }
 0x247   : > { %v1784_v22 = vpop.f32.mrb[7].mxu1  ;;  %v1496_v25 = vpop.f32.mrb[8].mxu0 }
 0x248   : > { %2051 = vst [vmem:[%s3138_s27] sm:$0xff] %v2050_v19   ;;  %v1818_v23 = vmax.f32 %v1782_v21, %v1784_v22  ;;  %v1825_v24 = vmax.f32 %v1809_v10, %v1817_v20  ;;  %v1498_v26 = vpop.f32.mrb[9].mxu0 }
 0x249   : > { %v1811_v29 = vmax.f32 %v1496_v25, %v1498_v26  ;;  %v1500_v30 = vpop.f32.mrb[10].mxu0 }
 0x24a   : > { %v1826_v28 = vmax.f32 %v1810_v16, %v1818_v23  ;;  %v1502_v32 = vpop.f32.mrb[11].mxu0  ;;  %v1873_v33 = vadd.f32 %v1844_v27, %v1825_v24 }
 0x24b   : > { %v1812_v35 = vmax.f32 %v1500_v30, %v1502_v32 }
 0x24c   : > { %v1874_v34 = vadd.f32 %v1849_v31, %v1826_v28  ;;  %v1788_v36 = vpop.f32.mrb[8].mxu1 }
 0x24d   : > { %v1790_v37 = vpop.f32.mrb[9].mxu1 }
 0x24e   : > { %v2055_v38 = vpack.c.bf16 %v1874_v34, %v1873_v33  ;;  %v1819_v39 = vmax.f32 %v1788_v36, %v1790_v37  ;;  %v1792_v40 = vpop.f32.mrb[10].mxu1 }
 0x24f   : > { %v1794_v41 = vpop.f32.mrb[11].mxu1  ;;  %v1506_v44 = vpop.f32.mrb[12].mxu0 }
 0x250   : > { %2067 = vst [vmem:[%s3138_s27 + $0x8] sm:$0xff] %v2055_v38   ;;  %v1827_v42 = vmax.f32 %v1811_v29, %v1819_v39  ;;  %v1820_v43 = vmax.f32 %v1792_v40, %v1794_v41  ;;  %v1508_v45 = vpop.f32.mrb[13].mxu0 }
 0x251   : > { %v1813_v48 = vmax.f32 %v1506_v44, %v1508_v45  ;;  %v1510_v49 = vpop.f32.mrb[14].mxu0 }
 0x252   : > { %v1828_v47 = vmax.f32 %v1812_v35, %v1820_v43  ;;  %v1512_v51 = vpop.f32.mrb[15].mxu0  ;;  %v1875_v52 = vadd.f32 %v1854_v46, %v1827_v42 }
 0x253   : > { %v1814_v54 = vmax.f32 %v1510_v49, %v1512_v51 }
 0x254   : > { %v1876_v53 = vadd.f32 %v1859_v50, %v1828_v47  ;;  %v1798_v55 = vpop.f32.mrb[12].mxu1 }
 0x255   : > { %v1800_v56 = vpop.f32.mrb[13].mxu1 }
 0x256   : > { %v2060_v57 = vpack.c.bf16 %v1876_v53, %v1875_v52  ;;  %v1821_v58 = vmax.f32 %v1798_v55, %v1800_v56  ;;  %v1802_v59 = vpop.f32.mrb[14].mxu1 }
 0x257   : > { %v1804_v60 = vpop.f32.mrb[15].mxu1 }
 0x258   : > { %2068 = vst [vmem:[%s3138_s27 + $0x10] sm:$0xff] %v2060_v57   ;;  %v1829_v61 = vmax.f32 %v1813_v48, %v1821_v58  ;;  %v1822_v62 = vmax.f32 %v1802_v59, %v1804_v60 }
 0x25a   : > { %v1830_v63 = vmax.f32 %v1814_v54, %v1822_v62  ;;  %v1877_v3 = vadd.f32 %v1864_v1, %v1829_v61 }
 0x25c   : > { %v1878_v4 = vadd.f32 %v1869_v2, %v1830_v63 }
 0x25e   : > { %v2065_v5 = vpack.c.bf16 %v1878_v4, %v1877_v3 }
 0x260   : > { %2069 = vst [vmem:[%s3138_s27 + $0x18] sm:$0xff] %v2065_v5  }
 0x261 PF: > { %s13_s12 = sadd.s32 1, %s2239_s12  }
 0x262   : > { %p10_p4 = scmp.ge.s32.totalorder %s13_s12, 4  }
 0x264   :  { %12 = sbr.rel (!%p10_p4) target bundleno = 1 (0x1), region = 62 }

</bundles_post_ra>
